<compile_context>
chip_gen: v7x
topology: tpu7x:2x2x1
jax: 0.10.0
libtpu: 0.0.40
codegen_flags: <defaults>
</compile_context>

<pallas_src>
import functools
import numpy as np

import jax
import jax.numpy as jnp
from jax.experimental import pallas as pl
from jax.experimental.pallas import tpu as pltpu

EPS = 1e-5                                    # nn.BatchNorm2d default eps
LRELU_SLOPE = 0.2                             # nn.LeakyReLU(0.2)
BN_SCALE = float(1.0 / np.sqrt(1.0 + EPS))    # gamma / sqrt(var + eps) with defaults
MM_DTYPE = jnp.bfloat16                       # MXU operand dtype (f32 accumulation)


# ----------------------------------------------------------------------------
# Pallas kernels
# ----------------------------------------------------------------------------
def _conv_mm_kernel(*refs, n_in, slope):
    """Conv-as-one-matmul + per-channel shift + LeakyReLU.

    refs = (x_1..x_n, w_1..w_n, shift, out):
      x_t:   (1, TP, K_t)  fused im2col tile, K_t = kh*kw*Cin_t          (bf16)
      w_t:   (K_t, Cout)   reshaped HWIO weight, BN scale pre-folded     (bf16)
      shift: (1, Cout)     bias (+ folded BN shift)                      (f32)
      out:   (1, TP, Cout)                                               (f32)
    n_in == 2 realizes conv(concat([a, b], ch)) = conv(a, wa) + conv(b, wb),
    so the channel concat is never materialized in HBM.
    """
    o_ref = refs[-1]
    shift_ref = refs[-2]
    acc = jnp.dot(refs[0][0], refs[n_in][...], preferred_element_type=jnp.float32)
    for t in range(1, n_in):
        acc = acc + jnp.dot(refs[t][0], refs[n_in + t][...],
                            preferred_element_type=jnp.float32)
    y = acc + shift_ref[...]
    if slope != 1.0:
        y = jnp.where(y >= 0.0, y, slope * y)   # LeakyReLU; slope==1.0 -> identity
    o_ref[0] = y.astype(o_ref.dtype)


def _maxpool_kernel(x_ref, o_ref, *, C):
    # x_ref: (1, Ho, 2, Wo, 2*C): the 2x2 window is (row-parity dim 2) x
    # (low/high half of the last dim). The wrapper only reshapes (no strided copy).
    top = x_ref[0, :, 0]                       # (Ho, Wo, 2C) even input rows
    bot = x_ref[0, :, 1]                       # (Ho, Wo, 2C) odd input rows
    m = jnp.maximum(top, bot)
    o_ref[0] = jnp.maximum(m[:, :, :C], m[:, :, C:])


# ----------------------------------------------------------------------------
# Pallas wrappers
# ----------------------------------------------------------------------------
def _tile_p(P):
    """Largest multiple-of-8 tile of the flattened spatial dim that divides P."""
    for tp in (512, 256, 128):
        if P % tp == 0:
            return tp
    return P


def _conv_matmul(pats, ws, shift, slope, out_dtype=jnp.float32):
    """pallas_call driver: out[n, p, :] = act(sum_t pats[t][n, p, :] @ ws[t] + shift)."""
    N, P, _ = pats[0].shape
    Cout = ws[0].shape[-1]
    TP = _tile_p(P)
    n_in = len(pats)
    in_specs = (
        [pl.BlockSpec((1, TP, p.shape[-1]), lambda n, t: (n, t, 0)) for p in pats]
        + [pl.BlockSpec((w.shape[0], Cout), lambda n, t: (0, 0)) for w in ws]
        + [pl.BlockSpec((1, Cout), lambda n, t: (0, 0))]
    )
    kernel = functools.partial(_conv_mm_kernel, n_in=n_in, slope=float(slope))
    return pl.pallas_call(
        kernel,
        out_shape=jax.ShapeDtypeStruct((N, P, Cout), out_dtype),
        grid=(N, P // TP),
        in_specs=in_specs,
        out_specs=pl.BlockSpec((1, TP, Cout), lambda n, t: (n, t, 0)),
        compiler_params=pltpu.CompilerParams(
            dimension_semantics=("parallel", "parallel"),
            vmem_limit_bytes=32 * 1024 * 1024,   # blocks are <= a few MB, v7x-safe
        ),
    )(*pats, *ws, shift.reshape(1, Cout))


def _im2col(xp, kh, kw):
    """(N, Hp, Wp, Cin) padded NHWC -> (N, P, kh*kw*Cin) bf16 patches (fused-K layout)."""
    N, Hp, Wp, Cin = xp.shape
    Ho, Wo = Hp - kh + 1, Wp - kw + 1
    taps = [xp[:, i:i + Ho, j:j + Wo, :] for i in range(kh) for j in range(kw)]
    pat = jnp.stack(taps, axis=3).reshape(N, Ho * Wo, kh * kw * Cin)
    return pat.astype(MM_DTYPE), Ho, Wo


def conv3x3_bn_lrelu(x, w, b):
    """Conv2d(3x3, pad=1) + Dropout2d(eval=id) + BatchNorm2d(eval defaults) + LeakyReLU(0.2)."""
    N = x.shape[0]
    Cout = w.shape[-1]
    pat, Ho, Wo = _im2col(jnp.pad(x, ((0, 0), (1, 1), (1, 1), (0, 0))), 3, 3)
    w2 = (w.reshape(-1, Cout) * BN_SCALE).astype(MM_DTYPE)   # BN scale folded into weight
    shift = (b * BN_SCALE).astype(jnp.float32)
    out = _conv_matmul([pat], [w2], shift, LRELU_SLOPE)
    return out.reshape(N, Ho, Wo, Cout)


def conv3x3_bn_lrelu_cat(a, b, w, bias):
    """Same as conv3x3_bn_lrelu but over channel-concat [a, b] without building the concat."""
    N = a.shape[0]
    Ca = a.shape[-1]
    Cout = w.shape[-1]
    pa, Ho, Wo = _im2col(jnp.pad(a, ((0, 0), (1, 1), (1, 1), (0, 0))), 3, 3)
    pb, _, _ = _im2col(jnp.pad(b, ((0, 0), (1, 1), (1, 1), (0, 0))), 3, 3)
    wa = (w[:, :, :Ca, :].reshape(-1, Cout) * BN_SCALE).astype(MM_DTYPE)
    wb = (w[:, :, Ca:, :].reshape(-1, Cout) * BN_SCALE).astype(MM_DTYPE)
    shift = (bias * BN_SCALE).astype(jnp.float32)
    out = _conv_matmul([pa, pb], [wa, wb], shift, LRELU_SLOPE)
    return out.reshape(N, Ho, Wo, Cout)


def conv1x1(x, w, b):
    """Conv2d(1x1) + Dropout2d(eval=id): no BN, no activation."""
    N, H, W, Cin = x.shape
    Cout = w.shape[-1]
    pat = x.reshape(N, H * W, Cin).astype(MM_DTYPE)
    w2 = w.reshape(Cin, Cout).astype(MM_DTYPE)
    out = _conv_matmul([pat], [w2], b.astype(jnp.float32), 1.0)
    return out.reshape(N, H, W, Cout)


def deconv4x4_s2(x, wt, b):
    """nn.ConvTranspose2d(Cin, Cout, k=4, s=2, p=1), one fused pallas_call.

    Output pixel (2m+a, 2n+c) only depends on the 3x3 input neighborhood around (m, n)
    (per axis: even outputs use kernel taps {3,1} on inputs {m-1, m}; odd outputs use
    taps {2,0} on inputs {m, m+1}).  All four stride phases are therefore computed by a
    single (P, 9*Cin) x (9*Cin, 4*Cout) matmul against a block-sparse rearranged weight,
    followed by a depth-to-space interleave.  wt has PyTorch layout (Cin, Cout, 4, 4).
    """
    N, H, W, Cin = x.shape
    Cout = wt.shape[1]
    w_hwio = jnp.transpose(wt, (2, 3, 0, 1))      # (4, 4, Cin, Cout)
    taps = ((3, 1), (2, 0))   # phase 0 (even out): inputs {m-1, m} x kernel taps {3, 1}
                              # phase 1 (odd  out): inputs {m, m+1} x kernel taps {2, 0}
    # Block-sparse weight: wbig[row_off, col_off, cin, a, c, cout]. For phase (a, c) the
    # input row offset in the pad-1 3x3 patch frame is a + i (i in {0,1}), pairing with
    # kernel tap taps[a][i] (same for columns).
    wbig = jnp.zeros((3, 3, Cin, 2, 2, Cout), jnp.float32)
    for a in range(2):
        for i in range(2):
            for c in range(2):
                for j in range(2):
                    wbig = wbig.at[a + i, c + j, :, a, c, :].set(
                        w_hwio[taps[a][i], taps[c][j]])
    w2 = wbig.reshape(9 * Cin, 4 * Cout).astype(MM_DTYPE)
    shift = jnp.tile(b.astype(jnp.float32), 4)    # each phase gets the bias once

    pat, Ho, Wo = _im2col(jnp.pad(x, ((0, 0), (1, 1), (1, 1), (0, 0))), 3, 3)
    y = _conv_matmul([pat], [w2], shift, 1.0)     # (N, H*W, 4*Cout)
    y = y.reshape(N, Ho, Wo, 2, 2, Cout)
    y = jnp.transpose(y, (0, 1, 3, 2, 4, 5))      # (N, H, 2, W, 2, Cout)
    return y.reshape(N, 2 * H, 2 * W, Cout)


def maxpool2x2(x):
    """nn.MaxPool2d(kernel_size=2) on NHWC input."""
    N, H, W, C = x.shape
    Ho, Wo = H // 2, W // 2
    xr = x.reshape(N, Ho, 2, Wo, 2 * C)           # pure reshape, no strided HBM copy
    return pl.pallas_call(
        functools.partial(_maxpool_kernel, C=C),
        out_shape=jax.ShapeDtypeStruct((N, Ho, Wo, C), x.dtype),
        grid=(N,),
        in_specs=[pl.BlockSpec((1, Ho, 2, Wo, 2 * C), lambda n: (n, 0, 0, 0, 0))],
        out_specs=pl.BlockSpec((1, Ho, Wo, C), lambda n: (n, 0, 0, 0)),
        compiler_params=pltpu.CompilerParams(dimension_semantics=("parallel",)),
    )(xr)


# ----------------------------------------------------------------------------
# Deterministic parameter construction (shapes from the module __init__)
# ----------------------------------------------------------------------------
class KeyGen:
    def __init__(self, key):
        self.key = key

    def __call__(self):
        self.key, k = jax.random.split(self.key)
        return k


def conv_p(kg, kh, kw, cin, cout):
    fan_in = kh * kw * cin
    w = jax.random.normal(kg(), (kh, kw, cin, cout), jnp.float32) / np.sqrt(fan_in)
    b = jax.random.normal(kg(), (cout,), jnp.float32) * 0.01
    return {"w": w, "b": b}


def deconv_p(kg, cin, cout):
    fan_in = 4 * 4 * cin
    w = jax.random.normal(kg(), (cin, cout, 4, 4), jnp.float32) / np.sqrt(fan_in)
    b = jax.random.normal(kg(), (cout,), jnp.float32) * 0.01
    return {"w": w, "b": b}


def init_params(kg, C, F):
    p = {}
    p["d1"] = conv_p(kg, 3, 3, C, F)           # conv_down1
    p["d2"] = conv_p(kg, 3, 3, F, F)           # conv_down2
    p["d3"] = conv_p(kg, 3, 3, F, F)           # conv_down3_4
    p["d4"] = conv_p(kg, 3, 3, F, 2 * F)
    p["d5"] = conv_p(kg, 3, 3, 2 * F, 2 * F)   # conv_down5_6_7
    p["d6"] = conv_p(kg, 3, 3, 2 * F, 2 * F)
    p["d7"] = conv_p(kg, 3, 3, 2 * F, 4 * F)
    p["d8"] = conv_p(kg, 3, 3, 4 * F, 4 * F)   # conv_down8_9_10
    p["d9"] = conv_p(kg, 3, 3, 4 * F, 4 * F)
    p["d10"] = conv_p(kg, 3, 3, 4 * F, 8 * F)
    p["d11"] = conv_p(kg, 3, 3, 8 * F, 8 * F)  # conv_down11_12_13
    p["d12"] = conv_p(kg, 3, 3, 8 * F, 8 * F)
    p["d13"] = conv_p(kg, 3, 3, 8 * F, 8 * F)
    p["d14"] = conv_p(kg, 3, 3, 8 * F, 8 * F)  # conv_down14_15_16
    p["d15"] = conv_p(kg, 3, 3, 8 * F, 8 * F)
    p["d16"] = conv_p(kg, 3, 3, 8 * F, 8 * F)
    p["up1"] = deconv_p(kg, 8 * F, 8 * F)      # upconcat1.deconv
    p["u1"] = conv_p(kg, 3, 3, 16 * F, 16 * F) # conv_up1_2_3
    p["u2"] = conv_p(kg, 3, 3, 16 * F, 16 * F)
    p["u3"] = conv_p(kg, 3, 3, 16 * F, 4 * F)
    p["up2"] = deconv_p(kg, 4 * F, 4 * F)      # upconcat2.deconv
    p["u4"] = conv_p(kg, 3, 3, 8 * F, 8 * F)   # conv_up4_5_6
    p["u5"] = conv_p(kg, 3, 3, 8 * F, 8 * F)
    p["u6"] = conv_p(kg, 3, 3, 8 * F, 2 * F)
    p["up3"] = deconv_p(kg, 2 * F, 2 * F)      # upconcat3.deconv
    p["u7"] = conv_p(kg, 3, 3, 4 * F, 4 * F)   # conv_up7_8
    p["u8"] = conv_p(kg, 3, 3, 4 * F, F)
    p["up4"] = deconv_p(kg, F, F)              # upconcat4.deconv
    p["u9"] = conv_p(kg, 3, 3, 2 * F, 2 * F)   # conv_up9_10
    p["u10"] = conv_p(kg, 3, 3, 2 * F, F)
    p["final"] = conv_p(kg, 1, 1, F, 1)        # final 1x1 conv
    return p


# ----------------------------------------------------------------------------
# Generator forward
# ----------------------------------------------------------------------------
def generator_forward(params, x_nchw):
    x = jnp.transpose(x_nchw, (0, 2, 3, 1))  # NCHW -> NHWC

    def c(name, t):
        return conv3x3_bn_lrelu(t, params[name]["w"], params[name]["b"])

    d1 = c("d1", x); d2 = c("d2", d1)
    mp1 = maxpool2x2(d2)
    d3 = c("d3", mp1); d4 = c("d4", d3)
    mp2 = maxpool2x2(d4)
    d5 = c("d5", mp2); d6 = c("d6", d5); d7 = c("d7", d6)
    mp3 = maxpool2x2(d7)
    d8 = c("d8", mp3); d9 = c("d9", d8); d10 = c("d10", d9)
    mp4 = maxpool2x2(d10)
    d11 = c("d11", mp4); d12 = c("d12", d11); d13 = c("d13", d12)
    d14 = c("d14", d13); d15 = c("d15", d14); d16 = c("d16", d15)

    # torch.cat([down, deconv], 1) is folded into the following conv (weight split).
    up1 = deconv4x4_s2(d16, params["up1"]["w"], params["up1"]["b"])
    u1 = conv3x3_bn_lrelu_cat(d10, up1, params["u1"]["w"], params["u1"]["b"])
    u2 = c("u2", u1); u3 = c("u3", u2)

    up2 = deconv4x4_s2(u3, params["up2"]["w"], params["up2"]["b"])
    u4 = conv3x3_bn_lrelu_cat(d7, up2, params["u4"]["w"], params["u4"]["b"])
    u5 = c("u5", u4); u6 = c("u6", u5)

    up3 = deconv4x4_s2(u6, params["up3"]["w"], params["up3"]["b"])
    u7 = conv3x3_bn_lrelu_cat(d4, up3, params["u7"]["w"], params["u7"]["b"])
    u8 = c("u8", u7)

    up4 = deconv4x4_s2(u8, params["up4"]["w"], params["up4"]["b"])
    u9 = conv3x3_bn_lrelu_cat(d2, up4, params["u9"]["w"], params["u9"]["b"])
    u10 = c("u10", u9)

    out = conv1x1(u10, params["final"]["w"], params["final"]["b"])
    return jnp.transpose(out, (0, 3, 1, 2))  # NHWC -> NCHW


# ----------------------------------------------------------------------------
if __name__ == "__main__":
    N, C, H, W = 2, 1, 16, 16   # 4 maxpools -> spatial must be divisible by 16
    F = 8                        # initial_features

    key = jax.random.PRNGKey(0)
    kx, kp = jax.random.split(key)
    x = jax.random.normal(kx, (N, C, H, W), jnp.float32)

    params = init_params(KeyGen(kp), C, F)

    fwd = jax.jit(functools.partial(generator_forward, params))
    out = fwd(x)
    out = jax.block_until_ready(out)

    assert out.shape == (N, 1, H, W), out.shape
    assert bool(jnp.all(jnp.isfinite(out)))
    print("KERNEL_OK")
</pallas_src>

<mosaic_0001>
module attributes {stable_mosaic.version = 11 : i64} {
  func.func @_conv_mm_kernel(%arg0: i32, %arg1: i32, %arg2: memref<1x256x9xbf16, #tpu.memory_space<vmem>>, %arg3: memref<9x8xbf16, #tpu.memory_space<vmem>>, %arg4: memref<1x8xf32, #tpu.memory_space<vmem>>, %arg5: memref<1x256x8xf32, #tpu.memory_space<vmem>>) attributes {dimension_semantics = [#tpu.dimension_semantics<parallel>, #tpu.dimension_semantics<parallel>], iteration_bounds = array<i64: 2, 1>, scalar_prefetch = 0 : i64, scratch_operands = 0 : i64, tpu.core_type = #tpu.core_type<tc>, window_params = [{transform_indices = @transform_0, window_bounds = array<i64: 1, 256, 9>}, {pipeline_mode = #tpu.pipeline_mode<synchronous>, transform_indices = @transform_1, window_bounds = array<i64: 9, 8>}, {pipeline_mode = #tpu.pipeline_mode<synchronous>, transform_indices = @transform_2, window_bounds = array<i64: 1, 8>}, {transform_indices = @transform_3, window_bounds = array<i64: 1, 256, 8>}]} {
    %c0 = arith.constant 0 : index
    %c0_0 = arith.constant 0 : index
    %c0_1 = arith.constant 0 : index
    %0 = vector.load %arg2[%c0, %c0_0, %c0_1] : memref<1x256x9xbf16, #tpu.memory_space<vmem>>, vector<1x256x9xbf16>
    %1 = vector.shape_cast %0 : vector<1x256x9xbf16> to vector<256x9xbf16>
    %c0_2 = arith.constant 0 : index
    %c0_3 = arith.constant 0 : index
    %2 = vector.load %arg3[%c0_2, %c0_3] : memref<9x8xbf16, #tpu.memory_space<vmem>>, vector<9x8xbf16>
    %cst = arith.constant dense<0.000000e+00> : vector<256x8xf32>
    %3 = tpu.matmul %1, %2, %cst {dimension_numbers = #tpu.dot_dimension_numbers<[1], [0], [0], [1], [0, 0, 1, 1], [], []>} : vector<256x9xbf16>, vector<9x8xbf16>, vector<256x8xf32> -> vector<256x8xf32>
    %c0_4 = arith.constant 0 : index
    %c0_5 = arith.constant 0 : index
    %4 = vector.load %arg4[%c0_4, %c0_5] : memref<1x8xf32, #tpu.memory_space<vmem>>, vector<1x8xf32>
    %5 = vector.broadcast %4 : vector<1x8xf32> to vector<256x8xf32>
    %6 = arith.addf %3, %5 : vector<256x8xf32>
    %cst_6 = arith.constant 0.000000e+00 : f32
    %7 = vector.broadcast %cst_6 : f32 to vector<256x8xf32>
    %8 = arith.cmpf oge, %6, %7 : vector<256x8xf32>
    %cst_7 = arith.constant 2.000000e-01 : f32
    %9 = vector.broadcast %cst_7 : f32 to vector<256x8xf32>
    %10 = arith.mulf %9, %6 : vector<256x8xf32>
    %11 = arith.select %8, %6, %10 : vector<256x8xi1>, vector<256x8xf32>
    %c0_8 = arith.constant 0 : index
    %c0_9 = arith.constant 0 : index
    %c0_10 = arith.constant 0 : index
    %12 = vector.load %arg5[%c0_8, %c0_9, %c0_10] : memref<1x256x8xf32, #tpu.memory_space<vmem>>, vector<1x256x8xf32>
    %13 = vector.shape_cast %12 : vector<1x256x8xf32> to vector<256x8xf32>
    %14 = vector.shape_cast %11 : vector<256x8xf32> to vector<1x256x8xf32>
    tpu.vector_store %arg5[%c0_8, %c0_9, %c0_10], %14 {strides = array<i32>} : memref<1x256x8xf32, #tpu.memory_space<vmem>>, vector<1x256x8xf32>,
    return
  }
  func.func @transform_0(%arg0: i32, %arg1: i32) -> (i32, i32, i32) {
    %c0_i32 = arith.constant 0 : i32
    %c0_i32_0 = arith.constant 0 : i32
    return %arg0, %arg1, %c0_i32 : i32, i32, i32
  }
  func.func @transform_1(%arg0: i32, %arg1: i32) -> (i32, i32) {
    %c0_i32 = arith.constant 0 : i32
    %c0_i32_0 = arith.constant 0 : i32
    %c0_i32_1 = arith.constant 0 : i32
    return %c0_i32, %c0_i32_0 : i32, i32
  }
  func.func @transform_2(%arg0: i32, %arg1: i32) -> (i32, i32) {
    %c0_i32 = arith.constant 0 : i32
    %c0_i32_0 = arith.constant 0 : i32
    %c0_i32_1 = arith.constant 0 : i32
    return %c0_i32, %c0_i32_0 : i32, i32
  }
  func.func @transform_3(%arg0: i32, %arg1: i32) -> (i32, i32, i32) {
    %c0_i32 = arith.constant 0 : i32
    %c0_i32_0 = arith.constant 0 : i32
    return %arg0, %arg1, %c0_i32 : i32, i32, i32
  }
}

module attributes {stable_mosaic.version = 11 : i64} {
  func.func @_conv_mm_kernel(%arg0: i32, %arg1: i32, %arg2: memref<1x256x72xbf16, #tpu.memory_space<vmem>>, %arg3: memref<72x8xbf16, #tpu.memory_space<vmem>>, %arg4: memref<1x8xf32, #tpu.memory_space<vmem>>, %arg5: memref<1x256x8xf32, #tpu.memory_space<vmem>>) attributes {dimension_semantics = [#tpu.dimension_semantics<parallel>, #tpu.dimension_semantics<parallel>], iteration_bounds = array<i64: 2, 1>, scalar_prefetch = 0 : i64, scratch_operands = 0 : i64, tpu.core_type = #tpu.core_type<tc>, window_params = [{transform_indices = @transform_0, window_bounds = array<i64: 1, 256, 72>}, {pipeline_mode = #tpu.pipeline_mode<synchronous>, transform_indices = @transform_1, window_bounds = array<i64: 72, 8>}, {pipeline_mode = #tpu.pipeline_mode<synchronous>, transform_indices = @transform_2, window_bounds = array<i64: 1, 8>}, {transform_indices = @transform_3, window_bounds = array<i64: 1, 256, 8>}]} {
    %c0 = arith.constant 0 : index
    %c0_0 = arith.constant 0 : index
    %c0_1 = arith.constant 0 : index
    %0 = vector.load %arg2[%c0, %c0_0, %c0_1] : memref<1x256x72xbf16, #tpu.memory_space<vmem>>, vector<1x256x72xbf16>
    %1 = vector.shape_cast %0 : vector<1x256x72xbf16> to vector<256x72xbf16>
    %c0_2 = arith.constant 0 : index
    %c0_3 = arith.constant 0 : index
    %2 = vector.load %arg3[%c0_2, %c0_3] : memref<72x8xbf16, #tpu.memory_space<vmem>>, vector<72x8xbf16>
    %cst = arith.constant dense<0.000000e+00> : vector<256x8xf32>
    %3 = tpu.matmul %1, %2, %cst {dimension_numbers = #tpu.dot_dimension_numbers<[1], [0], [0], [1], [0, 0, 1, 1], [], []>} : vector<256x72xbf16>, vector<72x8xbf16>, vector<256x8xf32> -> vector<256x8xf32>
    %c0_4 = arith.constant 0 : index
    %c0_5 = arith.constant 0 : index
    %4 = vector.load %arg4[%c0_4, %c0_5] : memref<1x8xf32, #tpu.memory_space<vmem>>, vector<1x8xf32>
    %5 = vector.broadcast %4 : vector<1x8xf32> to vector<256x8xf32>
    %6 = arith.addf %3, %5 : vector<256x8xf32>
    %cst_6 = arith.constant 0.000000e+00 : f32
    %7 = vector.broadcast %cst_6 : f32 to vector<256x8xf32>
    %8 = arith.cmpf oge, %6, %7 : vector<256x8xf32>
    %cst_7 = arith.constant 2.000000e-01 : f32
    %9 = vector.broadcast %cst_7 : f32 to vector<256x8xf32>
    %10 = arith.mulf %9, %6 : vector<256x8xf32>
    %11 = arith.select %8, %6, %10 : vector<256x8xi1>, vector<256x8xf32>
    %c0_8 = arith.constant 0 : index
    %c0_9 = arith.constant 0 : index
    %c0_10 = arith.constant 0 : index
    %12 = vector.load %arg5[%c0_8, %c0_9, %c0_10] : memref<1x256x8xf32, #tpu.memory_space<vmem>>, vector<1x256x8xf32>
    %13 = vector.shape_cast %12 : vector<1x256x8xf32> to vector<256x8xf32>
    %14 = vector.shape_cast %11 : vector<256x8xf32> to vector<1x256x8xf32>
    tpu.vector_store %arg5[%c0_8, %c0_9, %c0_10], %14 {strides = array<i32>} : memref<1x256x8xf32, #tpu.memory_space<vmem>>, vector<1x256x8xf32>,
    return
  }
  func.func @transform_0(%arg0: i32, %arg1: i32) -> (i32, i32, i32) {
    %c0_i32 = arith.constant 0 : i32
    %c0_i32_0 = arith.constant 0 : i32
    return %arg0, %arg1, %c0_i32 : i32, i32, i32
  }
  func.func @transform_1(%arg0: i32, %arg1: i32) -> (i32, i32) {
    %c0_i32 = arith.constant 0 : i32
    %c0_i32_0 = arith.constant 0 : i32
    %c0_i32_1 = arith.constant 0 : i32
    return %c0_i32, %c0_i32_0 : i32, i32
  }
  func.func @transform_2(%arg0: i32, %arg1: i32) -> (i32, i32) {
    %c0_i32 = arith.constant 0 : i32
    %c0_i32_0 = arith.constant 0 : i32
    %c0_i32_1 = arith.constant 0 : i32
    return %c0_i32, %c0_i32_0 : i32, i32
  }
  func.func @transform_3(%arg0: i32, %arg1: i32) -> (i32, i32, i32) {
    %c0_i32 = arith.constant 0 : i32
    %c0_i32_0 = arith.constant 0 : i32
    return %arg0, %arg1, %c0_i32 : i32, i32, i32
  }
}

module attributes {stable_mosaic.version = 11 : i64} {
  func.func @_maxpool_kernel(%arg0: i32, %arg1: memref<1x8x2x8x16xf32, #tpu.memory_space<vmem>>, %arg2: memref<1x8x8x8xf32, #tpu.memory_space<vmem>>) attributes {dimension_semantics = [#tpu.dimension_semantics<parallel>], iteration_bounds = array<i64: 2>, scalar_prefetch = 0 : i64, scratch_operands = 0 : i64, tpu.core_type = #tpu.core_type<tc>, window_params = [{transform_indices = @transform_0, window_bounds = array<i64: 1, 8, 2, 8, 16>}, {transform_indices = @transform_1, window_bounds = array<i64: 1, 8, 8, 8>}]} {
    %c0 = arith.constant 0 : index
    %c0_0 = arith.constant 0 : index
    %c0_1 = arith.constant 0 : index
    %c0_2 = arith.constant 0 : index
    %c0_3 = arith.constant 0 : index
    %0 = vector.load %arg1[%c0, %c0_0, %c0_1, %c0_2, %c0_3] : memref<1x8x2x8x16xf32, #tpu.memory_space<vmem>>, vector<1x8x1x8x16xf32>
    %1 = vector.shape_cast %0 : vector<1x8x1x8x16xf32> to vector<8x8x16xf32>
    %c0_4 = arith.constant 0 : index
    %c0_5 = arith.constant 0 : index
    %c1 = arith.constant 1 : index
    %c0_6 = arith.constant 0 : index
    %c0_7 = arith.constant 0 : index
    %2 = vector.load %arg1[%c0_4, %c0_5, %c1, %c0_6, %c0_7] : memref<1x8x2x8x16xf32, #tpu.memory_space<vmem>>, vector<1x8x1x8x16xf32>
    %3 = vector.shape_cast %2 : vector<1x8x1x8x16xf32> to vector<8x8x16xf32>
    %4 = arith.maximumf %1, %3 : vector<8x8x16xf32>
    %5 = vector.extract_strided_slice %4 {offsets = [0, 0, 0], sizes = [8, 8, 8], strides = [1, 1, 1]} : vector<8x8x16xf32> to vector<8x8x8xf32>
    %6 = vector.extract_strided_slice %4 {offsets = [0, 0, 8], sizes = [8, 8, 8], strides = [1, 1, 1]} : vector<8x8x16xf32> to vector<8x8x8xf32>
    %7 = arith.maximumf %5, %6 : vector<8x8x8xf32>
    %c0_8 = arith.constant 0 : index
    %c0_9 = arith.constant 0 : index
    %c0_10 = arith.constant 0 : index
    %c0_11 = arith.constant 0 : index
    %8 = vector.load %arg2[%c0_8, %c0_9, %c0_10, %c0_11] : memref<1x8x8x8xf32, #tpu.memory_space<vmem>>, vector<1x8x8x8xf32>
    %9 = vector.shape_cast %8 : vector<1x8x8x8xf32> to vector<8x8x8xf32>
    %10 = vector.shape_cast %7 : vector<8x8x8xf32> to vector<1x8x8x8xf32>
    tpu.vector_store %arg2[%c0_8, %c0_9, %c0_10, %c0_11], %10 {strides = array<i32>} : memref<1x8x8x8xf32, #tpu.memory_space<vmem>>, vector<1x8x8x8xf32>,
    return
  }
  func.func @transform_0(%arg0: i32) -> (i32, i32, i32, i32, i32) {
    %c0_i32 = arith.constant 0 : i32
    %c0_i32_0 = arith.constant 0 : i32
    %c0_i32_1 = arith.constant 0 : i32
    %c0_i32_2 = arith.constant 0 : i32
    %c0_i32_3 = arith.constant 0 : i32
    return %arg0, %c0_i32, %c0_i32_0, %c0_i32_1, %c0_i32_2 : i32, i32, i32, i32, i32
  }
  func.func @transform_1(%arg0: i32) -> (i32, i32, i32, i32) {
    %c0_i32 = arith.constant 0 : i32
    %c0_i32_0 = arith.constant 0 : i32
    %c0_i32_1 = arith.constant 0 : i32
    %c0_i32_2 = arith.constant 0 : i32
    return %arg0, %c0_i32, %c0_i32_0, %c0_i32_1 : i32, i32, i32, i32
  }
}

module attributes {stable_mosaic.version = 11 : i64} {
  func.func @_conv_mm_kernel(%arg0: i32, %arg1: i32, %arg2: memref<1x64x72xbf16, #tpu.memory_space<vmem>>, %arg3: memref<72x8xbf16, #tpu.memory_space<vmem>>, %arg4: memref<1x8xf32, #tpu.memory_space<vmem>>, %arg5: memref<1x64x8xf32, #tpu.memory_space<vmem>>) attributes {dimension_semantics = [#tpu.dimension_semantics<parallel>, #tpu.dimension_semantics<parallel>], iteration_bounds = array<i64: 2, 1>, scalar_prefetch = 0 : i64, scratch_operands = 0 : i64, tpu.core_type = #tpu.core_type<tc>, window_params = [{transform_indices = @transform_0, window_bounds = array<i64: 1, 64, 72>}, {pipeline_mode = #tpu.pipeline_mode<synchronous>, transform_indices = @transform_1, window_bounds = array<i64: 72, 8>}, {pipeline_mode = #tpu.pipeline_mode<synchronous>, transform_indices = @transform_2, window_bounds = array<i64: 1, 8>}, {transform_indices = @transform_3, window_bounds = array<i64: 1, 64, 8>}]} {
    %c0 = arith.constant 0 : index
    %c0_0 = arith.constant 0 : index
    %c0_1 = arith.constant 0 : index
    %0 = vector.load %arg2[%c0, %c0_0, %c0_1] : memref<1x64x72xbf16, #tpu.memory_space<vmem>>, vector<1x64x72xbf16>
    %1 = vector.shape_cast %0 : vector<1x64x72xbf16> to vector<64x72xbf16>
    %c0_2 = arith.constant 0 : index
    %c0_3 = arith.constant 0 : index
    %2 = vector.load %arg3[%c0_2, %c0_3] : memref<72x8xbf16, #tpu.memory_space<vmem>>, vector<72x8xbf16>
    %cst = arith.constant dense<0.000000e+00> : vector<64x8xf32>
    %3 = tpu.matmul %1, %2, %cst {dimension_numbers = #tpu.dot_dimension_numbers<[1], [0], [0], [1], [0, 0, 1, 1], [], []>} : vector<64x72xbf16>, vector<72x8xbf16>, vector<64x8xf32> -> vector<64x8xf32>
    %c0_4 = arith.constant 0 : index
    %c0_5 = arith.constant 0 : index
    %4 = vector.load %arg4[%c0_4, %c0_5] : memref<1x8xf32, #tpu.memory_space<vmem>>, vector<1x8xf32>
    %5 = vector.broadcast %4 : vector<1x8xf32> to vector<64x8xf32>
    %6 = arith.addf %3, %5 : vector<64x8xf32>
    %cst_6 = arith.constant 0.000000e+00 : f32
    %7 = vector.broadcast %cst_6 : f32 to vector<64x8xf32>
    %8 = arith.cmpf oge, %6, %7 : vector<64x8xf32>
    %cst_7 = arith.constant 2.000000e-01 : f32
    %9 = vector.broadcast %cst_7 : f32 to vector<64x8xf32>
    %10 = arith.mulf %9, %6 : vector<64x8xf32>
    %11 = arith.select %8, %6, %10 : vector<64x8xi1>, vector<64x8xf32>
    %c0_8 = arith.constant 0 : index
    %c0_9 = arith.constant 0 : index
    %c0_10 = arith.constant 0 : index
    %12 = vector.load %arg5[%c0_8, %c0_9, %c0_10] : memref<1x64x8xf32, #tpu.memory_space<vmem>>, vector<1x64x8xf32>
    %13 = vector.shape_cast %12 : vector<1x64x8xf32> to vector<64x8xf32>
    %14 = vector.shape_cast %11 : vector<64x8xf32> to vector<1x64x8xf32>
    tpu.vector_store %arg5[%c0_8, %c0_9, %c0_10], %14 {strides = array<i32>} : memref<1x64x8xf32, #tpu.memory_space<vmem>>, vector<1x64x8xf32>,
    return
  }
  func.func @transform_0(%arg0: i32, %arg1: i32) -> (i32, i32, i32) {
    %c0_i32 = arith.constant 0 : i32
    %c0_i32_0 = arith.constant 0 : i32
    return %arg0, %arg1, %c0_i32 : i32, i32, i32
  }
  func.func @transform_1(%arg0: i32, %arg1: i32) -> (i32, i32) {
    %c0_i32 = arith.constant 0 : i32
    %c0_i32_0 = arith.constant 0 : i32
    %c0_i32_1 = arith.constant 0 : i32
    return %c0_i32, %c0_i32_0 : i32, i32
  }
  func.func @transform_2(%arg0: i32, %arg1: i32) -> (i32, i32) {
    %c0_i32 = arith.constant 0 : i32
    %c0_i32_0 = arith.constant 0 : i32
    %c0_i32_1 = arith.constant 0 : i32
    return %c0_i32, %c0_i32_0 : i32, i32
  }
  func.func @transform_3(%arg0: i32, %arg1: i32) -> (i32, i32, i32) {
    %c0_i32 = arith.constant 0 : i32
    %c0_i32_0 = arith.constant 0 : i32
    return %arg0, %arg1, %c0_i32 : i32, i32, i32
  }
}

module attributes {stable_mosaic.version = 11 : i64} {
  func.func @_conv_mm_kernel(%arg0: i32, %arg1: i32, %arg2: memref<1x64x72xbf16, #tpu.memory_space<vmem>>, %arg3: memref<72x16xbf16, #tpu.memory_space<vmem>>, %arg4: memref<1x16xf32, #tpu.memory_space<vmem>>, %arg5: memref<1x64x16xf32, #tpu.memory_space<vmem>>) attributes {dimension_semantics = [#tpu.dimension_semantics<parallel>, #tpu.dimension_semantics<parallel>], iteration_bounds = array<i64: 2, 1>, scalar_prefetch = 0 : i64, scratch_operands = 0 : i64, tpu.core_type = #tpu.core_type<tc>, window_params = [{transform_indices = @transform_0, window_bounds = array<i64: 1, 64, 72>}, {pipeline_mode = #tpu.pipeline_mode<synchronous>, transform_indices = @transform_1, window_bounds = array<i64: 72, 16>}, {pipeline_mode = #tpu.pipeline_mode<synchronous>, transform_indices = @transform_2, window_bounds = array<i64: 1, 16>}, {transform_indices = @transform_3, window_bounds = array<i64: 1, 64, 16>}]} {
    %c0 = arith.constant 0 : index
    %c0_0 = arith.constant 0 : index
    %c0_1 = arith.constant 0 : index
    %0 = vector.load %arg2[%c0, %c0_0, %c0_1] : memref<1x64x72xbf16, #tpu.memory_space<vmem>>, vector<1x64x72xbf16>
    %1 = vector.shape_cast %0 : vector<1x64x72xbf16> to vector<64x72xbf16>
    %c0_2 = arith.constant 0 : index
    %c0_3 = arith.constant 0 : index
    %2 = vector.load %arg3[%c0_2, %c0_3] : memref<72x16xbf16, #tpu.memory_space<vmem>>, vector<72x16xbf16>
    %cst = arith.constant dense<0.000000e+00> : vector<64x16xf32>
    %3 = tpu.matmul %1, %2, %cst {dimension_numbers = #tpu.dot_dimension_numbers<[1], [0], [0], [1], [0, 0, 1, 1], [], []>} : vector<64x72xbf16>, vector<72x16xbf16>, vector<64x16xf32> -> vector<64x16xf32>
    %c0_4 = arith.constant 0 : index
    %c0_5 = arith.constant 0 : index
    %4 = vector.load %arg4[%c0_4, %c0_5] : memref<1x16xf32, #tpu.memory_space<vmem>>, vector<1x16xf32>
    %5 = vector.broadcast %4 : vector<1x16xf32> to vector<64x16xf32>
    %6 = arith.addf %3, %5 : vector<64x16xf32>
    %cst_6 = arith.constant 0.000000e+00 : f32
    %7 = vector.broadcast %cst_6 : f32 to vector<64x16xf32>
    %8 = arith.cmpf oge, %6, %7 : vector<64x16xf32>
    %cst_7 = arith.constant 2.000000e-01 : f32
    %9 = vector.broadcast %cst_7 : f32 to vector<64x16xf32>
    %10 = arith.mulf %9, %6 : vector<64x16xf32>
    %11 = arith.select %8, %6, %10 : vector<64x16xi1>, vector<64x16xf32>
    %c0_8 = arith.constant 0 : index
    %c0_9 = arith.constant 0 : index
    %c0_10 = arith.constant 0 : index
    %12 = vector.load %arg5[%c0_8, %c0_9, %c0_10] : memref<1x64x16xf32, #tpu.memory_space<vmem>>, vector<1x64x16xf32>
    %13 = vector.shape_cast %12 : vector<1x64x16xf32> to vector<64x16xf32>
    %14 = vector.shape_cast %11 : vector<64x16xf32> to vector<1x64x16xf32>
    tpu.vector_store %arg5[%c0_8, %c0_9, %c0_10], %14 {strides = array<i32>} : memref<1x64x16xf32, #tpu.memory_space<vmem>>, vector<1x64x16xf32>,
    return
  }
  func.func @transform_0(%arg0: i32, %arg1: i32) -> (i32, i32, i32) {
    %c0_i32 = arith.constant 0 : i32
    %c0_i32_0 = arith.constant 0 : i32
    return %arg0, %arg1, %c0_i32 : i32, i32, i32
  }
  func.func @transform_1(%arg0: i32, %arg1: i32) -> (i32, i32) {
    %c0_i32 = arith.constant 0 : i32
    %c0_i32_0 = arith.constant 0 : i32
    %c0_i32_1 = arith.constant 0 : i32
    return %c0_i32, %c0_i32_0 : i32, i32
  }
  func.func @transform_2(%arg0: i32, %arg1: i32) -> (i32, i32) {
    %c0_i32 = arith.constant 0 : i32
    %c0_i32_0 = arith.constant 0 : i32
    %c0_i32_1 = arith.constant 0 : i32
    return %c0_i32, %c0_i32_0 : i32, i32
  }
  func.func @transform_3(%arg0: i32, %arg1: i32) -> (i32, i32, i32) {
    %c0_i32 = arith.constant 0 : i32
    %c0_i32_0 = arith.constant 0 : i32
    return %arg0, %arg1, %c0_i32 : i32, i32, i32
  }
}

module attributes {stable_mosaic.version = 11 : i64} {
  func.func @_maxpool_kernel(%arg0: i32, %arg1: memref<1x4x2x4x32xf32, #tpu.memory_space<vmem>>, %arg2: memref<1x4x4x16xf32, #tpu.memory_space<vmem>>) attributes {dimension_semantics = [#tpu.dimension_semantics<parallel>], iteration_bounds = array<i64: 2>, scalar_prefetch = 0 : i64, scratch_operands = 0 : i64, tpu.core_type = #tpu.core_type<tc>, window_params = [{transform_indices = @transform_0, window_bounds = array<i64: 1, 4, 2, 4, 32>}, {transform_indices = @transform_1, window_bounds = array<i64: 1, 4, 4, 16>}]} {
    %c0 = arith.constant 0 : index
    %c0_0 = arith.constant 0 : index
    %c0_1 = arith.constant 0 : index
    %c0_2 = arith.constant 0 : index
    %c0_3 = arith.constant 0 : index
    %0 = vector.load %arg1[%c0, %c0_0, %c0_1, %c0_2, %c0_3] : memref<1x4x2x4x32xf32, #tpu.memory_space<vmem>>, vector<1x4x1x4x32xf32>
    %1 = vector.shape_cast %0 : vector<1x4x1x4x32xf32> to vector<4x4x32xf32>
    %c0_4 = arith.constant 0 : index
    %c0_5 = arith.constant 0 : index
    %c1 = arith.constant 1 : index
    %c0_6 = arith.constant 0 : index
    %c0_7 = arith.constant 0 : index
    %2 = vector.load %arg1[%c0_4, %c0_5, %c1, %c0_6, %c0_7] : memref<1x4x2x4x32xf32, #tpu.memory_space<vmem>>, vector<1x4x1x4x32xf32>
    %3 = vector.shape_cast %2 : vector<1x4x1x4x32xf32> to vector<4x4x32xf32>
    %4 = arith.maximumf %1, %3 : vector<4x4x32xf32>
    %5 = vector.extract_strided_slice %4 {offsets = [0, 0, 0], sizes = [4, 4, 16], strides = [1, 1, 1]} : vector<4x4x32xf32> to vector<4x4x16xf32>
    %6 = vector.extract_strided_slice %4 {offsets = [0, 0, 16], sizes = [4, 4, 16], strides = [1, 1, 1]} : vector<4x4x32xf32> to vector<4x4x16xf32>
    %7 = arith.maximumf %5, %6 : vector<4x4x16xf32>
    %c0_8 = arith.constant 0 : index
    %c0_9 = arith.constant 0 : index
    %c0_10 = arith.constant 0 : index
    %c0_11 = arith.constant 0 : index
    %8 = vector.load %arg2[%c0_8, %c0_9, %c0_10, %c0_11] : memref<1x4x4x16xf32, #tpu.memory_space<vmem>>, vector<1x4x4x16xf32>
    %9 = vector.shape_cast %8 : vector<1x4x4x16xf32> to vector<4x4x16xf32>
    %10 = vector.shape_cast %7 : vector<4x4x16xf32> to vector<1x4x4x16xf32>
    tpu.vector_store %arg2[%c0_8, %c0_9, %c0_10, %c0_11], %10 {strides = array<i32>} : memref<1x4x4x16xf32, #tpu.memory_space<vmem>>, vector<1x4x4x16xf32>,
    return
  }
  func.func @transform_0(%arg0: i32) -> (i32, i32, i32, i32, i32) {
    %c0_i32 = arith.constant 0 : i32
    %c0_i32_0 = arith.constant 0 : i32
    %c0_i32_1 = arith.constant 0 : i32
    %c0_i32_2 = arith.constant 0 : i32
    %c0_i32_3 = arith.constant 0 : i32
    return %arg0, %c0_i32, %c0_i32_0, %c0_i32_1, %c0_i32_2 : i32, i32, i32, i32, i32
  }
  func.func @transform_1(%arg0: i32) -> (i32, i32, i32, i32) {
    %c0_i32 = arith.constant 0 : i32
    %c0_i32_0 = arith.constant 0 : i32
    %c0_i32_1 = arith.constant 0 : i32
    %c0_i32_2 = arith.constant 0 : i32
    return %arg0, %c0_i32, %c0_i32_0, %c0_i32_1 : i32, i32, i32, i32
  }
}

module attributes {stable_mosaic.version = 11 : i64} {
  func.func @_conv_mm_kernel(%arg0: i32, %arg1: i32, %arg2: memref<1x16x144xbf16, #tpu.memory_space<vmem>>, %arg3: memref<144x16xbf16, #tpu.memory_space<vmem>>, %arg4: memref<1x16xf32, #tpu.memory_space<vmem>>, %arg5: memref<1x16x16xf32, #tpu.memory_space<vmem>>) attributes {dimension_semantics = [#tpu.dimension_semantics<parallel>, #tpu.dimension_semantics<parallel>], iteration_bounds = array<i64: 2, 1>, scalar_prefetch = 0 : i64, scratch_operands = 0 : i64, tpu.core_type = #tpu.core_type<tc>, window_params = [{transform_indices = @transform_0, window_bounds = array<i64: 1, 16, 144>}, {pipeline_mode = #tpu.pipeline_mode<synchronous>, transform_indices = @transform_1, window_bounds = array<i64: 144, 16>}, {pipeline_mode = #tpu.pipeline_mode<synchronous>, transform_indices = @transform_2, window_bounds = array<i64: 1, 16>}, {transform_indices = @transform_3, window_bounds = array<i64: 1, 16, 16>}]} {
    %c0 = arith.constant 0 : index
    %c0_0 = arith.constant 0 : index
    %c0_1 = arith.constant 0 : index
    %0 = vector.load %arg2[%c0, %c0_0, %c0_1] : memref<1x16x144xbf16, #tpu.memory_space<vmem>>, vector<1x16x144xbf16>
    %1 = vector.shape_cast %0 : vector<1x16x144xbf16> to vector<16x144xbf16>
    %c0_2 = arith.constant 0 : index
    %c0_3 = arith.constant 0 : index
    %2 = vector.load %arg3[%c0_2, %c0_3] : memref<144x16xbf16, #tpu.memory_space<vmem>>, vector<144x16xbf16>
    %cst = arith.constant dense<0.000000e+00> : vector<16x16xf32>
    %3 = tpu.matmul %1, %2, %cst {dimension_numbers = #tpu.dot_dimension_numbers<[1], [0], [0], [1], [0, 0, 1, 1], [], []>} : vector<16x144xbf16>, vector<144x16xbf16>, vector<16x16xf32> -> vector<16x16xf32>
    %c0_4 = arith.constant 0 : index
    %c0_5 = arith.constant 0 : index
    %4 = vector.load %arg4[%c0_4, %c0_5] : memref<1x16xf32, #tpu.memory_space<vmem>>, vector<1x16xf32>
    %5 = vector.broadcast %4 : vector<1x16xf32> to vector<16x16xf32>
    %6 = arith.addf %3, %5 : vector<16x16xf32>
    %cst_6 = arith.constant 0.000000e+00 : f32
    %7 = vector.broadcast %cst_6 : f32 to vector<16x16xf32>
    %8 = arith.cmpf oge, %6, %7 : vector<16x16xf32>
    %cst_7 = arith.constant 2.000000e-01 : f32
    %9 = vector.broadcast %cst_7 : f32 to vector<16x16xf32>
    %10 = arith.mulf %9, %6 : vector<16x16xf32>
    %11 = arith.select %8, %6, %10 : vector<16x16xi1>, vector<16x16xf32>
    %c0_8 = arith.constant 0 : index
    %c0_9 = arith.constant 0 : index
    %c0_10 = arith.constant 0 : index
    %12 = vector.load %arg5[%c0_8, %c0_9, %c0_10] : memref<1x16x16xf32, #tpu.memory_space<vmem>>, vector<1x16x16xf32>
    %13 = vector.shape_cast %12 : vector<1x16x16xf32> to vector<16x16xf32>
    %14 = vector.shape_cast %11 : vector<16x16xf32> to vector<1x16x16xf32>
    tpu.vector_store %arg5[%c0_8, %c0_9, %c0_10], %14 {strides = array<i32>} : memref<1x16x16xf32, #tpu.memory_space<vmem>>, vector<1x16x16xf32>,
    return
  }
  func.func @transform_0(%arg0: i32, %arg1: i32) -> (i32, i32, i32) {
    %c0_i32 = arith.constant 0 : i32
    %c0_i32_0 = arith.constant 0 : i32
    return %arg0, %arg1, %c0_i32 : i32, i32, i32
  }
  func.func @transform_1(%arg0: i32, %arg1: i32) -> (i32, i32) {
    %c0_i32 = arith.constant 0 : i32
    %c0_i32_0 = arith.constant 0 : i32
    %c0_i32_1 = arith.constant 0 : i32
    return %c0_i32, %c0_i32_0 : i32, i32
  }
  func.func @transform_2(%arg0: i32, %arg1: i32) -> (i32, i32) {
    %c0_i32 = arith.constant 0 : i32
    %c0_i32_0 = arith.constant 0 : i32
    %c0_i32_1 = arith.constant 0 : i32
    return %c0_i32, %c0_i32_0 : i32, i32
  }
  func.func @transform_3(%arg0: i32, %arg1: i32) -> (i32, i32, i32) {
    %c0_i32 = arith.constant 0 : i32
    %c0_i32_0 = arith.constant 0 : i32
    return %arg0, %arg1, %c0_i32 : i32, i32, i32
  }
}

module attributes {stable_mosaic.version = 11 : i64} {
  func.func @_conv_mm_kernel(%arg0: i32, %arg1: i32, %arg2: memref<1x16x144xbf16, #tpu.memory_space<vmem>>, %arg3: memref<144x32xbf16, #tpu.memory_space<vmem>>, %arg4: memref<1x32xf32, #tpu.memory_space<vmem>>, %arg5: memref<1x16x32xf32, #tpu.memory_space<vmem>>) attributes {dimension_semantics = [#tpu.dimension_semantics<parallel>, #tpu.dimension_semantics<parallel>], iteration_bounds = array<i64: 2, 1>, scalar_prefetch = 0 : i64, scratch_operands = 0 : i64, tpu.core_type = #tpu.core_type<tc>, window_params = [{transform_indices = @transform_0, window_bounds = array<i64: 1, 16, 144>}, {pipeline_mode = #tpu.pipeline_mode<synchronous>, transform_indices = @transform_1, window_bounds = array<i64: 144, 32>}, {pipeline_mode = #tpu.pipeline_mode<synchronous>, transform_indices = @transform_2, window_bounds = array<i64: 1, 32>}, {transform_indices = @transform_3, window_bounds = array<i64: 1, 16, 32>}]} {
    %c0 = arith.constant 0 : index
    %c0_0 = arith.constant 0 : index
    %c0_1 = arith.constant 0 : index
    %0 = vector.load %arg2[%c0, %c0_0, %c0_1] : memref<1x16x144xbf16, #tpu.memory_space<vmem>>, vector<1x16x144xbf16>
    %1 = vector.shape_cast %0 : vector<1x16x144xbf16> to vector<16x144xbf16>
    %c0_2 = arith.constant 0 : index
    %c0_3 = arith.constant 0 : index
    %2 = vector.load %arg3[%c0_2, %c0_3] : memref<144x32xbf16, #tpu.memory_space<vmem>>, vector<144x32xbf16>
    %cst = arith.constant dense<0.000000e+00> : vector<16x32xf32>
    %3 = tpu.matmul %1, %2, %cst {dimension_numbers = #tpu.dot_dimension_numbers<[1], [0], [0], [1], [0, 0, 1, 1], [], []>} : vector<16x144xbf16>, vector<144x32xbf16>, vector<16x32xf32> -> vector<16x32xf32>
    %c0_4 = arith.constant 0 : index
    %c0_5 = arith.constant 0 : index
    %4 = vector.load %arg4[%c0_4, %c0_5] : memref<1x32xf32, #tpu.memory_space<vmem>>, vector<1x32xf32>
    %5 = vector.broadcast %4 : vector<1x32xf32> to vector<16x32xf32>
    %6 = arith.addf %3, %5 : vector<16x32xf32>
    %cst_6 = arith.constant 0.000000e+00 : f32
    %7 = vector.broadcast %cst_6 : f32 to vector<16x32xf32>
    %8 = arith.cmpf oge, %6, %7 : vector<16x32xf32>
    %cst_7 = arith.constant 2.000000e-01 : f32
    %9 = vector.broadcast %cst_7 : f32 to vector<16x32xf32>
    %10 = arith.mulf %9, %6 : vector<16x32xf32>
    %11 = arith.select %8, %6, %10 : vector<16x32xi1>, vector<16x32xf32>
    %c0_8 = arith.constant 0 : index
    %c0_9 = arith.constant 0 : index
    %c0_10 = arith.constant 0 : index
    %12 = vector.load %arg5[%c0_8, %c0_9, %c0_10] : memref<1x16x32xf32, #tpu.memory_space<vmem>>, vector<1x16x32xf32>
    %13 = vector.shape_cast %12 : vector<1x16x32xf32> to vector<16x32xf32>
    %14 = vector.shape_cast %11 : vector<16x32xf32> to vector<1x16x32xf32>
    tpu.vector_store %arg5[%c0_8, %c0_9, %c0_10], %14 {strides = array<i32>} : memref<1x16x32xf32, #tpu.memory_space<vmem>>, vector<1x16x32xf32>,
    return
  }
  func.func @transform_0(%arg0: i32, %arg1: i32) -> (i32, i32, i32) {
    %c0_i32 = arith.constant 0 : i32
    %c0_i32_0 = arith.constant 0 : i32
    return %arg0, %arg1, %c0_i32 : i32, i32, i32
  }
  func.func @transform_1(%arg0: i32, %arg1: i32) -> (i32, i32) {
    %c0_i32 = arith.constant 0 : i32
    %c0_i32_0 = arith.constant 0 : i32
    %c0_i32_1 = arith.constant 0 : i32
    return %c0_i32, %c0_i32_0 : i32, i32
  }
  func.func @transform_2(%arg0: i32, %arg1: i32) -> (i32, i32) {
    %c0_i32 = arith.constant 0 : i32
    %c0_i32_0 = arith.constant 0 : i32
    %c0_i32_1 = arith.constant 0 : i32
    return %c0_i32, %c0_i32_0 : i32, i32
  }
  func.func @transform_3(%arg0: i32, %arg1: i32) -> (i32, i32, i32) {
    %c0_i32 = arith.constant 0 : i32
    %c0_i32_0 = arith.constant 0 : i32
    return %arg0, %arg1, %c0_i32 : i32, i32, i32
  }
}

module attributes {stable_mosaic.version = 11 : i64} {
  func.func @_maxpool_kernel(%arg0: i32, %arg1: memref<1x2x2x2x64xf32, #tpu.memory_space<vmem>>, %arg2: memref<1x2x2x32xf32, #tpu.memory_space<vmem>>) attributes {dimension_semantics = [#tpu.dimension_semantics<parallel>], iteration_bounds = array<i64: 2>, scalar_prefetch = 0 : i64, scratch_operands = 0 : i64, tpu.core_type = #tpu.core_type<tc>, window_params = [{transform_indices = @transform_0, window_bounds = array<i64: 1, 2, 2, 2, 64>}, {transform_indices = @transform_1, window_bounds = array<i64: 1, 2, 2, 32>}]} {
    %c0 = arith.constant 0 : index
    %c0_0 = arith.constant 0 : index
    %c0_1 = arith.constant 0 : index
    %c0_2 = arith.constant 0 : index
    %c0_3 = arith.constant 0 : index
    %0 = vector.load %arg1[%c0, %c0_0, %c0_1, %c0_2, %c0_3] : memref<1x2x2x2x64xf32, #tpu.memory_space<vmem>>, vector<1x2x1x2x64xf32>
    %1 = vector.shape_cast %0 : vector<1x2x1x2x64xf32> to vector<2x2x64xf32>
    %c0_4 = arith.constant 0 : index
    %c0_5 = arith.constant 0 : index
    %c1 = arith.constant 1 : index
    %c0_6 = arith.constant 0 : index
    %c0_7 = arith.constant 0 : index
    %2 = vector.load %arg1[%c0_4, %c0_5, %c1, %c0_6, %c0_7] : memref<1x2x2x2x64xf32, #tpu.memory_space<vmem>>, vector<1x2x1x2x64xf32>
    %3 = vector.shape_cast %2 : vector<1x2x1x2x64xf32> to vector<2x2x64xf32>
    %4 = arith.maximumf %1, %3 : vector<2x2x64xf32>
    %5 = vector.extract_strided_slice %4 {offsets = [0, 0, 0], sizes = [2, 2, 32], strides = [1, 1, 1]} : vector<2x2x64xf32> to vector<2x2x32xf32>
    %6 = vector.extract_strided_slice %4 {offsets = [0, 0, 32], sizes = [2, 2, 32], strides = [1, 1, 1]} : vector<2x2x64xf32> to vector<2x2x32xf32>
    %7 = arith.maximumf %5, %6 : vector<2x2x32xf32>
    %c0_8 = arith.constant 0 : index
    %c0_9 = arith.constant 0 : index
    %c0_10 = arith.constant 0 : index
    %c0_11 = arith.constant 0 : index
    %8 = vector.load %arg2[%c0_8, %c0_9, %c0_10, %c0_11] : memref<1x2x2x32xf32, #tpu.memory_space<vmem>>, vector<1x2x2x32xf32>
    %9 = vector.shape_cast %8 : vector<1x2x2x32xf32> to vector<2x2x32xf32>
    %10 = vector.shape_cast %7 : vector<2x2x32xf32> to vector<1x2x2x32xf32>
    tpu.vector_store %arg2[%c0_8, %c0_9, %c0_10, %c0_11], %10 {strides = array<i32>} : memref<1x2x2x32xf32, #tpu.memory_space<vmem>>, vector<1x2x2x32xf32>,
    return
  }
  func.func @transform_0(%arg0: i32) -> (i32, i32, i32, i32, i32) {
    %c0_i32 = arith.constant 0 : i32
    %c0_i32_0 = arith.constant 0 : i32
    %c0_i32_1 = arith.constant 0 : i32
    %c0_i32_2 = arith.constant 0 : i32
    %c0_i32_3 = arith.constant 0 : i32
    return %arg0, %c0_i32, %c0_i32_0, %c0_i32_1, %c0_i32_2 : i32, i32, i32, i32, i32
  }
  func.func @transform_1(%arg0: i32) -> (i32, i32, i32, i32) {
    %c0_i32 = arith.constant 0 : i32
    %c0_i32_0 = arith.constant 0 : i32
    %c0_i32_1 = arith.constant 0 : i32
    %c0_i32_2 = arith.constant 0 : i32
    return %arg0, %c0_i32, %c0_i32_0, %c0_i32_1 : i32, i32, i32, i32
  }
}

module attributes {stable_mosaic.version = 11 : i64} {
  func.func @_maxpool_kernel(%arg0: i32, %arg1: memref<1x1x2x1x128xf32, #tpu.memory_space<vmem>>, %arg2: memref<1x1x1x64xf32, #tpu.memory_space<vmem>>) attributes {dimension_semantics = [#tpu.dimension_semantics<parallel>], iteration_bounds = array<i64: 2>, scalar_prefetch = 0 : i64, scratch_operands = 0 : i64, tpu.core_type = #tpu.core_type<tc>, window_params = [{transform_indices = @transform_0, window_bounds = array<i64: 1, 1, 2, 1, 128>}, {transform_indices = @transform_1, window_bounds = array<i64: 1, 1, 1, 64>}]} {
    %c0 = arith.constant 0 : index
    %c0_0 = arith.constant 0 : index
    %c0_1 = arith.constant 0 : index
    %c0_2 = arith.constant 0 : index
    %c0_3 = arith.constant 0 : index
    %0 = vector.load %arg1[%c0, %c0_0, %c0_1, %c0_2, %c0_3] : memref<1x1x2x1x128xf32, #tpu.memory_space<vmem>>, vector<1x1x1x1x128xf32>
    %1 = vector.shape_cast %0 : vector<1x1x1x1x128xf32> to vector<1x1x128xf32>
    %c0_4 = arith.constant 0 : index
    %c0_5 = arith.constant 0 : index
    %c1 = arith.constant 1 : index
    %c0_6 = arith.constant 0 : index
    %c0_7 = arith.constant 0 : index
    %2 = vector.load %arg1[%c0_4, %c0_5, %c1, %c0_6, %c0_7] : memref<1x1x2x1x128xf32, #tpu.memory_space<vmem>>, vector<1x1x1x1x128xf32>
    %3 = vector.shape_cast %2 : vector<1x1x1x1x128xf32> to vector<1x1x128xf32>
    %4 = arith.maximumf %1, %3 : vector<1x1x128xf32>
    %5 = vector.extract_strided_slice %4 {offsets = [0, 0, 0], sizes = [1, 1, 64], strides = [1, 1, 1]} : vector<1x1x128xf32> to vector<1x1x64xf32>
    %6 = vector.extract_strided_slice %4 {offsets = [0, 0, 64], sizes = [1, 1, 64], strides = [1, 1, 1]} : vector<1x1x128xf32> to vector<1x1x64xf32>
    %7 = arith.maximumf %5, %6 : vector<1x1x64xf32>
    %c0_8 = arith.constant 0 : index
    %c0_9 = arith.constant 0 : index
    %c0_10 = arith.constant 0 : index
    %c0_11 = arith.constant 0 : index
    %8 = vector.load %arg2[%c0_8, %c0_9, %c0_10, %c0_11] : memref<1x1x1x64xf32, #tpu.memory_space<vmem>>, vector<1x1x1x64xf32>
    %9 = vector.shape_cast %8 : vector<1x1x1x64xf32> to vector<1x1x64xf32>
    %10 = vector.shape_cast %7 : vector<1x1x64xf32> to vector<1x1x1x64xf32>
    tpu.vector_store %arg2[%c0_8, %c0_9, %c0_10, %c0_11], %10 {strides = array<i32>} : memref<1x1x1x64xf32, #tpu.memory_space<vmem>>, vector<1x1x1x64xf32>,
    return
  }
  func.func @transform_0(%arg0: i32) -> (i32, i32, i32, i32, i32) {
    %c0_i32 = arith.constant 0 : i32
    %c0_i32_0 = arith.constant 0 : i32
    %c0_i32_1 = arith.constant 0 : i32
    %c0_i32_2 = arith.constant 0 : i32
    %c0_i32_3 = arith.constant 0 : i32
    return %arg0, %c0_i32, %c0_i32_0, %c0_i32_1, %c0_i32_2 : i32, i32, i32, i32, i32
  }
  func.func @transform_1(%arg0: i32) -> (i32, i32, i32, i32) {
    %c0_i32 = arith.constant 0 : i32
    %c0_i32_0 = arith.constant 0 : i32
    %c0_i32_1 = arith.constant 0 : i32
    %c0_i32_2 = arith.constant 0 : i32
    return %arg0, %c0_i32, %c0_i32_0, %c0_i32_1 : i32, i32, i32, i32
  }
}

module attributes {stable_mosaic.version = 11 : i64} {
  func.func @_conv_mm_kernel(%arg0: i32, %arg1: i32, %arg2: memref<1x4x288xbf16, #tpu.memory_space<vmem>>, %arg3: memref<288x32xbf16, #tpu.memory_space<vmem>>, %arg4: memref<1x32xf32, #tpu.memory_space<vmem>>, %arg5: memref<1x4x32xf32, #tpu.memory_space<vmem>>) attributes {dimension_semantics = [#tpu.dimension_semantics<parallel>, #tpu.dimension_semantics<parallel>], iteration_bounds = array<i64: 2, 1>, scalar_prefetch = 0 : i64, scratch_operands = 0 : i64, tpu.core_type = #tpu.core_type<tc>, window_params = [{transform_indices = @transform_0, window_bounds = array<i64: 1, 4, 288>}, {pipeline_mode = #tpu.pipeline_mode<synchronous>, transform_indices = @transform_1, window_bounds = array<i64: 288, 32>}, {pipeline_mode = #tpu.pipeline_mode<synchronous>, transform_indices = @transform_2, window_bounds = array<i64: 1, 32>}, {transform_indices = @transform_3, window_bounds = array<i64: 1, 4, 32>}]} {
    %c0 = arith.constant 0 : index
    %c0_0 = arith.constant 0 : index
    %c0_1 = arith.constant 0 : index
    %0 = vector.load %arg2[%c0, %c0_0, %c0_1] : memref<1x4x288xbf16, #tpu.memory_space<vmem>>, vector<1x4x288xbf16>
    %1 = vector.shape_cast %0 : vector<1x4x288xbf16> to vector<4x288xbf16>
    %c0_2 = arith.constant 0 : index
    %c0_3 = arith.constant 0 : index
    %2 = vector.load %arg3[%c0_2, %c0_3] : memref<288x32xbf16, #tpu.memory_space<vmem>>, vector<288x32xbf16>
    %cst = arith.constant dense<0.000000e+00> : vector<4x32xf32>
    %3 = tpu.matmul %1, %2, %cst {dimension_numbers = #tpu.dot_dimension_numbers<[1], [0], [0], [1], [0, 0, 1, 1], [], []>} : vector<4x288xbf16>, vector<288x32xbf16>, vector<4x32xf32> -> vector<4x32xf32>
    %c0_4 = arith.constant 0 : index
    %c0_5 = arith.constant 0 : index
    %4 = vector.load %arg4[%c0_4, %c0_5] : memref<1x32xf32, #tpu.memory_space<vmem>>, vector<1x32xf32>
    %5 = vector.broadcast %4 : vector<1x32xf32> to vector<4x32xf32>
    %6 = arith.addf %3, %5 : vector<4x32xf32>
    %cst_6 = arith.constant 0.000000e+00 : f32
    %7 = vector.broadcast %cst_6 : f32 to vector<4x32xf32>
    %8 = arith.cmpf oge, %6, %7 : vector<4x32xf32>
    %cst_7 = arith.constant 2.000000e-01 : f32
    %9 = vector.broadcast %cst_7 : f32 to vector<4x32xf32>
    %10 = arith.mulf %9, %6 : vector<4x32xf32>
    %11 = arith.select %8, %6, %10 : vector<4x32xi1>, vector<4x32xf32>
    %c0_8 = arith.constant 0 : index
    %c0_9 = arith.constant 0 : index
    %c0_10 = arith.constant 0 : index
    %12 = vector.load %arg5[%c0_8, %c0_9, %c0_10] : memref<1x4x32xf32, #tpu.memory_space<vmem>>, vector<1x4x32xf32>
    %13 = vector.shape_cast %12 : vector<1x4x32xf32> to vector<4x32xf32>
    %14 = vector.shape_cast %11 : vector<4x32xf32> to vector<1x4x32xf32>
    tpu.vector_store %arg5[%c0_8, %c0_9, %c0_10], %14 {strides = array<i32>} : memref<1x4x32xf32, #tpu.memory_space<vmem>>, vector<1x4x32xf32>,
    return
  }
  func.func @transform_0(%arg0: i32, %arg1: i32) -> (i32, i32, i32) {
    %c0_i32 = arith.constant 0 : i32
    %c0_i32_0 = arith.constant 0 : i32
    return %arg0, %arg1, %c0_i32 : i32, i32, i32
  }
  func.func @transform_1(%arg0: i32, %arg1: i32) -> (i32, i32) {
    %c0_i32 = arith.constant 0 : i32
    %c0_i32_0 = arith.constant 0 : i32
    %c0_i32_1 = arith.constant 0 : i32
    return %c0_i32, %c0_i32_0 : i32, i32
  }
  func.func @transform_2(%arg0: i32, %arg1: i32) -> (i32, i32) {
    %c0_i32 = arith.constant 0 : i32
    %c0_i32_0 = arith.constant 0 : i32
    %c0_i32_1 = arith.constant 0 : i32
    return %c0_i32, %c0_i32_0 : i32, i32
  }
  func.func @transform_3(%arg0: i32, %arg1: i32) -> (i32, i32, i32) {
    %c0_i32 = arith.constant 0 : i32
    %c0_i32_0 = arith.constant 0 : i32
    return %arg0, %arg1, %c0_i32 : i32, i32, i32
  }
}

module attributes {stable_mosaic.version = 11 : i64} {
  func.func @_conv_mm_kernel(%arg0: i32, %arg1: i32, %arg2: memref<1x4x288xbf16, #tpu.memory_space<vmem>>, %arg3: memref<288x64xbf16, #tpu.memory_space<vmem>>, %arg4: memref<1x64xf32, #tpu.memory_space<vmem>>, %arg5: memref<1x4x64xf32, #tpu.memory_space<vmem>>) attributes {dimension_semantics = [#tpu.dimension_semantics<parallel>, #tpu.dimension_semantics<parallel>], iteration_bounds = array<i64: 2, 1>, scalar_prefetch = 0 : i64, scratch_operands = 0 : i64, tpu.core_type = #tpu.core_type<tc>, window_params = [{transform_indices = @transform_0, window_bounds = array<i64: 1, 4, 288>}, {pipeline_mode = #tpu.pipeline_mode<synchronous>, transform_indices = @transform_1, window_bounds = array<i64: 288, 64>}, {pipeline_mode = #tpu.pipeline_mode<synchronous>, transform_indices = @transform_2, window_bounds = array<i64: 1, 64>}, {transform_indices = @transform_3, window_bounds = array<i64: 1, 4, 64>}]} {
    %c0 = arith.constant 0 : index
    %c0_0 = arith.constant 0 : index
    %c0_1 = arith.constant 0 : index
    %0 = vector.load %arg2[%c0, %c0_0, %c0_1] : memref<1x4x288xbf16, #tpu.memory_space<vmem>>, vector<1x4x288xbf16>
    %1 = vector.shape_cast %0 : vector<1x4x288xbf16> to vector<4x288xbf16>
    %c0_2 = arith.constant 0 : index
    %c0_3 = arith.constant 0 : index
    %2 = vector.load %arg3[%c0_2, %c0_3] : memref<288x64xbf16, #tpu.memory_space<vmem>>, vector<288x64xbf16>
    %cst = arith.constant dense<0.000000e+00> : vector<4x64xf32>
    %3 = tpu.matmul %1, %2, %cst {dimension_numbers = #tpu.dot_dimension_numbers<[1], [0], [0], [1], [0, 0, 1, 1], [], []>} : vector<4x288xbf16>, vector<288x64xbf16>, vector<4x64xf32> -> vector<4x64xf32>
    %c0_4 = arith.constant 0 : index
    %c0_5 = arith.constant 0 : index
    %4 = vector.load %arg4[%c0_4, %c0_5] : memref<1x64xf32, #tpu.memory_space<vmem>>, vector<1x64xf32>
    %5 = vector.broadcast %4 : vector<1x64xf32> to vector<4x64xf32>
    %6 = arith.addf %3, %5 : vector<4x64xf32>
    %cst_6 = arith.constant 0.000000e+00 : f32
    %7 = vector.broadcast %cst_6 : f32 to vector<4x64xf32>
    %8 = arith.cmpf oge, %6, %7 : vector<4x64xf32>
    %cst_7 = arith.constant 2.000000e-01 : f32
    %9 = vector.broadcast %cst_7 : f32 to vector<4x64xf32>
    %10 = arith.mulf %9, %6 : vector<4x64xf32>
    %11 = arith.select %8, %6, %10 : vector<4x64xi1>, vector<4x64xf32>
    %c0_8 = arith.constant 0 : index
    %c0_9 = arith.constant 0 : index
    %c0_10 = arith.constant 0 : index
    %12 = vector.load %arg5[%c0_8, %c0_9, %c0_10] : memref<1x4x64xf32, #tpu.memory_space<vmem>>, vector<1x4x64xf32>
    %13 = vector.shape_cast %12 : vector<1x4x64xf32> to vector<4x64xf32>
    %14 = vector.shape_cast %11 : vector<4x64xf32> to vector<1x4x64xf32>
    tpu.vector_store %arg5[%c0_8, %c0_9, %c0_10], %14 {strides = array<i32>} : memref<1x4x64xf32, #tpu.memory_space<vmem>>, vector<1x4x64xf32>,
    return
  }
  func.func @transform_0(%arg0: i32, %arg1: i32) -> (i32, i32, i32) {
    %c0_i32 = arith.constant 0 : i32
    %c0_i32_0 = arith.constant 0 : i32
    return %arg0, %arg1, %c0_i32 : i32, i32, i32
  }
  func.func @transform_1(%arg0: i32, %arg1: i32) -> (i32, i32) {
    %c0_i32 = arith.constant 0 : i32
    %c0_i32_0 = arith.constant 0 : i32
    %c0_i32_1 = arith.constant 0 : i32
    return %c0_i32, %c0_i32_0 : i32, i32
  }
  func.func @transform_2(%arg0: i32, %arg1: i32) -> (i32, i32) {
    %c0_i32 = arith.constant 0 : i32
    %c0_i32_0 = arith.constant 0 : i32
    %c0_i32_1 = arith.constant 0 : i32
    return %c0_i32, %c0_i32_0 : i32, i32
  }
  func.func @transform_3(%arg0: i32, %arg1: i32) -> (i32, i32, i32) {
    %c0_i32 = arith.constant 0 : i32
    %c0_i32_0 = arith.constant 0 : i32
    return %arg0, %arg1, %c0_i32 : i32, i32, i32
  }
}

module attributes {stable_mosaic.version = 11 : i64} {
  func.func @_conv_mm_kernel(%arg0: i32, %arg1: i32, %arg2: memref<1x1x576xbf16, #tpu.memory_space<vmem>>, %arg3: memref<576x64xbf16, #tpu.memory_space<vmem>>, %arg4: memref<1x64xf32, #tpu.memory_space<vmem>>, %arg5: memref<1x1x64xf32, #tpu.memory_space<vmem>>) attributes {dimension_semantics = [#tpu.dimension_semantics<parallel>, #tpu.dimension_semantics<parallel>], iteration_bounds = array<i64: 2, 1>, scalar_prefetch = 0 : i64, scratch_operands = 0 : i64, tpu.core_type = #tpu.core_type<tc>, window_params = [{transform_indices = @transform_0, window_bounds = array<i64: 1, 1, 576>}, {pipeline_mode = #tpu.pipeline_mode<synchronous>, transform_indices = @transform_1, window_bounds = array<i64: 576, 64>}, {pipeline_mode = #tpu.pipeline_mode<synchronous>, transform_indices = @transform_2, window_bounds = array<i64: 1, 64>}, {transform_indices = @transform_3, window_bounds = array<i64: 1, 1, 64>}]} {
    %c0 = arith.constant 0 : index
    %c0_0 = arith.constant 0 : index
    %c0_1 = arith.constant 0 : index
    %0 = vector.load %arg2[%c0, %c0_0, %c0_1] : memref<1x1x576xbf16, #tpu.memory_space<vmem>>, vector<1x1x576xbf16>
    %1 = vector.shape_cast %0 : vector<1x1x576xbf16> to vector<1x576xbf16>
    %c0_2 = arith.constant 0 : index
    %c0_3 = arith.constant 0 : index
    %2 = vector.load %arg3[%c0_2, %c0_3] : memref<576x64xbf16, #tpu.memory_space<vmem>>, vector<576x64xbf16>
    %cst = arith.constant dense<0.000000e+00> : vector<1x64xf32>
    %3 = tpu.matmul %1, %2, %cst {dimension_numbers = #tpu.dot_dimension_numbers<[1], [0], [0], [1], [0, 0, 1, 1], [], []>} : vector<1x576xbf16>, vector<576x64xbf16>, vector<1x64xf32> -> vector<1x64xf32>
    %c0_4 = arith.constant 0 : index
    %c0_5 = arith.constant 0 : index
    %4 = vector.load %arg4[%c0_4, %c0_5] : memref<1x64xf32, #tpu.memory_space<vmem>>, vector<1x64xf32>
    %5 = arith.addf %3, %4 : vector<1x64xf32>
    %cst_6 = arith.constant 0.000000e+00 : f32
    %6 = vector.broadcast %cst_6 : f32 to vector<1x64xf32>
    %7 = arith.cmpf oge, %5, %6 : vector<1x64xf32>
    %cst_7 = arith.constant 2.000000e-01 : f32
    %8 = vector.broadcast %cst_7 : f32 to vector<1x64xf32>
    %9 = arith.mulf %8, %5 : vector<1x64xf32>
    %10 = arith.select %7, %5, %9 : vector<1x64xi1>, vector<1x64xf32>
    %c0_8 = arith.constant 0 : index
    %c0_9 = arith.constant 0 : index
    %c0_10 = arith.constant 0 : index
    %11 = vector.load %arg5[%c0_8, %c0_9, %c0_10] : memref<1x1x64xf32, #tpu.memory_space<vmem>>, vector<1x1x64xf32>
    %12 = vector.shape_cast %11 : vector<1x1x64xf32> to vector<1x64xf32>
    %13 = vector.shape_cast %10 : vector<1x64xf32> to vector<1x1x64xf32>
    tpu.vector_store %arg5[%c0_8, %c0_9, %c0_10], %13 {strides = array<i32>} : memref<1x1x64xf32, #tpu.memory_space<vmem>>, vector<1x1x64xf32>,
    return
  }
  func.func @transform_0(%arg0: i32, %arg1: i32) -> (i32, i32, i32) {
    %c0_i32 = arith.constant 0 : i32
    %c0_i32_0 = arith.constant 0 : i32
    return %arg0, %arg1, %c0_i32 : i32, i32, i32
  }
  func.func @transform_1(%arg0: i32, %arg1: i32) -> (i32, i32) {
    %c0_i32 = arith.constant 0 : i32
    %c0_i32_0 = arith.constant 0 : i32
    %c0_i32_1 = arith.constant 0 : i32
    return %c0_i32, %c0_i32_0 : i32, i32
  }
  func.func @transform_2(%arg0: i32, %arg1: i32) -> (i32, i32) {
    %c0_i32 = arith.constant 0 : i32
    %c0_i32_0 = arith.constant 0 : i32
    %c0_i32_1 = arith.constant 0 : i32
    return %c0_i32, %c0_i32_0 : i32, i32
  }
  func.func @transform_3(%arg0: i32, %arg1: i32) -> (i32, i32, i32) {
    %c0_i32 = arith.constant 0 : i32
    %c0_i32_0 = arith.constant 0 : i32
    return %arg0, %arg1, %c0_i32 : i32, i32, i32
  }
}

module attributes {stable_mosaic.version = 11 : i64} {
  func.func @_conv_mm_kernel(%arg0: i32, %arg1: i32, %arg2: memref<1x1x576xbf16, #tpu.memory_space<vmem>>, %arg3: memref<576x256xbf16, #tpu.memory_space<vmem>>, %arg4: memref<1x256xf32, #tpu.memory_space<vmem>>, %arg5: memref<1x1x256xf32, #tpu.memory_space<vmem>>) attributes {dimension_semantics = [#tpu.dimension_semantics<parallel>, #tpu.dimension_semantics<parallel>], iteration_bounds = array<i64: 2, 1>, scalar_prefetch = 0 : i64, scratch_operands = 0 : i64, tpu.core_type = #tpu.core_type<tc>, window_params = [{transform_indices = @transform_0, window_bounds = array<i64: 1, 1, 576>}, {pipeline_mode = #tpu.pipeline_mode<synchronous>, transform_indices = @transform_1, window_bounds = array<i64: 576, 256>}, {pipeline_mode = #tpu.pipeline_mode<synchronous>, transform_indices = @transform_2, window_bounds = array<i64: 1, 256>}, {transform_indices = @transform_3, window_bounds = array<i64: 1, 1, 256>}]} {
    %c0 = arith.constant 0 : index
    %c0_0 = arith.constant 0 : index
    %c0_1 = arith.constant 0 : index
    %0 = vector.load %arg2[%c0, %c0_0, %c0_1] : memref<1x1x576xbf16, #tpu.memory_space<vmem>>, vector<1x1x576xbf16>
    %1 = vector.shape_cast %0 : vector<1x1x576xbf16> to vector<1x576xbf16>
    %c0_2 = arith.constant 0 : index
    %c0_3 = arith.constant 0 : index
    %2 = vector.load %arg3[%c0_2, %c0_3] : memref<576x256xbf16, #tpu.memory_space<vmem>>, vector<576x256xbf16>
    %cst = arith.constant dense<0.000000e+00> : vector<1x256xf32>
    %3 = tpu.matmul %1, %2, %cst {dimension_numbers = #tpu.dot_dimension_numbers<[1], [0], [0], [1], [0, 0, 1, 1], [], []>} : vector<1x576xbf16>, vector<576x256xbf16>, vector<1x256xf32> -> vector<1x256xf32>
    %c0_4 = arith.constant 0 : index
    %c0_5 = arith.constant 0 : index
    %4 = vector.load %arg4[%c0_4, %c0_5] : memref<1x256xf32, #tpu.memory_space<vmem>>, vector<1x256xf32>
    %5 = arith.addf %3, %4 : vector<1x256xf32>
    %c0_6 = arith.constant 0 : index
    %c0_7 = arith.constant 0 : index
    %c0_8 = arith.constant 0 : index
    %6 = vector.load %arg5[%c0_6, %c0_7, %c0_8] : memref<1x1x256xf32, #tpu.memory_space<vmem>>, vector<1x1x256xf32>
    %7 = vector.shape_cast %6 : vector<1x1x256xf32> to vector<1x256xf32>
    %8 = vector.shape_cast %5 : vector<1x256xf32> to vector<1x1x256xf32>
    tpu.vector_store %arg5[%c0_6, %c0_7, %c0_8], %8 {strides = array<i32>} : memref<1x1x256xf32, #tpu.memory_space<vmem>>, vector<1x1x256xf32>,
    return
  }
  func.func @transform_0(%arg0: i32, %arg1: i32) -> (i32, i32, i32) {
    %c0_i32 = arith.constant 0 : i32
    %c0_i32_0 = arith.constant 0 : i32
    return %arg0, %arg1, %c0_i32 : i32, i32, i32
  }
  func.func @transform_1(%arg0: i32, %arg1: i32) -> (i32, i32) {
    %c0_i32 = arith.constant 0 : i32
    %c0_i32_0 = arith.constant 0 : i32
    %c0_i32_1 = arith.constant 0 : i32
    return %c0_i32, %c0_i32_0 : i32, i32
  }
  func.func @transform_2(%arg0: i32, %arg1: i32) -> (i32, i32) {
    %c0_i32 = arith.constant 0 : i32
    %c0_i32_0 = arith.constant 0 : i32
    %c0_i32_1 = arith.constant 0 : i32
    return %c0_i32, %c0_i32_0 : i32, i32
  }
  func.func @transform_3(%arg0: i32, %arg1: i32) -> (i32, i32, i32) {
    %c0_i32 = arith.constant 0 : i32
    %c0_i32_0 = arith.constant 0 : i32
    return %arg0, %arg1, %c0_i32 : i32, i32, i32
  }
}

module attributes {stable_mosaic.version = 11 : i64} {
  func.func @_conv_mm_kernel(%arg0: i32, %arg1: i32, %arg2: memref<1x4x1152xbf16, #tpu.memory_space<vmem>>, %arg3: memref<1152x128xbf16, #tpu.memory_space<vmem>>, %arg4: memref<1x128xf32, #tpu.memory_space<vmem>>, %arg5: memref<1x4x128xf32, #tpu.memory_space<vmem>>) attributes {dimension_semantics = [#tpu.dimension_semantics<parallel>, #tpu.dimension_semantics<parallel>], iteration_bounds = array<i64: 2, 1>, scalar_prefetch = 0 : i64, scratch_operands = 0 : i64, tpu.core_type = #tpu.core_type<tc>, window_params = [{transform_indices = @transform_0, window_bounds = array<i64: 1, 4, 1152>}, {pipeline_mode = #tpu.pipeline_mode<synchronous>, transform_indices = @transform_1, window_bounds = array<i64: 1152, 128>}, {pipeline_mode = #tpu.pipeline_mode<synchronous>, transform_indices = @transform_2, window_bounds = array<i64: 1, 128>}, {transform_indices = @transform_3, window_bounds = array<i64: 1, 4, 128>}]} {
    %c0 = arith.constant 0 : index
    %c0_0 = arith.constant 0 : index
    %c0_1 = arith.constant 0 : index
    %0 = vector.load %arg2[%c0, %c0_0, %c0_1] : memref<1x4x1152xbf16, #tpu.memory_space<vmem>>, vector<1x4x1152xbf16>
    %1 = vector.shape_cast %0 : vector<1x4x1152xbf16> to vector<4x1152xbf16>
    %c0_2 = arith.constant 0 : index
    %c0_3 = arith.constant 0 : index
    %2 = vector.load %arg3[%c0_2, %c0_3] : memref<1152x128xbf16, #tpu.memory_space<vmem>>, vector<1152x128xbf16>
    %cst = arith.constant dense<0.000000e+00> : vector<4x128xf32>
    %3 = tpu.matmul %1, %2, %cst {dimension_numbers = #tpu.dot_dimension_numbers<[1], [0], [0], [1], [0, 0, 1, 1], [], []>} : vector<4x1152xbf16>, vector<1152x128xbf16>, vector<4x128xf32> -> vector<4x128xf32>
    %c0_4 = arith.constant 0 : index
    %c0_5 = arith.constant 0 : index
    %4 = vector.load %arg4[%c0_4, %c0_5] : memref<1x128xf32, #tpu.memory_space<vmem>>, vector<1x128xf32>
    %5 = vector.broadcast %4 : vector<1x128xf32> to vector<4x128xf32>
    %6 = arith.addf %3, %5 : vector<4x128xf32>
    %cst_6 = arith.constant 0.000000e+00 : f32
    %7 = vector.broadcast %cst_6 : f32 to vector<4x128xf32>
    %8 = arith.cmpf oge, %6, %7 : vector<4x128xf32>
    %cst_7 = arith.constant 2.000000e-01 : f32
    %9 = vector.broadcast %cst_7 : f32 to vector<4x128xf32>
    %10 = arith.mulf %9, %6 : vector<4x128xf32>
    %11 = arith.select %8, %6, %10 : vector<4x128xi1>, vector<4x128xf32>
    %c0_8 = arith.constant 0 : index
    %c0_9 = arith.constant 0 : index
    %c0_10 = arith.constant 0 : index
    %12 = vector.load %arg5[%c0_8, %c0_9, %c0_10] : memref<1x4x128xf32, #tpu.memory_space<vmem>>, vector<1x4x128xf32>
    %13 = vector.shape_cast %12 : vector<1x4x128xf32> to vector<4x128xf32>
    %14 = vector.shape_cast %11 : vector<4x128xf32> to vector<1x4x128xf32>
    tpu.vector_store %arg5[%c0_8, %c0_9, %c0_10], %14 {strides = array<i32>} : memref<1x4x128xf32, #tpu.memory_space<vmem>>, vector<1x4x128xf32>,
    return
  }
  func.func @transform_0(%arg0: i32, %arg1: i32) -> (i32, i32, i32) {
    %c0_i32 = arith.constant 0 : i32
    %c0_i32_0 = arith.constant 0 : i32
    return %arg0, %arg1, %c0_i32 : i32, i32, i32
  }
  func.func @transform_1(%arg0: i32, %arg1: i32) -> (i32, i32) {
    %c0_i32 = arith.constant 0 : i32
    %c0_i32_0 = arith.constant 0 : i32
    %c0_i32_1 = arith.constant 0 : i32
    return %c0_i32, %c0_i32_0 : i32, i32
  }
  func.func @transform_2(%arg0: i32, %arg1: i32) -> (i32, i32) {
    %c0_i32 = arith.constant 0 : i32
    %c0_i32_0 = arith.constant 0 : i32
    %c0_i32_1 = arith.constant 0 : i32
    return %c0_i32, %c0_i32_0 : i32, i32
  }
  func.func @transform_3(%arg0: i32, %arg1: i32) -> (i32, i32, i32) {
    %c0_i32 = arith.constant 0 : i32
    %c0_i32_0 = arith.constant 0 : i32
    return %arg0, %arg1, %c0_i32 : i32, i32, i32
  }
}

module attributes {stable_mosaic.version = 11 : i64} {
  func.func @_conv_mm_kernel(%arg0: i32, %arg1: i32, %arg2: memref<1x4x576xbf16, #tpu.memory_space<vmem>>, %arg3: memref<1x4x576xbf16, #tpu.memory_space<vmem>>, %arg4: memref<576x128xbf16, #tpu.memory_space<vmem>>, %arg5: memref<576x128xbf16, #tpu.memory_space<vmem>>, %arg6: memref<1x128xf32, #tpu.memory_space<vmem>>, %arg7: memref<1x4x128xf32, #tpu.memory_space<vmem>>) attributes {dimension_semantics = [#tpu.dimension_semantics<parallel>, #tpu.dimension_semantics<parallel>], iteration_bounds = array<i64: 2, 1>, scalar_prefetch = 0 : i64, scratch_operands = 0 : i64, tpu.core_type = #tpu.core_type<tc>, window_params = [{transform_indices = @transform_0, window_bounds = array<i64: 1, 4, 576>}, {transform_indices = @transform_1, window_bounds = array<i64: 1, 4, 576>}, {pipeline_mode = #tpu.pipeline_mode<synchronous>, transform_indices = @transform_2, window_bounds = array<i64: 576, 128>}, {pipeline_mode = #tpu.pipeline_mode<synchronous>, transform_indices = @transform_3, window_bounds = array<i64: 576, 128>}, {pipeline_mode = #tpu.pipeline_mode<synchronous>, transform_indices = @transform_4, window_bounds = array<i64: 1, 128>}, {transform_indices = @transform_5, window_bounds = array<i64: 1, 4, 128>}]} {
    %c0 = arith.constant 0 : index
    %c0_0 = arith.constant 0 : index
    %c0_1 = arith.constant 0 : index
    %0 = vector.load %arg2[%c0, %c0_0, %c0_1] : memref<1x4x576xbf16, #tpu.memory_space<vmem>>, vector<1x4x576xbf16>
    %1 = vector.shape_cast %0 : vector<1x4x576xbf16> to vector<4x576xbf16>
    %c0_2 = arith.constant 0 : index
    %c0_3 = arith.constant 0 : index
    %2 = vector.load %arg4[%c0_2, %c0_3] : memref<576x128xbf16, #tpu.memory_space<vmem>>, vector<576x128xbf16>
    %cst = arith.constant dense<0.000000e+00> : vector<4x128xf32>
    %3 = tpu.matmul %1, %2, %cst {dimension_numbers = #tpu.dot_dimension_numbers<[1], [0], [0], [1], [0, 0, 1, 1], [], []>} : vector<4x576xbf16>, vector<576x128xbf16>, vector<4x128xf32> -> vector<4x128xf32>
    %c0_4 = arith.constant 0 : index
    %c0_5 = arith.constant 0 : index
    %c0_6 = arith.constant 0 : index
    %4 = vector.load %arg3[%c0_4, %c0_5, %c0_6] : memref<1x4x576xbf16, #tpu.memory_space<vmem>>, vector<1x4x576xbf16>
    %5 = vector.shape_cast %4 : vector<1x4x576xbf16> to vector<4x576xbf16>
    %c0_7 = arith.constant 0 : index
    %c0_8 = arith.constant 0 : index
    %6 = vector.load %arg5[%c0_7, %c0_8] : memref<576x128xbf16, #tpu.memory_space<vmem>>, vector<576x128xbf16>
    %cst_9 = arith.constant dense<0.000000e+00> : vector<4x128xf32>
    %7 = tpu.matmul %5, %6, %cst_9 {dimension_numbers = #tpu.dot_dimension_numbers<[1], [0], [0], [1], [0, 0, 1, 1], [], []>} : vector<4x576xbf16>, vector<576x128xbf16>, vector<4x128xf32> -> vector<4x128xf32>
    %8 = arith.addf %3, %7 : vector<4x128xf32>
    %c0_10 = arith.constant 0 : index
    %c0_11 = arith.constant 0 : index
    %9 = vector.load %arg6[%c0_10, %c0_11] : memref<1x128xf32, #tpu.memory_space<vmem>>, vector<1x128xf32>
    %10 = vector.broadcast %9 : vector<1x128xf32> to vector<4x128xf32>
    %11 = arith.addf %8, %10 : vector<4x128xf32>
    %cst_12 = arith.constant 0.000000e+00 : f32
    %12 = vector.broadcast %cst_12 : f32 to vector<4x128xf32>
    %13 = arith.cmpf oge, %11, %12 : vector<4x128xf32>
    %cst_13 = arith.constant 2.000000e-01 : f32
    %14 = vector.broadcast %cst_13 : f32 to vector<4x128xf32>
    %15 = arith.mulf %14, %11 : vector<4x128xf32>
    %16 = arith.select %13, %11, %15 : vector<4x128xi1>, vector<4x128xf32>
    %c0_14 = arith.constant 0 : index
    %c0_15 = arith.constant 0 : index
    %c0_16 = arith.constant 0 : index
    %17 = vector.load %arg7[%c0_14, %c0_15, %c0_16] : memref<1x4x128xf32, #tpu.memory_space<vmem>>, vector<1x4x128xf32>
    %18 = vector.shape_cast %17 : vector<1x4x128xf32> to vector<4x128xf32>
    %19 = vector.shape_cast %16 : vector<4x128xf32> to vector<1x4x128xf32>
    tpu.vector_store %arg7[%c0_14, %c0_15, %c0_16], %19 {strides = array<i32>} : memref<1x4x128xf32, #tpu.memory_space<vmem>>, vector<1x4x128xf32>,
    return
  }
  func.func @transform_0(%arg0: i32, %arg1: i32) -> (i32, i32, i32) {
    %c0_i32 = arith.constant 0 : i32
    %c0_i32_0 = arith.constant 0 : i32
    return %arg0, %arg1, %c0_i32 : i32, i32, i32
  }
  func.func @transform_1(%arg0: i32, %arg1: i32) -> (i32, i32, i32) {
    %c0_i32 = arith.constant 0 : i32
    %c0_i32_0 = arith.constant 0 : i32
    return %arg0, %arg1, %c0_i32 : i32, i32, i32
  }
  func.func @transform_2(%arg0: i32, %arg1: i32) -> (i32, i32) {
    %c0_i32 = arith.constant 0 : i32
    %c0_i32_0 = arith.constant 0 : i32
    %c0_i32_1 = arith.constant 0 : i32
    return %c0_i32, %c0_i32_0 : i32, i32
  }
  func.func @transform_3(%arg0: i32, %arg1: i32) -> (i32, i32) {
    %c0_i32 = arith.constant 0 : i32
    %c0_i32_0 = arith.constant 0 : i32
    %c0_i32_1 = arith.constant 0 : i32
    return %c0_i32, %c0_i32_0 : i32, i32
  }
  func.func @transform_4(%arg0: i32, %arg1: i32) -> (i32, i32) {
    %c0_i32 = arith.constant 0 : i32
    %c0_i32_0 = arith.constant 0 : i32
    %c0_i32_1 = arith.constant 0 : i32
    return %c0_i32, %c0_i32_0 : i32, i32
  }
  func.func @transform_5(%arg0: i32, %arg1: i32) -> (i32, i32, i32) {
    %c0_i32 = arith.constant 0 : i32
    %c0_i32_0 = arith.constant 0 : i32
    return %arg0, %arg1, %c0_i32 : i32, i32, i32
  }
}

module attributes {stable_mosaic.version = 11 : i64} {
  func.func @_conv_mm_kernel(%arg0: i32, %arg1: i32, %arg2: memref<1x4x1152xbf16, #tpu.memory_space<vmem>>, %arg3: memref<1152x32xbf16, #tpu.memory_space<vmem>>, %arg4: memref<1x32xf32, #tpu.memory_space<vmem>>, %arg5: memref<1x4x32xf32, #tpu.memory_space<vmem>>) attributes {dimension_semantics = [#tpu.dimension_semantics<parallel>, #tpu.dimension_semantics<parallel>], iteration_bounds = array<i64: 2, 1>, scalar_prefetch = 0 : i64, scratch_operands = 0 : i64, tpu.core_type = #tpu.core_type<tc>, window_params = [{transform_indices = @transform_0, window_bounds = array<i64: 1, 4, 1152>}, {pipeline_mode = #tpu.pipeline_mode<synchronous>, transform_indices = @transform_1, window_bounds = array<i64: 1152, 32>}, {pipeline_mode = #tpu.pipeline_mode<synchronous>, transform_indices = @transform_2, window_bounds = array<i64: 1, 32>}, {transform_indices = @transform_3, window_bounds = array<i64: 1, 4, 32>}]} {
    %c0 = arith.constant 0 : index
    %c0_0 = arith.constant 0 : index
    %c0_1 = arith.constant 0 : index
    %0 = vector.load %arg2[%c0, %c0_0, %c0_1] : memref<1x4x1152xbf16, #tpu.memory_space<vmem>>, vector<1x4x1152xbf16>
    %1 = vector.shape_cast %0 : vector<1x4x1152xbf16> to vector<4x1152xbf16>
    %c0_2 = arith.constant 0 : index
    %c0_3 = arith.constant 0 : index
    %2 = vector.load %arg3[%c0_2, %c0_3] : memref<1152x32xbf16, #tpu.memory_space<vmem>>, vector<1152x32xbf16>
    %cst = arith.constant dense<0.000000e+00> : vector<4x32xf32>
    %3 = tpu.matmul %1, %2, %cst {dimension_numbers = #tpu.dot_dimension_numbers<[1], [0], [0], [1], [0, 0, 1, 1], [], []>} : vector<4x1152xbf16>, vector<1152x32xbf16>, vector<4x32xf32> -> vector<4x32xf32>
    %c0_4 = arith.constant 0 : index
    %c0_5 = arith.constant 0 : index
    %4 = vector.load %arg4[%c0_4, %c0_5] : memref<1x32xf32, #tpu.memory_space<vmem>>, vector<1x32xf32>
    %5 = vector.broadcast %4 : vector<1x32xf32> to vector<4x32xf32>
    %6 = arith.addf %3, %5 : vector<4x32xf32>
    %cst_6 = arith.constant 0.000000e+00 : f32
    %7 = vector.broadcast %cst_6 : f32 to vector<4x32xf32>
    %8 = arith.cmpf oge, %6, %7 : vector<4x32xf32>
    %cst_7 = arith.constant 2.000000e-01 : f32
    %9 = vector.broadcast %cst_7 : f32 to vector<4x32xf32>
    %10 = arith.mulf %9, %6 : vector<4x32xf32>
    %11 = arith.select %8, %6, %10 : vector<4x32xi1>, vector<4x32xf32>
    %c0_8 = arith.constant 0 : index
    %c0_9 = arith.constant 0 : index
    %c0_10 = arith.constant 0 : index
    %12 = vector.load %arg5[%c0_8, %c0_9, %c0_10] : memref<1x4x32xf32, #tpu.memory_space<vmem>>, vector<1x4x32xf32>
    %13 = vector.shape_cast %12 : vector<1x4x32xf32> to vector<4x32xf32>
    %14 = vector.shape_cast %11 : vector<4x32xf32> to vector<1x4x32xf32>
    tpu.vector_store %arg5[%c0_8, %c0_9, %c0_10], %14 {strides = array<i32>} : memref<1x4x32xf32, #tpu.memory_space<vmem>>, vector<1x4x32xf32>,
    return
  }
  func.func @transform_0(%arg0: i32, %arg1: i32) -> (i32, i32, i32) {
    %c0_i32 = arith.constant 0 : i32
    %c0_i32_0 = arith.constant 0 : i32
    return %arg0, %arg1, %c0_i32 : i32, i32, i32
  }
  func.func @transform_1(%arg0: i32, %arg1: i32) -> (i32, i32) {
    %c0_i32 = arith.constant 0 : i32
    %c0_i32_0 = arith.constant 0 : i32
    %c0_i32_1 = arith.constant 0 : i32
    return %c0_i32, %c0_i32_0 : i32, i32
  }
  func.func @transform_2(%arg0: i32, %arg1: i32) -> (i32, i32) {
    %c0_i32 = arith.constant 0 : i32
    %c0_i32_0 = arith.constant 0 : i32
    %c0_i32_1 = arith.constant 0 : i32
    return %c0_i32, %c0_i32_0 : i32, i32
  }
  func.func @transform_3(%arg0: i32, %arg1: i32) -> (i32, i32, i32) {
    %c0_i32 = arith.constant 0 : i32
    %c0_i32_0 = arith.constant 0 : i32
    return %arg0, %arg1, %c0_i32 : i32, i32, i32
  }
}

module attributes {stable_mosaic.version = 11 : i64} {
  func.func @_conv_mm_kernel(%arg0: i32, %arg1: i32, %arg2: memref<1x4x288xbf16, #tpu.memory_space<vmem>>, %arg3: memref<288x128xbf16, #tpu.memory_space<vmem>>, %arg4: memref<1x128xf32, #tpu.memory_space<vmem>>, %arg5: memref<1x4x128xf32, #tpu.memory_space<vmem>>) attributes {dimension_semantics = [#tpu.dimension_semantics<parallel>, #tpu.dimension_semantics<parallel>], iteration_bounds = array<i64: 2, 1>, scalar_prefetch = 0 : i64, scratch_operands = 0 : i64, tpu.core_type = #tpu.core_type<tc>, window_params = [{transform_indices = @transform_0, window_bounds = array<i64: 1, 4, 288>}, {pipeline_mode = #tpu.pipeline_mode<synchronous>, transform_indices = @transform_1, window_bounds = array<i64: 288, 128>}, {pipeline_mode = #tpu.pipeline_mode<synchronous>, transform_indices = @transform_2, window_bounds = array<i64: 1, 128>}, {transform_indices = @transform_3, window_bounds = array<i64: 1, 4, 128>}]} {
    %c0 = arith.constant 0 : index
    %c0_0 = arith.constant 0 : index
    %c0_1 = arith.constant 0 : index
    %0 = vector.load %arg2[%c0, %c0_0, %c0_1] : memref<1x4x288xbf16, #tpu.memory_space<vmem>>, vector<1x4x288xbf16>
    %1 = vector.shape_cast %0 : vector<1x4x288xbf16> to vector<4x288xbf16>
    %c0_2 = arith.constant 0 : index
    %c0_3 = arith.constant 0 : index
    %2 = vector.load %arg3[%c0_2, %c0_3] : memref<288x128xbf16, #tpu.memory_space<vmem>>, vector<288x128xbf16>
    %cst = arith.constant dense<0.000000e+00> : vector<4x128xf32>
    %3 = tpu.matmul %1, %2, %cst {dimension_numbers = #tpu.dot_dimension_numbers<[1], [0], [0], [1], [0, 0, 1, 1], [], []>} : vector<4x288xbf16>, vector<288x128xbf16>, vector<4x128xf32> -> vector<4x128xf32>
    %c0_4 = arith.constant 0 : index
    %c0_5 = arith.constant 0 : index
    %4 = vector.load %arg4[%c0_4, %c0_5] : memref<1x128xf32, #tpu.memory_space<vmem>>, vector<1x128xf32>
    %5 = vector.broadcast %4 : vector<1x128xf32> to vector<4x128xf32>
    %6 = arith.addf %3, %5 : vector<4x128xf32>
    %c0_6 = arith.constant 0 : index
    %c0_7 = arith.constant 0 : index
    %c0_8 = arith.constant 0 : index
    %7 = vector.load %arg5[%c0_6, %c0_7, %c0_8] : memref<1x4x128xf32, #tpu.memory_space<vmem>>, vector<1x4x128xf32>
    %8 = vector.shape_cast %7 : vector<1x4x128xf32> to vector<4x128xf32>
    %9 = vector.shape_cast %6 : vector<4x128xf32> to vector<1x4x128xf32>
    tpu.vector_store %arg5[%c0_6, %c0_7, %c0_8], %9 {strides = array<i32>} : memref<1x4x128xf32, #tpu.memory_space<vmem>>, vector<1x4x128xf32>,
    return
  }
  func.func @transform_0(%arg0: i32, %arg1: i32) -> (i32, i32, i32) {
    %c0_i32 = arith.constant 0 : i32
    %c0_i32_0 = arith.constant 0 : i32
    return %arg0, %arg1, %c0_i32 : i32, i32, i32
  }
  func.func @transform_1(%arg0: i32, %arg1: i32) -> (i32, i32) {
    %c0_i32 = arith.constant 0 : i32
    %c0_i32_0 = arith.constant 0 : i32
    %c0_i32_1 = arith.constant 0 : i32
    return %c0_i32, %c0_i32_0 : i32, i32
  }
  func.func @transform_2(%arg0: i32, %arg1: i32) -> (i32, i32) {
    %c0_i32 = arith.constant 0 : i32
    %c0_i32_0 = arith.constant 0 : i32
    %c0_i32_1 = arith.constant 0 : i32
    return %c0_i32, %c0_i32_0 : i32, i32
  }
  func.func @transform_3(%arg0: i32, %arg1: i32) -> (i32, i32, i32) {
    %c0_i32 = arith.constant 0 : i32
    %c0_i32_0 = arith.constant 0 : i32
    return %arg0, %arg1, %c0_i32 : i32, i32, i32
  }
}

module attributes {stable_mosaic.version = 11 : i64} {
  func.func @_conv_mm_kernel(%arg0: i32, %arg1: i32, %arg2: memref<1x16x288xbf16, #tpu.memory_space<vmem>>, %arg3: memref<1x16x288xbf16, #tpu.memory_space<vmem>>, %arg4: memref<288x64xbf16, #tpu.memory_space<vmem>>, %arg5: memref<288x64xbf16, #tpu.memory_space<vmem>>, %arg6: memref<1x64xf32, #tpu.memory_space<vmem>>, %arg7: memref<1x16x64xf32, #tpu.memory_space<vmem>>) attributes {dimension_semantics = [#tpu.dimension_semantics<parallel>, #tpu.dimension_semantics<parallel>], iteration_bounds = array<i64: 2, 1>, scalar_prefetch = 0 : i64, scratch_operands = 0 : i64, tpu.core_type = #tpu.core_type<tc>, window_params = [{transform_indices = @transform_0, window_bounds = array<i64: 1, 16, 288>}, {transform_indices = @transform_1, window_bounds = array<i64: 1, 16, 288>}, {pipeline_mode = #tpu.pipeline_mode<synchronous>, transform_indices = @transform_2, window_bounds = array<i64: 288, 64>}, {pipeline_mode = #tpu.pipeline_mode<synchronous>, transform_indices = @transform_3, window_bounds = array<i64: 288, 64>}, {pipeline_mode = #tpu.pipeline_mode<synchronous>, transform_indices = @transform_4, window_bounds = array<i64: 1, 64>}, {transform_indices = @transform_5, window_bounds = array<i64: 1, 16, 64>}]} {
    %c0 = arith.constant 0 : index
    %c0_0 = arith.constant 0 : index
    %c0_1 = arith.constant 0 : index
    %0 = vector.load %arg2[%c0, %c0_0, %c0_1] : memref<1x16x288xbf16, #tpu.memory_space<vmem>>, vector<1x16x288xbf16>
    %1 = vector.shape_cast %0 : vector<1x16x288xbf16> to vector<16x288xbf16>
    %c0_2 = arith.constant 0 : index
    %c0_3 = arith.constant 0 : index
    %2 = vector.load %arg4[%c0_2, %c0_3] : memref<288x64xbf16, #tpu.memory_space<vmem>>, vector<288x64xbf16>
    %cst = arith.constant dense<0.000000e+00> : vector<16x64xf32>
    %3 = tpu.matmul %1, %2, %cst {dimension_numbers = #tpu.dot_dimension_numbers<[1], [0], [0], [1], [0, 0, 1, 1], [], []>} : vector<16x288xbf16>, vector<288x64xbf16>, vector<16x64xf32> -> vector<16x64xf32>
    %c0_4 = arith.constant 0 : index
    %c0_5 = arith.constant 0 : index
    %c0_6 = arith.constant 0 : index
    %4 = vector.load %arg3[%c0_4, %c0_5, %c0_6] : memref<1x16x288xbf16, #tpu.memory_space<vmem>>, vector<1x16x288xbf16>
    %5 = vector.shape_cast %4 : vector<1x16x288xbf16> to vector<16x288xbf16>
    %c0_7 = arith.constant 0 : index
    %c0_8 = arith.constant 0 : index
    %6 = vector.load %arg5[%c0_7, %c0_8] : memref<288x64xbf16, #tpu.memory_space<vmem>>, vector<288x64xbf16>
    %cst_9 = arith.constant dense<0.000000e+00> : vector<16x64xf32>
    %7 = tpu.matmul %5, %6, %cst_9 {dimension_numbers = #tpu.dot_dimension_numbers<[1], [0], [0], [1], [0, 0, 1, 1], [], []>} : vector<16x288xbf16>, vector<288x64xbf16>, vector<16x64xf32> -> vector<16x64xf32>
    %8 = arith.addf %3, %7 : vector<16x64xf32>
    %c0_10 = arith.constant 0 : index
    %c0_11 = arith.constant 0 : index
    %9 = vector.load %arg6[%c0_10, %c0_11] : memref<1x64xf32, #tpu.memory_space<vmem>>, vector<1x64xf32>
    %10 = vector.broadcast %9 : vector<1x64xf32> to vector<16x64xf32>
    %11 = arith.addf %8, %10 : vector<16x64xf32>
    %cst_12 = arith.constant 0.000000e+00 : f32
    %12 = vector.broadcast %cst_12 : f32 to vector<16x64xf32>
    %13 = arith.cmpf oge, %11, %12 : vector<16x64xf32>
    %cst_13 = arith.constant 2.000000e-01 : f32
    %14 = vector.broadcast %cst_13 : f32 to vector<16x64xf32>
    %15 = arith.mulf %14, %11 : vector<16x64xf32>
    %16 = arith.select %13, %11, %15 : vector<16x64xi1>, vector<16x64xf32>
    %c0_14 = arith.constant 0 : index
    %c0_15 = arith.constant 0 : index
    %c0_16 = arith.constant 0 : index
    %17 = vector.load %arg7[%c0_14, %c0_15, %c0_16] : memref<1x16x64xf32, #tpu.memory_space<vmem>>, vector<1x16x64xf32>
    %18 = vector.shape_cast %17 : vector<1x16x64xf32> to vector<16x64xf32>
    %19 = vector.shape_cast %16 : vector<16x64xf32> to vector<1x16x64xf32>
    tpu.vector_store %arg7[%c0_14, %c0_15, %c0_16], %19 {strides = array<i32>} : memref<1x16x64xf32, #tpu.memory_space<vmem>>, vector<1x16x64xf32>,
    return
  }
  func.func @transform_0(%arg0: i32, %arg1: i32) -> (i32, i32, i32) {
    %c0_i32 = arith.constant 0 : i32
    %c0_i32_0 = arith.constant 0 : i32
    return %arg0, %arg1, %c0_i32 : i32, i32, i32
  }
  func.func @transform_1(%arg0: i32, %arg1: i32) -> (i32, i32, i32) {
    %c0_i32 = arith.constant 0 : i32
    %c0_i32_0 = arith.constant 0 : i32
    return %arg0, %arg1, %c0_i32 : i32, i32, i32
  }
  func.func @transform_2(%arg0: i32, %arg1: i32) -> (i32, i32) {
    %c0_i32 = arith.constant 0 : i32
    %c0_i32_0 = arith.constant 0 : i32
    %c0_i32_1 = arith.constant 0 : i32
    return %c0_i32, %c0_i32_0 : i32, i32
  }
  func.func @transform_3(%arg0: i32, %arg1: i32) -> (i32, i32) {
    %c0_i32 = arith.constant 0 : i32
    %c0_i32_0 = arith.constant 0 : i32
    %c0_i32_1 = arith.constant 0 : i32
    return %c0_i32, %c0_i32_0 : i32, i32
  }
  func.func @transform_4(%arg0: i32, %arg1: i32) -> (i32, i32) {
    %c0_i32 = arith.constant 0 : i32
    %c0_i32_0 = arith.constant 0 : i32
    %c0_i32_1 = arith.constant 0 : i32
    return %c0_i32, %c0_i32_0 : i32, i32
  }
  func.func @transform_5(%arg0: i32, %arg1: i32) -> (i32, i32, i32) {
    %c0_i32 = arith.constant 0 : i32
    %c0_i32_0 = arith.constant 0 : i32
    return %arg0, %arg1, %c0_i32 : i32, i32, i32
  }
}

module attributes {stable_mosaic.version = 11 : i64} {
  func.func @_conv_mm_kernel(%arg0: i32, %arg1: i32, %arg2: memref<1x16x576xbf16, #tpu.memory_space<vmem>>, %arg3: memref<576x16xbf16, #tpu.memory_space<vmem>>, %arg4: memref<1x16xf32, #tpu.memory_space<vmem>>, %arg5: memref<1x16x16xf32, #tpu.memory_space<vmem>>) attributes {dimension_semantics = [#tpu.dimension_semantics<parallel>, #tpu.dimension_semantics<parallel>], iteration_bounds = array<i64: 2, 1>, scalar_prefetch = 0 : i64, scratch_operands = 0 : i64, tpu.core_type = #tpu.core_type<tc>, window_params = [{transform_indices = @transform_0, window_bounds = array<i64: 1, 16, 576>}, {pipeline_mode = #tpu.pipeline_mode<synchronous>, transform_indices = @transform_1, window_bounds = array<i64: 576, 16>}, {pipeline_mode = #tpu.pipeline_mode<synchronous>, transform_indices = @transform_2, window_bounds = array<i64: 1, 16>}, {transform_indices = @transform_3, window_bounds = array<i64: 1, 16, 16>}]} {
    %c0 = arith.constant 0 : index
    %c0_0 = arith.constant 0 : index
    %c0_1 = arith.constant 0 : index
    %0 = vector.load %arg2[%c0, %c0_0, %c0_1] : memref<1x16x576xbf16, #tpu.memory_space<vmem>>, vector<1x16x576xbf16>
    %1 = vector.shape_cast %0 : vector<1x16x576xbf16> to vector<16x576xbf16>
    %c0_2 = arith.constant 0 : index
    %c0_3 = arith.constant 0 : index
    %2 = vector.load %arg3[%c0_2, %c0_3] : memref<576x16xbf16, #tpu.memory_space<vmem>>, vector<576x16xbf16>
    %cst = arith.constant dense<0.000000e+00> : vector<16x16xf32>
    %3 = tpu.matmul %1, %2, %cst {dimension_numbers = #tpu.dot_dimension_numbers<[1], [0], [0], [1], [0, 0, 1, 1], [], []>} : vector<16x576xbf16>, vector<576x16xbf16>, vector<16x16xf32> -> vector<16x16xf32>
    %c0_4 = arith.constant 0 : index
    %c0_5 = arith.constant 0 : index
    %4 = vector.load %arg4[%c0_4, %c0_5] : memref<1x16xf32, #tpu.memory_space<vmem>>, vector<1x16xf32>
    %5 = vector.broadcast %4 : vector<1x16xf32> to vector<16x16xf32>
    %6 = arith.addf %3, %5 : vector<16x16xf32>
    %cst_6 = arith.constant 0.000000e+00 : f32
    %7 = vector.broadcast %cst_6 : f32 to vector<16x16xf32>
    %8 = arith.cmpf oge, %6, %7 : vector<16x16xf32>
    %cst_7 = arith.constant 2.000000e-01 : f32
    %9 = vector.broadcast %cst_7 : f32 to vector<16x16xf32>
    %10 = arith.mulf %9, %6 : vector<16x16xf32>
    %11 = arith.select %8, %6, %10 : vector<16x16xi1>, vector<16x16xf32>
    %c0_8 = arith.constant 0 : index
    %c0_9 = arith.constant 0 : index
    %c0_10 = arith.constant 0 : index
    %12 = vector.load %arg5[%c0_8, %c0_9, %c0_10] : memref<1x16x16xf32, #tpu.memory_space<vmem>>, vector<1x16x16xf32>
    %13 = vector.shape_cast %12 : vector<1x16x16xf32> to vector<16x16xf32>
    %14 = vector.shape_cast %11 : vector<16x16xf32> to vector<1x16x16xf32>
    tpu.vector_store %arg5[%c0_8, %c0_9, %c0_10], %14 {strides = array<i32>} : memref<1x16x16xf32, #tpu.memory_space<vmem>>, vector<1x16x16xf32>,
    return
  }
  func.func @transform_0(%arg0: i32, %arg1: i32) -> (i32, i32, i32) {
    %c0_i32 = arith.constant 0 : i32
    %c0_i32_0 = arith.constant 0 : i32
    return %arg0, %arg1, %c0_i32 : i32, i32, i32
  }
  func.func @transform_1(%arg0: i32, %arg1: i32) -> (i32, i32) {
    %c0_i32 = arith.constant 0 : i32
    %c0_i32_0 = arith.constant 0 : i32
    %c0_i32_1 = arith.constant 0 : i32
    return %c0_i32, %c0_i32_0 : i32, i32
  }
  func.func @transform_2(%arg0: i32, %arg1: i32) -> (i32, i32) {
    %c0_i32 = arith.constant 0 : i32
    %c0_i32_0 = arith.constant 0 : i32
    %c0_i32_1 = arith.constant 0 : i32
    return %c0_i32, %c0_i32_0 : i32, i32
  }
  func.func @transform_3(%arg0: i32, %arg1: i32) -> (i32, i32, i32) {
    %c0_i32 = arith.constant 0 : i32
    %c0_i32_0 = arith.constant 0 : i32
    return %arg0, %arg1, %c0_i32 : i32, i32, i32
  }
}

module attributes {stable_mosaic.version = 11 : i64} {
  func.func @_conv_mm_kernel(%arg0: i32, %arg1: i32, %arg2: memref<1x16x576xbf16, #tpu.memory_space<vmem>>, %arg3: memref<576x64xbf16, #tpu.memory_space<vmem>>, %arg4: memref<1x64xf32, #tpu.memory_space<vmem>>, %arg5: memref<1x16x64xf32, #tpu.memory_space<vmem>>) attributes {dimension_semantics = [#tpu.dimension_semantics<parallel>, #tpu.dimension_semantics<parallel>], iteration_bounds = array<i64: 2, 1>, scalar_prefetch = 0 : i64, scratch_operands = 0 : i64, tpu.core_type = #tpu.core_type<tc>, window_params = [{transform_indices = @transform_0, window_bounds = array<i64: 1, 16, 576>}, {pipeline_mode = #tpu.pipeline_mode<synchronous>, transform_indices = @transform_1, window_bounds = array<i64: 576, 64>}, {pipeline_mode = #tpu.pipeline_mode<synchronous>, transform_indices = @transform_2, window_bounds = array<i64: 1, 64>}, {transform_indices = @transform_3, window_bounds = array<i64: 1, 16, 64>}]} {
    %c0 = arith.constant 0 : index
    %c0_0 = arith.constant 0 : index
    %c0_1 = arith.constant 0 : index
    %0 = vector.load %arg2[%c0, %c0_0, %c0_1] : memref<1x16x576xbf16, #tpu.memory_space<vmem>>, vector<1x16x576xbf16>
    %1 = vector.shape_cast %0 : vector<1x16x576xbf16> to vector<16x576xbf16>
    %c0_2 = arith.constant 0 : index
    %c0_3 = arith.constant 0 : index
    %2 = vector.load %arg3[%c0_2, %c0_3] : memref<576x64xbf16, #tpu.memory_space<vmem>>, vector<576x64xbf16>
    %cst = arith.constant dense<0.000000e+00> : vector<16x64xf32>
    %3 = tpu.matmul %1, %2, %cst {dimension_numbers = #tpu.dot_dimension_numbers<[1], [0], [0], [1], [0, 0, 1, 1], [], []>} : vector<16x576xbf16>, vector<576x64xbf16>, vector<16x64xf32> -> vector<16x64xf32>
    %c0_4 = arith.constant 0 : index
    %c0_5 = arith.constant 0 : index
    %4 = vector.load %arg4[%c0_4, %c0_5] : memref<1x64xf32, #tpu.memory_space<vmem>>, vector<1x64xf32>
    %5 = vector.broadcast %4 : vector<1x64xf32> to vector<16x64xf32>
    %6 = arith.addf %3, %5 : vector<16x64xf32>
    %cst_6 = arith.constant 0.000000e+00 : f32
    %7 = vector.broadcast %cst_6 : f32 to vector<16x64xf32>
    %8 = arith.cmpf oge, %6, %7 : vector<16x64xf32>
    %cst_7 = arith.constant 2.000000e-01 : f32
    %9 = vector.broadcast %cst_7 : f32 to vector<16x64xf32>
    %10 = arith.mulf %9, %6 : vector<16x64xf32>
    %11 = arith.select %8, %6, %10 : vector<16x64xi1>, vector<16x64xf32>
    %c0_8 = arith.constant 0 : index
    %c0_9 = arith.constant 0 : index
    %c0_10 = arith.constant 0 : index
    %12 = vector.load %arg5[%c0_8, %c0_9, %c0_10] : memref<1x16x64xf32, #tpu.memory_space<vmem>>, vector<1x16x64xf32>
    %13 = vector.shape_cast %12 : vector<1x16x64xf32> to vector<16x64xf32>
    %14 = vector.shape_cast %11 : vector<16x64xf32> to vector<1x16x64xf32>
    tpu.vector_store %arg5[%c0_8, %c0_9, %c0_10], %14 {strides = array<i32>} : memref<1x16x64xf32, #tpu.memory_space<vmem>>, vector<1x16x64xf32>,
    return
  }
  func.func @transform_0(%arg0: i32, %arg1: i32) -> (i32, i32, i32) {
    %c0_i32 = arith.constant 0 : i32
    %c0_i32_0 = arith.constant 0 : i32
    return %arg0, %arg1, %c0_i32 : i32, i32, i32
  }
  func.func @transform_1(%arg0: i32, %arg1: i32) -> (i32, i32) {
    %c0_i32 = arith.constant 0 : i32
    %c0_i32_0 = arith.constant 0 : i32
    %c0_i32_1 = arith.constant 0 : i32
    return %c0_i32, %c0_i32_0 : i32, i32
  }
  func.func @transform_2(%arg0: i32, %arg1: i32) -> (i32, i32) {
    %c0_i32 = arith.constant 0 : i32
    %c0_i32_0 = arith.constant 0 : i32
    %c0_i32_1 = arith.constant 0 : i32
    return %c0_i32, %c0_i32_0 : i32, i32
  }
  func.func @transform_3(%arg0: i32, %arg1: i32) -> (i32, i32, i32) {
    %c0_i32 = arith.constant 0 : i32
    %c0_i32_0 = arith.constant 0 : i32
    return %arg0, %arg1, %c0_i32 : i32, i32, i32
  }
}

module attributes {stable_mosaic.version = 11 : i64} {
  func.func @_conv_mm_kernel(%arg0: i32, %arg1: i32, %arg2: memref<1x16x144xbf16, #tpu.memory_space<vmem>>, %arg3: memref<144x64xbf16, #tpu.memory_space<vmem>>, %arg4: memref<1x64xf32, #tpu.memory_space<vmem>>, %arg5: memref<1x16x64xf32, #tpu.memory_space<vmem>>) attributes {dimension_semantics = [#tpu.dimension_semantics<parallel>, #tpu.dimension_semantics<parallel>], iteration_bounds = array<i64: 2, 1>, scalar_prefetch = 0 : i64, scratch_operands = 0 : i64, tpu.core_type = #tpu.core_type<tc>, window_params = [{transform_indices = @transform_0, window_bounds = array<i64: 1, 16, 144>}, {pipeline_mode = #tpu.pipeline_mode<synchronous>, transform_indices = @transform_1, window_bounds = array<i64: 144, 64>}, {pipeline_mode = #tpu.pipeline_mode<synchronous>, transform_indices = @transform_2, window_bounds = array<i64: 1, 64>}, {transform_indices = @transform_3, window_bounds = array<i64: 1, 16, 64>}]} {
    %c0 = arith.constant 0 : index
    %c0_0 = arith.constant 0 : index
    %c0_1 = arith.constant 0 : index
    %0 = vector.load %arg2[%c0, %c0_0, %c0_1] : memref<1x16x144xbf16, #tpu.memory_space<vmem>>, vector<1x16x144xbf16>
    %1 = vector.shape_cast %0 : vector<1x16x144xbf16> to vector<16x144xbf16>
    %c0_2 = arith.constant 0 : index
    %c0_3 = arith.constant 0 : index
    %2 = vector.load %arg3[%c0_2, %c0_3] : memref<144x64xbf16, #tpu.memory_space<vmem>>, vector<144x64xbf16>
    %cst = arith.constant dense<0.000000e+00> : vector<16x64xf32>
    %3 = tpu.matmul %1, %2, %cst {dimension_numbers = #tpu.dot_dimension_numbers<[1], [0], [0], [1], [0, 0, 1, 1], [], []>} : vector<16x144xbf16>, vector<144x64xbf16>, vector<16x64xf32> -> vector<16x64xf32>
    %c0_4 = arith.constant 0 : index
    %c0_5 = arith.constant 0 : index
    %4 = vector.load %arg4[%c0_4, %c0_5] : memref<1x64xf32, #tpu.memory_space<vmem>>, vector<1x64xf32>
    %5 = vector.broadcast %4 : vector<1x64xf32> to vector<16x64xf32>
    %6 = arith.addf %3, %5 : vector<16x64xf32>
    %c0_6 = arith.constant 0 : index
    %c0_7 = arith.constant 0 : index
    %c0_8 = arith.constant 0 : index
    %7 = vector.load %arg5[%c0_6, %c0_7, %c0_8] : memref<1x16x64xf32, #tpu.memory_space<vmem>>, vector<1x16x64xf32>
    %8 = vector.shape_cast %7 : vector<1x16x64xf32> to vector<16x64xf32>
    %9 = vector.shape_cast %6 : vector<16x64xf32> to vector<1x16x64xf32>
    tpu.vector_store %arg5[%c0_6, %c0_7, %c0_8], %9 {strides = array<i32>} : memref<1x16x64xf32, #tpu.memory_space<vmem>>, vector<1x16x64xf32>,
    return
  }
  func.func @transform_0(%arg0: i32, %arg1: i32) -> (i32, i32, i32) {
    %c0_i32 = arith.constant 0 : i32
    %c0_i32_0 = arith.constant 0 : i32
    return %arg0, %arg1, %c0_i32 : i32, i32, i32
  }
  func.func @transform_1(%arg0: i32, %arg1: i32) -> (i32, i32) {
    %c0_i32 = arith.constant 0 : i32
    %c0_i32_0 = arith.constant 0 : i32
    %c0_i32_1 = arith.constant 0 : i32
    return %c0_i32, %c0_i32_0 : i32, i32
  }
  func.func @transform_2(%arg0: i32, %arg1: i32) -> (i32, i32) {
    %c0_i32 = arith.constant 0 : i32
    %c0_i32_0 = arith.constant 0 : i32
    %c0_i32_1 = arith.constant 0 : i32
    return %c0_i32, %c0_i32_0 : i32, i32
  }
  func.func @transform_3(%arg0: i32, %arg1: i32) -> (i32, i32, i32) {
    %c0_i32 = arith.constant 0 : i32
    %c0_i32_0 = arith.constant 0 : i32
    return %arg0, %arg1, %c0_i32 : i32, i32, i32
  }
}

module attributes {stable_mosaic.version = 11 : i64} {
  func.func @_conv_mm_kernel(%arg0: i32, %arg1: i32, %arg2: memref<1x64x144xbf16, #tpu.memory_space<vmem>>, %arg3: memref<1x64x144xbf16, #tpu.memory_space<vmem>>, %arg4: memref<144x32xbf16, #tpu.memory_space<vmem>>, %arg5: memref<144x32xbf16, #tpu.memory_space<vmem>>, %arg6: memref<1x32xf32, #tpu.memory_space<vmem>>, %arg7: memref<1x64x32xf32, #tpu.memory_space<vmem>>) attributes {dimension_semantics = [#tpu.dimension_semantics<parallel>, #tpu.dimension_semantics<parallel>], iteration_bounds = array<i64: 2, 1>, scalar_prefetch = 0 : i64, scratch_operands = 0 : i64, tpu.core_type = #tpu.core_type<tc>, window_params = [{transform_indices = @transform_0, window_bounds = array<i64: 1, 64, 144>}, {transform_indices = @transform_1, window_bounds = array<i64: 1, 64, 144>}, {pipeline_mode = #tpu.pipeline_mode<synchronous>, transform_indices = @transform_2, window_bounds = array<i64: 144, 32>}, {pipeline_mode = #tpu.pipeline_mode<synchronous>, transform_indices = @transform_3, window_bounds = array<i64: 144, 32>}, {pipeline_mode = #tpu.pipeline_mode<synchronous>, transform_indices = @transform_4, window_bounds = array<i64: 1, 32>}, {transform_indices = @transform_5, window_bounds = array<i64: 1, 64, 32>}]} {
    %c0 = arith.constant 0 : index
    %c0_0 = arith.constant 0 : index
    %c0_1 = arith.constant 0 : index
    %0 = vector.load %arg2[%c0, %c0_0, %c0_1] : memref<1x64x144xbf16, #tpu.memory_space<vmem>>, vector<1x64x144xbf16>
    %1 = vector.shape_cast %0 : vector<1x64x144xbf16> to vector<64x144xbf16>
    %c0_2 = arith.constant 0 : index
    %c0_3 = arith.constant 0 : index
    %2 = vector.load %arg4[%c0_2, %c0_3] : memref<144x32xbf16, #tpu.memory_space<vmem>>, vector<144x32xbf16>
    %cst = arith.constant dense<0.000000e+00> : vector<64x32xf32>
    %3 = tpu.matmul %1, %2, %cst {dimension_numbers = #tpu.dot_dimension_numbers<[1], [0], [0], [1], [0, 0, 1, 1], [], []>} : vector<64x144xbf16>, vector<144x32xbf16>, vector<64x32xf32> -> vector<64x32xf32>
    %c0_4 = arith.constant 0 : index
    %c0_5 = arith.constant 0 : index
    %c0_6 = arith.constant 0 : index
    %4 = vector.load %arg3[%c0_4, %c0_5, %c0_6] : memref<1x64x144xbf16, #tpu.memory_space<vmem>>, vector<1x64x144xbf16>
    %5 = vector.shape_cast %4 : vector<1x64x144xbf16> to vector<64x144xbf16>
    %c0_7 = arith.constant 0 : index
    %c0_8 = arith.constant 0 : index
    %6 = vector.load %arg5[%c0_7, %c0_8] : memref<144x32xbf16, #tpu.memory_space<vmem>>, vector<144x32xbf16>
    %cst_9 = arith.constant dense<0.000000e+00> : vector<64x32xf32>
    %7 = tpu.matmul %5, %6, %cst_9 {dimension_numbers = #tpu.dot_dimension_numbers<[1], [0], [0], [1], [0, 0, 1, 1], [], []>} : vector<64x144xbf16>, vector<144x32xbf16>, vector<64x32xf32> -> vector<64x32xf32>
    %8 = arith.addf %3, %7 : vector<64x32xf32>
    %c0_10 = arith.constant 0 : index
    %c0_11 = arith.constant 0 : index
    %9 = vector.load %arg6[%c0_10, %c0_11] : memref<1x32xf32, #tpu.memory_space<vmem>>, vector<1x32xf32>
    %10 = vector.broadcast %9 : vector<1x32xf32> to vector<64x32xf32>
    %11 = arith.addf %8, %10 : vector<64x32xf32>
    %cst_12 = arith.constant 0.000000e+00 : f32
    %12 = vector.broadcast %cst_12 : f32 to vector<64x32xf32>
    %13 = arith.cmpf oge, %11, %12 : vector<64x32xf32>
    %cst_13 = arith.constant 2.000000e-01 : f32
    %14 = vector.broadcast %cst_13 : f32 to vector<64x32xf32>
    %15 = arith.mulf %14, %11 : vector<64x32xf32>
    %16 = arith.select %13, %11, %15 : vector<64x32xi1>, vector<64x32xf32>
    %c0_14 = arith.constant 0 : index
    %c0_15 = arith.constant 0 : index
    %c0_16 = arith.constant 0 : index
    %17 = vector.load %arg7[%c0_14, %c0_15, %c0_16] : memref<1x64x32xf32, #tpu.memory_space<vmem>>, vector<1x64x32xf32>
    %18 = vector.shape_cast %17 : vector<1x64x32xf32> to vector<64x32xf32>
    %19 = vector.shape_cast %16 : vector<64x32xf32> to vector<1x64x32xf32>
    tpu.vector_store %arg7[%c0_14, %c0_15, %c0_16], %19 {strides = array<i32>} : memref<1x64x32xf32, #tpu.memory_space<vmem>>, vector<1x64x32xf32>,
    return
  }
  func.func @transform_0(%arg0: i32, %arg1: i32) -> (i32, i32, i32) {
    %c0_i32 = arith.constant 0 : i32
    %c0_i32_0 = arith.constant 0 : i32
    return %arg0, %arg1, %c0_i32 : i32, i32, i32
  }
  func.func @transform_1(%arg0: i32, %arg1: i32) -> (i32, i32, i32) {
    %c0_i32 = arith.constant 0 : i32
    %c0_i32_0 = arith.constant 0 : i32
    return %arg0, %arg1, %c0_i32 : i32, i32, i32
  }
  func.func @transform_2(%arg0: i32, %arg1: i32) -> (i32, i32) {
    %c0_i32 = arith.constant 0 : i32
    %c0_i32_0 = arith.constant 0 : i32
    %c0_i32_1 = arith.constant 0 : i32
    return %c0_i32, %c0_i32_0 : i32, i32
  }
  func.func @transform_3(%arg0: i32, %arg1: i32) -> (i32, i32) {
    %c0_i32 = arith.constant 0 : i32
    %c0_i32_0 = arith.constant 0 : i32
    %c0_i32_1 = arith.constant 0 : i32
    return %c0_i32, %c0_i32_0 : i32, i32
  }
  func.func @transform_4(%arg0: i32, %arg1: i32) -> (i32, i32) {
    %c0_i32 = arith.constant 0 : i32
    %c0_i32_0 = arith.constant 0 : i32
    %c0_i32_1 = arith.constant 0 : i32
    return %c0_i32, %c0_i32_0 : i32, i32
  }
  func.func @transform_5(%arg0: i32, %arg1: i32) -> (i32, i32, i32) {
    %c0_i32 = arith.constant 0 : i32
    %c0_i32_0 = arith.constant 0 : i32
    return %arg0, %arg1, %c0_i32 : i32, i32, i32
  }
}

module attributes {stable_mosaic.version = 11 : i64} {
  func.func @_conv_mm_kernel(%arg0: i32, %arg1: i32, %arg2: memref<1x64x288xbf16, #tpu.memory_space<vmem>>, %arg3: memref<288x8xbf16, #tpu.memory_space<vmem>>, %arg4: memref<1x8xf32, #tpu.memory_space<vmem>>, %arg5: memref<1x64x8xf32, #tpu.memory_space<vmem>>) attributes {dimension_semantics = [#tpu.dimension_semantics<parallel>, #tpu.dimension_semantics<parallel>], iteration_bounds = array<i64: 2, 1>, scalar_prefetch = 0 : i64, scratch_operands = 0 : i64, tpu.core_type = #tpu.core_type<tc>, window_params = [{transform_indices = @transform_0, window_bounds = array<i64: 1, 64, 288>}, {pipeline_mode = #tpu.pipeline_mode<synchronous>, transform_indices = @transform_1, window_bounds = array<i64: 288, 8>}, {pipeline_mode = #tpu.pipeline_mode<synchronous>, transform_indices = @transform_2, window_bounds = array<i64: 1, 8>}, {transform_indices = @transform_3, window_bounds = array<i64: 1, 64, 8>}]} {
    %c0 = arith.constant 0 : index
    %c0_0 = arith.constant 0 : index
    %c0_1 = arith.constant 0 : index
    %0 = vector.load %arg2[%c0, %c0_0, %c0_1] : memref<1x64x288xbf16, #tpu.memory_space<vmem>>, vector<1x64x288xbf16>
    %1 = vector.shape_cast %0 : vector<1x64x288xbf16> to vector<64x288xbf16>
    %c0_2 = arith.constant 0 : index
    %c0_3 = arith.constant 0 : index
    %2 = vector.load %arg3[%c0_2, %c0_3] : memref<288x8xbf16, #tpu.memory_space<vmem>>, vector<288x8xbf16>
    %cst = arith.constant dense<0.000000e+00> : vector<64x8xf32>
    %3 = tpu.matmul %1, %2, %cst {dimension_numbers = #tpu.dot_dimension_numbers<[1], [0], [0], [1], [0, 0, 1, 1], [], []>} : vector<64x288xbf16>, vector<288x8xbf16>, vector<64x8xf32> -> vector<64x8xf32>
    %c0_4 = arith.constant 0 : index
    %c0_5 = arith.constant 0 : index
    %4 = vector.load %arg4[%c0_4, %c0_5] : memref<1x8xf32, #tpu.memory_space<vmem>>, vector<1x8xf32>
    %5 = vector.broadcast %4 : vector<1x8xf32> to vector<64x8xf32>
    %6 = arith.addf %3, %5 : vector<64x8xf32>
    %cst_6 = arith.constant 0.000000e+00 : f32
    %7 = vector.broadcast %cst_6 : f32 to vector<64x8xf32>
    %8 = arith.cmpf oge, %6, %7 : vector<64x8xf32>
    %cst_7 = arith.constant 2.000000e-01 : f32
    %9 = vector.broadcast %cst_7 : f32 to vector<64x8xf32>
    %10 = arith.mulf %9, %6 : vector<64x8xf32>
    %11 = arith.select %8, %6, %10 : vector<64x8xi1>, vector<64x8xf32>
    %c0_8 = arith.constant 0 : index
    %c0_9 = arith.constant 0 : index
    %c0_10 = arith.constant 0 : index
    %12 = vector.load %arg5[%c0_8, %c0_9, %c0_10] : memref<1x64x8xf32, #tpu.memory_space<vmem>>, vector<1x64x8xf32>
    %13 = vector.shape_cast %12 : vector<1x64x8xf32> to vector<64x8xf32>
    %14 = vector.shape_cast %11 : vector<64x8xf32> to vector<1x64x8xf32>
    tpu.vector_store %arg5[%c0_8, %c0_9, %c0_10], %14 {strides = array<i32>} : memref<1x64x8xf32, #tpu.memory_space<vmem>>, vector<1x64x8xf32>,
    return
  }
  func.func @transform_0(%arg0: i32, %arg1: i32) -> (i32, i32, i32) {
    %c0_i32 = arith.constant 0 : i32
    %c0_i32_0 = arith.constant 0 : i32
    return %arg0, %arg1, %c0_i32 : i32, i32, i32
  }
  func.func @transform_1(%arg0: i32, %arg1: i32) -> (i32, i32) {
    %c0_i32 = arith.constant 0 : i32
    %c0_i32_0 = arith.constant 0 : i32
    %c0_i32_1 = arith.constant 0 : i32
    return %c0_i32, %c0_i32_0 : i32, i32
  }
  func.func @transform_2(%arg0: i32, %arg1: i32) -> (i32, i32) {
    %c0_i32 = arith.constant 0 : i32
    %c0_i32_0 = arith.constant 0 : i32
    %c0_i32_1 = arith.constant 0 : i32
    return %c0_i32, %c0_i32_0 : i32, i32
  }
  func.func @transform_3(%arg0: i32, %arg1: i32) -> (i32, i32, i32) {
    %c0_i32 = arith.constant 0 : i32
    %c0_i32_0 = arith.constant 0 : i32
    return %arg0, %arg1, %c0_i32 : i32, i32, i32
  }
}

module attributes {stable_mosaic.version = 11 : i64} {
  func.func @_conv_mm_kernel(%arg0: i32, %arg1: i32, %arg2: memref<1x64x72xbf16, #tpu.memory_space<vmem>>, %arg3: memref<72x32xbf16, #tpu.memory_space<vmem>>, %arg4: memref<1x32xf32, #tpu.memory_space<vmem>>, %arg5: memref<1x64x32xf32, #tpu.memory_space<vmem>>) attributes {dimension_semantics = [#tpu.dimension_semantics<parallel>, #tpu.dimension_semantics<parallel>], iteration_bounds = array<i64: 2, 1>, scalar_prefetch = 0 : i64, scratch_operands = 0 : i64, tpu.core_type = #tpu.core_type<tc>, window_params = [{transform_indices = @transform_0, window_bounds = array<i64: 1, 64, 72>}, {pipeline_mode = #tpu.pipeline_mode<synchronous>, transform_indices = @transform_1, window_bounds = array<i64: 72, 32>}, {pipeline_mode = #tpu.pipeline_mode<synchronous>, transform_indices = @transform_2, window_bounds = array<i64: 1, 32>}, {transform_indices = @transform_3, window_bounds = array<i64: 1, 64, 32>}]} {
    %c0 = arith.constant 0 : index
    %c0_0 = arith.constant 0 : index
    %c0_1 = arith.constant 0 : index
    %0 = vector.load %arg2[%c0, %c0_0, %c0_1] : memref<1x64x72xbf16, #tpu.memory_space<vmem>>, vector<1x64x72xbf16>
    %1 = vector.shape_cast %0 : vector<1x64x72xbf16> to vector<64x72xbf16>
    %c0_2 = arith.constant 0 : index
    %c0_3 = arith.constant 0 : index
    %2 = vector.load %arg3[%c0_2, %c0_3] : memref<72x32xbf16, #tpu.memory_space<vmem>>, vector<72x32xbf16>
    %cst = arith.constant dense<0.000000e+00> : vector<64x32xf32>
    %3 = tpu.matmul %1, %2, %cst {dimension_numbers = #tpu.dot_dimension_numbers<[1], [0], [0], [1], [0, 0, 1, 1], [], []>} : vector<64x72xbf16>, vector<72x32xbf16>, vector<64x32xf32> -> vector<64x32xf32>
    %c0_4 = arith.constant 0 : index
    %c0_5 = arith.constant 0 : index
    %4 = vector.load %arg4[%c0_4, %c0_5] : memref<1x32xf32, #tpu.memory_space<vmem>>, vector<1x32xf32>
    %5 = vector.broadcast %4 : vector<1x32xf32> to vector<64x32xf32>
    %6 = arith.addf %3, %5 : vector<64x32xf32>
    %c0_6 = arith.constant 0 : index
    %c0_7 = arith.constant 0 : index
    %c0_8 = arith.constant 0 : index
    %7 = vector.load %arg5[%c0_6, %c0_7, %c0_8] : memref<1x64x32xf32, #tpu.memory_space<vmem>>, vector<1x64x32xf32>
    %8 = vector.shape_cast %7 : vector<1x64x32xf32> to vector<64x32xf32>
    %9 = vector.shape_cast %6 : vector<64x32xf32> to vector<1x64x32xf32>
    tpu.vector_store %arg5[%c0_6, %c0_7, %c0_8], %9 {strides = array<i32>} : memref<1x64x32xf32, #tpu.memory_space<vmem>>, vector<1x64x32xf32>,
    return
  }
  func.func @transform_0(%arg0: i32, %arg1: i32) -> (i32, i32, i32) {
    %c0_i32 = arith.constant 0 : i32
    %c0_i32_0 = arith.constant 0 : i32
    return %arg0, %arg1, %c0_i32 : i32, i32, i32
  }
  func.func @transform_1(%arg0: i32, %arg1: i32) -> (i32, i32) {
    %c0_i32 = arith.constant 0 : i32
    %c0_i32_0 = arith.constant 0 : i32
    %c0_i32_1 = arith.constant 0 : i32
    return %c0_i32, %c0_i32_0 : i32, i32
  }
  func.func @transform_2(%arg0: i32, %arg1: i32) -> (i32, i32) {
    %c0_i32 = arith.constant 0 : i32
    %c0_i32_0 = arith.constant 0 : i32
    %c0_i32_1 = arith.constant 0 : i32
    return %c0_i32, %c0_i32_0 : i32, i32
  }
  func.func @transform_3(%arg0: i32, %arg1: i32) -> (i32, i32, i32) {
    %c0_i32 = arith.constant 0 : i32
    %c0_i32_0 = arith.constant 0 : i32
    return %arg0, %arg1, %c0_i32 : i32, i32, i32
  }
}

module attributes {stable_mosaic.version = 11 : i64} {
  func.func @_conv_mm_kernel(%arg0: i32, %arg1: i32, %arg2: memref<1x256x72xbf16, #tpu.memory_space<vmem>>, %arg3: memref<1x256x72xbf16, #tpu.memory_space<vmem>>, %arg4: memref<72x16xbf16, #tpu.memory_space<vmem>>, %arg5: memref<72x16xbf16, #tpu.memory_space<vmem>>, %arg6: memref<1x16xf32, #tpu.memory_space<vmem>>, %arg7: memref<1x256x16xf32, #tpu.memory_space<vmem>>) attributes {dimension_semantics = [#tpu.dimension_semantics<parallel>, #tpu.dimension_semantics<parallel>], iteration_bounds = array<i64: 2, 1>, scalar_prefetch = 0 : i64, scratch_operands = 0 : i64, tpu.core_type = #tpu.core_type<tc>, window_params = [{transform_indices = @transform_0, window_bounds = array<i64: 1, 256, 72>}, {transform_indices = @transform_1, window_bounds = array<i64: 1, 256, 72>}, {pipeline_mode = #tpu.pipeline_mode<synchronous>, transform_indices = @transform_2, window_bounds = array<i64: 72, 16>}, {pipeline_mode = #tpu.pipeline_mode<synchronous>, transform_indices = @transform_3, window_bounds = array<i64: 72, 16>}, {pipeline_mode = #tpu.pipeline_mode<synchronous>, transform_indices = @transform_4, window_bounds = array<i64: 1, 16>}, {transform_indices = @transform_5, window_bounds = array<i64: 1, 256, 16>}]} {
    %c0 = arith.constant 0 : index
    %c0_0 = arith.constant 0 : index
    %c0_1 = arith.constant 0 : index
    %0 = vector.load %arg2[%c0, %c0_0, %c0_1] : memref<1x256x72xbf16, #tpu.memory_space<vmem>>, vector<1x256x72xbf16>
    %1 = vector.shape_cast %0 : vector<1x256x72xbf16> to vector<256x72xbf16>
    %c0_2 = arith.constant 0 : index
    %c0_3 = arith.constant 0 : index
    %2 = vector.load %arg4[%c0_2, %c0_3] : memref<72x16xbf16, #tpu.memory_space<vmem>>, vector<72x16xbf16>
    %cst = arith.constant dense<0.000000e+00> : vector<256x16xf32>
    %3 = tpu.matmul %1, %2, %cst {dimension_numbers = #tpu.dot_dimension_numbers<[1], [0], [0], [1], [0, 0, 1, 1], [], []>} : vector<256x72xbf16>, vector<72x16xbf16>, vector<256x16xf32> -> vector<256x16xf32>
    %c0_4 = arith.constant 0 : index
    %c0_5 = arith.constant 0 : index
    %c0_6 = arith.constant 0 : index
    %4 = vector.load %arg3[%c0_4, %c0_5, %c0_6] : memref<1x256x72xbf16, #tpu.memory_space<vmem>>, vector<1x256x72xbf16>
    %5 = vector.shape_cast %4 : vector<1x256x72xbf16> to vector<256x72xbf16>
    %c0_7 = arith.constant 0 : index
    %c0_8 = arith.constant 0 : index
    %6 = vector.load %arg5[%c0_7, %c0_8] : memref<72x16xbf16, #tpu.memory_space<vmem>>, vector<72x16xbf16>
    %cst_9 = arith.constant dense<0.000000e+00> : vector<256x16xf32>
    %7 = tpu.matmul %5, %6, %cst_9 {dimension_numbers = #tpu.dot_dimension_numbers<[1], [0], [0], [1], [0, 0, 1, 1], [], []>} : vector<256x72xbf16>, vector<72x16xbf16>, vector<256x16xf32> -> vector<256x16xf32>
    %8 = arith.addf %3, %7 : vector<256x16xf32>
    %c0_10 = arith.constant 0 : index
    %c0_11 = arith.constant 0 : index
    %9 = vector.load %arg6[%c0_10, %c0_11] : memref<1x16xf32, #tpu.memory_space<vmem>>, vector<1x16xf32>
    %10 = vector.broadcast %9 : vector<1x16xf32> to vector<256x16xf32>
    %11 = arith.addf %8, %10 : vector<256x16xf32>
    %cst_12 = arith.constant 0.000000e+00 : f32
    %12 = vector.broadcast %cst_12 : f32 to vector<256x16xf32>
    %13 = arith.cmpf oge, %11, %12 : vector<256x16xf32>
    %cst_13 = arith.constant 2.000000e-01 : f32
    %14 = vector.broadcast %cst_13 : f32 to vector<256x16xf32>
    %15 = arith.mulf %14, %11 : vector<256x16xf32>
    %16 = arith.select %13, %11, %15 : vector<256x16xi1>, vector<256x16xf32>
    %c0_14 = arith.constant 0 : index
    %c0_15 = arith.constant 0 : index
    %c0_16 = arith.constant 0 : index
    %17 = vector.load %arg7[%c0_14, %c0_15, %c0_16] : memref<1x256x16xf32, #tpu.memory_space<vmem>>, vector<1x256x16xf32>
    %18 = vector.shape_cast %17 : vector<1x256x16xf32> to vector<256x16xf32>
    %19 = vector.shape_cast %16 : vector<256x16xf32> to vector<1x256x16xf32>
    tpu.vector_store %arg7[%c0_14, %c0_15, %c0_16], %19 {strides = array<i32>} : memref<1x256x16xf32, #tpu.memory_space<vmem>>, vector<1x256x16xf32>,
    return
  }
  func.func @transform_0(%arg0: i32, %arg1: i32) -> (i32, i32, i32) {
    %c0_i32 = arith.constant 0 : i32
    %c0_i32_0 = arith.constant 0 : i32
    return %arg0, %arg1, %c0_i32 : i32, i32, i32
  }
  func.func @transform_1(%arg0: i32, %arg1: i32) -> (i32, i32, i32) {
    %c0_i32 = arith.constant 0 : i32
    %c0_i32_0 = arith.constant 0 : i32
    return %arg0, %arg1, %c0_i32 : i32, i32, i32
  }
  func.func @transform_2(%arg0: i32, %arg1: i32) -> (i32, i32) {
    %c0_i32 = arith.constant 0 : i32
    %c0_i32_0 = arith.constant 0 : i32
    %c0_i32_1 = arith.constant 0 : i32
    return %c0_i32, %c0_i32_0 : i32, i32
  }
  func.func @transform_3(%arg0: i32, %arg1: i32) -> (i32, i32) {
    %c0_i32 = arith.constant 0 : i32
    %c0_i32_0 = arith.constant 0 : i32
    %c0_i32_1 = arith.constant 0 : i32
    return %c0_i32, %c0_i32_0 : i32, i32
  }
  func.func @transform_4(%arg0: i32, %arg1: i32) -> (i32, i32) {
    %c0_i32 = arith.constant 0 : i32
    %c0_i32_0 = arith.constant 0 : i32
    %c0_i32_1 = arith.constant 0 : i32
    return %c0_i32, %c0_i32_0 : i32, i32
  }
  func.func @transform_5(%arg0: i32, %arg1: i32) -> (i32, i32, i32) {
    %c0_i32 = arith.constant 0 : i32
    %c0_i32_0 = arith.constant 0 : i32
    return %arg0, %arg1, %c0_i32 : i32, i32, i32
  }
}

module attributes {stable_mosaic.version = 11 : i64} {
  func.func @_conv_mm_kernel(%arg0: i32, %arg1: i32, %arg2: memref<1x256x8xbf16, #tpu.memory_space<vmem>>, %arg3: memref<8x1xbf16, #tpu.memory_space<vmem>>, %arg4: memref<1x1xf32, #tpu.memory_space<vmem>>, %arg5: memref<1x256x1xf32, #tpu.memory_space<vmem>>) attributes {dimension_semantics = [#tpu.dimension_semantics<parallel>, #tpu.dimension_semantics<parallel>], iteration_bounds = array<i64: 2, 1>, scalar_prefetch = 0 : i64, scratch_operands = 0 : i64, tpu.core_type = #tpu.core_type<tc>, window_params = [{transform_indices = @transform_0, window_bounds = array<i64: 1, 256, 8>}, {pipeline_mode = #tpu.pipeline_mode<synchronous>, transform_indices = @transform_1, window_bounds = array<i64: 8, 1>}, {pipeline_mode = #tpu.pipeline_mode<synchronous>, transform_indices = @transform_2, window_bounds = array<i64: 1, 1>}, {transform_indices = @transform_3, window_bounds = array<i64: 1, 256, 1>}]} {
    %c0 = arith.constant 0 : index
    %c0_0 = arith.constant 0 : index
    %c0_1 = arith.constant 0 : index
    %0 = vector.load %arg2[%c0, %c0_0, %c0_1] : memref<1x256x8xbf16, #tpu.memory_space<vmem>>, vector<1x256x8xbf16>
    %1 = vector.shape_cast %0 : vector<1x256x8xbf16> to vector<256x8xbf16>
    %c0_2 = arith.constant 0 : index
    %c0_3 = arith.constant 0 : index
    %2 = vector.load %arg3[%c0_2, %c0_3] : memref<8x1xbf16, #tpu.memory_space<vmem>>, vector<8x1xbf16>
    %cst = arith.constant dense<0.000000e+00> : vector<256x1xf32>
    %3 = tpu.matmul %1, %2, %cst {dimension_numbers = #tpu.dot_dimension_numbers<[1], [0], [0], [1], [0, 0, 1, 1], [], []>} : vector<256x8xbf16>, vector<8x1xbf16>, vector<256x1xf32> -> vector<256x1xf32>
    %c0_4 = arith.constant 0 : index
    %c0_5 = arith.constant 0 : index
    %4 = vector.load %arg4[%c0_4, %c0_5] : memref<1x1xf32, #tpu.memory_space<vmem>>, vector<1x1xf32>
    %5 = vector.broadcast %4 : vector<1x1xf32> to vector<256x1xf32>
    %6 = arith.addf %3, %5 : vector<256x1xf32>
    %c0_6 = arith.constant 0 : index
    %c0_7 = arith.constant 0 : index
    %c0_8 = arith.constant 0 : index
    %7 = vector.load %arg5[%c0_6, %c0_7, %c0_8] : memref<1x256x1xf32, #tpu.memory_space<vmem>>, vector<1x256x1xf32>
    %8 = vector.shape_cast %7 : vector<1x256x1xf32> to vector<256x1xf32>
    %9 = vector.shape_cast %6 : vector<256x1xf32> to vector<1x256x1xf32>
    tpu.vector_store %arg5[%c0_6, %c0_7, %c0_8], %9 {strides = array<i32>} : memref<1x256x1xf32, #tpu.memory_space<vmem>>, vector<1x256x1xf32>,
    return
  }
  func.func @transform_0(%arg0: i32, %arg1: i32) -> (i32, i32, i32) {
    %c0_i32 = arith.constant 0 : i32
    %c0_i32_0 = arith.constant 0 : i32
    return %arg0, %arg1, %c0_i32 : i32, i32, i32
  }
  func.func @transform_1(%arg0: i32, %arg1: i32) -> (i32, i32) {
    %c0_i32 = arith.constant 0 : i32
    %c0_i32_0 = arith.constant 0 : i32
    %c0_i32_1 = arith.constant 0 : i32
    return %c0_i32, %c0_i32_0 : i32, i32
  }
  func.func @transform_2(%arg0: i32, %arg1: i32) -> (i32, i32) {
    %c0_i32 = arith.constant 0 : i32
    %c0_i32_0 = arith.constant 0 : i32
    %c0_i32_1 = arith.constant 0 : i32
    return %c0_i32, %c0_i32_0 : i32, i32
  }
  func.func @transform_3(%arg0: i32, %arg1: i32) -> (i32, i32, i32) {
    %c0_i32 = arith.constant 0 : i32
    %c0_i32_0 = arith.constant 0 : i32
    return %arg0, %arg1, %c0_i32 : i32, i32, i32
  }
}

module attributes {stable_mosaic.version = 11 : i64} {
  func.func @_conv_mm_kernel(%arg0: i32, %arg1: i32, %arg2: memref<1x256x144xbf16, #tpu.memory_space<vmem>>, %arg3: memref<144x8xbf16, #tpu.memory_space<vmem>>, %arg4: memref<1x8xf32, #tpu.memory_space<vmem>>, %arg5: memref<1x256x8xf32, #tpu.memory_space<vmem>>) attributes {dimension_semantics = [#tpu.dimension_semantics<parallel>, #tpu.dimension_semantics<parallel>], iteration_bounds = array<i64: 2, 1>, scalar_prefetch = 0 : i64, scratch_operands = 0 : i64, tpu.core_type = #tpu.core_type<tc>, window_params = [{transform_indices = @transform_0, window_bounds = array<i64: 1, 256, 144>}, {pipeline_mode = #tpu.pipeline_mode<synchronous>, transform_indices = @transform_1, window_bounds = array<i64: 144, 8>}, {pipeline_mode = #tpu.pipeline_mode<synchronous>, transform_indices = @transform_2, window_bounds = array<i64: 1, 8>}, {transform_indices = @transform_3, window_bounds = array<i64: 1, 256, 8>}]} {
    %c0 = arith.constant 0 : index
    %c0_0 = arith.constant 0 : index
    %c0_1 = arith.constant 0 : index
    %0 = vector.load %arg2[%c0, %c0_0, %c0_1] : memref<1x256x144xbf16, #tpu.memory_space<vmem>>, vector<1x256x144xbf16>
    %1 = vector.shape_cast %0 : vector<1x256x144xbf16> to vector<256x144xbf16>
    %c0_2 = arith.constant 0 : index
    %c0_3 = arith.constant 0 : index
    %2 = vector.load %arg3[%c0_2, %c0_3] : memref<144x8xbf16, #tpu.memory_space<vmem>>, vector<144x8xbf16>
    %cst = arith.constant dense<0.000000e+00> : vector<256x8xf32>
    %3 = tpu.matmul %1, %2, %cst {dimension_numbers = #tpu.dot_dimension_numbers<[1], [0], [0], [1], [0, 0, 1, 1], [], []>} : vector<256x144xbf16>, vector<144x8xbf16>, vector<256x8xf32> -> vector<256x8xf32>
    %c0_4 = arith.constant 0 : index
    %c0_5 = arith.constant 0 : index
    %4 = vector.load %arg4[%c0_4, %c0_5] : memref<1x8xf32, #tpu.memory_space<vmem>>, vector<1x8xf32>
    %5 = vector.broadcast %4 : vector<1x8xf32> to vector<256x8xf32>
    %6 = arith.addf %3, %5 : vector<256x8xf32>
    %cst_6 = arith.constant 0.000000e+00 : f32
    %7 = vector.broadcast %cst_6 : f32 to vector<256x8xf32>
    %8 = arith.cmpf oge, %6, %7 : vector<256x8xf32>
    %cst_7 = arith.constant 2.000000e-01 : f32
    %9 = vector.broadcast %cst_7 : f32 to vector<256x8xf32>
    %10 = arith.mulf %9, %6 : vector<256x8xf32>
    %11 = arith.select %8, %6, %10 : vector<256x8xi1>, vector<256x8xf32>
    %c0_8 = arith.constant 0 : index
    %c0_9 = arith.constant 0 : index
    %c0_10 = arith.constant 0 : index
    %12 = vector.load %arg5[%c0_8, %c0_9, %c0_10] : memref<1x256x8xf32, #tpu.memory_space<vmem>>, vector<1x256x8xf32>
    %13 = vector.shape_cast %12 : vector<1x256x8xf32> to vector<256x8xf32>
    %14 = vector.shape_cast %11 : vector<256x8xf32> to vector<1x256x8xf32>
    tpu.vector_store %arg5[%c0_8, %c0_9, %c0_10], %14 {strides = array<i32>} : memref<1x256x8xf32, #tpu.memory_space<vmem>>, vector<1x256x8xf32>,
    return
  }
  func.func @transform_0(%arg0: i32, %arg1: i32) -> (i32, i32, i32) {
    %c0_i32 = arith.constant 0 : i32
    %c0_i32_0 = arith.constant 0 : i32
    return %arg0, %arg1, %c0_i32 : i32, i32, i32
  }
  func.func @transform_1(%arg0: i32, %arg1: i32) -> (i32, i32) {
    %c0_i32 = arith.constant 0 : i32
    %c0_i32_0 = arith.constant 0 : i32
    %c0_i32_1 = arith.constant 0 : i32
    return %c0_i32, %c0_i32_0 : i32, i32
  }
  func.func @transform_2(%arg0: i32, %arg1: i32) -> (i32, i32) {
    %c0_i32 = arith.constant 0 : i32
    %c0_i32_0 = arith.constant 0 : i32
    %c0_i32_1 = arith.constant 0 : i32
    return %c0_i32, %c0_i32_0 : i32, i32
  }
  func.func @transform_3(%arg0: i32, %arg1: i32) -> (i32, i32, i32) {
    %c0_i32 = arith.constant 0 : i32
    %c0_i32_0 = arith.constant 0 : i32
    return %arg0, %arg1, %c0_i32 : i32, i32, i32
  }
}

</mosaic_0001>

<bundles_post_ra>
// kernel: tile.19
= control target key start
LH: loop header
LB: loop body
LE: loop exit
PB: predicated region body
PF: predicated region fallthrough
CT: control target
= control target key end

     0   :  { %s6_s8 = smov 3  ;;  %vm8_vm0 = vcmask 523264   ;;  %s30_s9 = smov 64   ;;  %vm15_vm1 = vcmask 1048064   ;;  %s50_s0 = inlined_call_operand.vmem [shape: f32[4,64], index: 0, kind: input, shape index: {}]   ;;  %s51_s1 = inlined_call_operand.vmem [shape: f32[1,256], index: 1, kind: output, shape index: {}]  }
   0x1   :  { %v4_v0 = vld [vmem:[%s50_s0] sm:$0xf]  ;;  %s11_s0 = smov 3 }
   0x2   :  { %5 = vst [vmem:[#allocation1] sm:$0xf] %v4_v0 }
   0x9   :  { %v12_v1 = vld [vmem:[#allocation1 + $0x1] ss:$2 sm:%s11_s0]   ;;  %v7_v2 = vld [vmem:[#allocation1] ss:$2 sm:%s6_s8]  }
   0xa   :  { %13 = vrot.lane.b32.xlu0 %v12_v1, %s30_s9  ;;  %9 = vst.msk [vmem:[#allocation0] ss:$8 sm:$0x3] %vm8_vm0, %v7_v2  }
  0x7c   :  { %v14_v3 = vpop.permute.xlu0 %13  }
  0x7d   :  { %16 = vst.msk [vmem:[#allocation0] ss:$8 sm:$0x3] %vm15_vm1, %v14_v3  }
  0x84   :  { %v20_v4 = vld [vmem:[#allocation0] sm:$0x1]  ;;  %v24_v5 = vld [vmem:[#allocation0 + $0x8] sm:$0x1] }
  0x85   :  { %22 = vst [vmem:[%s51_s1] sm:$0x1] %v20_v4  ;;  %28 = vst [vmem:[%s51_s1 + $0x1] sm:$0x1] %v24_v5 }

// kernel: tile.23
= control target key start
LH: loop header
LB: loop body
LE: loop exit
PB: predicated region body
PF: predicated region fallthrough
CT: control target
= control target key end

     0   :  { %vm7_vm0 = vcmask 261120   ;;  %s37_s8 = smov 32   ;;  %s38_s9 = smov 64   ;;  %vm13_vm1 = vcmask 1048320   ;;  %vm19_vm2 = vcmask 785920   ;;  %vm25_vm3 = vcmask 523520   ;;  %s55_s0 = inlined_call_operand.vmem [shape: f32[4,32], index: 0, kind: input, shape index: {}]   ;;  %s56_s1 = inlined_call_operand.vmem [shape: f32[1,128], index: 1, kind: output, shape index: {}]  }
   0x1   :  { %v4_v0 = vld [vmem:[%s55_s0] sm:$0xf]  ;;  %s36_s0 = smov 96  }
   0x2   :  { %5 = vst [vmem:[#allocation1] sm:$0xf] %v4_v0 }
   0x9   :  { %v10_v1 = vld [vmem:[#allocation1 + $0x3] sm:$0x1]   ;;  %v22_v2 = vld [vmem:[#allocation1 + $0x1] sm:$0x1]   ;;  %v6_v3 = vld [vmem:[#allocation1] sm:$0x1]  }
   0xa   :  { %11 = vrot.lane.b32.xlu0 %v10_v1, %s36_s0  ;;  %23 = vrot.lane.b32.xlu1 %v22_v2, %s37_s8  ;;  %v16_v4 = vld [vmem:[#allocation1 + $0x2] sm:$0x1]   ;;  %8 = vst.msk [vmem:[#allocation0] sm:$0x1] %vm7_vm0, %v6_v3  }
   0xe   :  { %17 = vrot.lane.b32.xlu0 %v16_v4, %s38_s9 }
  0x7c   :  { %v12_v5 = vpop.permute.xlu0 %11   ;;  %v24_v6 = vpop.permute.xlu1 %23  }
  0x7d   :  { %14 = vst.msk [vmem:[#allocation0] sm:$0x1] %vm13_vm1, %v12_v5  }
  0x80   :  { %v18_v7 = vpop.permute.xlu0 %17  }
  0x81   :  { %20 = vst.msk [vmem:[#allocation0] sm:$0x1] %vm19_vm2, %v18_v7  }
  0x82   :  { %26 = vst.msk [vmem:[#allocation0] sm:$0x1] %vm25_vm3, %v24_v6  }
  0x89   :  { %v30_v8 = vld [vmem:[#allocation0] sm:$0x1] }
  0x8a   :  { %32 = vst [vmem:[%s56_s1] sm:$0x1] %v30_v8 }

// kernel: tile.22
= control target key start
LH: loop header
LB: loop body
LE: loop exit
PB: predicated region body
PF: predicated region fallthrough
CT: control target
= control target key end

     0   :  { %2 = vsyncpa [#allocation1], 0  ;;  %s44_s6 = smov [#allocation0]   ;;  %s70_s0 = inlined_call_operand.hbm [shape: f32[32], index: 0, kind: input, shape index: {}]   ;;  %s71_s1 = inlined_call_operand.vmem [shape: f32[4,32], index: 1, kind: output, shape index: {}]  }
   0x1   :  { %s9_s7 = sshll.u32 %s44_s6, 4  ;;  %s20_s10 = scalar_lea.hbm %s70_s0, 16  ;;  %s10_s7 = int_to_ptr.vmem [resolvable:$true] %s9_s7 }
   0x2   :  { %p21_p0 = scmp.ne.s32.totalorder %s70_s0, %s20_s10  ;;  %p24_p1 = scmp.lt.u32.totalorder %s20_s10, %s70_s0 }
   0x4   :  { %p26_p2 = pnand %p24_p1, %p21_p0 }
   0x6   :  { %29 = shalt.err (!%p26_p2)
}
   0x7   :  { %s30_s15 = scalar_lea.vmem %s10_s7, 16  ;;  %s34_s16 = scalar_lea.vmem %s10_s7, 32 }
   0x8   :  { %p31_p3 = scmp.ne.s32.totalorder %s10_s7, %s30_s15  ;;  %p35_p4 = scmp.lt.s32.totalorder %s10_s7, %s10_s7 }
   0x9   :  { %p36_p5 = scmp.lt.s32.totalorder %s34_s16, %s30_s15 }
   0xb   :  { %p37_p6 = por %p36_p5, %p35_p4 }
   0xd   :  { %p38_p7 = pnand %p37_p6, %p31_p3 }
   0xf   :  { %41 = shalt.err (!%p38_p7)
}
  0x10   :  { %12 = dma.hbm_to_vmem [thread:$0]  %s70_s0, 16, %s10_s7, [#allocation1]  }
  0x11   :  { %42 = dma.done.wait [#allocation1], 16  }
  0x12   :  { %43 = vsyncadd [#allocation1], 4294967280  ;;  %v16_v0 = vld [vmem:[#allocation0] ss:$0 sm:$0xff] }
  0x13   :  { %17 = vst [vmem:[%s71_s1] sm:$0xf] %v16_v0 }
  0x14   :  { %18 = vsyncpa [#allocation1], 1 }

// kernel: tile.18
= control target key start
LH: loop header
LB: loop body
LE: loop exit
PB: predicated region body
PF: predicated region fallthrough
CT: control target
= control target key end

     0   :  { %2 = vsyncpa [#allocation1], 0  ;;  %s44_s6 = smov [#allocation0]   ;;  %s70_s0 = inlined_call_operand.hbm [shape: f32[64], index: 0, kind: input, shape index: {}]   ;;  %s71_s1 = inlined_call_operand.vmem [shape: f32[4,64], index: 1, kind: output, shape index: {}]  }
   0x1   :  { %s9_s7 = sshll.u32 %s44_s6, 4  ;;  %s20_s10 = scalar_lea.hbm %s70_s0, 16  ;;  %s10_s7 = int_to_ptr.vmem [resolvable:$true] %s9_s7 }
   0x2   :  { %p21_p0 = scmp.ne.s32.totalorder %s70_s0, %s20_s10  ;;  %p24_p1 = scmp.lt.u32.totalorder %s20_s10, %s70_s0 }
   0x4   :  { %p26_p2 = pnand %p24_p1, %p21_p0 }
   0x6   :  { %29 = shalt.err (!%p26_p2)
}
   0x7   :  { %s30_s15 = scalar_lea.vmem %s10_s7, 16  ;;  %s34_s16 = scalar_lea.vmem %s10_s7, 32 }
   0x8   :  { %p31_p3 = scmp.ne.s32.totalorder %s10_s7, %s30_s15  ;;  %p35_p4 = scmp.lt.s32.totalorder %s10_s7, %s10_s7 }
   0x9   :  { %p36_p5 = scmp.lt.s32.totalorder %s34_s16, %s30_s15 }
   0xb   :  { %p37_p6 = por %p36_p5, %p35_p4 }
   0xd   :  { %p38_p7 = pnand %p37_p6, %p31_p3 }
   0xf   :  { %41 = shalt.err (!%p38_p7)
}
  0x10   :  { %12 = dma.hbm_to_vmem [thread:$0]  %s70_s0, 16, %s10_s7, [#allocation1]  }
  0x11   :  { %42 = dma.done.wait [#allocation1], 16  }
  0x12   :  { %43 = vsyncadd [#allocation1], 4294967280  ;;  %v16_v0 = vld [vmem:[#allocation0] ss:$0 sm:$0xff] }
  0x13   :  { %17 = vst [vmem:[%s71_s1] sm:$0xf] %v16_v0 }
  0x14   :  { %18 = vsyncpa [#allocation1], 1 }

// kernel: tile.27
= control target key start
LH: loop header
LB: loop body
LE: loop exit
PB: predicated region body
PF: predicated region fallthrough
CT: control target
= control target key end

     0   :  { %vm7_vm0 = vcmask 130048   ;;  %s37_s8 = smov 16   ;;  %s38_s9 = smov 32   ;;  %vm13_vm1 = vcmask 523648   ;;  %vm19_vm2 = vcmask 392448   ;;  %vm25_vm3 = vcmask 261248   ;;  %s55_s0 = inlined_call_operand.vmem [shape: f32[4,16], index: 0, kind: input, shape index: {}]   ;;  %s56_s1 = inlined_call_operand.vmem [shape: f32[1,64], index: 1, kind: output, shape index: {}]  }
   0x1   :  { %v4_v0 = vld [vmem:[%s55_s0] sm:$0xf]  ;;  %s36_s0 = smov 48  }
   0x2   :  { %5 = vst [vmem:[#allocation1] sm:$0xf] %v4_v0 }
   0x9   :  { %v10_v1 = vld [vmem:[#allocation1 + $0x3] sm:$0x1]   ;;  %v22_v2 = vld [vmem:[#allocation1 + $0x1] sm:$0x1]   ;;  %v6_v3 = vld [vmem:[#allocation1] sm:$0x1]  }
   0xa   :  { %11 = vrot.lane.b32.xlu0 %v10_v1, %s36_s0  ;;  %23 = vrot.lane.b32.xlu1 %v22_v2, %s37_s8  ;;  %v16_v4 = vld [vmem:[#allocation1 + $0x2] sm:$0x1]   ;;  %8 = vst.msk [vmem:[#allocation0] sm:$0x1] %vm7_vm0, %v6_v3  }
   0xe   :  { %17 = vrot.lane.b32.xlu0 %v16_v4, %s38_s9 }
  0x7c   :  { %v12_v5 = vpop.permute.xlu0 %11   ;;  %v24_v6 = vpop.permute.xlu1 %23  }
  0x7d   :  { %14 = vst.msk [vmem:[#allocation0] sm:$0x1] %vm13_vm1, %v12_v5  }
  0x80   :  { %v18_v7 = vpop.permute.xlu0 %17  }
  0x81   :  { %20 = vst.msk [vmem:[#allocation0] sm:$0x1] %vm19_vm2, %v18_v7  }
  0x82   :  { %26 = vst.msk [vmem:[#allocation0] sm:$0x1] %vm25_vm3, %v24_v6  }
  0x89   :  { %v30_v8 = vld [vmem:[#allocation0] sm:$0x1] }
  0x8a   :  { %32 = vst [vmem:[%s56_s1] sm:$0x1] %v30_v8 }

// kernel: tile.26
= control target key start
LH: loop header
LB: loop body
LE: loop exit
PB: predicated region body
PF: predicated region fallthrough
CT: control target
= control target key end

     0   :  { %2 = vsyncpa [#allocation1], 0  ;;  %s44_s6 = smov [#allocation0]   ;;  %s70_s0 = inlined_call_operand.hbm [shape: f32[16], index: 0, kind: input, shape index: {}]   ;;  %s71_s1 = inlined_call_operand.vmem [shape: f32[4,16], index: 1, kind: output, shape index: {}]  }
   0x1   :  { %s9_s7 = sshll.u32 %s44_s6, 4  ;;  %s20_s10 = scalar_lea.hbm %s70_s0, 16  ;;  %s10_s7 = int_to_ptr.vmem [resolvable:$true] %s9_s7 }
   0x2   :  { %p21_p0 = scmp.ne.s32.totalorder %s70_s0, %s20_s10  ;;  %p24_p1 = scmp.lt.u32.totalorder %s20_s10, %s70_s0 }
   0x4   :  { %p26_p2 = pnand %p24_p1, %p21_p0 }
   0x6   :  { %29 = shalt.err (!%p26_p2)
}
   0x7   :  { %s30_s15 = scalar_lea.vmem %s10_s7, 16  ;;  %s34_s16 = scalar_lea.vmem %s10_s7, 32 }
   0x8   :  { %p31_p3 = scmp.ne.s32.totalorder %s10_s7, %s30_s15  ;;  %p35_p4 = scmp.lt.s32.totalorder %s10_s7, %s10_s7 }
   0x9   :  { %p36_p5 = scmp.lt.s32.totalorder %s34_s16, %s30_s15 }
   0xb   :  { %p37_p6 = por %p36_p5, %p35_p4 }
   0xd   :  { %p38_p7 = pnand %p37_p6, %p31_p3 }
   0xf   :  { %41 = shalt.err (!%p38_p7)
}
  0x10   :  { %12 = dma.hbm_to_vmem [thread:$0]  %s70_s0, 16, %s10_s7, [#allocation1]  }
  0x11   :  { %42 = dma.done.wait [#allocation1], 16  }
  0x12   :  { %43 = vsyncadd [#allocation1], 4294967280  ;;  %v16_v0 = vld [vmem:[#allocation0] ss:$0 sm:$0xff] }
  0x13   :  { %17 = vst [vmem:[%s71_s1] sm:$0xf] %v16_v0 }
  0x14   :  { %18 = vsyncpa [#allocation1], 1 }

// kernel: tile.30
= control target key start
LH: loop header
LB: loop body
LE: loop exit
PB: predicated region body
PF: predicated region fallthrough
CT: control target
= control target key end

     0   :  { %2 = vsyncpa [#allocation1], 0  ;;  %s44_s6 = smov [#allocation0]   ;;  %s70_s0 = inlined_call_operand.hbm [shape: f32[8], index: 0, kind: input, shape index: {}]   ;;  %s71_s1 = inlined_call_operand.vmem [shape: f32[4,8], index: 1, kind: output, shape index: {}]  }
   0x1   :  { %s9_s7 = sshll.u32 %s44_s6, 4  ;;  %s20_s10 = scalar_lea.hbm %s70_s0, 16  ;;  %s10_s7 = int_to_ptr.vmem [resolvable:$true] %s9_s7 }
   0x2   :  { %p21_p0 = scmp.ne.s32.totalorder %s70_s0, %s20_s10  ;;  %p24_p1 = scmp.lt.u32.totalorder %s20_s10, %s70_s0 }
   0x4   :  { %p26_p2 = pnand %p24_p1, %p21_p0 }
   0x6   :  { %29 = shalt.err (!%p26_p2)
}
   0x7   :  { %s30_s15 = scalar_lea.vmem %s10_s7, 16  ;;  %s34_s16 = scalar_lea.vmem %s10_s7, 32 }
   0x8   :  { %p31_p3 = scmp.ne.s32.totalorder %s10_s7, %s30_s15  ;;  %p35_p4 = scmp.lt.s32.totalorder %s10_s7, %s10_s7 }
   0x9   :  { %p36_p5 = scmp.lt.s32.totalorder %s34_s16, %s30_s15 }
   0xb   :  { %p37_p6 = por %p36_p5, %p35_p4 }
   0xd   :  { %p38_p7 = pnand %p37_p6, %p31_p3 }
   0xf   :  { %41 = shalt.err (!%p38_p7)
}
  0x10   :  { %12 = dma.hbm_to_vmem [thread:$0]  %s70_s0, 16, %s10_s7, [#allocation1]  }
  0x11   :  { %42 = dma.done.wait [#allocation1], 16  }
  0x12   :  { %43 = vsyncadd [#allocation1], 4294967280  ;;  %v16_v0 = vld [vmem:[#allocation0] ss:$0 sm:$0xff] }
  0x13   :  { %17 = vst [vmem:[%s71_s1] sm:$0xf] %v16_v0 }
  0x14   :  { %18 = vsyncpa [#allocation1], 1 }

// kernel: tile.31
= control target key start
LH: loop header
LB: loop body
LE: loop exit
PB: predicated region body
PF: predicated region fallthrough
CT: control target
= control target key end

     0   :  { %vm7_vm0 = vcmask 64512   ;;  %s37_s8 = smov 8   ;;  %s38_s9 = smov 16   ;;  %vm13_vm1 = vcmask 261312   ;;  %vm19_vm2 = vcmask 195712   ;;  %vm25_vm3 = vcmask 130112   ;;  %s55_s0 = inlined_call_operand.vmem [shape: f32[4,8], index: 0, kind: input, shape index: {}]   ;;  %s56_s1 = inlined_call_operand.vmem [shape: f32[1,32], index: 1, kind: output, shape index: {}]  }
   0x1   :  { %v4_v0 = vld [vmem:[%s55_s0] sm:$0xf]  ;;  %s36_s0 = smov 24  }
   0x2   :  { %5 = vst [vmem:[#allocation1] sm:$0xf] %v4_v0 }
   0x9   :  { %v10_v1 = vld [vmem:[#allocation1 + $0x3] sm:$0x1]   ;;  %v22_v2 = vld [vmem:[#allocation1 + $0x1] sm:$0x1]   ;;  %v6_v3 = vld [vmem:[#allocation1] sm:$0x1]  }
   0xa   :  { %11 = vrot.lane.b32.xlu0 %v10_v1, %s36_s0  ;;  %23 = vrot.lane.b32.xlu1 %v22_v2, %s37_s8  ;;  %v16_v4 = vld [vmem:[#allocation1 + $0x2] sm:$0x1]   ;;  %8 = vst.msk [vmem:[#allocation0] sm:$0x1] %vm7_vm0, %v6_v3  }
   0xe   :  { %17 = vrot.lane.b32.xlu0 %v16_v4, %s38_s9 }
  0x7c   :  { %v12_v5 = vpop.permute.xlu0 %11   ;;  %v24_v6 = vpop.permute.xlu1 %23  }
  0x7d   :  { %14 = vst.msk [vmem:[#allocation0] sm:$0x1] %vm13_vm1, %v12_v5  }
  0x80   :  { %v18_v7 = vpop.permute.xlu0 %17  }
  0x81   :  { %20 = vst.msk [vmem:[#allocation0] sm:$0x1] %vm19_vm2, %v18_v7  }
  0x82   :  { %26 = vst.msk [vmem:[#allocation0] sm:$0x1] %vm25_vm3, %v24_v6  }
  0x89   :  { %v30_v8 = vld [vmem:[#allocation0] sm:$0x1] }
  0x8a   :  { %32 = vst [vmem:[%s56_s1] sm:$0x1] %v30_v8 }

// kernel: generator_forward.35
= control target key start
LH: loop header
LB: loop body
LE: loop exit
PB: predicated region body
PF: predicated region fallthrough
CT: control target
= control target key end

     0   :  { %8 = vsyncpa [#allocation3], 0  ;;  %s1354_s0 = inlined_call_operand.vmem [shape: bf16[2,256,9], index: 0, kind: input, shape index: {}]   ;;  %s1355_s1 = inlined_call_operand.hbm [shape: bf16[9,8], index: 1, kind: input, shape index: {}]   ;;  %s1356_s2 = inlined_call_operand.hbm [shape: f32[1,8], index: 2, kind: input, shape index: {}]   ;;  %s1357_s3 = inlined_call_operand.vmem [shape: f32[2,256,8], index: 3, kind: output, shape index: {}]  }
   0x1   :  { %9 = vsyncpa [#allocation5], 0  ;;  %s1102_s12 = smov 0   ;;  %s1104_s13 = smov 0  }
   0x2   :  { %s1106_s14 = smov 0  }
   0x3 LB: > { %s820_s15 = sadd.s32 4294967295, %s1075_s14   ;;  %s27_s16 = sadd.s32 1, %s1071_s13  ;;  %s1075_s14 = sphi %s1106_s14, %s15_s14   ;;  %s1071_s13 = sphi %s1104_s13, %s1367_s13   ;;  %s1067_s12 = sphi %s1102_s12, %s1366_s12  }
   0x4   : > { %p29_p0 = scmp.ge.s32.totalorder %s27_s16, 2  ;;  %p822_p1 = scmp.ge.s32.totalorder %s1075_s14, 1 }
   0x5   : > { %p130_p2 = scmp.lt.s32.totalorder %s1075_s14, 3  ;;  %p1127_p4 = scmp.eq.s32.totalorder %s820_s15, 0 }
   0x6   : > { %s1369_s16 = smov (%p29_p0, %s27_s16), 0  ;;  %s1077_s19 = smov [#allocation2]  }
   0x7   : > { %p1123_p3 = pnand %p822_p1, %p130_p2  ;;  %s142_s20 = sshll.u32 %s1077_s19, 4  ;;  %s143_s20 = int_to_ptr.vmem [resolvable:$true] %s142_s20 }
   0x8   : > { %s1362_s18 = scalar_select %p1127_p4, 1, 0 }
   0x9   : > { %s1361_s17 = scalar_select %p1123_p3, 1, 0 }
   0xa   : > { %p932_p5 = pneg %p1123_p3  ;;  %s1078_s22 = smov [#allocation4]  }
   0xb   : > { %s156_s23 = sshll.u32 %s1078_s22, 4  ;;  %s989_s26 = scalar_lea.hbm %s1355_s1, 128  ;;  %s1139_s23 = int_to_ptr.vmem [resolvable:$true] %s156_s23 }
   0xc   : > { %p1135_p6 = pnand %p1127_p4, %p932_p5  ;;  %p990_p7 = scmp.ne.s32.totalorder %s1355_s1, %s989_s26 }
   0xd   : > { %p996_p11 = scmp.lt.u32.totalorder %s989_s26, %s1355_s1 }
   0xe   : > { %p991_p8 = pneg %p1135_p6 }
  0x10   : > { %p992_p9 = pnand %p991_p8, %p990_p7 }
  0x12   : > { %p993_p10 = pneg %p992_p9 }
  0x14   : > { %p998_p12 = pnand %p996_p11, %p993_p10 }
  0x16   : > { %1001 = shalt.err (!%p998_p12)
}
  0x17   : > { %s1002_s4 = scalar_lea.vmem %s143_s20, 128  ;;  %p1010_p2 = scmp.lt.s32.totalorder %s143_s20, %s143_s20 }
  0x18   : > { %p1003_p13 = scmp.ne.s32.totalorder %s143_s20, %s1002_s4  ;;  %p1011_p5 = scmp.lt.s32.totalorder %s1002_s4, %s1002_s4 }
  0x1a   : > { %p1005_p0 = pnand %p1003_p13, %p991_p8  ;;  %p1012_p4 = por %p1011_p5, %p1010_p2 }
  0x1c   : > { %p1006_p1 = pneg %p1005_p0 }
  0x1e   : > { %p1013_p3 = pnand %p1012_p4, %p1006_p1 }
  0x20   : > { %1016 = shalt.err (!%p1013_p3)
}
  0x21   : > { %s1079_s5 = smov 64   ;;  %s1080_s6 = smov 4  }
  0x22   : > { %935 = dma.hbm_to_vmem [thread:$0]  (!%p1135_p6), %s1355_s1, 128, %s143_s20, [#allocation3], %s1079_s5, %s1079_s5, %s1080_s6  }
  0x23   : > { %s1017_s11 = scalar_lea.hbm %s1356_s2, 16 }
  0x24   : > { %p1018_p7 = scmp.ne.s32.totalorder %s1356_s2, %s1017_s11  ;;  %p1024_p9 = scmp.lt.u32.totalorder %s1017_s11, %s1356_s2 }
  0x26   : > { %p1020_p3 = pnand %p1018_p7, %p991_p8 }
  0x28   : > { %p1021_p4 = pneg %p1020_p3 }
  0x2a   : > { %p1026_p10 = pnand %p1024_p9, %p1021_p4 }
  0x2c   : > { %1029 = shalt.err (!%p1026_p10)
}
  0x2d   : > { %s1030_s20 = scalar_lea.vmem %s1139_s23, 16  ;;  %s1037_s25 = scalar_lea.vmem %s1139_s23, 32 }
  0x2e   : > { %p1031_p11 = scmp.ne.s32.totalorder %s1139_s23, %s1030_s20  ;;  %p1038_p0 = scmp.lt.s32.totalorder %s1139_s23, %s1139_s23 }
  0x2f   : > { %p1039_p1 = scmp.lt.s32.totalorder %s1037_s25, %s1030_s20 }
  0x30   : > { %p1033_p12 = pnand %p1031_p11, %p991_p8 }
  0x31   : > { %p1040_p2 = por %p1039_p1, %p1038_p0 }
  0x32   : > { %p1034_p13 = pneg %p1033_p12 }
  0x34   : > { %p1041_p5 = pnand %p1040_p2, %p1034_p13 }
  0x36   : > { %1044 = shalt.err (!%p1041_p5)
}
  0x37   : > { %938 = dma.hbm_to_vmem [thread:$0]  (!%p1135_p6), %s1356_s2, 16, %s1139_s23, [#allocation5]  }
  0x38   : > { %p1364_p7 = scmp.ne.s32.totalorder %s1361_s17, 0 }
  0x39   : > { %p1365_p8 = scmp.ne.s32.totalorder (!%p1364_p7), %s1362_s18, 0 }
  0x3a   : > { %182 = sbr.rel (%p1364_p7) target bundleno = 327 (0x147), region = 32 }
  0x41   : > { %1058 = dma.done.wait (%p1365_p8), [#allocation3], 128  }
  0x42   : > { %1060 = vsyncadd (%p1365_p8), [#allocation3], 4294967168 }
  0x43   : > { %1062 = dma.done.wait (%p1365_p8), [#allocation5], 16  }
  0x44   : > { %1064 = vsyncadd (%p1365_p8), [#allocation5], 4294967280  ;;  %vm414_vm0 = vcmask 1043456   ;;  %p219_p3 = scmp.lt.s32.totalorder %s1067_s12, 1  ;;  %vm415_vm1 = vcmask 1044480   ;;  %v1081_v0 = vmov 65535  }
  0x45   : > { %v416_v1 = vsel %vm414_vm0, 4294967295, %v1081_v0  ;;  %vm365_vm2 = vcmask 72704   ;;  %v972_v3 = vld [vmem:[#allocation2] sm:$0x1f]   ;;  %v1241_v21 = vld [vmem:[#allocation4] ss:$0 sm:$0xff] }
  0x46   : > { %s1371_s12 = smov (!%p219_p3, %s1067_s12), 1  ;;  %v417_v2 = vsel %vm415_vm1, %v416_v1, 0  ;;  %vm678_vm3 = vcmask 64512  }
  0x47   : > { %s869_s17 = sshll.u32 %s1371_s12, 7  ;;  %v419_v5 = vand.u32 %v972_v3, %v417_v2  ;;  %s870_s18 = sshll.u32 %s1371_s12, 8 }
  0x48   : > { %s1207_s28 = scalar_lea.vmem %s1354_s0, %s869_s17  ;;  %s1251_s4 = scalar_lea.vmem %s1357_s3, %s870_s18 }
  0x49   : > { %v973_v4 = vld [vmem:[%s1207_s28] sm:$0xff]   ;;  %v975_v7 = vld [vmem:[%s1207_s28 + $0x8] sm:$0xff]   ;;  %888 = vmatprep.subr.bf16.mxu0 %v419_v5  ;;  %922 = vmatprep.subr.bf16.mxu1 %v419_v5  ;;  %v977_v9 = vld [vmem:[%s1207_s28 + $0x10] sm:$0xff]  }
  0x4a   : > { %v974_v6 = vld [vmem:[%s1207_s28 + $0x40] sm:$0xff]   ;;  %890 = vmatprep.mubr.msk.bf16.mxu0 %vm365_vm2, %v973_v4  ;;  %v976_v8 = vld [vmem:[%s1207_s28 + $0x48] sm:$0xff]   ;;  %889 = vmatpush3.bf16.msra.mxu0 %v419_v5  ;;  %v978_v10 = vld [vmem:[%s1207_s28 + $0x50] sm:$0xff]  }
  0x4b   : > { %923 = vmatpush3.bf16.msra.mxu1 %v419_v5  ;;  %906 = vmatprep.mubr.msk.bf16.mxu1 %vm365_vm2, %v974_v6  ;;  %v979_v11 = vld [vmem:[%s1207_s28 + $0x18] sm:$0xff]   ;;  %v981_v13 = vld [vmem:[%s1207_s28 + $0x20] sm:$0xff]   ;;  %v983_v15 = vld [vmem:[%s1207_s28 + $0x28] sm:$0xff]  }
  0x4c   : > { %v980_v12 = vld [vmem:[%s1207_s28 + $0x58] sm:$0xff]   ;;  %v982_v14 = vld [vmem:[%s1207_s28 + $0x60] sm:$0xff]   ;;  %v984_v16 = vld [vmem:[%s1207_s28 + $0x68] sm:$0xff]  }
  0x4d   : > { %891 = vmatmul.mubr.msk.bf16.vlgmr.msra.gmra.mrb[0].mxu0 %vm365_vm2, %v975_v7  ;;  %v985_v17 = vld [vmem:[%s1207_s28 + $0x30] sm:$0xff]   ;;  %v987_v19 = vld [vmem:[%s1207_s28 + $0x38] sm:$0xff]  }
  0x4e   : > { %907 = vmatmul.mubr.msk.bf16.vlgmr.msra.gmra.mrb[0].mxu1 %vm365_vm2, %v976_v8  ;;  %894 = vmatprep.mubr.msk.bf16.mxu0 %vm365_vm2, %v977_v9  ;;  %v986_v18 = vld [vmem:[%s1207_s28 + $0x70] sm:$0xff]   ;;  %v988_v20 = vld [vmem:[%s1207_s28 + $0x78] sm:$0xff]  }
  0x4f   : > { %910 = vmatprep.mubr.msk.bf16.mxu1 %vm365_vm2, %v978_v10 }
  0x55   : > { %895 = vmatmul.mubr.msk.bf16.gmra.mrb[4].mxu0 %vm365_vm2, %v979_v11 }
  0x56   : > { %911 = vmatmul.mubr.msk.bf16.gmra.mrb[4].mxu1 %vm365_vm2, %v980_v12  ;;  %898 = vmatprep.mubr.msk.bf16.mxu0 %vm365_vm2, %v981_v13 }
  0x57   : > { %914 = vmatprep.mubr.msk.bf16.mxu1 %vm365_vm2, %v982_v14 }
  0x5d   : > { %899 = vmatmul.mubr.msk.bf16.gmra.mrb[8].mxu0 %vm365_vm2, %v983_v15 }
  0x5e   : > { %915 = vmatmul.mubr.msk.bf16.gmra.mrb[8].mxu1 %vm365_vm2, %v984_v16  ;;  %902 = vmatprep.mubr.msk.bf16.mxu0 %vm365_vm2, %v985_v17 }
  0x5f   : > { %918 = vmatprep.mubr.msk.bf16.mxu1 %vm365_vm2, %v986_v18 }
  0x65   : > { %903 = vmatmul.mubr.msk.bf16.gmra.mrb[12].mxu0 %vm365_vm2, %v987_v19 }
  0x66   : > { %919 = vmatmul.mubr.msk.bf16.gmra.mrb[12].mxu1 %vm365_vm2, %v988_v20 }
 0x120   : > { %v892_v22 = vpop.f32.mrb[0].mxu0 }
 0x121   : > { %v908_v23 = vpop.f32.mrb[0].mxu1  ;;  %v464_v24 = vadd.f32 %v892_v22, %v1241_v21  ;;  %v455_v26 = vpop.f32.mrb[1].mxu0 }
 0x122   : > { %v528_v25 = vadd.f32 %v908_v23, %v1241_v21  ;;  %v519_v27 = vpop.f32.mrb[1].mxu1  ;;  %v456_v28 = vadd.f32 %v1241_v21, %v455_v26  ;;  %v893_v30 = vpop.f32.mrb[2].mxu0 }
 0x123   : > { %v520_v29 = vadd.f32 %v1241_v21, %v519_v27  ;;  %v909_v31 = vpop.f32.mrb[2].mxu1  ;;  %vm584_vm4 = vcmp.ge.f32.partialorder %v464_v24, 0.0  ;;  %v616_v32 = vmul.f32 0.2, %v464_v24  ;;  %v467_v38 = vadd.f32 %v893_v30, %v1241_v21  ;;  %v458_v40 = vpop.f32.mrb[3].mxu0 }
 0x124   : > { %vm600_vm5 = vcmp.ge.f32.partialorder %v528_v25, 0.0  ;;  %v632_v33 = vmul.f32 0.2, %v528_v25  ;;  %vm582_vm6 = vcmp.ge.f32.partialorder %v456_v28, 0.0  ;;  %v614_v34 = vmul.f32 0.2, %v456_v28 }
 0x125   : > { %vm598_vm7 = vcmp.ge.f32.partialorder %v520_v29, 0.0  ;;  %v630_v35 = vmul.f32 0.2, %v520_v29  ;;  %v648_v36 = vsel %vm584_vm4, %v464_v24, %v616_v32  ;;  %v531_v39 = vadd.f32 %v909_v31, %v1241_v21  ;;  %v522_v41 = vpop.f32.mrb[3].mxu1 }
 0x126   : > { %v664_v37 = vsel %vm600_vm5, %v528_v25, %v632_v33  ;;  %681 = vst.msk [vmem:[%s1251_s4 + $0x10] sm:$0xff] %vm678_vm3, %v648_v36  ;;  %v646_v42 = vsel %vm582_vm6, %v456_v28, %v614_v34  ;;  %v459_v44 = vadd.f32 %v1241_v21, %v458_v40  ;;  %v523_v45 = vadd.f32 %v1241_v21, %v522_v41 }
 0x127   : > { %697 = vst.msk [vmem:[%s1251_s4 + $0x90] sm:$0xff] %vm678_vm3, %v664_v37  ;;  %v662_v43 = vsel %vm598_vm7, %v520_v29, %v630_v35  ;;  %679 = vst.msk [vmem:[%s1251_s4] sm:$0xff] %vm678_vm3, %v646_v42  ;;  %vm585_vm8 = vcmp.ge.f32.partialorder %v467_v38, 0.0  ;;  %v617_v46 = vmul.f32 0.2, %v467_v38  ;;  %vm601_vm9 = vcmp.ge.f32.partialorder %v531_v39, 0.0 }
 0x128   : > { %695 = vst.msk [vmem:[%s1251_s4 + $0x80] sm:$0xff] %vm678_vm3, %v662_v43  ;;  %v633_v47 = vmul.f32 0.2, %v531_v39  ;;  %vm583_vm10 = vcmp.ge.f32.partialorder %v459_v44, 0.0  ;;  %v615_v48 = vmul.f32 0.2, %v459_v44 }
 0x129   : > { %vm599_vm11 = vcmp.ge.f32.partialorder %v523_v45, 0.0  ;;  %v631_v49 = vmul.f32 0.2, %v523_v45  ;;  %v649_v50 = vsel %vm585_vm8, %v467_v38, %v617_v46  ;;  %v896_v52 = vpop.f32.mrb[4].mxu0  ;;  %v912_v53 = vpop.f32.mrb[4].mxu1 }
 0x12a   : > { %v665_v51 = vsel %vm601_vm9, %v531_v39, %v633_v47  ;;  %682 = vst.msk [vmem:[%s1251_s4 + $0x18] sm:$0xff] %vm678_vm3, %v649_v50  ;;  %v647_v54 = vsel %vm583_vm10, %v459_v44, %v615_v48  ;;  %v480_v56 = vadd.f32 %v896_v52, %v1241_v21  ;;  %v544_v57 = vadd.f32 %v912_v53, %v1241_v21  ;;  %v471_v58 = vpop.f32.mrb[5].mxu0  ;;  %v535_v59 = vpop.f32.mrb[5].mxu1 }
 0x12b   : > { %698 = vst.msk [vmem:[%s1251_s4 + $0x98] sm:$0xff] %vm678_vm3, %v665_v51  ;;  %v663_v55 = vsel %vm599_vm11, %v523_v45, %v631_v49  ;;  %680 = vst.msk [vmem:[%s1251_s4 + $0x8] sm:$0xff] %vm678_vm3, %v647_v54  ;;  %v472_v60 = vadd.f32 %v1241_v21, %v471_v58  ;;  %v536_v61 = vadd.f32 %v1241_v21, %v535_v59  ;;  %v897_v62 = vpop.f32.mrb[6].mxu0  ;;  %v913_v63 = vpop.f32.mrb[6].mxu1 }
 0x12c   : > { %696 = vst.msk [vmem:[%s1251_s4 + $0x88] sm:$0xff] %vm678_vm3, %v663_v55  ;;  %vm588_vm12 = vcmp.ge.f32.partialorder %v480_v56, 0.0  ;;  %v620_v0 = vmul.f32 0.2, %v480_v56  ;;  %vm604_vm13 = vcmp.ge.f32.partialorder %v544_v57, 0.0  ;;  %v483_v6 = vadd.f32 %v897_v62, %v1241_v21  ;;  %v474_v8 = vpop.f32.mrb[7].mxu0 }
 0x12d   : > { %v636_v1 = vmul.f32 0.2, %v544_v57  ;;  %vm586_vm14 = vcmp.ge.f32.partialorder %v472_v60, 0.0  ;;  %v618_v2 = vmul.f32 0.2, %v472_v60  ;;  %vm602_vm15 = vcmp.ge.f32.partialorder %v536_v61, 0.0 }
 0x12e   : > { %v634_v3 = vmul.f32 0.2, %v536_v61  ;;  %v652_v4 = vsel %vm588_vm12, %v480_v56, %v620_v0  ;;  %v547_v7 = vadd.f32 %v913_v63, %v1241_v21  ;;  %v538_v9 = vpop.f32.mrb[7].mxu1  ;;  %v475_v12 = vadd.f32 %v1241_v21, %v474_v8 }
 0x12f   : > { %v668_v5 = vsel %vm604_vm13, %v544_v57, %v636_v1  ;;  %685 = vst.msk [vmem:[%s1251_s4 + $0x30] sm:$0xff] %vm678_vm3, %v652_v4  ;;  %v650_v10 = vsel %vm586_vm14, %v472_v60, %v618_v2  ;;  %v539_v13 = vadd.f32 %v1241_v21, %v538_v9  ;;  %vm589_vm0 = vcmp.ge.f32.partialorder %v483_v6, 0.0 }
 0x130   : > { %701 = vst.msk [vmem:[%s1251_s4 + $0xb0] sm:$0xff] %vm678_vm3, %v668_v5  ;;  %v666_v11 = vsel %vm602_vm15, %v536_v61, %v634_v3  ;;  %683 = vst.msk [vmem:[%s1251_s4 + $0x20] sm:$0xff] %vm678_vm3, %v650_v10  ;;  %v621_v14 = vmul.f32 0.2, %v483_v6  ;;  %vm605_vm1 = vcmp.ge.f32.partialorder %v547_v7, 0.0  ;;  %vm587_vm2 = vcmp.ge.f32.partialorder %v475_v12, 0.0 }
 0x131   : > { %699 = vst.msk [vmem:[%s1251_s4 + $0xa0] sm:$0xff] %vm678_vm3, %v666_v11  ;;  %v637_v15 = vmul.f32 0.2, %v547_v7  ;;  %v619_v16 = vmul.f32 0.2, %v475_v12  ;;  %vm603_vm4 = vcmp.ge.f32.partialorder %v539_v13, 0.0 }
 0x132   : > { %v635_v17 = vmul.f32 0.2, %v539_v13  ;;  %v653_v18 = vsel %vm589_vm0, %v483_v6, %v621_v14  ;;  %v900_v20 = vpop.f32.mrb[8].mxu0  ;;  %v916_v22 = vpop.f32.mrb[8].mxu1 }
 0x133   : > { %v669_v19 = vsel %vm605_vm1, %v547_v7, %v637_v15  ;;  %686 = vst.msk [vmem:[%s1251_s4 + $0x38] sm:$0xff] %vm678_vm3, %v653_v18  ;;  %v651_v23 = vsel %vm587_vm2, %v475_v12, %v619_v16  ;;  %v496_v25 = vadd.f32 %v900_v20, %v1241_v21  ;;  %v560_v26 = vadd.f32 %v916_v22, %v1241_v21  ;;  %v487_v27 = vpop.f32.mrb[9].mxu0  ;;  %v551_v28 = vpop.f32.mrb[9].mxu1 }
 0x134   : > { %702 = vst.msk [vmem:[%s1251_s4 + $0xb8] sm:$0xff] %vm678_vm3, %v669_v19  ;;  %v667_v24 = vsel %vm603_vm4, %v539_v13, %v635_v17  ;;  %684 = vst.msk [vmem:[%s1251_s4 + $0x28] sm:$0xff] %vm678_vm3, %v651_v23  ;;  %v488_v29 = vadd.f32 %v1241_v21, %v487_v27  ;;  %v552_v30 = vadd.f32 %v1241_v21, %v551_v28  ;;  %v901_v31 = vpop.f32.mrb[10].mxu0  ;;  %v917_v32 = vpop.f32.mrb[10].mxu1 }
 0x135   : > { %700 = vst.msk [vmem:[%s1251_s4 + $0xa8] sm:$0xff] %vm678_vm3, %v667_v24  ;;  %vm592_vm5 = vcmp.ge.f32.partialorder %v496_v25, 0.0  ;;  %v624_v33 = vmul.f32 0.2, %v496_v25  ;;  %vm608_vm6 = vcmp.ge.f32.partialorder %v560_v26, 0.0  ;;  %v499_v39 = vadd.f32 %v901_v31, %v1241_v21  ;;  %v490_v41 = vpop.f32.mrb[11].mxu0 }
 0x136   : > { %v640_v34 = vmul.f32 0.2, %v560_v26  ;;  %vm590_vm7 = vcmp.ge.f32.partialorder %v488_v29, 0.0  ;;  %v622_v35 = vmul.f32 0.2, %v488_v29  ;;  %vm606_vm8 = vcmp.ge.f32.partialorder %v552_v30, 0.0 }
 0x137   : > { %v638_v36 = vmul.f32 0.2, %v552_v30  ;;  %v656_v37 = vsel %vm592_vm5, %v496_v25, %v624_v33  ;;  %v563_v40 = vadd.f32 %v917_v32, %v1241_v21  ;;  %v554_v42 = vpop.f32.mrb[11].mxu1  ;;  %v491_v45 = vadd.f32 %v1241_v21, %v490_v41 }
 0x138   : > { %v672_v38 = vsel %vm608_vm6, %v560_v26, %v640_v34  ;;  %689 = vst.msk [vmem:[%s1251_s4 + $0x50] sm:$0xff] %vm678_vm3, %v656_v37  ;;  %v654_v43 = vsel %vm590_vm7, %v488_v29, %v622_v35  ;;  %v555_v46 = vadd.f32 %v1241_v21, %v554_v42  ;;  %v904_v47 = vpop.f32.mrb[12].mxu0  ;;  %vm593_vm9 = vcmp.ge.f32.partialorder %v499_v39, 0.0 }
 0x139   : > { %705 = vst.msk [vmem:[%s1251_s4 + $0xd0] sm:$0xff] %vm678_vm3, %v672_v38  ;;  %v670_v44 = vsel %vm606_vm8, %v552_v30, %v638_v36  ;;  %v920_v48 = vpop.f32.mrb[12].mxu1  ;;  %687 = vst.msk [vmem:[%s1251_s4 + $0x40] sm:$0xff] %vm678_vm3, %v654_v43  ;;  %v625_v49 = vmul.f32 0.2, %v499_v39  ;;  %vm609_vm10 = vcmp.ge.f32.partialorder %v563_v40, 0.0  ;;  %v512_v55 = vadd.f32 %v904_v47, %v1241_v21 }
 0x13a   : > { %703 = vst.msk [vmem:[%s1251_s4 + $0xc0] sm:$0xff] %vm678_vm3, %v670_v44  ;;  %v641_v50 = vmul.f32 0.2, %v563_v40  ;;  %vm591_vm11 = vcmp.ge.f32.partialorder %v491_v45, 0.0  ;;  %v623_v51 = vmul.f32 0.2, %v491_v45  ;;  %v576_v56 = vadd.f32 %v920_v48, %v1241_v21 }
 0x13b   : > { %vm607_vm12 = vcmp.ge.f32.partialorder %v555_v46, 0.0  ;;  %v639_v52 = vmul.f32 0.2, %v555_v46  ;;  %v657_v53 = vsel %vm593_vm9, %v499_v39, %v625_v49  ;;  %v503_v57 = vpop.f32.mrb[13].mxu0  ;;  %v567_v58 = vpop.f32.mrb[13].mxu1  ;;  %vm596_vm13 = vcmp.ge.f32.partialorder %v512_v55, 0.0 }
 0x13c   : > { %v673_v54 = vsel %vm609_vm10, %v563_v40, %v641_v50  ;;  %690 = vst.msk [vmem:[%s1251_s4 + $0x58] sm:$0xff] %vm678_vm3, %v657_v53  ;;  %v655_v59 = vsel %vm591_vm11, %v491_v45, %v623_v51  ;;  %v504_v61 = vadd.f32 %v1241_v21, %v503_v57  ;;  %v568_v62 = vadd.f32 %v1241_v21, %v567_v58  ;;  %v905_v63 = vpop.f32.mrb[14].mxu0  ;;  %v921_v0 = vpop.f32.mrb[14].mxu1 }
 0x13d   : > { %706 = vst.msk [vmem:[%s1251_s4 + $0xd8] sm:$0xff] %vm678_vm3, %v673_v54  ;;  %v671_v60 = vsel %vm607_vm12, %v555_v46, %v639_v52  ;;  %688 = vst.msk [vmem:[%s1251_s4 + $0x48] sm:$0xff] %vm678_vm3, %v655_v59  ;;  %v628_v1 = vmul.f32 0.2, %v512_v55  ;;  %vm612_vm14 = vcmp.ge.f32.partialorder %v576_v56, 0.0  ;;  %v515_v7 = vadd.f32 %v905_v63, %v1241_v21  ;;  %v506_v9 = vpop.f32.mrb[15].mxu0 }
 0x13e   : > { %704 = vst.msk [vmem:[%s1251_s4 + $0xc8] sm:$0xff] %vm678_vm3, %v671_v60  ;;  %v644_v2 = vmul.f32 0.2, %v576_v56  ;;  %vm594_vm15 = vcmp.ge.f32.partialorder %v504_v61, 0.0  ;;  %v626_v3 = vmul.f32 0.2, %v504_v61  ;;  %v579_v8 = vadd.f32 %v921_v0, %v1241_v21 }
 0x13f   : > { %vm610_vm0 = vcmp.ge.f32.partialorder %v568_v62, 0.0  ;;  %v642_v4 = vmul.f32 0.2, %v568_v62  ;;  %v660_v5 = vsel %vm596_vm13, %v512_v55, %v628_v1  ;;  %v570_v10 = vpop.f32.mrb[15].mxu1  ;;  %v507_v13 = vadd.f32 %v1241_v21, %v506_v9 }
 0x140   : > { %v676_v6 = vsel %vm612_vm14, %v576_v56, %v644_v2  ;;  %693 = vst.msk [vmem:[%s1251_s4 + $0x70] sm:$0xff] %vm678_vm3, %v660_v5  ;;  %v658_v11 = vsel %vm594_vm15, %v504_v61, %v626_v3  ;;  %v571_v14 = vadd.f32 %v1241_v21, %v570_v10  ;;  %vm597_vm1 = vcmp.ge.f32.partialorder %v515_v7, 0.0 }
 0x141   : > { %709 = vst.msk [vmem:[%s1251_s4 + $0xf0] sm:$0xff] %vm678_vm3, %v676_v6  ;;  %v674_v12 = vsel %vm610_vm0, %v568_v62, %v642_v4  ;;  %691 = vst.msk [vmem:[%s1251_s4 + $0x60] sm:$0xff] %vm678_vm3, %v658_v11  ;;  %v629_v15 = vmul.f32 0.2, %v515_v7  ;;  %vm613_vm2 = vcmp.ge.f32.partialorder %v579_v8, 0.0  ;;  %vm595_vm4 = vcmp.ge.f32.partialorder %v507_v13, 0.0 }
 0x142   : > { %707 = vst.msk [vmem:[%s1251_s4 + $0xe0] sm:$0xff] %vm678_vm3, %v674_v12  ;;  %v645_v16 = vmul.f32 0.2, %v579_v8  ;;  %v627_v17 = vmul.f32 0.2, %v507_v13  ;;  %vm611_vm5 = vcmp.ge.f32.partialorder %v571_v14, 0.0 }
 0x143   : > { %v643_v18 = vmul.f32 0.2, %v571_v14  ;;  %v661_v19 = vsel %vm597_vm1, %v515_v7, %v629_v15 }
 0x144   : > { %v677_v20 = vsel %vm613_vm2, %v579_v8, %v645_v16  ;;  %694 = vst.msk [vmem:[%s1251_s4 + $0x78] sm:$0xff] %vm678_vm3, %v661_v19  ;;  %v659_v21 = vsel %vm595_vm4, %v507_v13, %v627_v17 }
 0x145   : > { %710 = vst.msk [vmem:[%s1251_s4 + $0xf8] sm:$0xff] %vm678_vm3, %v677_v20  ;;  %v675_v22 = vsel %vm611_vm5, %v571_v14, %v643_v18  ;;  %692 = vst.msk [vmem:[%s1251_s4 + $0x68] sm:$0xff] %vm678_vm3, %v659_v21 }
 0x146   : > { %708 = vst.msk [vmem:[%s1251_s4 + $0xe8] sm:$0xff] %vm678_vm3, %v675_v22 }
 0x147 PF: > { %s15_s14 = sadd.s32 1, %s1075_s14   ;;  %s1366_s12 = smov %s1071_s13 }
 0x148   : > { %p12_p6 = scmp.ge.s32.totalorder %s15_s14, 4   ;;  %s1367_s13 = smov %s1369_s16 }
 0x14a   :  { %14 = sbr.rel (!%p12_p6) target bundleno = 3 (0x3), region = 71 }
 0x151   :  { %741 = vsyncpa [#allocation3], 1 }
 0x152   :  { %743 = vsyncpa [#allocation3 + $0x1], 1 }
 0x153   :  { %744 = vsyncpa [#allocation5], 1 }

// kernel: generator_forward.36
= control target key start
LH: loop header
LB: loop body
LE: loop exit
PB: predicated region body
PF: predicated region fallthrough
CT: control target
= control target key end

     0   :  { %s1011_s12 = smov 0   ;;  %s1013_s13 = smov 0   ;;  %s1200_s0 = inlined_call_operand.vmem [shape: bf16[2,256,72], index: 0, kind: input, shape index: {}]   ;;  %s1201_s1 = inlined_call_operand.vmem [shape: bf16[72,8], index: 1, kind: input, shape index: {}]   ;;  %s1202_s2 = inlined_call_operand.vmem [shape: f32[1,8], index: 2, kind: input, shape index: {}]   ;;  %s1203_s3 = inlined_call_operand.vmem [shape: f32[2,256,8], index: 3, kind: output, shape index: {}]  }
   0x1   :  { %s1015_s14 = smov 0  }
   0x2 LB: > { %s25_s15 = sadd.s32 1, %s985_s13  ;;  %p800_p0 = scmp.ge.s32.totalorder %s989_s14, 1  ;;  %s989_s14 = sphi %s1015_s14, %s13_s14   ;;  %s985_s13 = sphi %s1013_s13, %s1205_s13   ;;  %s981_s12 = sphi %s1011_s12, %s1204_s12  }
   0x3   : > { %p27_p1 = scmp.ge.s32.totalorder %s25_s15, 2  ;;  %p158_p2 = scmp.lt.s32.totalorder %s989_s14, 3 }
   0x5   : > { %s1207_s15 = smov (%p27_p1, %s25_s15), 0  ;;  %p159_p3 = pnand %p800_p0, %p158_p2 }
   0x6   : > { %v946_v0 = vld [vmem:[%s1201_s1] sm:$0xff] (!%p159_p3)   ;;  %v947_v1 = vld [vmem:[%s1201_s1 + $0x8] sm:$0xff] (!%p159_p3)   ;;  %p191_p4 = scmp.lt.s32.totalorder (!%p159_p3), %s981_s12, 1  ;;  %v948_v2 = vld [vmem:[%s1201_s1 + $0x10] sm:$0xff] (!%p159_p3)   ;;  %vm366_vm0 = vcmask (!%p159_p3), 588800   ;;  %vm415_vm1 = vcmask (!%p159_p3), 1043456  }
   0x7   : > { %162 = sbr.rel (%p159_p3) target bundleno = 276 (0x114), region = 32  ;;  %868 = vmatprep.subr.bf16.mxu0 (!%p159_p3), %v946_v0  ;;  %910 = vmatprep.subr.bf16.mxu1 (!%p159_p3), %v946_v0  ;;  %v949_v3 = vld [vmem:[%s1201_s1 + $0x18] sm:$0xff] (!%p159_p3)   ;;  %v950_v6 = vld [vmem:[%s1201_s1 + $0x20] ss:$0 sps:$4 sm:$0xff] (!%p159_p3)   ;;  %vm676_vm2 = vcmask (!%p159_p3), 64512  }
   0x8   : > { %869 = vmatpush3.bf16.msra.mxu0 (!%p159_p3), %v946_v0  ;;  %915 = vmatpush3.bf16.msra.mxu1 (!%p159_p3), %v946_v0  ;;  %v417_v7 = vsel (!%p159_p3), %vm415_vm1, %v950_v6, 0  ;;  %v1087_v22 = vld [vmem:[%s1202_s2] ss:$0 sm:$0xff] (!%p159_p3) }
   0x9   : > { %870 = vmatprep.subr.bf16.mxu0 (!%p159_p3), %v947_v1  ;;  %911 = vmatprep.subr.bf16.mxu1 (!%p159_p3), %v947_v1 }
   0xc   : > { %871 = vmatpush3.bf16.msra.mxu0 (!%p159_p3), %v947_v1  ;;  %916 = vmatpush3.bf16.msra.mxu1 (!%p159_p3), %v947_v1 }
   0xd   : > { %872 = vmatprep.subr.bf16.mxu0 (!%p159_p3), %v948_v2  ;;  %912 = vmatprep.subr.bf16.mxu1 (!%p159_p3), %v948_v2 }
   0xe   : > { %s1209_s12 = smov (!%p191_p4, %s981_s12), 1 }
   0xf   : > { %s845_s22 = sshll.u32 %s1209_s12, 7  ;;  %s846_s5 = sshll.u32 %s1209_s12, 8 }
  0x10   : > { %s1047_s27 = scalar_lea.vmem %s1200_s0, %s845_s22  ;;  %873 = vmatpush3.bf16.msra.mxu0 %v948_v2  ;;  %917 = vmatpush3.bf16.msra.mxu1 %v948_v2  ;;  %s1097_s8 = scalar_lea.vmem %s1203_s3, %s846_s5 }
  0x11   : > { %v951_v4 = vld [vmem:[%s1047_s27] sm:$0xff]   ;;  %874 = vmatprep.subr.bf16.mxu0 %v949_v3  ;;  %913 = vmatprep.subr.bf16.mxu1 %v949_v3  ;;  %v953_v8 = vld [vmem:[%s1047_s27 + $0x8] sm:$0xff]   ;;  %v955_v10 = vld [vmem:[%s1047_s27 + $0x10] sm:$0xff]  }
  0x12   : > { %v952_v5 = vld [vmem:[%s1047_s27 + $0x40] sm:$0xff]   ;;  %878 = vmatprep.mubr.msk.bf16.mxu0 %vm366_vm0, %v951_v4  ;;  %v954_v9 = vld [vmem:[%s1047_s27 + $0x48] sm:$0xff]   ;;  %v956_v11 = vld [vmem:[%s1047_s27 + $0x50] sm:$0xff]  }
  0x13   : > { %894 = vmatprep.mubr.msk.bf16.mxu1 %vm366_vm0, %v952_v5  ;;  %v957_v12 = vld [vmem:[%s1047_s27 + $0x18] sm:$0xff]   ;;  %v959_v14 = vld [vmem:[%s1047_s27 + $0x20] sm:$0xff]   ;;  %v961_v16 = vld [vmem:[%s1047_s27 + $0x28] sm:$0xff]  }
  0x14   : > { %875 = vmatpush3.bf16.msra.mxu0 %v949_v3  ;;  %918 = vmatpush3.bf16.msra.mxu1 %v949_v3  ;;  %v958_v13 = vld [vmem:[%s1047_s27 + $0x58] sm:$0xff]   ;;  %v960_v15 = vld [vmem:[%s1047_s27 + $0x60] sm:$0xff]   ;;  %v962_v17 = vld [vmem:[%s1047_s27 + $0x68] sm:$0xff]  }
  0x15   : > { %920 = vmatprep.subr.msk.bf16.mxu0 %vm415_vm1, %v950_v6  ;;  %921 = vmatprep.subr.msk.bf16.mxu1 %vm415_vm1, %v950_v6  ;;  %v963_v18 = vld [vmem:[%s1047_s27 + $0x30] sm:$0xff]   ;;  %v965_v20 = vld [vmem:[%s1047_s27 + $0x38] sm:$0xff]  }
  0x16   : > { %v964_v19 = vld [vmem:[%s1047_s27 + $0x70] sm:$0xff]   ;;  %v966_v21 = vld [vmem:[%s1047_s27 + $0x78] sm:$0xff]  }
  0x18   : > { %877 = vmatpush3.bf16.msra.mxu0 %v417_v7  ;;  %919 = vmatpush3.bf16.msra.mxu1 %v417_v7 }
  0x1b   : > { %879 = vmatmul.mubr.msk.bf16.vlgmr.msra.gmra.mrb[0].mxu0 %vm366_vm0, %v953_v8  ;;  %895 = vmatmul.mubr.msk.bf16.vlgmr.msra.gmra.mrb[0].mxu1 %vm366_vm0, %v954_v9 }
  0x1c   : > { %882 = vmatprep.mubr.msk.bf16.mxu0 %vm366_vm0, %v955_v10  ;;  %898 = vmatprep.mubr.msk.bf16.mxu1 %vm366_vm0, %v956_v11 }
  0x23   : > { %883 = vmatmul.mubr.msk.bf16.gmra.mrb[4].mxu0 %vm366_vm0, %v957_v12  ;;  %899 = vmatmul.mubr.msk.bf16.gmra.mrb[4].mxu1 %vm366_vm0, %v958_v13 }
  0x24   : > { %886 = vmatprep.mubr.msk.bf16.mxu0 %vm366_vm0, %v959_v14  ;;  %902 = vmatprep.mubr.msk.bf16.mxu1 %vm366_vm0, %v960_v15 }
  0x2b   : > { %887 = vmatmul.mubr.msk.bf16.gmra.mrb[8].mxu0 %vm366_vm0, %v961_v16  ;;  %903 = vmatmul.mubr.msk.bf16.gmra.mrb[8].mxu1 %vm366_vm0, %v962_v17 }
  0x2c   : > { %890 = vmatprep.mubr.msk.bf16.mxu0 %vm366_vm0, %v963_v18  ;;  %906 = vmatprep.mubr.msk.bf16.mxu1 %vm366_vm0, %v964_v19 }
  0x33   : > { %891 = vmatmul.mubr.msk.bf16.gmra.mrb[12].mxu0 %vm366_vm0, %v965_v20  ;;  %907 = vmatmul.mubr.msk.bf16.gmra.mrb[12].mxu1 %vm366_vm0, %v966_v21 }
  0xee   : > { %v880_v23 = vpop.f32.mrb[0].mxu0  ;;  %v896_v24 = vpop.f32.mrb[0].mxu1 }
  0xef   : > { %v462_v25 = vadd.f32 %v880_v23, %v1087_v22  ;;  %v526_v26 = vadd.f32 %v896_v24, %v1087_v22  ;;  %v453_v27 = vpop.f32.mrb[1].mxu0  ;;  %v517_v28 = vpop.f32.mrb[1].mxu1 }
  0xf0   : > { %v454_v29 = vadd.f32 %v1087_v22, %v453_v27  ;;  %v518_v30 = vadd.f32 %v1087_v22, %v517_v28  ;;  %v881_v31 = vpop.f32.mrb[2].mxu0  ;;  %v897_v32 = vpop.f32.mrb[2].mxu1 }
  0xf1   : > { %vm582_vm3 = vcmp.ge.f32.partialorder %v462_v25, 0.0  ;;  %v614_v33 = vmul.f32 0.2, %v462_v25  ;;  %vm598_vm4 = vcmp.ge.f32.partialorder %v526_v26, 0.0  ;;  %v630_v34 = vmul.f32 0.2, %v526_v26 }
  0xf2   : > { %vm580_vm5 = vcmp.ge.f32.partialorder %v454_v29, 0.0  ;;  %v612_v35 = vmul.f32 0.2, %v454_v29  ;;  %vm596_vm6 = vcmp.ge.f32.partialorder %v518_v30, 0.0  ;;  %v628_v36 = vmul.f32 0.2, %v518_v30 }
  0xf3   : > { %v646_v37 = vsel %vm582_vm3, %v462_v25, %v614_v33  ;;  %v662_v38 = vsel %vm598_vm4, %v526_v26, %v630_v34  ;;  %v465_v39 = vadd.f32 %v881_v31, %v1087_v22  ;;  %v529_v40 = vadd.f32 %v897_v32, %v1087_v22  ;;  %v456_v41 = vpop.f32.mrb[3].mxu0  ;;  %v520_v42 = vpop.f32.mrb[3].mxu1 }
  0xf4   : > { %679 = vst.msk [vmem:[%s1097_s8 + $0x10] sm:$0xff] %vm676_vm2, %v646_v37  ;;  %695 = vst.msk [vmem:[%s1097_s8 + $0x90] sm:$0xff] %vm676_vm2, %v662_v38  ;;  %v644_v43 = vsel %vm580_vm5, %v454_v29, %v612_v35  ;;  %v660_v44 = vsel %vm596_vm6, %v518_v30, %v628_v36  ;;  %v457_v45 = vadd.f32 %v1087_v22, %v456_v41 }
  0xf5   : > { %v521_v46 = vadd.f32 %v1087_v22, %v520_v42  ;;  %677 = vst.msk [vmem:[%s1097_s8] sm:$0xff] %vm676_vm2, %v644_v43  ;;  %693 = vst.msk [vmem:[%s1097_s8 + $0x80] sm:$0xff] %vm676_vm2, %v660_v44  ;;  %vm583_vm7 = vcmp.ge.f32.partialorder %v465_v39, 0.0  ;;  %v615_v47 = vmul.f32 0.2, %v465_v39  ;;  %vm599_vm8 = vcmp.ge.f32.partialorder %v529_v40, 0.0 }
  0xf6   : > { %v631_v48 = vmul.f32 0.2, %v529_v40  ;;  %vm581_vm9 = vcmp.ge.f32.partialorder %v457_v45, 0.0  ;;  %v613_v49 = vmul.f32 0.2, %v457_v45  ;;  %v884_v53 = vpop.f32.mrb[4].mxu0 }
  0xf7   : > { %vm597_vm10 = vcmp.ge.f32.partialorder %v521_v46, 0.0  ;;  %v629_v50 = vmul.f32 0.2, %v521_v46  ;;  %v647_v51 = vsel %vm583_vm7, %v465_v39, %v615_v47  ;;  %v900_v54 = vpop.f32.mrb[4].mxu1  ;;  %v478_v57 = vadd.f32 %v884_v53, %v1087_v22  ;;  %v469_v59 = vpop.f32.mrb[5].mxu0 }
  0xf8   : > { %v663_v52 = vsel %vm599_vm8, %v529_v40, %v631_v48  ;;  %680 = vst.msk [vmem:[%s1097_s8 + $0x18] sm:$0xff] %vm676_vm2, %v647_v51  ;;  %v645_v55 = vsel %vm581_vm9, %v457_v45, %v613_v49  ;;  %v542_v58 = vadd.f32 %v900_v54, %v1087_v22  ;;  %v533_v60 = vpop.f32.mrb[5].mxu1  ;;  %v470_v61 = vadd.f32 %v1087_v22, %v469_v59  ;;  %v885_v63 = vpop.f32.mrb[6].mxu0 }
  0xf9   : > { %696 = vst.msk [vmem:[%s1097_s8 + $0x98] sm:$0xff] %vm676_vm2, %v663_v52  ;;  %v661_v56 = vsel %vm597_vm10, %v521_v46, %v629_v50  ;;  %678 = vst.msk [vmem:[%s1097_s8 + $0x8] sm:$0xff] %vm676_vm2, %v645_v55  ;;  %v534_v62 = vadd.f32 %v1087_v22, %v533_v60  ;;  %v901_v0 = vpop.f32.mrb[6].mxu1  ;;  %vm586_vm11 = vcmp.ge.f32.partialorder %v478_v57, 0.0  ;;  %v618_v1 = vmul.f32 0.2, %v478_v57 }
  0xfa   : > { %694 = vst.msk [vmem:[%s1097_s8 + $0x88] sm:$0xff] %vm676_vm2, %v661_v56  ;;  %vm602_vm12 = vcmp.ge.f32.partialorder %v542_v58, 0.0  ;;  %v634_v2 = vmul.f32 0.2, %v542_v58  ;;  %vm584_vm13 = vcmp.ge.f32.partialorder %v470_v61, 0.0  ;;  %v481_v7 = vadd.f32 %v885_v63, %v1087_v22  ;;  %v472_v9 = vpop.f32.mrb[7].mxu0 }
  0xfb   : > { %v616_v3 = vmul.f32 0.2, %v470_v61  ;;  %vm600_vm14 = vcmp.ge.f32.partialorder %v534_v62, 0.0  ;;  %v632_v4 = vmul.f32 0.2, %v534_v62  ;;  %v650_v5 = vsel %vm586_vm11, %v478_v57, %v618_v1  ;;  %v536_v10 = vpop.f32.mrb[7].mxu1 }
  0xfc   : > { %v666_v6 = vsel %vm602_vm12, %v542_v58, %v634_v2  ;;  %v545_v8 = vadd.f32 %v901_v0, %v1087_v22  ;;  %683 = vst.msk [vmem:[%s1097_s8 + $0x30] sm:$0xff] %vm676_vm2, %v650_v5  ;;  %v473_v13 = vadd.f32 %v1087_v22, %v472_v9  ;;  %v537_v14 = vadd.f32 %v1087_v22, %v536_v10 }
  0xfd   : > { %699 = vst.msk [vmem:[%s1097_s8 + $0xb0] sm:$0xff] %vm676_vm2, %v666_v6  ;;  %v648_v11 = vsel %vm584_vm13, %v470_v61, %v616_v3  ;;  %v664_v12 = vsel %vm600_vm14, %v534_v62, %v632_v4  ;;  %vm587_vm15 = vcmp.ge.f32.partialorder %v481_v7, 0.0  ;;  %v619_v15 = vmul.f32 0.2, %v481_v7 }
  0xfe   : > { %681 = vst.msk [vmem:[%s1097_s8 + $0x20] sm:$0xff] %vm676_vm2, %v648_v11  ;;  %697 = vst.msk [vmem:[%s1097_s8 + $0xa0] sm:$0xff] %vm676_vm2, %v664_v12  ;;  %vm603_vm0 = vcmp.ge.f32.partialorder %v545_v8, 0.0  ;;  %v635_v16 = vmul.f32 0.2, %v545_v8  ;;  %vm585_vm1 = vcmp.ge.f32.partialorder %v473_v13, 0.0 }
  0xff   : > { %v617_v17 = vmul.f32 0.2, %v473_v13  ;;  %vm601_vm3 = vcmp.ge.f32.partialorder %v537_v14, 0.0  ;;  %v633_v18 = vmul.f32 0.2, %v537_v14  ;;  %v651_v19 = vsel %vm587_vm15, %v481_v7, %v619_v15  ;;  %v888_v21 = vpop.f32.mrb[8].mxu0 }
 0x100   : > { %v667_v20 = vsel %vm603_vm0, %v545_v8, %v635_v16  ;;  %v904_v23 = vpop.f32.mrb[8].mxu1  ;;  %684 = vst.msk [vmem:[%s1097_s8 + $0x38] sm:$0xff] %vm676_vm2, %v651_v19  ;;  %v494_v26 = vadd.f32 %v888_v21, %v1087_v22  ;;  %v485_v28 = vpop.f32.mrb[9].mxu0 }
 0x101   : > { %700 = vst.msk [vmem:[%s1097_s8 + $0xb8] sm:$0xff] %vm676_vm2, %v667_v20  ;;  %v649_v24 = vsel %vm585_vm1, %v473_v13, %v617_v17  ;;  %v665_v25 = vsel %vm601_vm3, %v537_v14, %v633_v18  ;;  %v558_v27 = vadd.f32 %v904_v23, %v1087_v22  ;;  %v549_v29 = vpop.f32.mrb[9].mxu1  ;;  %v486_v30 = vadd.f32 %v1087_v22, %v485_v28  ;;  %v889_v32 = vpop.f32.mrb[10].mxu0 }
 0x102   : > { %682 = vst.msk [vmem:[%s1097_s8 + $0x28] sm:$0xff] %vm676_vm2, %v649_v24  ;;  %698 = vst.msk [vmem:[%s1097_s8 + $0xa8] sm:$0xff] %vm676_vm2, %v665_v25  ;;  %v550_v31 = vadd.f32 %v1087_v22, %v549_v29  ;;  %v905_v33 = vpop.f32.mrb[10].mxu1  ;;  %vm590_vm4 = vcmp.ge.f32.partialorder %v494_v26, 0.0  ;;  %v622_v34 = vmul.f32 0.2, %v494_v26  ;;  %v497_v40 = vadd.f32 %v889_v32, %v1087_v22 }
 0x103   : > { %vm606_vm5 = vcmp.ge.f32.partialorder %v558_v27, 0.0  ;;  %v638_v35 = vmul.f32 0.2, %v558_v27  ;;  %vm588_vm6 = vcmp.ge.f32.partialorder %v486_v30, 0.0  ;;  %v620_v36 = vmul.f32 0.2, %v486_v30 }
 0x104   : > { %vm604_vm7 = vcmp.ge.f32.partialorder %v550_v31, 0.0  ;;  %v636_v37 = vmul.f32 0.2, %v550_v31  ;;  %v654_v38 = vsel %vm590_vm4, %v494_v26, %v622_v34  ;;  %v561_v41 = vadd.f32 %v905_v33, %v1087_v22  ;;  %v488_v42 = vpop.f32.mrb[11].mxu0  ;;  %v552_v43 = vpop.f32.mrb[11].mxu1 }
 0x105   : > { %v670_v39 = vsel %vm606_vm5, %v558_v27, %v638_v35  ;;  %687 = vst.msk [vmem:[%s1097_s8 + $0x50] sm:$0xff] %vm676_vm2, %v654_v38  ;;  %v652_v44 = vsel %vm588_vm6, %v486_v30, %v620_v36  ;;  %v489_v46 = vadd.f32 %v1087_v22, %v488_v42  ;;  %v553_v47 = vadd.f32 %v1087_v22, %v552_v43 }
 0x106   : > { %703 = vst.msk [vmem:[%s1097_s8 + $0xd0] sm:$0xff] %vm676_vm2, %v670_v39  ;;  %v668_v45 = vsel %vm604_vm7, %v550_v31, %v636_v37  ;;  %v892_v48 = vpop.f32.mrb[12].mxu0  ;;  %v908_v49 = vpop.f32.mrb[12].mxu1  ;;  %685 = vst.msk [vmem:[%s1097_s8 + $0x40] sm:$0xff] %vm676_vm2, %v652_v44  ;;  %vm591_vm8 = vcmp.ge.f32.partialorder %v497_v40, 0.0  ;;  %vm607_vm9 = vcmp.ge.f32.partialorder %v561_v41, 0.0 }
 0x107   : > { %701 = vst.msk [vmem:[%s1097_s8 + $0xc0] sm:$0xff] %vm676_vm2, %v668_v45  ;;  %v623_v50 = vmul.f32 0.2, %v497_v40  ;;  %v639_v51 = vmul.f32 0.2, %v561_v41  ;;  %vm589_vm10 = vcmp.ge.f32.partialorder %v489_v46, 0.0  ;;  %v510_v56 = vadd.f32 %v892_v48, %v1087_v22 }
 0x108   : > { %v621_v52 = vmul.f32 0.2, %v489_v46  ;;  %vm605_vm11 = vcmp.ge.f32.partialorder %v553_v47, 0.0  ;;  %v637_v53 = vmul.f32 0.2, %v553_v47  ;;  %v574_v57 = vadd.f32 %v908_v49, %v1087_v22  ;;  %v501_v58 = vpop.f32.mrb[13].mxu0 }
 0x109   : > { %v655_v54 = vsel %vm591_vm8, %v497_v40, %v623_v50  ;;  %v671_v55 = vsel %vm607_vm9, %v561_v41, %v639_v51  ;;  %v565_v59 = vpop.f32.mrb[13].mxu1  ;;  %v502_v62 = vadd.f32 %v1087_v22, %v501_v58  ;;  %v893_v0 = vpop.f32.mrb[14].mxu0  ;;  %vm594_vm12 = vcmp.ge.f32.partialorder %v510_v56, 0.0 }
 0x10a   : > { %688 = vst.msk [vmem:[%s1097_s8 + $0x58] sm:$0xff] %vm676_vm2, %v655_v54  ;;  %704 = vst.msk [vmem:[%s1097_s8 + $0xd8] sm:$0xff] %vm676_vm2, %v671_v55  ;;  %v653_v60 = vsel %vm589_vm10, %v489_v46, %v621_v52  ;;  %v669_v61 = vsel %vm605_vm11, %v553_v47, %v637_v53  ;;  %v566_v63 = vadd.f32 %v1087_v22, %v565_v59  ;;  %v909_v1 = vpop.f32.mrb[14].mxu1  ;;  %v626_v2 = vmul.f32 0.2, %v510_v56  ;;  %v504_v10 = vpop.f32.mrb[15].mxu0 }
 0x10b   : > { %686 = vst.msk [vmem:[%s1097_s8 + $0x48] sm:$0xff] %vm676_vm2, %v653_v60  ;;  %702 = vst.msk [vmem:[%s1097_s8 + $0xc8] sm:$0xff] %vm676_vm2, %v669_v61  ;;  %vm610_vm13 = vcmp.ge.f32.partialorder %v574_v57, 0.0  ;;  %v642_v3 = vmul.f32 0.2, %v574_v57  ;;  %vm592_vm14 = vcmp.ge.f32.partialorder %v502_v62, 0.0  ;;  %v513_v8 = vadd.f32 %v893_v0, %v1087_v22 }
 0x10c   : > { %v624_v4 = vmul.f32 0.2, %v502_v62  ;;  %vm608_vm15 = vcmp.ge.f32.partialorder %v566_v63, 0.0  ;;  %v640_v5 = vmul.f32 0.2, %v566_v63  ;;  %v658_v6 = vsel %vm594_vm12, %v510_v56, %v626_v2  ;;  %v568_v11 = vpop.f32.mrb[15].mxu1 }
 0x10d   : > { %v674_v7 = vsel %vm610_vm13, %v574_v57, %v642_v3  ;;  %v577_v9 = vadd.f32 %v909_v1, %v1087_v22  ;;  %691 = vst.msk [vmem:[%s1097_s8 + $0x70] sm:$0xff] %vm676_vm2, %v658_v6  ;;  %v505_v14 = vadd.f32 %v1087_v22, %v504_v10  ;;  %v569_v15 = vadd.f32 %v1087_v22, %v568_v11 }
 0x10e   : > { %707 = vst.msk [vmem:[%s1097_s8 + $0xf0] sm:$0xff] %vm676_vm2, %v674_v7  ;;  %v656_v12 = vsel %vm592_vm14, %v502_v62, %v624_v4  ;;  %v672_v13 = vsel %vm608_vm15, %v566_v63, %v640_v5  ;;  %vm595_vm0 = vcmp.ge.f32.partialorder %v513_v8, 0.0  ;;  %v627_v16 = vmul.f32 0.2, %v513_v8 }
 0x10f   : > { %689 = vst.msk [vmem:[%s1097_s8 + $0x60] sm:$0xff] %vm676_vm2, %v656_v12  ;;  %705 = vst.msk [vmem:[%s1097_s8 + $0xe0] sm:$0xff] %vm676_vm2, %v672_v13  ;;  %vm611_vm1 = vcmp.ge.f32.partialorder %v577_v9, 0.0  ;;  %v643_v17 = vmul.f32 0.2, %v577_v9  ;;  %vm593_vm3 = vcmp.ge.f32.partialorder %v505_v14, 0.0 }
 0x110   : > { %v625_v18 = vmul.f32 0.2, %v505_v14  ;;  %vm609_vm4 = vcmp.ge.f32.partialorder %v569_v15, 0.0  ;;  %v641_v19 = vmul.f32 0.2, %v569_v15  ;;  %v659_v20 = vsel %vm595_vm0, %v513_v8, %v627_v16 }
 0x111   : > { %v675_v21 = vsel %vm611_vm1, %v577_v9, %v643_v17  ;;  %692 = vst.msk [vmem:[%s1097_s8 + $0x78] sm:$0xff] %vm676_vm2, %v659_v20 }
 0x112   : > { %708 = vst.msk [vmem:[%s1097_s8 + $0xf8] sm:$0xff] %vm676_vm2, %v675_v21  ;;  %v657_v22 = vsel %vm593_vm3, %v505_v14, %v625_v18  ;;  %v673_v23 = vsel %vm609_vm4, %v569_v15, %v641_v19 }
 0x113   : > { %690 = vst.msk [vmem:[%s1097_s8 + $0x68] sm:$0xff] %vm676_vm2, %v657_v22  ;;  %706 = vst.msk [vmem:[%s1097_s8 + $0xe8] sm:$0xff] %vm676_vm2, %v673_v23 }
 0x114 PF: > { %s13_s14 = sadd.s32 1, %s989_s14   ;;  %s1204_s12 = smov %s985_s13 }
 0x115   : > { %p10_p5 = scmp.ge.s32.totalorder %s13_s14, 4   ;;  %s1205_s13 = smov %s1207_s15 }
 0x117   :  { %12 = sbr.rel (!%p10_p5) target bundleno = 2 (0x2), region = 62 }

// kernel: generator_forward.37
= control target key start
LH: loop header
LB: loop body
LE: loop exit
PB: predicated region body
PF: predicated region fallthrough
CT: control target
= control target key end

     0   :  { %s295_s6 = smov 0   ;;  %s324_s0 = inlined_call_operand.vmem [shape: f32[2,8,2,8,16], index: 0, kind: input, shape index: {}]   ;;  %s325_s1 = inlined_call_operand.vmem [shape: f32[2,8,8,8], index: 1, kind: output, shape index: {}]  }
   0x1 LB: > { %s246_s7 = sadd.s32 4294967295, %s282_s6   ;;  %p250_p0 = scmp.ge.s32.totalorder %s282_s6, 1  ;;  %s282_s6 = sphi %s295_s6, %s11_s6  }
   0x2   : > { %p87_p1 = scmp.lt.s32.totalorder %s282_s6, 3 }
   0x4   : > { %p88_p2 = pnand %p250_p0, %p87_p1 }
   0x5   : > { %p107_p3 = scmp.lt.s32.totalorder (!%p88_p2), %s246_s7, 1  ;;  %s284_s12 = smov (!%p88_p2), 120   ;;  %vm182_vm0 = vcmask (!%p88_p2), 64512  }
   0x6   : > { %91 = sbr.rel (%p88_p2) target bundleno = 150 (0x96), region = 24 }
   0xd   : > { %s327_s7 = smov (!%p107_p3, %s246_s7), 1 }
   0xe   : > { %s265_s8 = sshll.u32 %s327_s7, 7  ;;  %s266_s13 = sshll.u32 %s327_s7, 6 }
   0xf   : > { %s111_s11 = scalar_lea.vmem %s324_s0, %s265_s8  ;;  %s116_s16 = scalar_lea.vmem %s325_s1, %s266_s13 }
  0x10   : > { %v119_v0 = vld [vmem:[%s111_s11 + $0x20] sm:$0xff]  ;;  %v257_v1 = vld [vmem:[%s111_s11 + $0x28] sm:$0xff]  ;;  %v120_v5 = vld [vmem:[%s111_s11 + $0x30] sm:$0xff] }
  0x11   : > { %v117_v2 = vld [vmem:[%s111_s11] sm:$0xff]  ;;  %v136_v3 = vmax.f32 %v119_v0, %v257_v1  ;;  %v255_v4 = vld [vmem:[%s111_s11 + $0x8] sm:$0xff]  ;;  %v258_v6 = vld [vmem:[%s111_s11 + $0x38] sm:$0xff] }
  0x12   : > { %v134_v7 = vmax.f32 %v117_v2, %v255_v4  ;;  %v118_v8 = vld [vmem:[%s111_s11 + $0x10] sm:$0xff]  ;;  %v256_v9 = vld [vmem:[%s111_s11 + $0x18] sm:$0xff]  ;;  %v137_v10 = vmax.f32 %v120_v5, %v258_v6  ;;  %v121_v14 = vld [vmem:[%s111_s11 + $0x40] sm:$0xff] }
  0x13   : > { %154 = vrot.lane.b32.xlu1 %v136_v3, %s284_s12  ;;  %v135_v11 = vmax.f32 %v118_v8, %v256_v9  ;;  %v122_v12 = vld [vmem:[%s111_s11 + $0x50] sm:$0xff]  ;;  %v260_v13 = vld [vmem:[%s111_s11 + $0x58] sm:$0xff]  ;;  %v259_v15 = vld [vmem:[%s111_s11 + $0x48] sm:$0xff] }
  0x14   : > { %150 = vrot.lane.b32.xlu0 %v134_v7, %s284_s12  ;;  %v139_v16 = vmax.f32 %v122_v12, %v260_v13  ;;  %v138_v17 = vmax.f32 %v121_v14, %v259_v15  ;;  %v124_v18 = vld [vmem:[%s111_s11 + $0x70] sm:$0xff]  ;;  %v262_v19 = vld [vmem:[%s111_s11 + $0x78] sm:$0xff]  ;;  %v123_v20 = vld [vmem:[%s111_s11 + $0x60] sm:$0xff] }
  0x15   : > { %v261_v21 = vld [vmem:[%s111_s11 + $0x68] sm:$0xff]  ;;  %v141_v22 = vmax.f32 %v124_v18, %v262_v19 }
  0x16   : > { %v140_v23 = vmax.f32 %v123_v20, %v261_v21 }
  0x17   : > { %156 = vrot.lane.b32.xlu1 %v137_v10, %s284_s12 }
  0x18   : > { %152 = vrot.lane.b32.xlu0 %v135_v11, %s284_s12 }
  0x1b   : > { %160 = vrot.lane.b32.xlu1 %v139_v16, %s284_s12 }
  0x1c   : > { %158 = vrot.lane.b32.xlu0 %v138_v17, %s284_s12 }
  0x1f   : > { %164 = vrot.lane.b32.xlu1 %v141_v22, %s284_s12 }
  0x20   : > { %162 = vrot.lane.b32.xlu0 %v140_v23, %s284_s12 }
  0x85   : > { %v155_v24 = vpop.permute.xlu1 %154 }
  0x86   : > { %v176_v25 = vmax.f32 %v136_v3, %v155_v24  ;;  %v151_v26 = vpop.permute.xlu0 %150 }
  0x87   : > { %v174_v27 = vmax.f32 %v134_v7, %v151_v26 }
  0x88   : > { %185 = vst.msk [vmem:[%s116_s16 + $0x10] sm:$0xff] %vm182_vm0, %v176_v25 }
  0x89   : > { %183 = vst.msk [vmem:[%s116_s16] sm:$0xff] %vm182_vm0, %v174_v27  ;;  %v157_v28 = vpop.permute.xlu1 %156 }
  0x8a   : > { %v177_v29 = vmax.f32 %v137_v10, %v157_v28  ;;  %v153_v30 = vpop.permute.xlu0 %152 }
  0x8b   : > { %v175_v31 = vmax.f32 %v135_v11, %v153_v30 }
  0x8c   : > { %186 = vst.msk [vmem:[%s116_s16 + $0x18] sm:$0xff] %vm182_vm0, %v177_v29 }
  0x8d   : > { %184 = vst.msk [vmem:[%s116_s16 + $0x8] sm:$0xff] %vm182_vm0, %v175_v31  ;;  %v161_v32 = vpop.permute.xlu1 %160 }
  0x8e   : > { %v179_v33 = vmax.f32 %v139_v16, %v161_v32  ;;  %v159_v34 = vpop.permute.xlu0 %158 }
  0x8f   : > { %v178_v35 = vmax.f32 %v138_v17, %v159_v34 }
  0x90   : > { %188 = vst.msk [vmem:[%s116_s16 + $0x28] sm:$0xff] %vm182_vm0, %v179_v33 }
  0x91   : > { %187 = vst.msk [vmem:[%s116_s16 + $0x20] sm:$0xff] %vm182_vm0, %v178_v35  ;;  %v165_v36 = vpop.permute.xlu1 %164 }
  0x92   : > { %v181_v37 = vmax.f32 %v141_v22, %v165_v36  ;;  %v163_v38 = vpop.permute.xlu0 %162 }
  0x93   : > { %v180_v39 = vmax.f32 %v140_v23, %v163_v38 }
  0x94   : > { %190 = vst.msk [vmem:[%s116_s16 + $0x38] sm:$0xff] %vm182_vm0, %v181_v37 }
  0x95   : > { %189 = vst.msk [vmem:[%s116_s16 + $0x30] sm:$0xff] %vm182_vm0, %v180_v39 }
  0x96 PF: > { %s11_s6 = sadd.s32 1, %s282_s6  }
  0x97   : > { %p8_p4 = scmp.ge.s32.totalorder %s11_s6, 4  }
  0x99   :  { %10 = sbr.rel (!%p8_p4) target bundleno = 1 (0x1), region = 55 }

// kernel: generator_forward.38
= control target key start
LH: loop header
LB: loop body
LE: loop exit
PB: predicated region body
PF: predicated region fallthrough
CT: control target
= control target key end

     0   :  { %s627_s12 = smov 0   ;;  %s629_s13 = smov 0   ;;  %s704_s0 = inlined_call_operand.vmem [shape: bf16[2,64,72], index: 0, kind: input, shape index: {}]   ;;  %s705_s1 = inlined_call_operand.vmem [shape: bf16[72,8], index: 1, kind: input, shape index: {}]   ;;  %s706_s2 = inlined_call_operand.vmem [shape: f32[1,8], index: 2, kind: input, shape index: {}]   ;;  %s707_s3 = inlined_call_operand.vmem [shape: f32[2,64,8], index: 3, kind: output, shape index: {}]  }
   0x1   :  { %s631_s14 = smov 0  }
   0x2 LB: > { %s25_s15 = sadd.s32 1, %s601_s13  ;;  %p488_p0 = scmp.ge.s32.totalorder %s605_s14, 1  ;;  %s605_s14 = sphi %s631_s14, %s13_s14   ;;  %s601_s13 = sphi %s629_s13, %s709_s13   ;;  %s597_s12 = sphi %s627_s12, %s708_s12  }
   0x3   : > { %p27_p1 = scmp.ge.s32.totalorder %s25_s15, 2  ;;  %p158_p2 = scmp.lt.s32.totalorder %s605_s14, 3 }
   0x5   : > { %s711_s15 = smov (%p27_p1, %s25_s15), 0  ;;  %p159_p3 = pnand %p488_p0, %p158_p2 }
   0x6   : > { %v574_v0 = vld [vmem:[%s705_s1] sm:$0xff] (!%p159_p3)   ;;  %v575_v1 = vld [vmem:[%s705_s1 + $0x8] sm:$0xff] (!%p159_p3)   ;;  %p191_p4 = scmp.lt.s32.totalorder (!%p159_p3), %s597_s12, 1  ;;  %v576_v2 = vld [vmem:[%s705_s1 + $0x10] sm:$0xff] (!%p159_p3)   ;;  %vm282_vm0 = vcmask (!%p159_p3), 588800   ;;  %vm295_vm1 = vcmask (!%p159_p3), 1043456  }
   0x7   : > { %162 = sbr.rel (%p159_p3) target bundleno = 251 (0xfb), region = 32  ;;  %520 = vmatprep.subr.bf16.mxu0 (!%p159_p3), %v574_v0  ;;  %538 = vmatprep.subr.bf16.mxu1 (!%p159_p3), %v574_v0  ;;  %v577_v3 = vld [vmem:[%s705_s1 + $0x18] sm:$0xff] (!%p159_p3)   ;;  %v578_v6 = vld [vmem:[%s705_s1 + $0x20] ss:$0 sps:$4 sm:$0xff] (!%p159_p3)   ;;  %vm388_vm2 = vcmask (!%p159_p3), 64512  }
   0x8   : > { %521 = vmatpush3.bf16.msra.mxu0 (!%p159_p3), %v574_v0  ;;  %543 = vmatpush3.bf16.msra.mxu1 (!%p159_p3), %v574_v0  ;;  %v297_v7 = vsel (!%p159_p3), %vm295_vm1, %v578_v6, 0  ;;  %v493_v10 = vld [vmem:[%s706_s2] ss:$0 sm:$0xff] (!%p159_p3) }
   0x9   : > { %522 = vmatprep.subr.bf16.mxu0 (!%p159_p3), %v575_v1  ;;  %539 = vmatprep.subr.bf16.mxu1 (!%p159_p3), %v575_v1 }
   0xc   : > { %523 = vmatpush3.bf16.msra.mxu0 (!%p159_p3), %v575_v1  ;;  %544 = vmatpush3.bf16.msra.mxu1 (!%p159_p3), %v575_v1 }
   0xd   : > { %524 = vmatprep.subr.bf16.mxu0 (!%p159_p3), %v576_v2  ;;  %540 = vmatprep.subr.bf16.mxu1 (!%p159_p3), %v576_v2 }
   0xe   : > { %s713_s12 = smov (!%p191_p4, %s597_s12), 1 }
   0xf   : > { %s509_s22 = sshll.u32 %s713_s12, 5  ;;  %s510_s5 = sshll.u32 %s713_s12, 6 }
  0x10   : > { %s198_s27 = scalar_lea.vmem %s704_s0, %s509_s22  ;;  %525 = vmatpush3.bf16.msra.mxu0 %v576_v2  ;;  %545 = vmatpush3.bf16.msra.mxu1 %v576_v2  ;;  %s677_s8 = scalar_lea.vmem %s707_s3, %s510_s5 }
  0x11   : > { %v579_v4 = vld [vmem:[%s198_s27] sm:$0xff]   ;;  %v580_v5 = vld [vmem:[%s198_s27 + $0x10] sm:$0xff]   ;;  %526 = vmatprep.subr.bf16.mxu0 %v577_v3  ;;  %541 = vmatprep.subr.bf16.mxu1 %v577_v3  ;;  %v581_v8 = vld [vmem:[%s198_s27 + $0x8] sm:$0xff]  }
  0x12   : > { %530 = vmatprep.mubr.msk.bf16.mxu0 %vm282_vm0, %v579_v4  ;;  %534 = vmatprep.mubr.msk.bf16.mxu1 %vm282_vm0, %v580_v5  ;;  %v582_v9 = vld [vmem:[%s198_s27 + $0x18] sm:$0xff]  }
  0x14   : > { %527 = vmatpush3.bf16.msra.mxu0 %v577_v3  ;;  %546 = vmatpush3.bf16.msra.mxu1 %v577_v3 }
  0x15   : > { %548 = vmatprep.subr.msk.bf16.mxu0 %vm295_vm1, %v578_v6  ;;  %549 = vmatprep.subr.msk.bf16.mxu1 %vm295_vm1, %v578_v6 }
  0x18   : > { %529 = vmatpush3.bf16.msra.mxu0 %v297_v7  ;;  %547 = vmatpush3.bf16.msra.mxu1 %v297_v7 }
  0x1b   : > { %531 = vmatmul.mubr.msk.bf16.vlgmr.msra.gmra.mrb[0].mxu0 %vm282_vm0, %v581_v8  ;;  %535 = vmatmul.mubr.msk.bf16.vlgmr.msra.gmra.mrb[0].mxu1 %vm282_vm0, %v582_v9 }
  0xee   : > { %v532_v11 = vpop.f32.mrb[0].mxu0  ;;  %v536_v12 = vpop.f32.mrb[0].mxu1 }
  0xef   : > { %v342_v13 = vadd.f32 %v532_v11, %v493_v10  ;;  %v358_v14 = vadd.f32 %v536_v12, %v493_v10  ;;  %v333_v15 = vpop.f32.mrb[1].mxu0  ;;  %v349_v16 = vpop.f32.mrb[1].mxu1 }
  0xf0   : > { %v334_v17 = vadd.f32 %v493_v10, %v333_v15  ;;  %v350_v18 = vadd.f32 %v493_v10, %v349_v16  ;;  %v533_v19 = vpop.f32.mrb[2].mxu0  ;;  %v537_v20 = vpop.f32.mrb[2].mxu1 }
  0xf1   : > { %vm366_vm3 = vcmp.ge.f32.partialorder %v342_v13, 0.0  ;;  %v374_v21 = vmul.f32 0.2, %v342_v13  ;;  %vm370_vm4 = vcmp.ge.f32.partialorder %v358_v14, 0.0  ;;  %v378_v22 = vmul.f32 0.2, %v358_v14 }
  0xf2   : > { %vm364_vm5 = vcmp.ge.f32.partialorder %v334_v17, 0.0  ;;  %v372_v23 = vmul.f32 0.2, %v334_v17  ;;  %vm368_vm6 = vcmp.ge.f32.partialorder %v350_v18, 0.0  ;;  %v376_v24 = vmul.f32 0.2, %v350_v18 }
  0xf3   : > { %v382_v25 = vsel %vm366_vm3, %v342_v13, %v374_v21  ;;  %v386_v26 = vsel %vm370_vm4, %v358_v14, %v378_v22  ;;  %v345_v27 = vadd.f32 %v533_v19, %v493_v10  ;;  %v361_v28 = vadd.f32 %v537_v20, %v493_v10  ;;  %v336_v29 = vpop.f32.mrb[3].mxu0  ;;  %v352_v30 = vpop.f32.mrb[3].mxu1 }
  0xf4   : > { %391 = vst.msk [vmem:[%s677_s8 + $0x10] sm:$0xff] %vm388_vm2, %v382_v25  ;;  %395 = vst.msk [vmem:[%s677_s8 + $0x30] sm:$0xff] %vm388_vm2, %v386_v26  ;;  %v380_v31 = vsel %vm364_vm5, %v334_v17, %v372_v23  ;;  %v384_v32 = vsel %vm368_vm6, %v350_v18, %v376_v24  ;;  %v337_v33 = vadd.f32 %v493_v10, %v336_v29 }
  0xf5   : > { %v353_v34 = vadd.f32 %v493_v10, %v352_v30  ;;  %389 = vst.msk [vmem:[%s677_s8] sm:$0xff] %vm388_vm2, %v380_v31  ;;  %393 = vst.msk [vmem:[%s677_s8 + $0x20] sm:$0xff] %vm388_vm2, %v384_v32  ;;  %vm367_vm7 = vcmp.ge.f32.partialorder %v345_v27, 0.0  ;;  %v375_v35 = vmul.f32 0.2, %v345_v27  ;;  %vm371_vm8 = vcmp.ge.f32.partialorder %v361_v28, 0.0 }
  0xf6   : > { %v379_v36 = vmul.f32 0.2, %v361_v28  ;;  %vm365_vm9 = vcmp.ge.f32.partialorder %v337_v33, 0.0  ;;  %v373_v37 = vmul.f32 0.2, %v337_v33 }
  0xf7   : > { %vm369_vm10 = vcmp.ge.f32.partialorder %v353_v34, 0.0  ;;  %v377_v38 = vmul.f32 0.2, %v353_v34  ;;  %v383_v39 = vsel %vm367_vm7, %v345_v27, %v375_v35 }
  0xf8   : > { %v387_v40 = vsel %vm371_vm8, %v361_v28, %v379_v36  ;;  %392 = vst.msk [vmem:[%s677_s8 + $0x18] sm:$0xff] %vm388_vm2, %v383_v39  ;;  %v381_v41 = vsel %vm365_vm9, %v337_v33, %v373_v37 }
  0xf9   : > { %396 = vst.msk [vmem:[%s677_s8 + $0x38] sm:$0xff] %vm388_vm2, %v387_v40  ;;  %v385_v42 = vsel %vm369_vm10, %v353_v34, %v377_v38  ;;  %390 = vst.msk [vmem:[%s677_s8 + $0x8] sm:$0xff] %vm388_vm2, %v381_v41 }
  0xfa   : > { %394 = vst.msk [vmem:[%s677_s8 + $0x28] sm:$0xff] %vm388_vm2, %v385_v42 }
  0xfb PF: > { %s13_s14 = sadd.s32 1, %s605_s14   ;;  %s708_s12 = smov %s601_s13 }
  0xfc   : > { %p10_p5 = scmp.ge.s32.totalorder %s13_s14, 4   ;;  %s709_s13 = smov %s711_s15 }
  0xfe   :  { %12 = sbr.rel (!%p10_p5) target bundleno = 2 (0x2), region = 62 }

// kernel: generator_forward.39
= control target key start
LH: loop header
LB: loop body
LE: loop exit
PB: predicated region body
PF: predicated region fallthrough
CT: control target
= control target key end

     0   :  { %s627_s12 = smov 0   ;;  %s629_s13 = smov 0   ;;  %s704_s0 = inlined_call_operand.vmem [shape: bf16[2,64,72], index: 0, kind: input, shape index: {}]   ;;  %s705_s1 = inlined_call_operand.vmem [shape: bf16[72,16], index: 1, kind: input, shape index: {}]   ;;  %s706_s2 = inlined_call_operand.vmem [shape: f32[1,16], index: 2, kind: input, shape index: {}]   ;;  %s707_s3 = inlined_call_operand.vmem [shape: f32[2,64,16], index: 3, kind: output, shape index: {}]  }
   0x1   :  { %s631_s14 = smov 0  }
   0x2 LB: > { %s25_s15 = sadd.s32 1, %s601_s13  ;;  %p488_p0 = scmp.ge.s32.totalorder %s605_s14, 1  ;;  %s605_s14 = sphi %s631_s14, %s13_s14   ;;  %s601_s13 = sphi %s629_s13, %s709_s13   ;;  %s597_s12 = sphi %s627_s12, %s708_s12  }
   0x3   : > { %p27_p1 = scmp.ge.s32.totalorder %s25_s15, 2  ;;  %p158_p2 = scmp.lt.s32.totalorder %s605_s14, 3 }
   0x5   : > { %s711_s15 = smov (%p27_p1, %s25_s15), 0  ;;  %p159_p3 = pnand %p488_p0, %p158_p2 }
   0x6   : > { %v574_v0 = vld [vmem:[%s705_s1] sm:$0xff] (!%p159_p3)   ;;  %v575_v1 = vld [vmem:[%s705_s1 + $0x8] sm:$0xff] (!%p159_p3)   ;;  %p191_p4 = scmp.lt.s32.totalorder (!%p159_p3), %s597_s12, 1  ;;  %v576_v2 = vld [vmem:[%s705_s1 + $0x10] sm:$0xff] (!%p159_p3)   ;;  %vm282_vm0 = vcmask (!%p159_p3), 588800   ;;  %vm295_vm1 = vcmask (!%p159_p3), 1043456  }
   0x7   : > { %162 = sbr.rel (%p159_p3) target bundleno = 251 (0xfb), region = 32  ;;  %520 = vmatprep.subr.bf16.mxu0 (!%p159_p3), %v574_v0  ;;  %538 = vmatprep.subr.bf16.mxu1 (!%p159_p3), %v574_v0  ;;  %v577_v3 = vld [vmem:[%s705_s1 + $0x18] sm:$0xff] (!%p159_p3)   ;;  %v578_v6 = vld [vmem:[%s705_s1 + $0x20] ss:$0 sps:$4 sm:$0xff] (!%p159_p3)   ;;  %vm388_vm2 = vcmask (!%p159_p3), 130048  }
   0x8   : > { %521 = vmatpush3.bf16.msra.mxu0 (!%p159_p3), %v574_v0  ;;  %543 = vmatpush3.bf16.msra.mxu1 (!%p159_p3), %v574_v0  ;;  %v297_v7 = vsel (!%p159_p3), %vm295_vm1, %v578_v6, 0  ;;  %v493_v10 = vld [vmem:[%s706_s2] ss:$0 sm:$0xff] (!%p159_p3) }
   0x9   : > { %522 = vmatprep.subr.bf16.mxu0 (!%p159_p3), %v575_v1  ;;  %539 = vmatprep.subr.bf16.mxu1 (!%p159_p3), %v575_v1 }
   0xc   : > { %523 = vmatpush3.bf16.msra.mxu0 (!%p159_p3), %v575_v1  ;;  %544 = vmatpush3.bf16.msra.mxu1 (!%p159_p3), %v575_v1 }
   0xd   : > { %524 = vmatprep.subr.bf16.mxu0 (!%p159_p3), %v576_v2  ;;  %540 = vmatprep.subr.bf16.mxu1 (!%p159_p3), %v576_v2 }
   0xe   : > { %s713_s12 = smov (!%p191_p4, %s597_s12), 1 }
   0xf   : > { %s509_s22 = sshll.u32 %s713_s12, 5  ;;  %s510_s5 = sshll.u32 %s713_s12, 6 }
  0x10   : > { %s198_s27 = scalar_lea.vmem %s704_s0, %s509_s22  ;;  %525 = vmatpush3.bf16.msra.mxu0 %v576_v2  ;;  %545 = vmatpush3.bf16.msra.mxu1 %v576_v2  ;;  %s677_s8 = scalar_lea.vmem %s707_s3, %s510_s5 }
  0x11   : > { %v579_v4 = vld [vmem:[%s198_s27] sm:$0xff]   ;;  %v580_v5 = vld [vmem:[%s198_s27 + $0x10] sm:$0xff]   ;;  %526 = vmatprep.subr.bf16.mxu0 %v577_v3  ;;  %541 = vmatprep.subr.bf16.mxu1 %v577_v3  ;;  %v581_v8 = vld [vmem:[%s198_s27 + $0x8] sm:$0xff]  }
  0x12   : > { %530 = vmatprep.mubr.msk.bf16.mxu0 %vm282_vm0, %v579_v4  ;;  %534 = vmatprep.mubr.msk.bf16.mxu1 %vm282_vm0, %v580_v5  ;;  %v582_v9 = vld [vmem:[%s198_s27 + $0x18] sm:$0xff]  }
  0x14   : > { %527 = vmatpush3.bf16.msra.mxu0 %v577_v3  ;;  %546 = vmatpush3.bf16.msra.mxu1 %v577_v3 }
  0x15   : > { %548 = vmatprep.subr.msk.bf16.mxu0 %vm295_vm1, %v578_v6  ;;  %549 = vmatprep.subr.msk.bf16.mxu1 %vm295_vm1, %v578_v6 }
  0x18   : > { %529 = vmatpush3.bf16.msra.mxu0 %v297_v7  ;;  %547 = vmatpush3.bf16.msra.mxu1 %v297_v7 }
  0x1b   : > { %531 = vmatmul.mubr.msk.bf16.vlgmr.msra.gmra.mrb[0].mxu0 %vm282_vm0, %v581_v8  ;;  %535 = vmatmul.mubr.msk.bf16.vlgmr.msra.gmra.mrb[0].mxu1 %vm282_vm0, %v582_v9 }
  0xee   : > { %v532_v11 = vpop.f32.mrb[0].mxu0  ;;  %v536_v12 = vpop.f32.mrb[0].mxu1 }
  0xef   : > { %v342_v13 = vadd.f32 %v532_v11, %v493_v10  ;;  %v358_v14 = vadd.f32 %v536_v12, %v493_v10  ;;  %v333_v15 = vpop.f32.mrb[1].mxu0  ;;  %v349_v16 = vpop.f32.mrb[1].mxu1 }
  0xf0   : > { %v334_v17 = vadd.f32 %v493_v10, %v333_v15  ;;  %v350_v18 = vadd.f32 %v493_v10, %v349_v16  ;;  %v533_v19 = vpop.f32.mrb[2].mxu0  ;;  %v537_v20 = vpop.f32.mrb[2].mxu1 }
  0xf1   : > { %vm366_vm3 = vcmp.ge.f32.partialorder %v342_v13, 0.0  ;;  %v374_v21 = vmul.f32 0.2, %v342_v13  ;;  %vm370_vm4 = vcmp.ge.f32.partialorder %v358_v14, 0.0  ;;  %v378_v22 = vmul.f32 0.2, %v358_v14 }
  0xf2   : > { %vm364_vm5 = vcmp.ge.f32.partialorder %v334_v17, 0.0  ;;  %v372_v23 = vmul.f32 0.2, %v334_v17  ;;  %vm368_vm6 = vcmp.ge.f32.partialorder %v350_v18, 0.0  ;;  %v376_v24 = vmul.f32 0.2, %v350_v18 }
  0xf3   : > { %v382_v25 = vsel %vm366_vm3, %v342_v13, %v374_v21  ;;  %v386_v26 = vsel %vm370_vm4, %v358_v14, %v378_v22  ;;  %v345_v27 = vadd.f32 %v533_v19, %v493_v10  ;;  %v361_v28 = vadd.f32 %v537_v20, %v493_v10  ;;  %v336_v29 = vpop.f32.mrb[3].mxu0  ;;  %v352_v30 = vpop.f32.mrb[3].mxu1 }
  0xf4   : > { %391 = vst.msk [vmem:[%s677_s8 + $0x10] sm:$0xff] %vm388_vm2, %v382_v25  ;;  %395 = vst.msk [vmem:[%s677_s8 + $0x30] sm:$0xff] %vm388_vm2, %v386_v26  ;;  %v380_v31 = vsel %vm364_vm5, %v334_v17, %v372_v23  ;;  %v384_v32 = vsel %vm368_vm6, %v350_v18, %v376_v24  ;;  %v337_v33 = vadd.f32 %v493_v10, %v336_v29 }
  0xf5   : > { %v353_v34 = vadd.f32 %v493_v10, %v352_v30  ;;  %389 = vst.msk [vmem:[%s677_s8] sm:$0xff] %vm388_vm2, %v380_v31  ;;  %393 = vst.msk [vmem:[%s677_s8 + $0x20] sm:$0xff] %vm388_vm2, %v384_v32  ;;  %vm367_vm7 = vcmp.ge.f32.partialorder %v345_v27, 0.0  ;;  %v375_v35 = vmul.f32 0.2, %v345_v27  ;;  %vm371_vm8 = vcmp.ge.f32.partialorder %v361_v28, 0.0 }
  0xf6   : > { %v379_v36 = vmul.f32 0.2, %v361_v28  ;;  %vm365_vm9 = vcmp.ge.f32.partialorder %v337_v33, 0.0  ;;  %v373_v37 = vmul.f32 0.2, %v337_v33 }
  0xf7   : > { %vm369_vm10 = vcmp.ge.f32.partialorder %v353_v34, 0.0  ;;  %v377_v38 = vmul.f32 0.2, %v353_v34  ;;  %v383_v39 = vsel %vm367_vm7, %v345_v27, %v375_v35 }
  0xf8   : > { %v387_v40 = vsel %vm371_vm8, %v361_v28, %v379_v36  ;;  %392 = vst.msk [vmem:[%s677_s8 + $0x18] sm:$0xff] %vm388_vm2, %v383_v39  ;;  %v381_v41 = vsel %vm365_vm9, %v337_v33, %v373_v37 }
  0xf9   : > { %396 = vst.msk [vmem:[%s677_s8 + $0x38] sm:$0xff] %vm388_vm2, %v387_v40  ;;  %v385_v42 = vsel %vm369_vm10, %v353_v34, %v377_v38  ;;  %390 = vst.msk [vmem:[%s677_s8 + $0x8] sm:$0xff] %vm388_vm2, %v381_v41 }
  0xfa   : > { %394 = vst.msk [vmem:[%s677_s8 + $0x28] sm:$0xff] %vm388_vm2, %v385_v42 }
  0xfb PF: > { %s13_s14 = sadd.s32 1, %s605_s14   ;;  %s708_s12 = smov %s601_s13 }
  0xfc   : > { %p10_p5 = scmp.ge.s32.totalorder %s13_s14, 4   ;;  %s709_s13 = smov %s711_s15 }
  0xfe   :  { %12 = sbr.rel (!%p10_p5) target bundleno = 2 (0x2), region = 62 }

// kernel: generator_forward.40
= control target key start
LH: loop header
LB: loop body
LE: loop exit
PB: predicated region body
PF: predicated region fallthrough
CT: control target
= control target key end

     0   :  { %s255_s6 = smov 0   ;;  %s272_s0 = inlined_call_operand.vmem [shape: f32[2,4,2,4,32], index: 0, kind: input, shape index: {}]   ;;  %s273_s1 = inlined_call_operand.vmem [shape: f32[2,4,4,16], index: 1, kind: output, shape index: {}]  }
   0x1 LB: > { %s210_s7 = sadd.s32 4294967295, %s242_s6   ;;  %p214_p0 = scmp.ge.s32.totalorder %s242_s6, 1  ;;  %s242_s6 = sphi %s255_s6, %s11_s6  }
   0x2   : > { %p87_p1 = scmp.lt.s32.totalorder %s242_s6, 3 }
   0x4   : > { %p88_p2 = pnand %p214_p0, %p87_p1 }
   0x5   : > { %p107_p3 = scmp.lt.s32.totalorder (!%p88_p2), %s210_s7, 1  ;;  %s244_s12 = smov (!%p88_p2), 112   ;;  %vm150_vm0 = vcmask (!%p88_p2), 125952  }
   0x6   : > { %91 = sbr.rel (%p88_p2) target bundleno = 142 (0x8e), region = 24 }
   0xd   : > { %s275_s7 = smov (!%p107_p3, %s210_s7), 1 }
   0xe   : > { %s225_s8 = sshll.u32 %s275_s7, 5  ;;  %s226_s13 = sshll.u32 %s275_s7, 4 }
   0xf   : > { %s111_s11 = scalar_lea.vmem %s272_s0, %s225_s8  ;;  %s116_s16 = scalar_lea.vmem %s273_s1, %s226_s13 }
  0x10   : > { %v119_v0 = vld [vmem:[%s111_s11 + $0x10] sm:$0xf]  ;;  %v221_v1 = vld [vmem:[%s111_s11 + $0x14] sm:$0xf]  ;;  %v117_v2 = vld [vmem:[%s111_s11] sm:$0xf] }
  0x11   : > { %v128_v3 = vmax.f32 %v119_v0, %v221_v1  ;;  %v219_v4 = vld [vmem:[%s111_s11 + $0x4] sm:$0xf]  ;;  %v120_v5 = vld [vmem:[%s111_s11 + $0x18] sm:$0xf]  ;;  %v222_v6 = vld [vmem:[%s111_s11 + $0x1c] sm:$0xf] }
  0x12   : > { %v126_v7 = vmax.f32 %v117_v2, %v219_v4  ;;  %v118_v8 = vld [vmem:[%s111_s11 + $0x8] sm:$0xf]  ;;  %v220_v9 = vld [vmem:[%s111_s11 + $0xc] sm:$0xf]  ;;  %v129_v10 = vmax.f32 %v120_v5, %v222_v6 }
  0x13   : > { %138 = vrot.lane.b32.xlu1 %v128_v3, %s244_s12  ;;  %v127_v11 = vmax.f32 %v118_v8, %v220_v9 }
  0x14   : > { %134 = vrot.lane.b32.xlu0 %v126_v7, %s244_s12 }
  0x17   : > { %140 = vrot.lane.b32.xlu1 %v129_v10, %s244_s12 }
  0x18   : > { %136 = vrot.lane.b32.xlu0 %v127_v11, %s244_s12 }
  0x85   : > { %v139_v12 = vpop.permute.xlu1 %138 }
  0x86   : > { %v148_v13 = vmax.f32 %v128_v3, %v139_v12  ;;  %v135_v14 = vpop.permute.xlu0 %134 }
  0x87   : > { %v146_v15 = vmax.f32 %v126_v7, %v135_v14 }
  0x88   : > { %153 = vst.msk [vmem:[%s116_s16 + $0x8] sm:$0xf] %vm150_vm0, %v148_v13 }
  0x89   : > { %151 = vst.msk [vmem:[%s116_s16] sm:$0xf] %vm150_vm0, %v146_v15  ;;  %v141_v16 = vpop.permute.xlu1 %140 }
  0x8a   : > { %v149_v17 = vmax.f32 %v129_v10, %v141_v16  ;;  %v137_v18 = vpop.permute.xlu0 %136 }
  0x8b   : > { %v147_v19 = vmax.f32 %v127_v11, %v137_v18 }
  0x8c   : > { %154 = vst.msk [vmem:[%s116_s16 + $0xc] sm:$0xf] %vm150_vm0, %v149_v17 }
  0x8d   : > { %152 = vst.msk [vmem:[%s116_s16 + $0x4] sm:$0xf] %vm150_vm0, %v147_v19 }
  0x8e PF: > { %s11_s6 = sadd.s32 1, %s242_s6  }
  0x8f   : > { %p8_p4 = scmp.ge.s32.totalorder %s11_s6, 4  }
  0x91   :  { %10 = sbr.rel (!%p8_p4) target bundleno = 1 (0x1), region = 55 }

// kernel: generator_forward.41
= control target key start
LH: loop header
LB: loop body
LE: loop exit
PB: predicated region body
PF: predicated region fallthrough
CT: control target
= control target key end

     0   :  { %s555_s12 = smov 0   ;;  %s557_s13 = smov 0   ;;  %s628_s0 = inlined_call_operand.vmem [shape: bf16[2,16,144], index: 0, kind: input, shape index: {}]   ;;  %s629_s1 = inlined_call_operand.vmem [shape: bf16[144,16], index: 1, kind: input, shape index: {}]   ;;  %s630_s2 = inlined_call_operand.vmem [shape: f32[1,16], index: 2, kind: input, shape index: {}]   ;;  %s631_s3 = inlined_call_operand.vmem [shape: f32[2,16,16], index: 3, kind: output, shape index: {}]  }
   0x1   :  { %s559_s14 = smov 0  }
   0x2 LB: > { %s25_s15 = sadd.s32 1, %s528_s13  ;;  %p451_p0 = scmp.ge.s32.totalorder %s532_s14, 1  ;;  %s532_s14 = sphi %s559_s14, %s13_s14   ;;  %s528_s13 = sphi %s557_s13, %s633_s13   ;;  %s524_s12 = sphi %s555_s12, %s632_s12  }
   0x3   : > { %p27_p1 = scmp.ge.s32.totalorder %s25_s15, 2  ;;  %p159_p2 = scmp.lt.s32.totalorder %s532_s14, 3 }
   0x5   : > { %s635_s15 = smov (%p27_p1, %s25_s15), 0  ;;  %p160_p3 = pnand %p451_p0, %p159_p2 }
   0x6   : > { %v498_v0 = vld [vmem:[%s629_s1] sm:$0xff] (!%p160_p3)   ;;  %v534_v1 = vmov (!%p160_p3), 0   ;;  %p193_p4 = scmp.lt.s32.totalorder (!%p160_p3), %s524_s12, 1  ;;  %v499_v2 = vld [vmem:[%s629_s1 + $0x8] sm:$0xff] (!%p160_p3)   ;;  %v500_v3 = vld [vmem:[%s629_s1 + $0x10] sm:$0xff] (!%p160_p3)   ;;  %vm304_vm0 = vcmask (!%p160_p3), 130048  }
   0x7   : > { %163 = sbr.rel (%p160_p3) target bundleno = 263 (0x107), region = 32  ;;  %308 = vmatprep.subr.bf16.mxu0 (!%p160_p3), %v534_v1  ;;  %v501_v4 = vld [vmem:[%s629_s1 + $0x18] sm:$0xff] (!%p160_p3)   ;;  %v502_v6 = vld [vmem:[%s629_s1 + $0x20] sm:$0xff] (!%p160_p3)   ;;  %v503_v7 = vld [vmem:[%s629_s1 + $0x28] sm:$0xff] (!%p160_p3)  }
   0x8   : > { %309 = vmatpush1.bf16.msra.mxu0 (!%p160_p3), %v498_v0  ;;  %v504_v8 = vld [vmem:[%s629_s1 + $0x30] sm:$0xff] (!%p160_p3)   ;;  %v505_v9 = vld [vmem:[%s629_s1 + $0x38] sm:$0xff] (!%p160_p3)   ;;  %v506_v10 = vld [vmem:[%s629_s1 + $0x40] sm:$0xff] (!%p160_p3)  }
   0x9   : > { %310 = vmatprep.subr.bf16.mxu0 (!%p160_p3), %v534_v1  ;;  %v456_v12 = vld [vmem:[%s630_s2] ss:$0 sm:$0xff] (!%p160_p3) }
   0xc   : > { %311 = vmatpush1.bf16.msra.mxu0 (!%p160_p3), %v499_v2 }
   0xd   : > { %312 = vmatprep.subr.bf16.mxu0 (!%p160_p3), %v534_v1 }
   0xe   : > { %s637_s12 = smov (!%p193_p4, %s524_s12), 1 }
   0xf   : > { %s471_s20 = sshll.u32 %s637_s12, 4 }
  0x10   : > { %s201_s25 = scalar_lea.vmem %s628_s0, %s471_s20  ;;  %313 = vmatpush1.bf16.msra.mxu0 %v500_v3  ;;  %s211_s19 = scalar_lea.vmem %s631_s3, %s471_s20 }
  0x11   : > { %v509_v5 = vld [vmem:[%s201_s25 + $0x4] ss:$8 sps:$4 sm:$0xff]   ;;  %314 = vmatprep.subr.bf16.mxu0 %v534_v1  ;;  %v507_v11 = vld [vmem:[%s201_s25] ss:$8 sps:$4 sm:$0xff]  }
  0x12   : > { %468 = vmatprep.mubr.msk.bf16.mxu0 %vm304_vm0, %v509_v5 }
  0x14   : > { %315 = vmatpush1.bf16.msra.mxu0 %v501_v4 }
  0x15   : > { %316 = vmatprep.subr.bf16.mxu0 %v534_v1 }
  0x18   : > { %317 = vmatpush1.bf16.msra.mxu0 %v502_v6 }
  0x19   : > { %318 = vmatprep.subr.bf16.mxu0 %v534_v1 }
  0x1c   : > { %319 = vmatpush1.bf16.msra.mxu0 %v503_v7 }
  0x1d   : > { %320 = vmatprep.subr.bf16.mxu0 %v534_v1 }
  0x20   : > { %321 = vmatpush1.bf16.msra.mxu0 %v504_v8 }
  0x21   : > { %322 = vmatprep.subr.bf16.mxu0 %v534_v1 }
  0x24   : > { %323 = vmatpush1.bf16.msra.mxu0 %v505_v9 }
  0x25   : > { %324 = vmatprep.subr.bf16.mxu0 %v534_v1 }
  0x28   : > { %325 = vmatpush1.bf16.msra.mxu0 %v506_v10 }
  0x2b   : > { %341 = vmatmul.mubr.bf16.vlgmr.msra.gmra.mrb[0].mxu0 %v507_v11 }
  0xfe   : > { %v342_v13 = vpop.f32.mrb[0].mxu0 }
  0xff   : > { %v343_v14 = vadd.f32 %v456_v12, %v342_v13  ;;  %v344_v15 = vpop.f32.mrb[1].mxu0 }
 0x100   : > { %v345_v16 = vpop.f32.mrb[2].mxu0 }
 0x101   : > { %vm349_vm1 = vcmp.ge.f32.partialorder %v343_v14, 0.0  ;;  %v351_v17 = vmul.f32 0.2, %v343_v14  ;;  %v346_v18 = vadd.f32 %v456_v12, %v345_v16  ;;  %v347_v19 = vpop.f32.mrb[3].mxu0 }
 0x103   : > { %v353_v20 = vsel %vm349_vm1, %v343_v14, %v351_v17  ;;  %vm350_vm2 = vcmp.ge.f32.partialorder %v346_v18, 0.0  ;;  %v352_v21 = vmul.f32 0.2, %v346_v18 }
 0x104   : > { %355 = vst.msk [vmem:[%s211_s19] sm:$0xff] %vm304_vm0, %v353_v20 }
 0x105   : > { %v354_v22 = vsel %vm350_vm2, %v346_v18, %v352_v21 }
 0x106   : > { %356 = vst.msk [vmem:[%s211_s19 + $0x8] sm:$0xff] %vm304_vm0, %v354_v22 }
 0x107 PF: > { %s13_s14 = sadd.s32 1, %s532_s14   ;;  %s632_s12 = smov %s528_s13 }
 0x108   : > { %p10_p5 = scmp.ge.s32.totalorder %s13_s14, 4   ;;  %s633_s13 = smov %s635_s15 }
 0x10a   :  { %12 = sbr.rel (!%p10_p5) target bundleno = 2 (0x2), region = 62 }

// kernel: generator_forward.44
= control target key start
LH: loop header
LB: loop body
LE: loop exit
PB: predicated region body
PF: predicated region fallthrough
CT: control target
= control target key end

     0   :  { %s235_s6 = smov 0   ;;  %s252_s0 = inlined_call_operand.vmem [shape: f32[2,2,2,2,64], index: 0, kind: input, shape index: {}]   ;;  %s253_s1 = inlined_call_operand.vmem [shape: f32[2,2,2,32], index: 1, kind: output, shape index: {}]  }
   0x1 LB: > { %s192_s7 = sadd.s32 4294967295, %s222_s6   ;;  %p196_p0 = scmp.ge.s32.totalorder %s222_s6, 1  ;;  %s222_s6 = sphi %s235_s6, %s11_s6  }
   0x2   : > { %p87_p1 = scmp.lt.s32.totalorder %s222_s6, 3 }
   0x4   : > { %p88_p2 = pnand %p196_p0, %p87_p1 }
   0x5   : > { %p107_p3 = scmp.lt.s32.totalorder (!%p88_p2), %s192_s7, 1  ;;  %s224_s12 = smov (!%p88_p2), 96   ;;  %vm134_vm0 = vcmask (!%p88_p2), 254976  }
   0x6   : > { %91 = sbr.rel (%p88_p2) target bundleno = 141 (0x8d), region = 24 }
   0xd   : > { %s255_s7 = smov (!%p107_p3, %s192_s7), 1 }
   0xe   : > { %s205_s8 = sshll.u32 %s255_s7, 3  ;;  %s206_s13 = sshll.u32 %s255_s7, 2 }
   0xf   : > { %s111_s11 = scalar_lea.vmem %s252_s0, %s205_s8  ;;  %s116_s16 = scalar_lea.vmem %s253_s1, %s206_s13 }
  0x10   : > { %v117_v0 = vld [vmem:[%s111_s11] sm:$0x3]  ;;  %v201_v1 = vld [vmem:[%s111_s11 + $0x2] sm:$0x3]  ;;  %v118_v2 = vld [vmem:[%s111_s11 + $0x4] sm:$0x3] }
  0x11   : > { %v122_v3 = vmax.f32 %v117_v0, %v201_v1  ;;  %v202_v4 = vld [vmem:[%s111_s11 + $0x6] sm:$0x3] }
  0x12   : > { %v123_v5 = vmax.f32 %v118_v2, %v202_v4 }
  0x13   : > { %126 = vrot.lane.b32.xlu0 %v122_v3, %s224_s12 }
  0x17   : > { %128 = vrot.lane.b32.xlu0 %v123_v5, %s224_s12 }
  0x85   : > { %v127_v6 = vpop.permute.xlu0 %126 }
  0x86   : > { %v132_v7 = vmax.f32 %v122_v3, %v127_v6 }
  0x88   : > { %135 = vst.msk [vmem:[%s116_s16] sm:$0x3] %vm134_vm0, %v132_v7 }
  0x89   : > { %v129_v8 = vpop.permute.xlu0 %128 }
  0x8a   : > { %v133_v9 = vmax.f32 %v123_v5, %v129_v8 }
  0x8c   : > { %136 = vst.msk [vmem:[%s116_s16 + $0x2] sm:$0x3] %vm134_vm0, %v133_v9 }
  0x8d PF: > { %s11_s6 = sadd.s32 1, %s222_s6  }
  0x8e   : > { %p8_p4 = scmp.ge.s32.totalorder %s11_s6, 4  }
  0x90   :  { %10 = sbr.rel (!%p8_p4) target bundleno = 1 (0x1), region = 55 }

// kernel: generator_forward.43
= control target key start
LH: loop header
LB: loop body
LE: loop exit
PB: predicated region body
PF: predicated region fallthrough
CT: control target
= control target key end

     0   :  { %s556_s12 = smov 0   ;;  %s558_s13 = smov 0   ;;  %s626_s0 = inlined_call_operand.vmem [shape: bf16[2,16,144], index: 0, kind: input, shape index: {}]   ;;  %s627_s1 = inlined_call_operand.vmem [shape: bf16[144,32], index: 1, kind: input, shape index: {}]   ;;  %s628_s2 = inlined_call_operand.vmem [shape: f32[1,32], index: 2, kind: input, shape index: {}]   ;;  %s629_s3 = inlined_call_operand.vmem [shape: f32[2,16,32], index: 3, kind: output, shape index: {}]  }
   0x1   :  { %s560_s14 = smov 0  }
   0x2 LB: > { %s25_s15 = sadd.s32 1, %s529_s13  ;;  %p452_p0 = scmp.ge.s32.totalorder %s533_s14, 1  ;;  %s533_s14 = sphi %s560_s14, %s13_s14   ;;  %s529_s13 = sphi %s558_s13, %s631_s13   ;;  %s525_s12 = sphi %s556_s12, %s630_s12  }
   0x3   : > { %p27_p1 = scmp.ge.s32.totalorder %s25_s15, 2  ;;  %p159_p2 = scmp.lt.s32.totalorder %s533_s14, 3 }
   0x5   : > { %s633_s15 = smov (%p27_p1, %s25_s15), 0  ;;  %p160_p3 = pnand %p452_p0, %p159_p2 }
   0x6   : > { %v499_v0 = vld [vmem:[%s627_s1] sm:$0xff] (!%p160_p3)   ;;  %v535_v1 = vmov (!%p160_p3), 0   ;;  %p193_p4 = scmp.lt.s32.totalorder (!%p160_p3), %s525_s12, 1  ;;  %v500_v2 = vld [vmem:[%s627_s1 + $0x8] sm:$0xff] (!%p160_p3)   ;;  %v501_v3 = vld [vmem:[%s627_s1 + $0x10] sm:$0xff] (!%p160_p3)   ;;  %vm304_vm0 = vcmask (!%p160_p3), 130048  }
   0x7   : > { %163 = sbr.rel (%p160_p3) target bundleno = 263 (0x107), region = 32  ;;  %308 = vmatprep.subr.bf16.mxu0 (!%p160_p3), %v535_v1  ;;  %v502_v4 = vld [vmem:[%s627_s1 + $0x18] sm:$0xff] (!%p160_p3)   ;;  %v503_v6 = vld [vmem:[%s627_s1 + $0x20] sm:$0xff] (!%p160_p3)   ;;  %v504_v7 = vld [vmem:[%s627_s1 + $0x28] sm:$0xff] (!%p160_p3)   ;;  %vm355_vm2 = vcmask (!%p160_p3), 261120  }
   0x8   : > { %309 = vmatpush1.bf16.msra.mxu0 (!%p160_p3), %v499_v0  ;;  %v505_v8 = vld [vmem:[%s627_s1 + $0x30] sm:$0xff] (!%p160_p3)   ;;  %v506_v9 = vld [vmem:[%s627_s1 + $0x38] sm:$0xff] (!%p160_p3)   ;;  %v507_v10 = vld [vmem:[%s627_s1 + $0x40] sm:$0xff] (!%p160_p3)  }
   0x9   : > { %310 = vmatprep.subr.bf16.mxu0 (!%p160_p3), %v535_v1  ;;  %v457_v12 = vld [vmem:[%s628_s2] ss:$0 sm:$0xff] (!%p160_p3) }
   0xc   : > { %311 = vmatpush1.bf16.msra.mxu0 (!%p160_p3), %v500_v2 }
   0xd   : > { %312 = vmatprep.subr.bf16.mxu0 (!%p160_p3), %v535_v1 }
   0xe   : > { %s635_s12 = smov (!%p193_p4, %s525_s12), 1 }
   0xf   : > { %s472_s20 = sshll.u32 %s635_s12, 4 }
  0x10   : > { %s201_s25 = scalar_lea.vmem %s626_s0, %s472_s20  ;;  %313 = vmatpush1.bf16.msra.mxu0 %v501_v3  ;;  %s211_s19 = scalar_lea.vmem %s629_s3, %s472_s20 }
  0x11   : > { %v510_v5 = vld [vmem:[%s201_s25 + $0x4] ss:$8 sps:$4 sm:$0xff]   ;;  %314 = vmatprep.subr.bf16.mxu0 %v535_v1  ;;  %v508_v11 = vld [vmem:[%s201_s25] ss:$8 sps:$4 sm:$0xff]  }
  0x12   : > { %469 = vmatprep.mubr.msk.bf16.mxu0 %vm304_vm0, %v510_v5 }
  0x14   : > { %315 = vmatpush1.bf16.msra.mxu0 %v502_v4 }
  0x15   : > { %316 = vmatprep.subr.bf16.mxu0 %v535_v1 }
  0x18   : > { %317 = vmatpush1.bf16.msra.mxu0 %v503_v6 }
  0x19   : > { %318 = vmatprep.subr.bf16.mxu0 %v535_v1 }
  0x1c   : > { %319 = vmatpush1.bf16.msra.mxu0 %v504_v7 }
  0x1d   : > { %320 = vmatprep.subr.bf16.mxu0 %v535_v1 }
  0x20   : > { %321 = vmatpush1.bf16.msra.mxu0 %v505_v8 }
  0x21   : > { %322 = vmatprep.subr.bf16.mxu0 %v535_v1 }
  0x24   : > { %323 = vmatpush1.bf16.msra.mxu0 %v506_v9 }
  0x25   : > { %324 = vmatprep.subr.bf16.mxu0 %v535_v1 }
  0x28   : > { %325 = vmatpush1.bf16.msra.mxu0 %v507_v10 }
  0x2b   : > { %341 = vmatmul.mubr.bf16.vlgmr.msra.gmra.mrb[0].mxu0 %v508_v11 }
  0xfe   : > { %v342_v13 = vpop.f32.mrb[0].mxu0 }
  0xff   : > { %v343_v14 = vadd.f32 %v457_v12, %v342_v13  ;;  %v344_v15 = vpop.f32.mrb[1].mxu0 }
 0x100   : > { %v345_v16 = vpop.f32.mrb[2].mxu0 }
 0x101   : > { %vm349_vm1 = vcmp.ge.f32.partialorder %v343_v14, 0.0  ;;  %v351_v17 = vmul.f32 0.2, %v343_v14  ;;  %v346_v18 = vadd.f32 %v457_v12, %v345_v16  ;;  %v347_v19 = vpop.f32.mrb[3].mxu0 }
 0x103   : > { %v353_v20 = vsel %vm349_vm1, %v343_v14, %v351_v17  ;;  %vm350_vm3 = vcmp.ge.f32.partialorder %v346_v18, 0.0  ;;  %v352_v21 = vmul.f32 0.2, %v346_v18 }
 0x104   : > { %356 = vst.msk [vmem:[%s211_s19] sm:$0xff] %vm355_vm2, %v353_v20 }
 0x105   : > { %v354_v22 = vsel %vm350_vm3, %v346_v18, %v352_v21 }
 0x106   : > { %357 = vst.msk [vmem:[%s211_s19 + $0x8] sm:$0xff] %vm355_vm2, %v354_v22 }
 0x107 PF: > { %s13_s14 = sadd.s32 1, %s533_s14   ;;  %s630_s12 = smov %s529_s13 }
 0x108   : > { %p10_p5 = scmp.ge.s32.totalorder %s13_s14, 4   ;;  %s631_s13 = smov %s633_s15 }
 0x10a   :  { %12 = sbr.rel (!%p10_p5) target bundleno = 2 (0x2), region = 62 }

// kernel: generator_forward.48
= control target key start
LH: loop header
LB: loop body
LE: loop exit
PB: predicated region body
PF: predicated region fallthrough
CT: control target
= control target key end

     0   :  { %s190_s6 = smov 0   ;;  %s211_s0 = inlined_call_operand.vmem [shape: f32[2,1,2,1,128], index: 0, kind: input, shape index: {}]   ;;  %s212_s1 = inlined_call_operand.vmem [shape: f32[2,1,1,64], index: 1, kind: output, shape index: {}]  }
   0x1 LB: > { %s168_s7 = sadd.s32 4294967295, %s192_s6   ;;  %p172_p0 = scmp.ge.s32.totalorder %s192_s6, 1  ;;  %s192_s6 = sphi %s190_s6, %s11_s6  }
   0x2   : > { %p86_p1 = scmp.lt.s32.totalorder %s192_s6, 3 }
   0x4   : > { %p87_p2 = pnand %p172_p0, %p86_p1 }
   0x5   : > { %p103_p3 = scmp.lt.s32.totalorder (!%p87_p2), %s168_s7, 1  ;;  %s194_s12 = smov (!%p87_p2), 64   ;;  %vm119_vm0 = vcmask (!%p87_p2), 516096  }
   0x6   : > { %90 = sbr.rel (%p87_p2) target bundleno = 137 (0x89), region = 24 }
   0xd   : > { %s214_s7 = smov (!%p103_p3, %s168_s7), 1 }
   0xe   : > { %s173_s8 = sshll.u32 %s214_s7, 1  ;;  %s109_s15 = scalar_lea.vmem %s212_s1, %s214_s7 }
   0xf   : > { %s106_s11 = scalar_lea.vmem %s211_s0, %s173_s8 }
  0x10   : > { %v110_v0 = vld [vmem:[%s106_s11] sm:$0x1]  ;;  %v174_v1 = vld [vmem:[%s106_s11 + $0x1] sm:$0x1] }
  0x11   : > { %v113_v2 = vmax.f32 %v110_v0, %v174_v1 }
  0x13   : > { %115 = vrot.lane.b32.xlu0 %v113_v2, %s194_s12 }
  0x85   : > { %v116_v3 = vpop.permute.xlu0 %115 }
  0x86   : > { %v118_v4 = vmax.f32 %v113_v2, %v116_v3 }
  0x88   : > { %120 = vst.msk [vmem:[%s109_s15] sm:$0x1] %vm119_vm0, %v118_v4 }
  0x89 PF: > { %s11_s6 = sadd.s32 1, %s192_s6  }
  0x8a   : > { %p8_p4 = scmp.ge.s32.totalorder %s11_s6, 4  }
  0x8c   :  { %10 = sbr.rel (!%p8_p4) target bundleno = 1 (0x1), region = 55 }

// kernel: generator_forward.45
= control target key start
LH: loop header
LB: loop body
LE: loop exit
PB: predicated region body
PF: predicated region fallthrough
CT: control target
= control target key end

     0   :  { %s700_s12 = smov 0   ;;  %s702_s13 = smov 0   ;;  %s794_s0 = inlined_call_operand.vmem [shape: bf16[2,4,288], index: 0, kind: input, shape index: {}]   ;;  %s795_s1 = inlined_call_operand.vmem [shape: bf16[288,32], index: 1, kind: input, shape index: {}]   ;;  %s796_s2 = inlined_call_operand.vmem [shape: f32[1,32], index: 2, kind: input, shape index: {}]   ;;  %s797_s3 = inlined_call_operand.vmem [shape: f32[2,4,32], index: 3, kind: output, shape index: {}]  }
   0x1   :  { %s704_s14 = smov 0  }
   0x2 LB: > { %s25_s15 = sadd.s32 1, %s671_s13  ;;  %p548_p0 = scmp.ge.s32.totalorder %s675_s14, 1  ;;  %s675_s14 = sphi %s704_s14, %s13_s14   ;;  %s671_s13 = sphi %s702_s13, %s799_s13   ;;  %s667_s12 = sphi %s700_s12, %s798_s12  }
   0x3   : > { %p27_p1 = scmp.ge.s32.totalorder %s25_s15, 2  ;;  %p157_p2 = scmp.lt.s32.totalorder %s675_s14, 3 }
   0x5   : > { %s801_s15 = smov (%p27_p1, %s25_s15), 0  ;;  %p158_p3 = pnand %p548_p0, %p157_p2 }
   0x6   : > { %v634_v0 = vld [vmem:[%s795_s1 + $0x40] sm:$0xff] (!%p158_p3)   ;;  %v677_v2 = vmov (!%p158_p3), 0.0   ;;  %v636_v3 = vld [vmem:[%s795_s1 + $0x48] sm:$0xff] (!%p158_p3)   ;;  %p187_p4 = scmp.lt.s32.totalorder (!%p158_p3), %s667_s12, 1  ;;  %v638_v5 = vld [vmem:[%s795_s1 + $0x50] sm:$0xff] (!%p158_p3)   ;;  %vm678_vm0 = vmmov (!%p158_p3), 0   ;;  %v253_v11 = vlaneseq (!%p158_p3) }
   0x7   : > { %161 = sbr.rel (%p158_p3) target bundleno = 262 (0x106), region = 32  ;;  %v635_v1 = vld [vmem:[%s795_s1] sm:$0xff] (!%p158_p3)   ;;  %598 = vmatprep.subr.bf16.mxu1 (!%p158_p3), %v677_v2  ;;  %573 = vmatprep.subr.bf16.mxu0 (!%p158_p3), %v634_v0  ;;  %v637_v4 = vld [vmem:[%s795_s1 + $0x8] sm:$0xff] (!%p158_p3)   ;;  %v639_v6 = vld [vmem:[%s795_s1 + $0x10] sm:$0xff] (!%p158_p3)   ;;  %v679_v14 = vmov (!%p158_p3), 1983009808  }
   0x8   : > { %574 = vmatpush3.bf16.msra.mxu0 (!%p158_p3), %v635_v1  ;;  %602 = vmatprep.mubr.msk.bf16.mxu1 (!%p158_p3), %vm678_vm0, %v677_v2  ;;  %v640_v7 = vld [vmem:[%s795_s1 + $0x58] sm:$0xff] (!%p158_p3)   ;;  %v642_v9 = vld [vmem:[%s795_s1 + $0x60] sm:$0xff] (!%p158_p3)   ;;  %v644_v13 = vld [vmem:[%s795_s1 + $0x68] sm:$0xff] (!%p158_p3)   ;;  %v251_v15 = vunpack.c.l.s4 (!%p158_p3), %v679_v14  ;;  %v254_v16 = vshrl.u32 (!%p158_p3), %v253_v11, 7  ;;  %vm375_vm1 = vcmask (!%p158_p3), 261120   ;;  %vm462_vm3 = vcmask (!%p158_p3), 257024  }
   0x9   : > { %575 = vmatprep.subr.bf16.mxu0 (!%p158_p3), %v636_v3  ;;  %v641_v8 = vld [vmem:[%s795_s1 + $0x18] sm:$0xff] (!%p158_p3)   ;;  %v648_v10 = vld [vmem:[%s795_s1 + $0x80] sm:$0xff] (!%p158_p3)   ;;  %v652_v17 = vld [vmem:[%s795_s1 + $0x88] sm:$0xff] (!%p158_p3)  }
   0xa   : > { %v643_v12 = vld [vmem:[%s795_s1 + $0x20] sm:$0xff] (!%p158_p3)   ;;  %599 = vmatpush3.bf16.msra.mxu1 (!%p158_p3), %v648_v10  ;;  %v645_v18 = vld [vmem:[%s795_s1 + $0x28] sm:$0xff] (!%p158_p3)   ;;  %v646_v20 = vld [vmem:[%s795_s1 + $0x70] sm:$0xff] (!%p158_p3)   ;;  %v252_v22 = vunpack.c.0.s8 (!%p158_p3), %v251_v15 }
   0xb   : > { %600 = vmatprep.subr.bf16.mxu1 (!%p158_p3), %v677_v2  ;;  %v647_v24 = vld [vmem:[%s795_s1 + $0x30] sm:$0xff] (!%p158_p3)   ;;  %v649_v25 = vld [vmem:[%s795_s1 + $0x78] sm:$0xff] (!%p158_p3)   ;;  %v551_v36 = vld [vmem:[%s796_s2] ss:$0 sm:$0xff] (!%p158_p3) }
   0xc   : > { %576 = vmatpush3.bf16.msra.mxu0 (!%p158_p3), %v637_v4  ;;  %v255_v23 = vsub.s32 (!%p158_p3), %v252_v22, %v254_v16  ;;  %v650_v29 = vld [vmem:[%s795_s1 + $0x38] sm:$0xff] (!%p158_p3)  }
   0xd   : > { %577 = vmatprep.subr.bf16.mxu0 (!%p158_p3), %v638_v5 }
   0xe   : > { %s803_s12 = smov (!%p187_p4, %s667_s12), 1  ;;  %601 = vmatpush3.bf16.msra.mxu1 %v652_v17 }
   0xf   : > { %s606_s7 = smul.u32 6, %s803_s12  ;;  %s550_s8 = sshll.u32 %s803_s12, 2 }
  0x10   : > { %578 = vmatpush3.bf16.msra.mxu0 %v639_v6  ;;  %s202_s11 = scalar_lea.vmem %s797_s3, %s550_s8 }
  0x11   : > { %579 = vmatprep.subr.bf16.mxu0 %v640_v7  ;;  %s195_s20 = scalar_lea.vmem %s794_s0, %s606_s7 }
  0x12   : > { %v204_v19 = vld [vmem:[%s195_s20] sm:$0x3f] }
  0x13   : > { %v249_v21 = vcombine.high %v204_v19, %v204_v19  ;;  %v256_v26 = vrot.slane %v204_v19, %v255_v23 }
  0x14   : > { %580 = vmatpush3.bf16.msra.mxu0 %v641_v8 }
  0x15   : > { %581 = vmatprep.subr.bf16.mxu0 %v642_v9  ;;  %v263_v27 = vrot.slane %v249_v21, %v255_v23  ;;  %v264_v28 = vcombine.high %v256_v26, %v256_v26 }
  0x17   : > { %603 = vmatmul.mubr.msk.bf16.vlgmr.msra.gmra.mrb[0].mxu1 %vm375_vm1, %v263_v27  ;;  %411 = vmatprep.mubr.bf16.mxu0 %v264_v28 }
  0x18   : > { %582 = vmatpush3.bf16.msra.mxu0 %v643_v12 }
  0x19   : > { %583 = vmatprep.subr.bf16.mxu0 %v644_v13 }
  0x1c   : > { %584 = vmatpush3.bf16.msra.mxu0 %v645_v18 }
  0x1d   : > { %585 = vmatprep.subr.bf16.mxu0 %v646_v20 }
  0x20   : > { %586 = vmatpush3.bf16.msra.mxu0 %v647_v24 }
  0x21   : > { %587 = vmatprep.subr.bf16.mxu0 %v649_v25 }
  0x24   : > { %588 = vmatpush3.bf16.msra.mxu0 %v650_v29 }
  0x27   : > { %412 = vmatmul.mubr.bf16.vlgmr.msra.gmra.mrb[0].mxu0 %v256_v26 }
  0xea   : > { %v453_v30 = vpop.f32.mrb[0].mxu1 }
  0xeb   : > { %v604_v31 = vpop.f32.mrb[1].mxu1 }
  0xec   : > { %v456_v32 = vpop.f32.mrb[2].mxu1 }
  0xed   : > { %v605_v33 = vpop.f32.mrb[3].mxu1 }
  0xfa   : > { %v589_v34 = vpop.f32.mrb[0].mxu0 }
  0xfb   : > { %v590_v35 = vpop.f32.mrb[1].mxu0 }
  0xfc   : > { %v591_v37 = vadd.f32 %v590_v35, %v589_v34  ;;  %v592_v38 = vpop.f32.mrb[2].mxu0 }
  0xfd   : > { %v593_v39 = vpop.f32.mrb[3].mxu0 }
  0xfe   : > { %v414_v40 = vadd.f32 %v591_v37, %v551_v36 }
 0x100   : > { %v454_v41 = vadd.f32 %v453_v30, %v414_v40 }
 0x102   : > { %vm459_vm2 = vcmp.ge.f32.partialorder %v454_v41, 0.0  ;;  %v460_v42 = vmul.f32 0.2, %v454_v41 }
 0x104   : > { %v461_v43 = vsel %vm459_vm2, %v454_v41, %v460_v42 }
 0x105   : > { %463 = vst.msk [vmem:[%s202_s11] sm:$0xf] %vm462_vm3, %v461_v43 }
 0x106 PF: > { %s13_s14 = sadd.s32 1, %s675_s14   ;;  %s798_s12 = smov %s671_s13 }
 0x107   : > { %p10_p5 = scmp.ge.s32.totalorder %s13_s14, 4   ;;  %s799_s13 = smov %s801_s15 }
 0x109   :  { %12 = sbr.rel (!%p10_p5) target bundleno = 2 (0x2), region = 62 }

// kernel: generator_forward.49
= control target key start
LH: loop header
LB: loop body
LE: loop exit
PB: predicated region body
PF: predicated region fallthrough
CT: control target
= control target key end

     0   :  { %s950_s12 = smov 0   ;;  %s952_s13 = smov 0   ;;  %s1102_s0 = inlined_call_operand.vmem [shape: bf16[2,1,576], index: 0, kind: input, shape index: {}]   ;;  %s1103_s1 = inlined_call_operand.vmem [shape: bf16[576,64], index: 1, kind: input, shape index: {}]   ;;  %s1104_s2 = inlined_call_operand.vmem [shape: f32[1,64], index: 2, kind: input, shape index: {}]   ;;  %s1105_s3 = inlined_call_operand.vmem [shape: f32[2,1,64], index: 3, kind: output, shape index: {}]  }
   0x1   :  { %s954_s14 = smov 0  }
   0x2 LB: > { %s25_s15 = sadd.s32 1, %s921_s13  ;;  %p737_p0 = scmp.ge.s32.totalorder %s925_s14, 1  ;;  %s925_s14 = sphi %s954_s14, %s13_s14   ;;  %s921_s13 = sphi %s952_s13, %s1107_s13   ;;  %s917_s12 = sphi %s950_s12, %s1106_s12  }
   0x3   : > { %p27_p1 = scmp.ge.s32.totalorder %s25_s15, 2  ;;  %p156_p2 = scmp.lt.s32.totalorder %s925_s14, 3 }
   0x5   : > { %s1109_s15 = smov (%p27_p1, %s25_s15), 0  ;;  %p157_p3 = pnand %p737_p0, %p156_p2 }
   0x6   : > { %v866_v0 = vld [vmem:[%s1103_s1 + $0x40] sm:$0xff] (!%p157_p3)   ;;  %v870_v4 = vld [vmem:[%s1103_s1 + $0x48] sm:$0xff] (!%p157_p3)   ;;  %v874_v8 = vld [vmem:[%s1103_s1 + $0x50] sm:$0xff] (!%p157_p3)   ;;  %p184_p4 = scmp.lt.s32.totalorder (!%p157_p3), %s917_s12, 1  ;;  %v278_v29 = vlaneseq (!%p157_p3)  ;;  %v927_v32 = vmov (!%p157_p3), 1966171168  }
   0x7   : > { %160 = sbr.rel (%p157_p3) target bundleno = 273 (0x111), region = 32  ;;  %v867_v1 = vld [vmem:[%s1103_s1] sm:$0xff] (!%p157_p3)   ;;  %777 = vmatprep.subr.bf16.mxu0 (!%p157_p3), %v866_v0  ;;  %v871_v5 = vld [vmem:[%s1103_s1 + $0x8] sm:$0xff] (!%p157_p3)   ;;  %v875_v9 = vld [vmem:[%s1103_s1 + $0x10] sm:$0xff] (!%p157_p3)   ;;  %v276_v33 = vunpack.c.l.s4 (!%p157_p3), %v927_v32  ;;  %v928_v36 = vmov (!%p157_p3), 0.0   ;;  %vm929_vm0 = vmmov (!%p157_p3), 0  }
   0x8   : > { %v868_v2 = vld [vmem:[%s1103_s1 + $0xc0] sm:$0xff] (!%p157_p3)   ;;  %778 = vmatpush3.bf16.msra.mxu0 (!%p157_p3), %v867_v1  ;;  %v872_v6 = vld [vmem:[%s1103_s1 + $0xc8] sm:$0xff] (!%p157_p3)   ;;  %v876_v10 = vld [vmem:[%s1103_s1 + $0xd0] sm:$0xff] (!%p157_p3)   ;;  %v279_v34 = vshrl.u32 (!%p157_p3), %v278_v29, 7  ;;  %vm533_vm1 = vcmask (!%p157_p3), 523264   ;;  %vm660_vm3 = vcmask (!%p157_p3), 516096  }
   0x9   : > { %v869_v3 = vld [vmem:[%s1103_s1 + $0x80] sm:$0xff] (!%p157_p3)   ;;  %799 = vmatprep.subr.bf16.mxu1 (!%p157_p3), %v868_v2  ;;  %779 = vmatprep.subr.bf16.mxu0 (!%p157_p3), %v870_v4  ;;  %v873_v7 = vld [vmem:[%s1103_s1 + $0x88] sm:$0xff] (!%p157_p3)   ;;  %v877_v11 = vld [vmem:[%s1103_s1 + $0x90] sm:$0xff] (!%p157_p3)   ;;  %v277_v37 = vunpack.c.0.s8 (!%p157_p3), %v276_v33 }
   0xa   : > { %800 = vmatpush3.bf16.msra.mxu1 (!%p157_p3), %v869_v3  ;;  %v878_v12 = vld [vmem:[%s1103_s1 + $0x58] sm:$0xff] (!%p157_p3)   ;;  %v882_v16 = vld [vmem:[%s1103_s1 + $0x60] sm:$0xff] (!%p157_p3)   ;;  %v886_v20 = vld [vmem:[%s1103_s1 + $0x68] sm:$0xff] (!%p157_p3)  }
   0xb   : > { %801 = vmatprep.subr.bf16.mxu1 (!%p157_p3), %v872_v6  ;;  %v879_v13 = vld [vmem:[%s1103_s1 + $0x18] sm:$0xff] (!%p157_p3)   ;;  %v883_v17 = vld [vmem:[%s1103_s1 + $0x20] sm:$0xff] (!%p157_p3)   ;;  %v887_v21 = vld [vmem:[%s1103_s1 + $0x28] sm:$0xff] (!%p157_p3)   ;;  %v280_v39 = vsub.s32 (!%p157_p3), %v277_v37, %v279_v34 }
   0xc   : > { %780 = vmatpush3.bf16.msra.mxu0 (!%p157_p3), %v871_v5  ;;  %v880_v14 = vld [vmem:[%s1103_s1 + $0xd8] sm:$0xff] (!%p157_p3)   ;;  %v884_v18 = vld [vmem:[%s1103_s1 + $0xe0] sm:$0xff] (!%p157_p3)   ;;  %v888_v22 = vld [vmem:[%s1103_s1 + $0xe8] sm:$0xff] (!%p157_p3)  }
   0xd   : > { %781 = vmatprep.subr.bf16.mxu0 (!%p157_p3), %v874_v8  ;;  %v881_v15 = vld [vmem:[%s1103_s1 + $0x98] sm:$0xff] (!%p157_p3)   ;;  %v885_v19 = vld [vmem:[%s1103_s1 + $0xa0] sm:$0xff] (!%p157_p3)   ;;  %v889_v23 = vld [vmem:[%s1103_s1 + $0xa8] sm:$0xff] (!%p157_p3)  }
   0xe   : > { %802 = vmatpush3.bf16.msra.mxu1 %v873_v7  ;;  %v890_v24 = vld [vmem:[%s1103_s1 + $0x70] sm:$0xff]   ;;  %s1111_s12 = smov (!%p184_p4, %s917_s12), 1  ;;  %v894_v28 = vld [vmem:[%s1103_s1 + $0x78] sm:$0xff]   ;;  %v899_v44 = vld [vmem:[%s1103_s1 + $0x100] sm:$0xff]  }
   0xf   : > { %803 = vmatprep.subr.bf16.mxu1 %v876_v10  ;;  %v891_v25 = vld [vmem:[%s1103_s1 + $0x30] sm:$0xff]   ;;  %s838_s28 = smul.u32 5, %s1111_s12  ;;  %v895_v30 = vld [vmem:[%s1103_s1 + $0x38] sm:$0xff]   ;;  %v900_v47 = vld [vmem:[%s1103_s1 + $0x108] sm:$0xff]   ;;  %s197_s27 = scalar_lea.vmem %s1105_s3, %s1111_s12 }
  0x10   : > { %782 = vmatpush3.bf16.msra.mxu0 %v875_v9  ;;  %v892_v26 = vld [vmem:[%s1103_s1 + $0xf0] sm:$0xff]   ;;  %v896_v31 = vld [vmem:[%s1103_s1 + $0xf8] sm:$0xff]   ;;  %v272_v54 = vld [vmem:[%s1104_s2] sm:$0x1] }
  0x11   : > { %783 = vmatprep.subr.bf16.mxu0 %v878_v12  ;;  %v893_v27 = vld [vmem:[%s1103_s1 + $0xb0] sm:$0xff]   ;;  %s191_s8 = scalar_lea.vmem %s1102_s0, %s838_s28  ;;  %v898_v35 = vld [vmem:[%s1103_s1 + $0xb8] sm:$0xff]  }
  0x12   : > { %804 = vmatpush3.bf16.msra.mxu1 %v877_v11  ;;  %v199_v38 = vld [vmem:[%s191_s8] sm:$0x1f]  ;;  %v901_v49 = vld [vmem:[%s1103_s1 + $0x110] sm:$0xff]   ;;  %v902_v51 = vld [vmem:[%s1103_s1 + $0x118] sm:$0xff]  }
  0x13   : > { %805 = vmatprep.subr.bf16.mxu1 %v880_v14  ;;  %v281_v40 = vrot.slane %v199_v38, %v280_v39  ;;  %v274_v48 = vcombine.high %v199_v38, %v199_v38 }
  0x14   : > { %784 = vmatpush3.bf16.msra.mxu0 %v879_v13 }
  0x15   : > { %785 = vmatprep.subr.bf16.mxu0 %v882_v16  ;;  %v289_v41 = vcombine.high %v281_v40, %v281_v40  ;;  %v296_v42 = vrot.slane %v281_v40, %v280_v39  ;;  %v288_v50 = vrot.slane %v274_v48, %v280_v39 }
  0x16   : > { %806 = vmatpush3.bf16.msra.mxu1 %v881_v15 }
  0x17   : > { %807 = vmatprep.subr.bf16.mxu1 %v884_v18  ;;  %v310_v43 = vrot.slane %v289_v41, %v280_v39  ;;  %v311_v45 = vcombine.high %v296_v42, %v296_v42  ;;  %v303_v52 = vrot.slane %v288_v50, %v280_v39 }
  0x18   : > { %786 = vmatpush3.bf16.msra.mxu0 %v883_v17 }
  0x19   : > { %787 = vmatprep.subr.bf16.mxu0 %v886_v20  ;;  %569 = vmatprep.mubr.bf16.mxu0 %v310_v43  ;;  %v312_v46 = vcombine.high %v310_v43, %v310_v43 }
  0x1a   : > { %808 = vmatpush3.bf16.msra.mxu1 %v885_v19 }
  0x1b   : > { %809 = vmatprep.subr.bf16.mxu1 %v888_v22  ;;  %609 = vmatprep.mubr.bf16.mxu1 %v312_v46 }
  0x1c   : > { %788 = vmatpush3.bf16.msra.mxu0 %v887_v21 }
  0x1d   : > { %789 = vmatprep.subr.bf16.mxu0 %v890_v24 }
  0x1e   : > { %810 = vmatpush3.bf16.msra.mxu1 %v889_v23 }
  0x1f   : > { %811 = vmatprep.subr.bf16.mxu1 %v892_v26 }
  0x20   : > { %790 = vmatpush3.bf16.msra.mxu0 %v891_v25 }
  0x21   : > { %791 = vmatprep.subr.bf16.mxu0 %v894_v28 }
  0x22   : > { %812 = vmatpush3.bf16.msra.mxu1 %v893_v27 }
  0x23   : > { %813 = vmatprep.subr.bf16.mxu1 %v896_v31 }
  0x24   : > { %792 = vmatpush3.bf16.msra.mxu0 %v895_v30 }
  0x25   : > { %826 = vmatprep.subr.bf16.mxu0 %v928_v36 }
  0x26   : > { %814 = vmatpush3.bf16.msra.mxu1 %v898_v35 }
  0x27   : > { %570 = vmatmul.mubr.bf16.vlgmr.msra.gmra.mrb[0].mxu0 %v296_v42 }
  0x28   : > { %827 = vmatpush3.bf16.msra.mxu0 %v899_v44  ;;  %834 = vmatprep.mubr.msk.bf16.mxu0 %vm929_vm0, %v928_v36 }
  0x29   : > { %610 = vmatmul.mubr.bf16.vlgmr.msra.gmra.mrb[0].mxu1 %v311_v45  ;;  %828 = vmatprep.subr.bf16.mxu0 %v928_v36 }
  0x2c   : > { %829 = vmatpush3.bf16.msra.mxu0 %v900_v47 }
  0x2d   : > { %830 = vmatprep.subr.bf16.mxu0 %v928_v36 }
  0x30   : > { %831 = vmatpush3.bf16.msra.mxu0 %v901_v49 }
  0x31   : > { %832 = vmatprep.subr.bf16.mxu0 %v928_v36 }
  0x34   : > { %833 = vmatpush3.bf16.msra.mxu0 %v902_v51 }
  0x37   : > { %835 = vmatmul.mubr.msk.bf16.vlgmr.msra.gmra.mrb[4].mxu0 %vm533_vm1, %v303_v52 }
  0xfa   : > { %v793_v53 = vpop.f32.mrb[0].mxu0 }
  0xfb   : > { %v794_v55 = vpop.f32.mrb[1].mxu0 }
  0xfc   : > { %v795_v56 = vadd.f32 %v794_v55, %v793_v53  ;;  %v796_v57 = vpop.f32.mrb[2].mxu0  ;;  %v815_v58 = vpop.f32.mrb[0].mxu1 }
  0xfd   : > { %v797_v59 = vpop.f32.mrb[3].mxu0  ;;  %v816_v60 = vpop.f32.mrb[1].mxu1 }
  0xfe   : > { %v572_v61 = vadd.f32 %v795_v56, %v272_v54  ;;  %v817_v62 = vadd.f32 %v816_v60, %v815_v58  ;;  %v818_v63 = vpop.f32.mrb[2].mxu1 }
  0xff   : > { %v819_v0 = vpop.f32.mrb[3].mxu1 }
 0x100   : > { %v612_v1 = vadd.f32 %v817_v62, %v572_v61 }
 0x10a   : > { %v651_v2 = vpop.f32.mrb[4].mxu0 }
 0x10b   : > { %v652_v3 = vadd.f32 %v651_v2, %v612_v1  ;;  %v836_v4 = vpop.f32.mrb[5].mxu0 }
 0x10c   : > { %v654_v5 = vpop.f32.mrb[6].mxu0 }
 0x10d   : > { %vm657_vm2 = vcmp.ge.f32.partialorder %v652_v3, 0.0  ;;  %v658_v6 = vmul.f32 0.2, %v652_v3  ;;  %v837_v7 = vpop.f32.mrb[7].mxu0 }
 0x10f   : > { %v659_v8 = vsel %vm657_vm2, %v652_v3, %v658_v6 }
 0x110   : > { %661 = vst.msk [vmem:[%s197_s27] sm:$0x1] %vm660_vm3, %v659_v8 }
 0x111 PF: > { %s13_s14 = sadd.s32 1, %s925_s14   ;;  %s1106_s12 = smov %s921_s13 }
 0x112   : > { %p10_p5 = scmp.ge.s32.totalorder %s13_s14, 4   ;;  %s1107_s13 = smov %s1109_s15 }
 0x114   :  { %12 = sbr.rel (!%p10_p5) target bundleno = 2 (0x2), region = 62 }

// kernel: generator_forward.47
= control target key start
LH: loop header
LB: loop body
LE: loop exit
PB: predicated region body
PF: predicated region fallthrough
CT: control target
= control target key end

     0   :  { %s700_s12 = smov 0   ;;  %s702_s13 = smov 0   ;;  %s794_s0 = inlined_call_operand.vmem [shape: bf16[2,4,288], index: 0, kind: input, shape index: {}]   ;;  %s795_s1 = inlined_call_operand.vmem [shape: bf16[288,64], index: 1, kind: input, shape index: {}]   ;;  %s796_s2 = inlined_call_operand.vmem [shape: f32[1,64], index: 2, kind: input, shape index: {}]   ;;  %s797_s3 = inlined_call_operand.vmem [shape: f32[2,4,64], index: 3, kind: output, shape index: {}]  }
   0x1   :  { %s704_s14 = smov 0  }
   0x2 LB: > { %s25_s15 = sadd.s32 1, %s671_s13  ;;  %p548_p0 = scmp.ge.s32.totalorder %s675_s14, 1  ;;  %s675_s14 = sphi %s704_s14, %s13_s14   ;;  %s671_s13 = sphi %s702_s13, %s799_s13   ;;  %s667_s12 = sphi %s700_s12, %s798_s12  }
   0x3   : > { %p27_p1 = scmp.ge.s32.totalorder %s25_s15, 2  ;;  %p157_p2 = scmp.lt.s32.totalorder %s675_s14, 3 }
   0x5   : > { %s801_s15 = smov (%p27_p1, %s25_s15), 0  ;;  %p158_p3 = pnand %p548_p0, %p157_p2 }
   0x6   : > { %v634_v0 = vld [vmem:[%s795_s1 + $0x40] sm:$0xff] (!%p158_p3)   ;;  %v677_v2 = vmov (!%p158_p3), 0.0   ;;  %v636_v3 = vld [vmem:[%s795_s1 + $0x48] sm:$0xff] (!%p158_p3)   ;;  %p187_p4 = scmp.lt.s32.totalorder (!%p158_p3), %s667_s12, 1  ;;  %v638_v5 = vld [vmem:[%s795_s1 + $0x50] sm:$0xff] (!%p158_p3)   ;;  %vm678_vm0 = vmmov (!%p158_p3), 0   ;;  %v253_v11 = vlaneseq (!%p158_p3) }
   0x7   : > { %161 = sbr.rel (%p158_p3) target bundleno = 262 (0x106), region = 32  ;;  %v635_v1 = vld [vmem:[%s795_s1] sm:$0xff] (!%p158_p3)   ;;  %598 = vmatprep.subr.bf16.mxu1 (!%p158_p3), %v677_v2  ;;  %573 = vmatprep.subr.bf16.mxu0 (!%p158_p3), %v634_v0  ;;  %v637_v4 = vld [vmem:[%s795_s1 + $0x8] sm:$0xff] (!%p158_p3)   ;;  %v639_v6 = vld [vmem:[%s795_s1 + $0x10] sm:$0xff] (!%p158_p3)   ;;  %v679_v14 = vmov (!%p158_p3), 1983009808  }
   0x8   : > { %574 = vmatpush3.bf16.msra.mxu0 (!%p158_p3), %v635_v1  ;;  %602 = vmatprep.mubr.msk.bf16.mxu1 (!%p158_p3), %vm678_vm0, %v677_v2  ;;  %v640_v7 = vld [vmem:[%s795_s1 + $0x58] sm:$0xff] (!%p158_p3)   ;;  %v642_v9 = vld [vmem:[%s795_s1 + $0x60] sm:$0xff] (!%p158_p3)   ;;  %v644_v13 = vld [vmem:[%s795_s1 + $0x68] sm:$0xff] (!%p158_p3)   ;;  %v251_v15 = vunpack.c.l.s4 (!%p158_p3), %v679_v14  ;;  %v254_v16 = vshrl.u32 (!%p158_p3), %v253_v11, 7  ;;  %vm375_vm1 = vcmask (!%p158_p3), 261120   ;;  %vm462_vm3 = vcmask (!%p158_p3), 519168  }
   0x9   : > { %575 = vmatprep.subr.bf16.mxu0 (!%p158_p3), %v636_v3  ;;  %v641_v8 = vld [vmem:[%s795_s1 + $0x18] sm:$0xff] (!%p158_p3)   ;;  %v648_v10 = vld [vmem:[%s795_s1 + $0x80] sm:$0xff] (!%p158_p3)   ;;  %v652_v17 = vld [vmem:[%s795_s1 + $0x88] sm:$0xff] (!%p158_p3)  }
   0xa   : > { %v643_v12 = vld [vmem:[%s795_s1 + $0x20] sm:$0xff] (!%p158_p3)   ;;  %599 = vmatpush3.bf16.msra.mxu1 (!%p158_p3), %v648_v10  ;;  %v645_v18 = vld [vmem:[%s795_s1 + $0x28] sm:$0xff] (!%p158_p3)   ;;  %v646_v20 = vld [vmem:[%s795_s1 + $0x70] sm:$0xff] (!%p158_p3)   ;;  %v252_v22 = vunpack.c.0.s8 (!%p158_p3), %v251_v15 }
   0xb   : > { %600 = vmatprep.subr.bf16.mxu1 (!%p158_p3), %v677_v2  ;;  %v647_v24 = vld [vmem:[%s795_s1 + $0x30] sm:$0xff] (!%p158_p3)   ;;  %v649_v25 = vld [vmem:[%s795_s1 + $0x78] sm:$0xff] (!%p158_p3)   ;;  %v551_v36 = vld [vmem:[%s796_s2] ss:$0 sm:$0xff] (!%p158_p3) }
   0xc   : > { %576 = vmatpush3.bf16.msra.mxu0 (!%p158_p3), %v637_v4  ;;  %v255_v23 = vsub.s32 (!%p158_p3), %v252_v22, %v254_v16  ;;  %v650_v29 = vld [vmem:[%s795_s1 + $0x38] sm:$0xff] (!%p158_p3)  }
   0xd   : > { %577 = vmatprep.subr.bf16.mxu0 (!%p158_p3), %v638_v5 }
   0xe   : > { %s803_s12 = smov (!%p187_p4, %s667_s12), 1  ;;  %601 = vmatpush3.bf16.msra.mxu1 %v652_v17 }
   0xf   : > { %s606_s7 = smul.u32 6, %s803_s12  ;;  %s550_s8 = sshll.u32 %s803_s12, 2 }
  0x10   : > { %578 = vmatpush3.bf16.msra.mxu0 %v639_v6  ;;  %s202_s11 = scalar_lea.vmem %s797_s3, %s550_s8 }
  0x11   : > { %579 = vmatprep.subr.bf16.mxu0 %v640_v7  ;;  %s195_s20 = scalar_lea.vmem %s794_s0, %s606_s7 }
  0x12   : > { %v204_v19 = vld [vmem:[%s195_s20] sm:$0x3f] }
  0x13   : > { %v249_v21 = vcombine.high %v204_v19, %v204_v19  ;;  %v256_v26 = vrot.slane %v204_v19, %v255_v23 }
  0x14   : > { %580 = vmatpush3.bf16.msra.mxu0 %v641_v8 }
  0x15   : > { %581 = vmatprep.subr.bf16.mxu0 %v642_v9  ;;  %v263_v27 = vrot.slane %v249_v21, %v255_v23  ;;  %v264_v28 = vcombine.high %v256_v26, %v256_v26 }
  0x17   : > { %603 = vmatmul.mubr.msk.bf16.vlgmr.msra.gmra.mrb[0].mxu1 %vm375_vm1, %v263_v27  ;;  %411 = vmatprep.mubr.bf16.mxu0 %v264_v28 }
  0x18   : > { %582 = vmatpush3.bf16.msra.mxu0 %v643_v12 }
  0x19   : > { %583 = vmatprep.subr.bf16.mxu0 %v644_v13 }
  0x1c   : > { %584 = vmatpush3.bf16.msra.mxu0 %v645_v18 }
  0x1d   : > { %585 = vmatprep.subr.bf16.mxu0 %v646_v20 }
  0x20   : > { %586 = vmatpush3.bf16.msra.mxu0 %v647_v24 }
  0x21   : > { %587 = vmatprep.subr.bf16.mxu0 %v649_v25 }
  0x24   : > { %588 = vmatpush3.bf16.msra.mxu0 %v650_v29 }
  0x27   : > { %412 = vmatmul.mubr.bf16.vlgmr.msra.gmra.mrb[0].mxu0 %v256_v26 }
  0xea   : > { %v453_v30 = vpop.f32.mrb[0].mxu1 }
  0xeb   : > { %v604_v31 = vpop.f32.mrb[1].mxu1 }
  0xec   : > { %v456_v32 = vpop.f32.mrb[2].mxu1 }
  0xed   : > { %v605_v33 = vpop.f32.mrb[3].mxu1 }
  0xfa   : > { %v589_v34 = vpop.f32.mrb[0].mxu0 }
  0xfb   : > { %v590_v35 = vpop.f32.mrb[1].mxu0 }
  0xfc   : > { %v591_v37 = vadd.f32 %v590_v35, %v589_v34  ;;  %v592_v38 = vpop.f32.mrb[2].mxu0 }
  0xfd   : > { %v593_v39 = vpop.f32.mrb[3].mxu0 }
  0xfe   : > { %v414_v40 = vadd.f32 %v591_v37, %v551_v36 }
 0x100   : > { %v454_v41 = vadd.f32 %v453_v30, %v414_v40 }
 0x102   : > { %vm459_vm2 = vcmp.ge.f32.partialorder %v454_v41, 0.0  ;;  %v460_v42 = vmul.f32 0.2, %v454_v41 }
 0x104   : > { %v461_v43 = vsel %vm459_vm2, %v454_v41, %v460_v42 }
 0x105   : > { %463 = vst.msk [vmem:[%s202_s11] sm:$0xf] %vm462_vm3, %v461_v43 }
 0x106 PF: > { %s13_s14 = sadd.s32 1, %s675_s14   ;;  %s798_s12 = smov %s671_s13 }
 0x107   : > { %p10_p5 = scmp.ge.s32.totalorder %s13_s14, 4   ;;  %s799_s13 = smov %s801_s15 }
 0x109   :  { %12 = sbr.rel (!%p10_p5) target bundleno = 2 (0x2), region = 62 }

// kernel: generator_forward.55
= control target key start
LH: loop header
LB: loop body
LE: loop exit
PB: predicated region body
PF: predicated region fallthrough
CT: control target
= control target key end

     0   :  { %s1196_s12 = smov 0   ;;  %s1198_s13 = smov 0   ;;  %s1477_s0 = inlined_call_operand.vmem [shape: bf16[2,1,576], index: 0, kind: input, shape index: {}]   ;;  %s1478_s1 = inlined_call_operand.vmem [shape: bf16[576,256], index: 1, kind: input, shape index: {}]   ;;  %s1479_s2 = inlined_call_operand.vmem [shape: f32[1,256], index: 2, kind: input, shape index: {}]   ;;  %s1480_s3 = inlined_call_operand.vmem [shape: f32[2,1,256], index: 3, kind: output, shape index: {}]  }
   0x1   :  { %s1200_s14 = smov 0  }
   0x2 LB: > { %s25_s15 = sadd.s32 1, %s1168_s13  ;;  %p929_p0 = scmp.ge.s32.totalorder %s1172_s14, 1  ;;  %s1172_s14 = sphi %s1200_s14, %s13_s14   ;;  %s1168_s13 = sphi %s1198_s13, %s1482_s13   ;;  %s1164_s12 = sphi %s1196_s12, %s1481_s12  }
   0x3   : > { %p27_p1 = scmp.ge.s32.totalorder %s25_s15, 2  ;;  %p156_p2 = scmp.lt.s32.totalorder %s1172_s14, 3 }
   0x5   : > { %s1484_s15 = smov (%p27_p1, %s25_s15), 0  ;;  %p157_p3 = pnand %p929_p0, %p156_p2 }
   0x6   : > { %v1041_v0 = vld [vmem:[%s1478_s1 + $0x104] ss:$8 sps:$4 sm:$0xff] (!%p157_p3)   ;;  %v1043_v1 = vld [vmem:[%s1478_s1 + $0x100] ss:$8 sps:$4 sm:$0xff] (!%p157_p3)   ;;  %v1044_v2 = vld [vmem:[%s1478_s1 + $0x114] ss:$8 sps:$4 sm:$0xff] (!%p157_p3)   ;;  %v282_v34 = vlaneseq (!%p157_p3) }
   0x7   : > { %160 = sbr.rel (%p157_p3) target bundleno = 309 (0x135), region = 32  ;;  %737 = vmatprep.subr.bf16.mxu0 (!%p157_p3), %v1041_v0  ;;  %v1046_v3 = vld [vmem:[%s1478_s1 + $0x110] ss:$8 sps:$4 sm:$0xff] (!%p157_p3)   ;;  %v1047_v4 = vld [vmem:[%s1478_s1 + $0x124] ss:$8 sps:$4 sm:$0xff] (!%p157_p3)   ;;  %p186_p4 = scmp.lt.s32.totalorder (!%p157_p3), %s1164_s12, 1 }
   0x8   : > { %738 = vmatpush1.bf16.msra.mxu0 (!%p157_p3), %v1043_v1  ;;  %v1050_v5 = vld [vmem:[%s1478_s1 + $0x4] ss:$8 sps:$4 sm:$0xff] (!%p157_p3)   ;;  %v1052_v6 = vld [vmem:[%s1478_s1] ss:$8 sps:$4 sm:$0xff] (!%p157_p3)   ;;  %v1056_v8 = vld [vmem:[%s1478_s1 + $0x14] ss:$8 sps:$4 sm:$0xff] (!%p157_p3)  }
   0x9   : > { %739 = vmatprep.subr.bf16.mxu0 (!%p157_p3), %v1044_v2  ;;  %v1049_v7 = vld [vmem:[%s1478_s1 + $0x120] ss:$8 sps:$4 sm:$0xff] (!%p157_p3)   ;;  %696 = vmatprep.subr.bf16.mxu1 (!%p157_p3), %v1050_v5  ;;  %v1058_v9 = vld [vmem:[%s1478_s1 + $0x10] ss:$8 sps:$4 sm:$0xff] (!%p157_p3)   ;;  %v1053_v10 = vld [vmem:[%s1478_s1 + $0x134] ss:$8 sps:$4 sm:$0xff] (!%p157_p3)  }
   0xa   : > { %697 = vmatpush1.bf16.msra.mxu1 (!%p157_p3), %v1052_v6  ;;  %v1055_v11 = vld [vmem:[%s1478_s1 + $0x130] ss:$8 sps:$4 sm:$0xff] (!%p157_p3)   ;;  %v1062_v12 = vld [vmem:[%s1478_s1 + $0x24] ss:$8 sps:$4 sm:$0xff] (!%p157_p3)   ;;  %v1064_v14 = vld [vmem:[%s1478_s1 + $0x20] ss:$8 sps:$4 sm:$0xff] (!%p157_p3)  }
   0xb   : > { %698 = vmatprep.subr.bf16.mxu1 (!%p157_p3), %v1056_v8  ;;  %v1059_v13 = vld [vmem:[%s1478_s1 + $0x144] ss:$8 sps:$4 sm:$0xff] (!%p157_p3)   ;;  %v1068_v15 = vld [vmem:[%s1478_s1 + $0x34] ss:$8 sps:$4 sm:$0xff] (!%p157_p3)   ;;  %v1061_v16 = vld [vmem:[%s1478_s1 + $0x140] ss:$8 sps:$4 sm:$0xff] (!%p157_p3)  }
   0xc   : > { %740 = vmatpush1.bf16.msra.mxu0 (!%p157_p3), %v1046_v3  ;;  %v1065_v17 = vld [vmem:[%s1478_s1 + $0x154] ss:$8 sps:$4 sm:$0xff] (!%p157_p3)   ;;  %v1070_v18 = vld [vmem:[%s1478_s1 + $0x30] ss:$8 sps:$4 sm:$0xff] (!%p157_p3)   ;;  %v1074_v19 = vld [vmem:[%s1478_s1 + $0x44] ss:$8 sps:$4 sm:$0xff] (!%p157_p3)  }
   0xd   : > { %741 = vmatprep.subr.bf16.mxu0 (!%p157_p3), %v1047_v4  ;;  %v1067_v20 = vld [vmem:[%s1478_s1 + $0x150] ss:$8 sps:$4 sm:$0xff] (!%p157_p3)   ;;  %v1071_v21 = vld [vmem:[%s1478_s1 + $0x164] ss:$8 sps:$4 sm:$0xff] (!%p157_p3)   ;;  %v1076_v22 = vld [vmem:[%s1478_s1 + $0x40] ss:$8 sps:$4 sm:$0xff] (!%p157_p3)  }
   0xe   : > { %699 = vmatpush1.bf16.msra.mxu1 %v1058_v9  ;;  %v1080_v23 = vld [vmem:[%s1478_s1 + $0x54] ss:$8 sps:$4 sm:$0xff]   ;;  %v1073_v24 = vld [vmem:[%s1478_s1 + $0x160] ss:$8 sps:$4 sm:$0xff]   ;;  %v1082_v26 = vld [vmem:[%s1478_s1 + $0x50] ss:$8 sps:$4 sm:$0xff]  }
   0xf   : > { %700 = vmatprep.subr.bf16.mxu1 %v1062_v12  ;;  %v1077_v25 = vld [vmem:[%s1478_s1 + $0x174] ss:$8 sps:$4 sm:$0xff]   ;;  %v1086_v27 = vld [vmem:[%s1478_s1 + $0x64] ss:$8 sps:$4 sm:$0xff]   ;;  %v1079_v28 = vld [vmem:[%s1478_s1 + $0x170] ss:$8 sps:$4 sm:$0xff]  }
  0x10   : > { %742 = vmatpush1.bf16.msra.mxu0 %v1049_v7  ;;  %v1083_v29 = vld [vmem:[%s1478_s1 + $0x184] ss:$8 sps:$4 sm:$0xff]   ;;  %v1088_v30 = vld [vmem:[%s1478_s1 + $0x60] ss:$8 sps:$4 sm:$0xff]   ;;  %v1092_v31 = vld [vmem:[%s1478_s1 + $0x74] ss:$8 sps:$4 sm:$0xff]  }
  0x11   : > { %743 = vmatprep.subr.bf16.mxu0 %v1053_v10  ;;  %s1486_s12 = smov (!%p186_p4, %s1164_s12), 1  ;;  %v1174_v32 = vmov 1966171168   ;;  %v1085_v35 = vld [vmem:[%s1478_s1 + $0x180] ss:$8 sps:$4 sm:$0xff]   ;;  %v1330_v40 = vshrl.u32 %v282_v34, 7 }
  0x12   : > { %701 = vmatpush1.bf16.msra.mxu1 %v1064_v14  ;;  %v280_v33 = vunpack.c.l.s4 %v1174_v32  ;;  %v1089_v36 = vld [vmem:[%s1478_s1 + $0x194] ss:$8 sps:$4 sm:$0xff]   ;;  %v1094_v37 = vld [vmem:[%s1478_s1 + $0x70] ss:$8 sps:$4 sm:$0xff]   ;;  %v1098_v38 = vld [vmem:[%s1478_s1 + $0x84] ss:$8 sps:$4 sm:$0xff]  }
  0x13   : > { %702 = vmatprep.subr.bf16.mxu1 %v1068_v15  ;;  %s1014_s19 = smul.u32 5, %s1486_s12  ;;  %v1091_v41 = vld [vmem:[%s1478_s1 + $0x190] ss:$8 sps:$4 sm:$0xff]   ;;  %v1095_v42 = vld [vmem:[%s1478_s1 + $0x1a4] ss:$8 sps:$4 sm:$0xff]   ;;  %vm692_vm0 = vcmask 523264  }
  0x14   : > { %744 = vmatpush1.bf16.msra.mxu0 %v1055_v11  ;;  %v281_v39 = vunpack.c.0.s8 %v280_v33  ;;  %v1100_v43 = vld [vmem:[%s1478_s1 + $0x80] ss:$8 sps:$4 sm:$0xff]   ;;  %v1104_v44 = vld [vmem:[%s1478_s1 + $0x94] ss:$8 sps:$4 sm:$0xff]   ;;  %v1106_v48 = vld [vmem:[%s1478_s1 + $0x90] ss:$8 sps:$4 sm:$0xff]  }
  0x15   : > { %745 = vmatprep.subr.bf16.mxu0 %v1059_v13  ;;  %s193_s30 = scalar_lea.vmem %s1477_s0, %s1014_s19  ;;  %v1097_v46 = vld [vmem:[%s1478_s1 + $0x1a0] ss:$8 sps:$4 sm:$0xff]   ;;  %v1101_v47 = vld [vmem:[%s1478_s1 + $0x1b4] ss:$8 sps:$4 sm:$0xff]   ;;  %v1110_v49 = vld [vmem:[%s1478_s1 + $0xa4] ss:$8 sps:$4 sm:$0xff]  }
  0x16   : > { %703 = vmatpush1.bf16.msra.mxu1 %v1070_v18  ;;  %v1348_v45 = vsub.s32 %v281_v39, %v1330_v40  ;;  %v1362_v50 = vld [vmem:[%s193_s30] sm:$0x1f]  ;;  %v1103_v52 = vld [vmem:[%s1478_s1 + $0x1b0] ss:$8 sps:$4 sm:$0xff]   ;;  %v1116_v56 = vld [vmem:[%s1478_s1 + $0xb4] ss:$8 sps:$4 sm:$0xff]  }
  0x17   : > { %704 = vmatprep.subr.bf16.mxu1 %v1074_v19  ;;  %v1107_v53 = vld [vmem:[%s1478_s1 + $0x1c4] ss:$8 sps:$4 sm:$0xff]   ;;  %v1112_v54 = vld [vmem:[%s1478_s1 + $0xa0] ss:$8 sps:$4 sm:$0xff]   ;;  %v1118_v59 = vld [vmem:[%s1478_s1 + $0xb0] ss:$8 sps:$4 sm:$0xff]   ;;  %v278_v19 = vcombine.high %v1362_v50, %v1362_v50 }
  0x18   : > { %746 = vmatpush1.bf16.msra.mxu0 %v1061_v16  ;;  %v285_v51 = vrot.slane %v1362_v50, %v1348_v45  ;;  %v1109_v58 = vld [vmem:[%s1478_s1 + $0x1c0] ss:$8 sps:$4 sm:$0xff]   ;;  %v1113_v61 = vld [vmem:[%s1478_s1 + $0x1d4] ss:$8 sps:$4 sm:$0xff]   ;;  %v1122_v62 = vld [vmem:[%s1478_s1 + $0xc4] ss:$8 sps:$4 sm:$0xff]  }
  0x19   : > { %747 = vmatprep.subr.bf16.mxu0 %v1065_v17  ;;  %v1115_v63 = vld [vmem:[%s1478_s1 + $0x1d0] ss:$8 sps:$4 sm:$0xff]   ;;  %v1124_v0 = vld [vmem:[%s1478_s1 + $0xc0] ss:$8 sps:$4 sm:$0xff]   ;;  %v1119_v1 = vld [vmem:[%s1478_s1 + $0x1e4] ss:$8 sps:$4 sm:$0xff]  }
  0x1a   : > { %705 = vmatpush1.bf16.msra.mxu1 %v1076_v22  ;;  %v293_v55 = vcombine.high %v285_v51, %v285_v51  ;;  %v1128_v2 = vld [vmem:[%s1478_s1 + $0xd4] ss:$8 sps:$4 sm:$0xff]   ;;  %v1121_v3 = vld [vmem:[%s1478_s1 + $0x1e0] ss:$8 sps:$4 sm:$0xff]   ;;  %v1130_v4 = vld [vmem:[%s1478_s1 + $0xd0] ss:$8 sps:$4 sm:$0xff]   ;;  %v300_v7 = vrot.slane %v285_v51, %v1348_v45  ;;  %v292_v22 = vrot.slane %v278_v19, %v1348_v45 }
  0x1b   : > { %706 = vmatprep.subr.bf16.mxu1 %v1080_v23  ;;  %v1125_v5 = vld [vmem:[%s1478_s1 + $0x1f4] ss:$8 sps:$4 sm:$0xff]   ;;  %v1135_v6 = vld [vmem:[%s1478_s1 + $0xe4] ss:$8 sps:$4 sm:$0xff]   ;;  %v1127_v8 = vld [vmem:[%s1478_s1 + $0x1f0] ss:$8 sps:$4 sm:$0xff]  }
  0x1c   : > { %748 = vmatpush1.bf16.msra.mxu0 %v1067_v20  ;;  %v314_v57 = vrot.slane %v293_v55, %v1348_v45  ;;  %v1137_v9 = vld [vmem:[%s1478_s1 + $0xe0] ss:$8 sps:$4 sm:$0xff]   ;;  %v1134_v10 = vld [vmem:[%s1478_s1 + $0x204] ss:$8 sps:$4 sm:$0xff]   ;;  %v1141_v11 = vld [vmem:[%s1478_s1 + $0xf4] ss:$8 sps:$4 sm:$0xff]   ;;  %v315_v12 = vcombine.high %v300_v7, %v300_v7 }
  0x1d   : > { %749 = vmatprep.subr.bf16.mxu0 %v1071_v21  ;;  %v1132_v13 = vld [vmem:[%s1478_s1 + $0x200] ss:$8 sps:$4 sm:$0xff]   ;;  %v1143_v14 = vld [vmem:[%s1478_s1 + $0xf0] ss:$8 sps:$4 sm:$0xff]   ;;  %v1140_v15 = vld [vmem:[%s1478_s1 + $0x214] ss:$8 sps:$4 sm:$0xff]  }
  0x1e   : > { %707 = vmatpush1.bf16.msra.mxu1 %v1082_v26  ;;  %v316_v60 = vcombine.high %v314_v57, %v314_v57  ;;  %728 = vmatprep.mubr.bf16.mxu1 %v314_v57  ;;  %v1138_v16 = vld [vmem:[%s1478_s1 + $0x210] ss:$8 sps:$4 sm:$0xff]   ;;  %v1146_v17 = vld [vmem:[%s1478_s1 + $0x224] ss:$8 sps:$4 sm:$0xff]   ;;  %v1175_v18 = vmov 0   ;;  %v684_v26 = vsub.s32 0, %v1330_v40 }
  0x1f   : > { %708 = vmatprep.subr.bf16.mxu1 %v1086_v27  ;;  %v1144_v20 = vld [vmem:[%s1478_s1 + $0x220] ss:$8 sps:$4 sm:$0xff]   ;;  %v1149_v21 = vld [vmem:[%s1478_s1 + $0x234] ss:$8 sps:$4 sm:$0xff]   ;;  %v1147_v23 = vld [vmem:[%s1478_s1 + $0x230] ss:$8 sps:$4 sm:$0xff]  }
  0x20   : > { %750 = vmatpush1.bf16.msra.mxu0 %v1073_v24  ;;  %769 = vmatprep.mubr.bf16.mxu0 %v316_v60  ;;  %v307_v24 = vrot.slane %v292_v22, %v1348_v45  ;;  %s930_s28 = sshll.u32 %s1486_s12, 1  ;;  %vm839_vm1 = vcmp.lt.s32.totalorder %v282_v34, 256 }
  0x21   : > { %751 = vmatprep.subr.bf16.mxu0 %v1077_v25  ;;  %s201_s4 = scalar_lea.vmem %s1480_s3, %s930_s28 }
  0x22   : > { %709 = vmatpush1.bf16.msra.mxu1 %v1088_v30 }
  0x23   : > { %710 = vmatprep.subr.bf16.mxu1 %v1092_v31 }
  0x24   : > { %752 = vmatpush1.bf16.msra.mxu0 %v1079_v28  ;;  %v276_v28 = vld [vmem:[%s1479_s2] sm:$0x3] }
  0x25   : > { %753 = vmatprep.subr.bf16.mxu0 %v1083_v29  ;;  %v688_v29 = vsub.s32 1, %v1330_v40  ;;  %v685_v32 = vrot.slane %v276_v28, %v684_v26 }
  0x26   : > { %711 = vmatpush1.bf16.msra.mxu1 %v1094_v37 }
  0x27   : > { %712 = vmatprep.subr.bf16.mxu1 %v1098_v38  ;;  %v689_v33 = vrot.slane %v276_v28, %v688_v29 }
  0x28   : > { %754 = vmatpush1.bf16.msra.mxu0 %v1085_v35 }
  0x29   : > { %755 = vmatprep.subr.bf16.mxu0 %v1089_v36 }
  0x2a   : > { %713 = vmatpush1.bf16.msra.mxu1 %v1100_v43 }
  0x2b   : > { %714 = vmatprep.subr.bf16.mxu1 %v1104_v44 }
  0x2c   : > { %756 = vmatpush1.bf16.msra.mxu0 %v1091_v41 }
  0x2d   : > { %757 = vmatprep.subr.bf16.mxu0 %v1095_v42 }
  0x2e   : > { %715 = vmatpush1.bf16.msra.mxu1 %v1106_v48 }
  0x2f   : > { %716 = vmatprep.subr.bf16.mxu1 %v1110_v49 }
  0x30   : > { %758 = vmatpush1.bf16.msra.mxu0 %v1097_v46 }
  0x31   : > { %759 = vmatprep.subr.bf16.mxu0 %v1101_v47 }
  0x32   : > { %717 = vmatpush1.bf16.msra.mxu1 %v1112_v54 }
  0x33   : > { %718 = vmatprep.subr.bf16.mxu1 %v1116_v56 }
  0x34   : > { %760 = vmatpush1.bf16.msra.mxu0 %v1103_v52 }
  0x35   : > { %761 = vmatprep.subr.bf16.mxu0 %v1107_v53 }
  0x36   : > { %719 = vmatpush1.bf16.msra.mxu1 %v1118_v59 }
  0x37   : > { %720 = vmatprep.subr.bf16.mxu1 %v1122_v62 }
  0x38   : > { %762 = vmatpush1.bf16.msra.mxu0 %v1109_v58 }
  0x39   : > { %763 = vmatprep.subr.bf16.mxu0 %v1113_v61 }
  0x3a   : > { %721 = vmatpush1.bf16.msra.mxu1 %v1124_v0 }
  0x3b   : > { %722 = vmatprep.subr.bf16.mxu1 %v1128_v2 }
  0x3c   : > { %764 = vmatpush1.bf16.msra.mxu0 %v1115_v63 }
  0x3d   : > { %765 = vmatprep.subr.bf16.mxu0 %v1119_v1 }
  0x3e   : > { %723 = vmatpush1.bf16.msra.mxu1 %v1130_v4 }
  0x3f   : > { %724 = vmatprep.subr.bf16.mxu1 %v1135_v6 }
  0x40   : > { %766 = vmatpush1.bf16.msra.mxu0 %v1121_v3 }
  0x41   : > { %767 = vmatprep.subr.bf16.mxu0 %v1125_v5 }
  0x42   : > { %725 = vmatpush1.bf16.msra.mxu1 %v1137_v9 }
  0x43   : > { %726 = vmatprep.subr.bf16.mxu1 %v1141_v11 }
  0x44   : > { %768 = vmatpush1.bf16.msra.mxu0 %v1127_v8 }
  0x45   : > { %778 = vmatprep.subr.bf16.mxu0 %v1134_v10 }
  0x46   : > { %727 = vmatpush1.bf16.msra.mxu1 %v1143_v14 }
  0x47   : > { %770 = vmatmul.mubr.bf16.vlgmr.msra.gmra.mrb[0].mxu0 %v315_v12 }
  0x48   : > { %779 = vmatpush1.bf16.msra.mxu0 %v1132_v13  ;;  %810 = vmatprep.mubr.bf16.mxu0 %v1175_v18 }
  0x49   : > { %780 = vmatprep.subr.bf16.mxu0 %v1140_v15  ;;  %729 = vmatmul.mubr.bf16.vlgmr.msra.gmra.mrb[0].mxu1 %v300_v7 }
  0x4c   : > { %781 = vmatpush1.bf16.msra.mxu0 %v1138_v16 }
  0x4d   : > { %782 = vmatprep.subr.bf16.mxu0 %v1146_v17 }
  0x50   : > { %783 = vmatpush1.bf16.msra.mxu0 %v1144_v20 }
  0x51   : > { %784 = vmatprep.subr.bf16.mxu0 %v1149_v21 }
  0x54   : > { %785 = vmatpush1.bf16.msra.mxu0 %v1147_v23 }
  0x57   : > { %1003 = vmatmul.mubr.msk.bf16.vlgmr.msra.gmra.mrb[0].mxu0 %vm692_vm0, %v307_v24 }
 0x11c   : > { %v730_v25 = vpop.f32.mrb[0].mxu1 }
 0x11d   : > { %v732_v27 = vpop.f32.mrb[1].mxu1  ;;  %v731_v35 = vadd.f32 %v730_v25, %v685_v32 }
 0x11e   : > { %v734_v30 = vpop.f32.mrb[2].mxu1  ;;  %v733_v36 = vadd.f32 %v732_v27, %v689_v33 }
 0x11f   : > { %v735_v31 = vpop.f32.mrb[3].mxu1 }
 0x12a   : > { %v812_v37 = vpop.f32.mrb[0].mxu0 }
 0x12b   : > { %v1007_v38 = vadd.f32 %v812_v37, %v731_v35  ;;  %v814_v39 = vpop.f32.mrb[1].mxu0 }
 0x12c   : > { %v1009_v41 = vadd.f32 %v814_v39, %v733_v36  ;;  %v816_v42 = vpop.f32.mrb[2].mxu0 }
 0x12d   : > { %v817_v43 = vpop.f32.mrb[3].mxu0 }
 0x12e   : > { %v821_v44 = vcombine.low %v1007_v38, %v1009_v41 }
 0x130   : > { %v828_v46 = vrot.slane %v821_v44, %v1348_v45 }
 0x132   : > { %v835_v40 = vrot.slane %v828_v46, %v1348_v45 }
 0x134   : > { %841 = vst.msk [vmem:[%s201_s4] sm:$0x3] %vm839_vm1, %v835_v40 }
 0x135 PF: > { %s13_s14 = sadd.s32 1, %s1172_s14   ;;  %s1481_s12 = smov %s1168_s13 }
 0x136   : > { %p10_p5 = scmp.ge.s32.totalorder %s13_s14, 4   ;;  %s1482_s13 = smov %s1484_s15 }
 0x138   :  { %12 = sbr.rel (!%p10_p5) target bundleno = 2 (0x2), region = 62 }

// kernel: generator_forward.59
= control target key start
LH: loop header
LB: loop body
LE: loop exit
PB: predicated region body
PF: predicated region fallthrough
CT: control target
= control target key end

     0   :  { %s696_s12 = smov 0   ;;  %s698_s13 = smov 0   ;;  %s790_s0 = inlined_call_operand.vmem [shape: bf16[2,4,288], index: 0, kind: input, shape index: {}]   ;;  %s791_s1 = inlined_call_operand.vmem [shape: bf16[288,128], index: 1, kind: input, shape index: {}]   ;;  %s792_s2 = inlined_call_operand.vmem [shape: f32[1,128], index: 2, kind: input, shape index: {}]   ;;  %s793_s3 = inlined_call_operand.vmem [shape: f32[2,4,128], index: 3, kind: output, shape index: {}]  }
   0x1   :  { %s700_s14 = smov 0  }
   0x2 LB: > { %s25_s15 = sadd.s32 1, %s667_s13  ;;  %p544_p0 = scmp.ge.s32.totalorder %s671_s14, 1  ;;  %s671_s14 = sphi %s700_s14, %s13_s14   ;;  %s667_s13 = sphi %s698_s13, %s795_s13   ;;  %s663_s12 = sphi %s696_s12, %s794_s12  }
   0x3   : > { %p27_p1 = scmp.ge.s32.totalorder %s25_s15, 2  ;;  %p157_p2 = scmp.lt.s32.totalorder %s671_s14, 3 }
   0x5   : > { %s797_s15 = smov (%p27_p1, %s25_s15), 0  ;;  %p158_p3 = pnand %p544_p0, %p157_p2 }
   0x6   : > { %v630_v0 = vld [vmem:[%s791_s1 + $0x40] sm:$0xff] (!%p158_p3)   ;;  %v673_v2 = vmov (!%p158_p3), 0.0   ;;  %v632_v3 = vld [vmem:[%s791_s1 + $0x48] sm:$0xff] (!%p158_p3)   ;;  %p187_p4 = scmp.lt.s32.totalorder (!%p158_p3), %s663_s12, 1  ;;  %v634_v5 = vld [vmem:[%s791_s1 + $0x50] sm:$0xff] (!%p158_p3)   ;;  %vm674_vm0 = vmmov (!%p158_p3), 0   ;;  %v253_v11 = vlaneseq (!%p158_p3) }
   0x7   : > { %161 = sbr.rel (%p158_p3) target bundleno = 259 (0x103), region = 32  ;;  %v631_v1 = vld [vmem:[%s791_s1] sm:$0xff] (!%p158_p3)   ;;  %594 = vmatprep.subr.bf16.mxu1 (!%p158_p3), %v673_v2  ;;  %569 = vmatprep.subr.bf16.mxu0 (!%p158_p3), %v630_v0  ;;  %v633_v4 = vld [vmem:[%s791_s1 + $0x8] sm:$0xff] (!%p158_p3)   ;;  %v635_v6 = vld [vmem:[%s791_s1 + $0x10] sm:$0xff] (!%p158_p3)   ;;  %v675_v14 = vmov (!%p158_p3), 1983009808  }
   0x8   : > { %570 = vmatpush3.bf16.msra.mxu0 (!%p158_p3), %v631_v1  ;;  %598 = vmatprep.mubr.msk.bf16.mxu1 (!%p158_p3), %vm674_vm0, %v673_v2  ;;  %v636_v7 = vld [vmem:[%s791_s1 + $0x58] sm:$0xff] (!%p158_p3)   ;;  %v638_v9 = vld [vmem:[%s791_s1 + $0x60] sm:$0xff] (!%p158_p3)   ;;  %v640_v13 = vld [vmem:[%s791_s1 + $0x68] sm:$0xff] (!%p158_p3)   ;;  %v251_v15 = vunpack.c.l.s4 (!%p158_p3), %v675_v14  ;;  %v254_v16 = vshrl.u32 (!%p158_p3), %v253_v11, 7  ;;  %vm375_vm1 = vcmask (!%p158_p3), 261120  }
   0x9   : > { %571 = vmatprep.subr.bf16.mxu0 (!%p158_p3), %v632_v3  ;;  %v637_v8 = vld [vmem:[%s791_s1 + $0x18] sm:$0xff] (!%p158_p3)   ;;  %v644_v10 = vld [vmem:[%s791_s1 + $0x80] sm:$0xff] (!%p158_p3)   ;;  %v648_v17 = vld [vmem:[%s791_s1 + $0x88] sm:$0xff] (!%p158_p3)  }
   0xa   : > { %v639_v12 = vld [vmem:[%s791_s1 + $0x20] sm:$0xff] (!%p158_p3)   ;;  %595 = vmatpush3.bf16.msra.mxu1 (!%p158_p3), %v644_v10  ;;  %v641_v18 = vld [vmem:[%s791_s1 + $0x28] sm:$0xff] (!%p158_p3)   ;;  %v642_v20 = vld [vmem:[%s791_s1 + $0x70] sm:$0xff] (!%p158_p3)   ;;  %v252_v22 = vunpack.c.0.s8 (!%p158_p3), %v251_v15 }
   0xb   : > { %596 = vmatprep.subr.bf16.mxu1 (!%p158_p3), %v673_v2  ;;  %v643_v24 = vld [vmem:[%s791_s1 + $0x30] sm:$0xff] (!%p158_p3)   ;;  %v645_v25 = vld [vmem:[%s791_s1 + $0x78] sm:$0xff] (!%p158_p3)   ;;  %v547_v36 = vld [vmem:[%s792_s2] ss:$0 sm:$0xff] (!%p158_p3) }
   0xc   : > { %572 = vmatpush3.bf16.msra.mxu0 (!%p158_p3), %v633_v4  ;;  %v255_v23 = vsub.s32 (!%p158_p3), %v252_v22, %v254_v16  ;;  %v646_v29 = vld [vmem:[%s791_s1 + $0x38] sm:$0xff] (!%p158_p3)  }
   0xd   : > { %573 = vmatprep.subr.bf16.mxu0 (!%p158_p3), %v634_v5 }
   0xe   : > { %s799_s12 = smov (!%p187_p4, %s663_s12), 1  ;;  %597 = vmatpush3.bf16.msra.mxu1 %v648_v17 }
   0xf   : > { %s602_s7 = smul.u32 6, %s799_s12  ;;  %s546_s8 = sshll.u32 %s799_s12, 2 }
  0x10   : > { %574 = vmatpush3.bf16.msra.mxu0 %v635_v6  ;;  %s202_s11 = scalar_lea.vmem %s793_s3, %s546_s8 }
  0x11   : > { %575 = vmatprep.subr.bf16.mxu0 %v636_v7  ;;  %s195_s20 = scalar_lea.vmem %s790_s0, %s602_s7 }
  0x12   : > { %v204_v19 = vld [vmem:[%s195_s20] sm:$0x3f] }
  0x13   : > { %v249_v21 = vcombine.high %v204_v19, %v204_v19  ;;  %v256_v26 = vrot.slane %v204_v19, %v255_v23 }
  0x14   : > { %576 = vmatpush3.bf16.msra.mxu0 %v637_v8 }
  0x15   : > { %577 = vmatprep.subr.bf16.mxu0 %v638_v9  ;;  %v263_v27 = vrot.slane %v249_v21, %v255_v23  ;;  %v264_v28 = vcombine.high %v256_v26, %v256_v26 }
  0x17   : > { %599 = vmatmul.mubr.msk.bf16.vlgmr.msra.gmra.mrb[0].mxu1 %vm375_vm1, %v263_v27  ;;  %411 = vmatprep.mubr.bf16.mxu0 %v264_v28 }
  0x18   : > { %578 = vmatpush3.bf16.msra.mxu0 %v639_v12 }
  0x19   : > { %579 = vmatprep.subr.bf16.mxu0 %v640_v13 }
  0x1c   : > { %580 = vmatpush3.bf16.msra.mxu0 %v641_v18 }
  0x1d   : > { %581 = vmatprep.subr.bf16.mxu0 %v642_v20 }
  0x20   : > { %582 = vmatpush3.bf16.msra.mxu0 %v643_v24 }
  0x21   : > { %583 = vmatprep.subr.bf16.mxu0 %v645_v25 }
  0x24   : > { %584 = vmatpush3.bf16.msra.mxu0 %v646_v29 }
  0x27   : > { %412 = vmatmul.mubr.bf16.vlgmr.msra.gmra.mrb[0].mxu0 %v256_v26 }
  0xea   : > { %v453_v30 = vpop.f32.mrb[0].mxu1 }
  0xeb   : > { %v600_v31 = vpop.f32.mrb[1].mxu1 }
  0xec   : > { %v456_v32 = vpop.f32.mrb[2].mxu1 }
  0xed   : > { %v601_v33 = vpop.f32.mrb[3].mxu1 }
  0xfa   : > { %v585_v34 = vpop.f32.mrb[0].mxu0 }
  0xfb   : > { %v586_v35 = vpop.f32.mrb[1].mxu0 }
  0xfc   : > { %v587_v37 = vadd.f32 %v586_v35, %v585_v34  ;;  %v588_v38 = vpop.f32.mrb[2].mxu0 }
  0xfd   : > { %v589_v39 = vpop.f32.mrb[3].mxu0 }
  0xfe   : > { %v414_v40 = vadd.f32 %v587_v37, %v547_v36 }
 0x100   : > { %v454_v41 = vadd.f32 %v453_v30, %v414_v40 }
 0x102   : > { %459 = vst [vmem:[%s202_s11] sm:$0xf] %v454_v41 }
 0x103 PF: > { %s13_s14 = sadd.s32 1, %s671_s14   ;;  %s794_s12 = smov %s667_s13 }
 0x104   : > { %p10_p5 = scmp.ge.s32.totalorder %s13_s14, 4   ;;  %s795_s13 = smov %s797_s15 }
 0x106   :  { %12 = sbr.rel (!%p10_p5) target bundleno = 2 (0x2), region = 62 }

// kernel: generator_forward.57
= control target key start
LH: loop header
LB: loop body
LE: loop exit
PB: predicated region body
PF: predicated region fallthrough
CT: control target
= control target key end

     0   :  { %s1476_s12 = smov 0   ;;  %s1478_s13 = smov 0   ;;  %s1747_s0 = inlined_call_operand.vmem [shape: bf16[2,4,1152], index: 0, kind: input, shape index: {}]   ;;  %s1748_s1 = inlined_call_operand.vmem [shape: bf16[1152,128], index: 1, kind: input, shape index: {}]   ;;  %s1749_s2 = inlined_call_operand.vmem [shape: f32[1,128], index: 2, kind: input, shape index: {}]   ;;  %s1750_s3 = inlined_call_operand.vmem [shape: f32[2,4,128], index: 3, kind: output, shape index: {}]  }
   0x1   :  { %s1480_s14 = smov 0  }
   0x2 LB: > { %s25_s15 = sadd.s32 1, %s1447_s13  ;;  %p1131_p0 = scmp.ge.s32.totalorder %s1451_s14, 1  ;;  %s1451_s14 = sphi %s1480_s14, %s13_s14   ;;  %s1447_s13 = sphi %s1478_s13, %s1752_s13   ;;  %s1443_s12 = sphi %s1476_s12, %s1751_s12  }
   0x3   : > { %p27_p1 = scmp.ge.s32.totalorder %s25_s15, 2  ;;  %p157_p2 = scmp.lt.s32.totalorder %s1451_s14, 3 }
   0x5   : > { %s1754_s15 = smov (%p27_p1, %s25_s15), 0  ;;  %p158_p3 = pnand %p1131_p0, %p157_p2 }
   0x6   : > { %v1355_v0 = vld [vmem:[%s1748_s1 + $0x40] sm:$0xff] (!%p158_p3)   ;;  %v1359_v4 = vld [vmem:[%s1748_s1 + $0x48] sm:$0xff] (!%p158_p3)   ;;  %v1363_v8 = vld [vmem:[%s1748_s1 + $0x50] sm:$0xff] (!%p158_p3)   ;;  %p187_p4 = scmp.lt.s32.totalorder (!%p158_p3), %s1443_s12, 1  ;;  %v365_v27 = vlaneseq (!%p158_p3)  ;;  %v1453_v35 = vmov (!%p158_p3), 1983009808  }
   0x7   : > { %161 = sbr.rel (%p158_p3) target bundleno = 321 (0x141), region = 32  ;;  %v1356_v1 = vld [vmem:[%s1748_s1] sm:$0xff] (!%p158_p3)   ;;  %1210 = vmatprep.subr.bf16.mxu0 (!%p158_p3), %v1355_v0  ;;  %v1360_v5 = vld [vmem:[%s1748_s1 + $0x8] sm:$0xff] (!%p158_p3)   ;;  %v1364_v9 = vld [vmem:[%s1748_s1 + $0x10] sm:$0xff] (!%p158_p3)   ;;  %v363_v36 = vunpack.c.l.s4 (!%p158_p3), %v1453_v35  ;;  %vm1455_vm0 = vmmov (!%p158_p3), 0  }
   0x8   : > { %v1357_v2 = vld [vmem:[%s1748_s1 + $0xc0] sm:$0xff] (!%p158_p3)   ;;  %1211 = vmatpush3.bf16.msra.mxu0 (!%p158_p3), %v1356_v1  ;;  %v1361_v6 = vld [vmem:[%s1748_s1 + $0xc8] sm:$0xff] (!%p158_p3)   ;;  %v1365_v10 = vld [vmem:[%s1748_s1 + $0xd0] sm:$0xff] (!%p158_p3)   ;;  %v366_v32 = vshrl.u32 (!%p158_p3), %v365_v27, 7 }
   0x9   : > { %v1358_v3 = vld [vmem:[%s1748_s1 + $0x80] sm:$0xff] (!%p158_p3)   ;;  %1232 = vmatprep.subr.bf16.mxu1 (!%p158_p3), %v1357_v2  ;;  %1212 = vmatprep.subr.bf16.mxu0 (!%p158_p3), %v1359_v4  ;;  %v1362_v7 = vld [vmem:[%s1748_s1 + $0x88] sm:$0xff] (!%p158_p3)   ;;  %v1366_v11 = vld [vmem:[%s1748_s1 + $0x90] sm:$0xff] (!%p158_p3)   ;;  %v364_v38 = vunpack.c.0.s8 (!%p158_p3), %v363_v36 }
   0xa   : > { %1233 = vmatpush3.bf16.msra.mxu1 (!%p158_p3), %v1358_v3  ;;  %v1367_v12 = vld [vmem:[%s1748_s1 + $0x58] sm:$0xff] (!%p158_p3)   ;;  %v1371_v16 = vld [vmem:[%s1748_s1 + $0x60] sm:$0xff] (!%p158_p3)   ;;  %v1375_v20 = vld [vmem:[%s1748_s1 + $0x68] sm:$0xff] (!%p158_p3)  }
   0xb   : > { %1234 = vmatprep.subr.bf16.mxu1 (!%p158_p3), %v1361_v6  ;;  %v1368_v13 = vld [vmem:[%s1748_s1 + $0x18] sm:$0xff] (!%p158_p3)   ;;  %v1372_v17 = vld [vmem:[%s1748_s1 + $0x20] sm:$0xff] (!%p158_p3)   ;;  %v1376_v21 = vld [vmem:[%s1748_s1 + $0x28] sm:$0xff] (!%p158_p3)   ;;  %v1609_v41 = vsub.s32 (!%p158_p3), %v364_v38, %v366_v32 }
   0xc   : > { %1213 = vmatpush3.bf16.msra.mxu0 (!%p158_p3), %v1360_v5  ;;  %v1369_v14 = vld [vmem:[%s1748_s1 + $0xd8] sm:$0xff] (!%p158_p3)   ;;  %v1373_v18 = vld [vmem:[%s1748_s1 + $0xe0] sm:$0xff] (!%p158_p3)   ;;  %v1377_v22 = vld [vmem:[%s1748_s1 + $0xe8] sm:$0xff] (!%p158_p3)  }
   0xd   : > { %1214 = vmatprep.subr.bf16.mxu0 (!%p158_p3), %v1363_v8  ;;  %v1370_v15 = vld [vmem:[%s1748_s1 + $0x98] sm:$0xff] (!%p158_p3)   ;;  %v1374_v19 = vld [vmem:[%s1748_s1 + $0xa0] sm:$0xff] (!%p158_p3)   ;;  %v1378_v23 = vld [vmem:[%s1748_s1 + $0xa8] sm:$0xff] (!%p158_p3)  }
   0xe   : > { %1235 = vmatpush3.bf16.msra.mxu1 %v1362_v7  ;;  %s1756_s12 = smov (!%p187_p4, %s1443_s12), 1  ;;  %v1379_v24 = vld [vmem:[%s1748_s1 + $0x70] sm:$0xff]   ;;  %v1383_v29 = vld [vmem:[%s1748_s1 + $0x78] sm:$0xff]   ;;  %v1387_v37 = vld [vmem:[%s1748_s1 + $0x140] sm:$0xff]  }
   0xf   : > { %1236 = vmatprep.subr.bf16.mxu1 %v1365_v10  ;;  %s1327_s20 = smul.u32 18, %s1756_s12  ;;  %v1380_v25 = vld [vmem:[%s1748_s1 + $0x30] sm:$0xff]   ;;  %v1384_v30 = vld [vmem:[%s1748_s1 + $0x38] sm:$0xff]   ;;  %v1390_v40 = vld [vmem:[%s1748_s1 + $0x1c0] sm:$0xff]  }
  0x10   : > { %1215 = vmatpush3.bf16.msra.mxu0 %v1364_v9  ;;  %v1381_v26 = vld [vmem:[%s1748_s1 + $0xf0] sm:$0xff]   ;;  %v1385_v31 = vld [vmem:[%s1748_s1 + $0xf8] sm:$0xff]   ;;  %v1389_v44 = vld [vmem:[%s1748_s1 + $0x100] sm:$0xff]  }
  0x11   : > { %1216 = vmatprep.subr.bf16.mxu0 %v1367_v12  ;;  %v1382_v28 = vld [vmem:[%s1748_s1 + $0xb0] sm:$0xff]   ;;  %s1591_s4 = scalar_lea.vmem %s1747_s0, %s1327_s20  ;;  %v1386_v34 = vld [vmem:[%s1748_s1 + $0xb8] sm:$0xff]   ;;  %v1391_v45 = vld [vmem:[%s1748_s1 + $0x180] sm:$0xff]  }
  0x12   : > { %1237 = vmatpush3.bf16.msra.mxu1 %v1366_v11  ;;  %v204_v33 = vld [vmem:[%s1591_s4] sm:$0xff]  ;;  %v1392_v48 = vld [vmem:[%s1748_s1 + $0x148] sm:$0xff]   ;;  %v1396_v52 = vld [vmem:[%s1748_s1 + $0x150] sm:$0xff]  }
  0x13   : > { %1238 = vmatprep.subr.bf16.mxu1 %v1369_v14  ;;  %v361_v39 = vcombine.high %v204_v33, %v204_v33  ;;  %v368_v42 = vrot.slane %v204_v33, %v1609_v41  ;;  %v1394_v49 = vld [vmem:[%s1748_s1 + $0x1c8] sm:$0xff]   ;;  %v1398_v53 = vld [vmem:[%s1748_s1 + $0x1d0] sm:$0xff]   ;;  %v1400_v56 = vld [vmem:[%s1748_s1 + $0x158] sm:$0xff]  }
  0x14   : > { %1217 = vmatpush3.bf16.msra.mxu0 %v1368_v13  ;;  %v1393_v50 = vld [vmem:[%s1748_s1 + $0x108] sm:$0xff]   ;;  %v1397_v54 = vld [vmem:[%s1748_s1 + $0x110] sm:$0xff]   ;;  %v1402_v57 = vld [vmem:[%s1748_s1 + $0x1d8] sm:$0xff]  }
  0x15   : > { %1218 = vmatprep.subr.bf16.mxu0 %v1371_v16  ;;  %v375_v43 = vrot.slane %v361_v39, %v1609_v41  ;;  %v376_v46 = vcombine.high %v368_v42, %v368_v42  ;;  %v1395_v51 = vld [vmem:[%s1748_s1 + $0x188] sm:$0xff]   ;;  %v1399_v55 = vld [vmem:[%s1748_s1 + $0x190] sm:$0xff]   ;;  %v1401_v58 = vld [vmem:[%s1748_s1 + $0x118] sm:$0xff]  }
  0x16   : > { %1239 = vmatpush3.bf16.msra.mxu1 %v1370_v15  ;;  %v1403_v59 = vld [vmem:[%s1748_s1 + $0x198] sm:$0xff]   ;;  %v1404_v60 = vld [vmem:[%s1748_s1 + $0x160] sm:$0xff]   ;;  %v1408_v0 = vld [vmem:[%s1748_s1 + $0x168] sm:$0xff]  }
  0x17   : > { %1240 = vmatprep.subr.bf16.mxu1 %v1373_v18  ;;  %v377_v47 = vcombine.high %v375_v43, %v375_v43  ;;  %875 = vmatprep.mubr.bf16.mxu0 %v376_v46  ;;  %v1406_v61 = vld [vmem:[%s1748_s1 + $0x1e0] sm:$0xff]   ;;  %v1410_v1 = vld [vmem:[%s1748_s1 + $0x1e8] sm:$0xff]   ;;  %v1412_v4 = vld [vmem:[%s1748_s1 + $0x170] sm:$0xff]  }
  0x18   : > { %1219 = vmatpush3.bf16.msra.mxu0 %v1372_v17  ;;  %v1405_v62 = vld [vmem:[%s1748_s1 + $0x120] sm:$0xff]   ;;  %v1409_v2 = vld [vmem:[%s1748_s1 + $0x128] sm:$0xff]   ;;  %v1414_v5 = vld [vmem:[%s1748_s1 + $0x1f0] sm:$0xff]  }
  0x19   : > { %1220 = vmatprep.subr.bf16.mxu0 %v1375_v20  ;;  %915 = vmatprep.mubr.bf16.mxu1 %v377_v47  ;;  %v1407_v63 = vld [vmem:[%s1748_s1 + $0x1a0] sm:$0xff]   ;;  %v1411_v3 = vld [vmem:[%s1748_s1 + $0x1a8] sm:$0xff]   ;;  %v1413_v6 = vld [vmem:[%s1748_s1 + $0x130] sm:$0xff]  }
  0x1a   : > { %1241 = vmatpush3.bf16.msra.mxu1 %v1374_v19  ;;  %v1415_v7 = vld [vmem:[%s1748_s1 + $0x1b0] sm:$0xff]   ;;  %v205_v8 = vld [vmem:[%s1591_s4 + $0x8] sm:$0xff]  ;;  %v1416_v9 = vld [vmem:[%s1748_s1 + $0x178] sm:$0xff]   ;;  %v1454_v19 = vmov 0.0  }
  0x1b   : > { %1242 = vmatprep.subr.bf16.mxu1 %v1377_v22  ;;  %v385_v10 = vrot.slane %v205_v8, %v1609_v41  ;;  %v378_v11 = vcombine.high %v205_v8, %v205_v8  ;;  %v1418_v12 = vld [vmem:[%s1748_s1 + $0x1f8] sm:$0xff]   ;;  %v1421_v18 = vld [vmem:[%s1748_s1 + $0x200] sm:$0xff]   ;;  %v1422_v20 = vld [vmem:[%s1748_s1 + $0x208] sm:$0xff]  }
  0x1c   : > { %1221 = vmatpush3.bf16.msra.mxu0 %v1376_v21  ;;  %v1417_v15 = vld [vmem:[%s1748_s1 + $0x138] sm:$0xff]   ;;  %v1423_v21 = vld [vmem:[%s1748_s1 + $0x210] sm:$0xff]  }
  0x1d   : > { %1222 = vmatprep.subr.bf16.mxu0 %v1379_v24  ;;  %v393_v13 = vcombine.high %v385_v10, %v385_v10  ;;  %v392_v14 = vrot.slane %v378_v11, %v1609_v41  ;;  %v1419_v16 = vld [vmem:[%s1748_s1 + $0x1b8] sm:$0xff]   ;;  %v1426_v24 = vld [vmem:[%s1748_s1 + $0x228] sm:$0xff]   ;;  %v1135_v27 = vld.sshfl [vmem:[%s1591_s4 + $0x10] sm:$0x3 pattern:$0x76325410] }
  0x1e   : > { %1243 = vmatpush3.bf16.msra.mxu1 %v1378_v23  ;;  %v1424_v22 = vld [vmem:[%s1748_s1 + $0x218] sm:$0xff]   ;;  %v1425_v23 = vld [vmem:[%s1748_s1 + $0x220] sm:$0xff]   ;;  %s1133_s4 = sshll.u32 %s1756_s12, 2 }
  0x1f   : > { %1244 = vmatprep.subr.bf16.mxu1 %v1381_v26  ;;  %v394_v17 = vcombine.high %v392_v14, %v392_v14  ;;  %v1428_v26 = vld [vmem:[%s1748_s1 + $0x238] sm:$0xff]   ;;  %s202_s7 = scalar_lea.vmem %s1750_s3, %s1133_s4 }
  0x20   : > { %1223 = vmatpush3.bf16.msra.mxu0 %v1380_v25  ;;  %v1427_v25 = vld [vmem:[%s1748_s1 + $0x230] sm:$0xff]  }
  0x21   : > { %1224 = vmatprep.subr.bf16.mxu0 %v1383_v29 }
  0x22   : > { %1245 = vmatpush3.bf16.msra.mxu1 %v1382_v28 }
  0x23   : > { %1246 = vmatprep.subr.bf16.mxu1 %v1385_v31 }
  0x24   : > { %1225 = vmatpush3.bf16.msra.mxu0 %v1384_v30  ;;  %v1134_v30 = vld [vmem:[%s1749_s2] ss:$0 sm:$0xff] }
  0x25   : > { %1254 = vmatprep.subr.bf16.mxu0 %v1387_v37 }
  0x26   : > { %1247 = vmatpush3.bf16.msra.mxu1 %v1386_v34 }
  0x27   : > { %1276 = vmatprep.subr.bf16.mxu1 %v1390_v40  ;;  %876 = vmatmul.mubr.bf16.vlgmr.msra.gmra.mrb[0].mxu0 %v368_v42 }
  0x28   : > { %1255 = vmatpush3.bf16.msra.mxu0 %v1389_v44  ;;  %955 = vmatprep.mubr.bf16.mxu0 %v393_v13 }
  0x29   : > { %916 = vmatmul.mubr.bf16.vlgmr.msra.gmra.mrb[0].mxu1 %v375_v43  ;;  %1256 = vmatprep.subr.bf16.mxu0 %v1392_v48 }
  0x2a   : > { %1277 = vmatpush3.bf16.msra.mxu1 %v1391_v45  ;;  %995 = vmatprep.mubr.bf16.mxu1 %v394_v17 }
  0x2b   : > { %1278 = vmatprep.subr.bf16.mxu1 %v1394_v49 }
  0x2c   : > { %1257 = vmatpush3.bf16.msra.mxu0 %v1393_v50 }
  0x2d   : > { %1258 = vmatprep.subr.bf16.mxu0 %v1396_v52 }
  0x2e   : > { %1279 = vmatpush3.bf16.msra.mxu1 %v1395_v51 }
  0x2f   : > { %1280 = vmatprep.subr.bf16.mxu1 %v1398_v53 }
  0x30   : > { %1259 = vmatpush3.bf16.msra.mxu0 %v1397_v54 }
  0x31   : > { %1260 = vmatprep.subr.bf16.mxu0 %v1400_v56 }
  0x32   : > { %1281 = vmatpush3.bf16.msra.mxu1 %v1399_v55 }
  0x33   : > { %1282 = vmatprep.subr.bf16.mxu1 %v1402_v57 }
  0x34   : > { %1261 = vmatpush3.bf16.msra.mxu0 %v1401_v58 }
  0x35   : > { %1262 = vmatprep.subr.bf16.mxu0 %v1404_v60 }
  0x36   : > { %1283 = vmatpush3.bf16.msra.mxu1 %v1403_v59 }
  0x37   : > { %1284 = vmatprep.subr.bf16.mxu1 %v1406_v61 }
  0x38   : > { %1263 = vmatpush3.bf16.msra.mxu0 %v1405_v62 }
  0x39   : > { %1264 = vmatprep.subr.bf16.mxu0 %v1408_v0 }
  0x3a   : > { %1285 = vmatpush3.bf16.msra.mxu1 %v1407_v63 }
  0x3b   : > { %1286 = vmatprep.subr.bf16.mxu1 %v1410_v1 }
  0x3c   : > { %1265 = vmatpush3.bf16.msra.mxu0 %v1409_v2 }
  0x3d   : > { %1266 = vmatprep.subr.bf16.mxu0 %v1412_v4 }
  0x3e   : > { %1287 = vmatpush3.bf16.msra.mxu1 %v1411_v3 }
  0x3f   : > { %1288 = vmatprep.subr.bf16.mxu1 %v1414_v5 }
  0x40   : > { %1267 = vmatpush3.bf16.msra.mxu0 %v1413_v6 }
  0x41   : > { %1268 = vmatprep.subr.bf16.mxu0 %v1416_v9 }
  0x42   : > { %1289 = vmatpush3.bf16.msra.mxu1 %v1415_v7 }
  0x43   : > { %1290 = vmatprep.subr.bf16.mxu1 %v1418_v12 }
  0x44   : > { %1269 = vmatpush3.bf16.msra.mxu0 %v1417_v15 }
  0x45   : > { %1307 = vmatprep.subr.bf16.mxu0 %v1454_v19 }
  0x46   : > { %1291 = vmatpush3.bf16.msra.mxu1 %v1419_v16 }
  0x47   : > { %956 = vmatmul.mubr.bf16.vlgmr.msra.gmra.mrb[4].mxu0 %v385_v10 }
  0x48   : > { %1308 = vmatpush3.bf16.msra.mxu0 %v1421_v18  ;;  %1323 = vmatprep.mubr.msk.bf16.mxu0 %vm1455_vm0, %v1454_v19 }
  0x49   : > { %996 = vmatmul.mubr.bf16.vlgmr.msra.gmra.mrb[4].mxu1 %v392_v14  ;;  %1309 = vmatprep.subr.bf16.mxu0 %v1454_v19 }
  0x4c   : > { %1310 = vmatpush3.bf16.msra.mxu0 %v1422_v20 }
  0x4d   : > { %1311 = vmatprep.subr.bf16.mxu0 %v1454_v19 }
  0x50   : > { %1312 = vmatpush3.bf16.msra.mxu0 %v1423_v21 }
  0x51   : > { %1313 = vmatprep.subr.bf16.mxu0 %v1454_v19 }
  0x54   : > { %1314 = vmatpush3.bf16.msra.mxu0 %v1424_v22 }
  0x55   : > { %1315 = vmatprep.subr.bf16.mxu0 %v1454_v19 }
  0x58   : > { %1316 = vmatpush3.bf16.msra.mxu0 %v1425_v23 }
  0x59   : > { %1317 = vmatprep.subr.bf16.mxu0 %v1454_v19 }
  0x5c   : > { %1318 = vmatpush3.bf16.msra.mxu0 %v1426_v24 }
  0x5d   : > { %1319 = vmatprep.subr.bf16.mxu0 %v1454_v19 }
  0x60   : > { %1320 = vmatpush3.bf16.msra.mxu0 %v1427_v25 }
  0x61   : > { %1321 = vmatprep.subr.bf16.mxu0 %v1454_v19 }
  0x64   : > { %1322 = vmatpush3.bf16.msra.mxu0 %v1428_v26 }
  0x67   : > { %1324 = vmatmul.mubr.bf16.vlgmr.msra.gmra.mrb[8].mxu0 %v1135_v27 }
  0xfa   : > { %v1226_v28 = vpop.f32.mrb[0].mxu0 }
  0xfb   : > { %v1227_v31 = vpop.f32.mrb[1].mxu0 }
  0xfc   : > { %v1248_v29 = vpop.f32.mrb[0].mxu1  ;;  %v1228_v33 = vadd.f32 %v1227_v31, %v1226_v28  ;;  %v1229_v34 = vpop.f32.mrb[2].mxu0 }
  0xfd   : > { %v1249_v32 = vpop.f32.mrb[1].mxu1  ;;  %v1230_v37 = vpop.f32.mrb[3].mxu0 }
  0xfe   : > { %v1250_v35 = vadd.f32 %v1249_v32, %v1248_v29  ;;  %v1251_v36 = vpop.f32.mrb[2].mxu1  ;;  %v878_v39 = vadd.f32 %v1228_v33, %v1134_v30 }
  0xff   : > { %v1252_v38 = vpop.f32.mrb[3].mxu1 }
 0x100   : > { %v918_v40 = vadd.f32 %v1250_v35, %v878_v39 }
 0x11a   : > { %v1270_v41 = vpop.f32.mrb[4].mxu0 }
 0x11b   : > { %v1271_v43 = vpop.f32.mrb[5].mxu0 }
 0x11c   : > { %v1292_v42 = vpop.f32.mrb[4].mxu1  ;;  %v1272_v45 = vadd.f32 %v1271_v43, %v1270_v41  ;;  %v1273_v46 = vpop.f32.mrb[6].mxu0 }
 0x11d   : > { %v1293_v44 = vpop.f32.mrb[5].mxu1  ;;  %v1274_v49 = vpop.f32.mrb[7].mxu0 }
 0x11e   : > { %v1294_v47 = vadd.f32 %v1293_v44, %v1292_v42  ;;  %v1295_v48 = vpop.f32.mrb[6].mxu1  ;;  %v958_v51 = vadd.f32 %v1272_v45, %v918_v40 }
 0x11f   : > { %v1296_v50 = vpop.f32.mrb[7].mxu1 }
 0x120   : > { %v998_v52 = vadd.f32 %v1294_v47, %v958_v51 }
 0x13a   : > { %v1037_v53 = vpop.f32.mrb[8].mxu0 }
 0x13b   : > { %v1038_v54 = vadd.f32 %v1037_v53, %v998_v52  ;;  %v1325_v55 = vpop.f32.mrb[9].mxu0 }
 0x13c   : > { %v1040_v56 = vpop.f32.mrb[10].mxu0 }
 0x13d   : > { %vm1043_vm1 = vcmp.ge.f32.partialorder %v1038_v54, 0.0  ;;  %v1044_v57 = vmul.f32 0.2, %v1038_v54  ;;  %v1326_v58 = vpop.f32.mrb[11].mxu0 }
 0x13f   : > { %v1045_v59 = vsel %vm1043_vm1, %v1038_v54, %v1044_v57 }
 0x140   : > { %1046 = vst [vmem:[%s202_s7] sm:$0xf] %v1045_v59 }
 0x141 PF: > { %s13_s14 = sadd.s32 1, %s1451_s14   ;;  %s1751_s12 = smov %s1447_s13 }
 0x142   : > { %p10_p5 = scmp.ge.s32.totalorder %s13_s14, 4   ;;  %s1752_s13 = smov %s1754_s15 }
 0x144   :  { %12 = sbr.rel (!%p10_p5) target bundleno = 2 (0x2), region = 62 }

// kernel: generator_forward.56
= control target key start
LH: loop header
LB: loop body
LE: loop exit
PB: predicated region body
PF: predicated region fallthrough
CT: control target
= control target key end

     0   :  { %s1660_s18 = smov 0   ;;  %s1662_s19 = smov 0   ;;  %s1949_s0 = inlined_call_operand.vmem [shape: bf16[2,4,576], index: 0, kind: input, shape index: {}]   ;;  %s1950_s1 = inlined_call_operand.vmem [shape: bf16[2,4,576], index: 1, kind: input, shape index: {}]   ;;  %s1951_s2 = inlined_call_operand.vmem [shape: bf16[576,128], index: 2, kind: input, shape index: {}]   ;;  %s1952_s3 = inlined_call_operand.vmem [shape: bf16[576,128], index: 3, kind: input, shape index: {}]   ;;  %s1953_s4 = inlined_call_operand.vmem [shape: f32[1,128], index: 4, kind: input, shape index: {}]   ;;  %s1954_s5 = inlined_call_operand.vmem [shape: f32[2,4,128], index: 5, kind: output, shape index: {}]  }
   0x1   :  { %s1664_s20 = smov 0  }
   0x2 LB: > { %s27_s21 = sadd.s32 1, %s1621_s19  ;;  %p1296_p0 = scmp.ge.s32.totalorder %s1625_s20, 1  ;;  %s1625_s20 = sphi %s1664_s20, %s15_s20   ;;  %s1621_s19 = sphi %s1662_s19, %s1956_s19   ;;  %s1617_s18 = sphi %s1660_s18, %s1955_s18  }
   0x3   : > { %p29_p1 = scmp.ge.s32.totalorder %s27_s21, 2  ;;  %p223_p2 = scmp.lt.s32.totalorder %s1625_s20, 3 }
   0x5   : > { %s1958_s21 = smov (%p29_p1, %s27_s21), 0  ;;  %p224_p3 = pnand %p1296_p0, %p223_p2 }
   0x6   : > { %v1529_v0 = vld [vmem:[%s1952_s3 + $0x40] sm:$0xff] (!%p224_p3)   ;;  %v1533_v4 = vld [vmem:[%s1952_s3 + $0x48] sm:$0xff] (!%p224_p3)   ;;  %v1537_v8 = vld [vmem:[%s1952_s3 + $0x50] sm:$0xff] (!%p224_p3)   ;;  %p266_p4 = scmp.lt.s32.totalorder (!%p224_p3), %s1617_s18, 1  ;;  %v446_v31 = vlaneseq (!%p224_p3)  ;;  %v1627_v35 = vmov (!%p224_p3), 0.0   ;;  %vm1629_vm0 = vmmov (!%p224_p3), 0  }
   0x7   : > { %227 = sbr.rel (%p224_p3) target bundleno = 313 (0x139), region = 40  ;;  %v1530_v1 = vld [vmem:[%s1952_s3 + $0xc0] sm:$0xff] (!%p224_p3)   ;;  %1379 = vmatprep.subr.bf16.mxu0 (!%p224_p3), %v1529_v0  ;;  %v1534_v5 = vld [vmem:[%s1952_s3 + $0xc8] sm:$0xff] (!%p224_p3)   ;;  %v1538_v9 = vld [vmem:[%s1952_s3 + $0xd0] sm:$0xff] (!%p224_p3)   ;;  %v1628_v36 = vmov (!%p224_p3), 1983009808  }
   0x8   : > { %v1531_v2 = vld [vmem:[%s1952_s3] sm:$0xff] (!%p224_p3)   ;;  %1401 = vmatprep.subr.bf16.mxu1 (!%p224_p3), %v1530_v1  ;;  %v1535_v6 = vld [vmem:[%s1952_s3 + $0x8] sm:$0xff] (!%p224_p3)   ;;  %v1539_v10 = vld [vmem:[%s1952_s3 + $0x10] sm:$0xff] (!%p224_p3)   ;;  %v444_v37 = vunpack.c.l.s4 (!%p224_p3), %v1628_v36  ;;  %v447_v38 = vshrl.u32 (!%p224_p3), %v446_v31, 7  ;;  %vm686_vm1 = vcmask (!%p224_p3), 523264  }
   0x9   : > { %v1532_v3 = vld [vmem:[%s1952_s3 + $0x80] sm:$0xff] (!%p224_p3)   ;;  %1380 = vmatpush3.bf16.msra.mxu0 (!%p224_p3), %v1531_v2  ;;  %v1536_v7 = vld [vmem:[%s1952_s3 + $0x88] sm:$0xff] (!%p224_p3)   ;;  %v1540_v11 = vld [vmem:[%s1952_s3 + $0x90] sm:$0xff] (!%p224_p3)  }
   0xa   : > { %1402 = vmatpush3.bf16.msra.mxu1 (!%p224_p3), %v1532_v3  ;;  %1381 = vmatprep.subr.bf16.mxu0 (!%p224_p3), %v1533_v4  ;;  %v1541_v12 = vld [vmem:[%s1952_s3 + $0x58] sm:$0xff] (!%p224_p3)   ;;  %v1545_v16 = vld [vmem:[%s1952_s3 + $0x60] sm:$0xff] (!%p224_p3)   ;;  %v1549_v20 = vld [vmem:[%s1952_s3 + $0x68] sm:$0xff] (!%p224_p3)   ;;  %v445_v39 = vunpack.c.0.s8 (!%p224_p3), %v444_v37 }
   0xb   : > { %1403 = vmatprep.subr.bf16.mxu1 (!%p224_p3), %v1534_v5  ;;  %v1542_v13 = vld [vmem:[%s1952_s3 + $0xd8] sm:$0xff] (!%p224_p3)   ;;  %v1546_v17 = vld [vmem:[%s1952_s3 + $0xe0] sm:$0xff] (!%p224_p3)   ;;  %v1550_v21 = vld [vmem:[%s1952_s3 + $0xe8] sm:$0xff] (!%p224_p3)  }
   0xc   : > { %v1543_v14 = vld [vmem:[%s1952_s3 + $0x18] sm:$0xff] (!%p224_p3)   ;;  %v1547_v18 = vld [vmem:[%s1952_s3 + $0x20] sm:$0xff] (!%p224_p3)   ;;  %v1551_v22 = vld [vmem:[%s1952_s3 + $0x28] sm:$0xff] (!%p224_p3)   ;;  %v448_v41 = vsub.s32 (!%p224_p3), %v445_v39, %v447_v38 }
   0xd   : > { %1382 = vmatpush3.bf16.msra.mxu0 (!%p224_p3), %v1535_v6  ;;  %v1544_v15 = vld [vmem:[%s1952_s3 + $0x98] sm:$0xff] (!%p224_p3)   ;;  %v1548_v19 = vld [vmem:[%s1952_s3 + $0xa0] sm:$0xff] (!%p224_p3)   ;;  %v1552_v23 = vld [vmem:[%s1952_s3 + $0xa8] sm:$0xff] (!%p224_p3)  }
   0xe   : > { %1404 = vmatpush3.bf16.msra.mxu1 %v1536_v7  ;;  %1383 = vmatprep.subr.bf16.mxu0 %v1537_v8  ;;  %s1960_s18 = smov (!%p266_p4, %s1617_s18), 1  ;;  %v1553_v24 = vld [vmem:[%s1952_s3 + $0x70] sm:$0xff]   ;;  %v1557_v28 = vld [vmem:[%s1952_s3 + $0x78] sm:$0xff]   ;;  %v1562_v34 = vld [vmem:[%s1951_s2 + $0x40] sm:$0xff]  }
   0xf   : > { %1405 = vmatprep.subr.bf16.mxu1 %v1538_v9  ;;  %v1554_v25 = vld [vmem:[%s1952_s3 + $0xf0] sm:$0xff]   ;;  %s1501_s7 = smul.u32 10, %s1960_s18  ;;  %v1558_v29 = vld [vmem:[%s1952_s3 + $0xf8] sm:$0xff]   ;;  %v1563_v44 = vld [vmem:[%s1952_s3 + $0x100] sm:$0xff]   ;;  %s1299_s6 = sshll.u32 %s1960_s18, 2 }
  0x10   : > { %v1555_v26 = vld [vmem:[%s1952_s3 + $0x30] sm:$0xff]   ;;  %v1559_v30 = vld [vmem:[%s1952_s3 + $0x38] sm:$0xff]   ;;  %v1564_v47 = vld [vmem:[%s1951_s2] sm:$0xff]   ;;  %s290_s10 = scalar_lea.vmem %s1954_s5, %s1299_s6 }
  0x11   : > { %1384 = vmatpush3.bf16.msra.mxu0 %v1539_v10  ;;  %v1556_v27 = vld [vmem:[%s1952_s3 + $0xb0] sm:$0xff]   ;;  %s1780_s22 = scalar_lea.vmem %s1950_s1, %s1501_s7  ;;  %v1560_v32 = vld [vmem:[%s1952_s3 + $0xb8] sm:$0xff]   ;;  %v1565_v48 = vld [vmem:[%s1951_s2 + $0x48] sm:$0xff]  }
  0x12   : > { %1406 = vmatpush3.bf16.msra.mxu1 %v1540_v11  ;;  %1385 = vmatprep.subr.bf16.mxu0 %v1541_v12  ;;  %v366_v33 = vld [vmem:[%s1780_s22] sm:$0xff]  ;;  %v1566_v49 = vld [vmem:[%s1952_s3 + $0x108] sm:$0xff]   ;;  %v1568_v51 = vld [vmem:[%s1951_s2 + $0x50] sm:$0xff]  }
  0x13   : > { %1407 = vmatprep.subr.bf16.mxu1 %v1542_v13  ;;  %v442_v40 = vcombine.high %v366_v33, %v366_v33  ;;  %v449_v42 = vrot.slane %v366_v33, %v448_v41  ;;  %v1567_v50 = vld [vmem:[%s1951_s2 + $0x8] sm:$0xff]   ;;  %v1569_v52 = vld [vmem:[%s1952_s3 + $0x110] sm:$0xff]   ;;  %v1571_v54 = vld [vmem:[%s1951_s2 + $0x58] sm:$0xff]  }
  0x14   : > { %v1570_v53 = vld [vmem:[%s1951_s2 + $0x10] sm:$0xff]   ;;  %v1572_v55 = vld [vmem:[%s1952_s3 + $0x118] sm:$0xff]   ;;  %v1574_v57 = vld [vmem:[%s1951_s2 + $0x60] sm:$0xff]  }
  0x15   : > { %1386 = vmatpush3.bf16.msra.mxu0 %v1543_v14  ;;  %v456_v43 = vrot.slane %v442_v40, %v448_v41  ;;  %v457_v45 = vcombine.high %v449_v42, %v449_v42  ;;  %v1573_v56 = vld [vmem:[%s1951_s2 + $0x18] sm:$0xff]   ;;  %v1575_v58 = vld [vmem:[%s1951_s2 + $0xc0] sm:$0xff]   ;;  %v1300_v59 = vld.sshfl [vmem:[%s1780_s22 + $0x8] sm:$0x3 pattern:$0x76325410]  ;;  %s1852_s22 = scalar_lea.vmem %s1949_s0, %s1501_s7 }
  0x16   : > { %1408 = vmatpush3.bf16.msra.mxu1 %v1544_v15  ;;  %1387 = vmatprep.subr.bf16.mxu0 %v1545_v16  ;;  %v1576_v60 = vld [vmem:[%s1951_s2 + $0x20] sm:$0xff]   ;;  %v1578_v62 = vld [vmem:[%s1951_s2 + $0x68] sm:$0xff]   ;;  %v1582_v3 = vld [vmem:[%s1951_s2 + $0x70] sm:$0xff]  }
  0x17   : > { %1409 = vmatprep.subr.bf16.mxu1 %v1546_v17  ;;  %v458_v46 = vcombine.high %v456_v43, %v456_v43  ;;  %722 = vmatprep.mubr.bf16.mxu0 %v457_v45  ;;  %v1577_v61 = vld [vmem:[%s1951_s2 + $0x80] sm:$0xff]   ;;  %v1579_v63 = vld [vmem:[%s1951_s2 + $0xc8] sm:$0xff]   ;;  %v1583_v6 = vld [vmem:[%s1951_s2 + $0xd0] sm:$0xff]  }
  0x18   : > { %v1580_v0 = vld [vmem:[%s1951_s2 + $0x28] sm:$0xff]   ;;  %v292_v2 = vld [vmem:[%s1852_s22] sm:$0xff]  ;;  %v1584_v7 = vld [vmem:[%s1951_s2 + $0x30] sm:$0xff]  }
  0x19   : > { %1388 = vmatpush3.bf16.msra.mxu0 %v1547_v18  ;;  %762 = vmatprep.mubr.bf16.mxu1 %v458_v46  ;;  %v1581_v1 = vld [vmem:[%s1951_s2 + $0x88] sm:$0xff]   ;;  %v819_v4 = vrot.slane %v292_v2, %v448_v41  ;;  %v812_v5 = vcombine.high %v292_v2, %v292_v2  ;;  %v1585_v10 = vld [vmem:[%s1951_s2 + $0x90] sm:$0xff]   ;;  %v1586_v11 = vld [vmem:[%s1951_s2 + $0x78] sm:$0xff]  }
  0x1a   : > { %1410 = vmatpush3.bf16.msra.mxu1 %v1548_v19  ;;  %1389 = vmatprep.subr.bf16.mxu0 %v1549_v20  ;;  %v1587_v13 = vld [vmem:[%s1951_s2 + $0xd8] sm:$0xff]   ;;  %v1590_v16 = vld [vmem:[%s1951_s2 + $0xe0] sm:$0xff]   ;;  %v1593_v19 = vld [vmem:[%s1951_s2 + $0xe8] sm:$0xff]  }
  0x1b   : > { %1411 = vmatprep.subr.bf16.mxu1 %v1550_v21  ;;  %v827_v8 = vcombine.high %v819_v4, %v819_v4  ;;  %v826_v9 = vrot.slane %v812_v5, %v448_v41  ;;  %v1588_v14 = vld [vmem:[%s1951_s2 + $0x38] sm:$0xff]   ;;  %v1591_v17 = vld [vmem:[%s1951_s2 + $0xa0] sm:$0xff]   ;;  %v1594_v20 = vld [vmem:[%s1951_s2 + $0xa8] sm:$0xff]  }
  0x1c   : > { %v1589_v15 = vld [vmem:[%s1951_s2 + $0x98] sm:$0xff]   ;;  %v1592_v18 = vld [vmem:[%s1951_s2 + $0x100] sm:$0xff]   ;;  %v1595_v21 = vld [vmem:[%s1951_s2 + $0x108] sm:$0xff]  }
  0x1d   : > { %1390 = vmatpush3.bf16.msra.mxu0 %v1551_v22  ;;  %v828_v12 = vcombine.high %v826_v9, %v826_v9  ;;  %v1596_v22 = vld [vmem:[%s1951_s2 + $0xf0] sm:$0xff]  }
  0x1e   : > { %1412 = vmatpush3.bf16.msra.mxu1 %v1552_v23  ;;  %1391 = vmatprep.subr.bf16.mxu0 %v1553_v24  ;;  %v1597_v23 = vld [vmem:[%s1951_s2 + $0xb0] sm:$0xff]  }
  0x1f   : > { %1413 = vmatprep.subr.bf16.mxu1 %v1554_v25  ;;  %v1598_v24 = vld [vmem:[%s1951_s2 + $0x110] sm:$0xff]   ;;  %v1599_v25 = vld [vmem:[%s1951_s2 + $0xf8] sm:$0xff]  }
  0x21   : > { %1392 = vmatpush3.bf16.msra.mxu0 %v1555_v26  ;;  %v1600_v26 = vld [vmem:[%s1951_s2 + $0xb8] sm:$0xff]  }
  0x22   : > { %1414 = vmatpush3.bf16.msra.mxu1 %v1556_v27  ;;  %1393 = vmatprep.subr.bf16.mxu0 %v1557_v28  ;;  %v1602_v27 = vld [vmem:[%s1951_s2 + $0x118] sm:$0xff]   ;;  %v1338_v28 = vld.sshfl [vmem:[%s1852_s22 + $0x8] sm:$0x3 pattern:$0x76325410] }
  0x23   : > { %1415 = vmatprep.subr.bf16.mxu1 %v1558_v29 }
  0x25   : > { %1394 = vmatpush3.bf16.msra.mxu0 %v1559_v30 }
  0x26   : > { %1416 = vmatpush3.bf16.msra.mxu1 %v1560_v32  ;;  %1477 = vmatprep.subr.bf16.mxu0 %v1627_v35 }
  0x27   : > { %1428 = vmatprep.subr.bf16.mxu1 %v1562_v34 }
  0x28   : > { %723 = vmatmul.mubr.bf16.vlgmr.msra.gmra.mrb[0].mxu0 %v449_v42 }
  0x29   : > { %763 = vmatmul.mubr.bf16.vlgmr.msra.gmra.mrb[0].mxu1 %v456_v43  ;;  %1478 = vmatpush3.bf16.msra.mxu0 %v1563_v44 }
  0x2a   : > { %1429 = vmatpush3.bf16.msra.mxu1 %v1564_v47  ;;  %1479 = vmatprep.subr.bf16.mxu0 %v1627_v35 }
  0x2b   : > { %1430 = vmatprep.subr.bf16.mxu1 %v1565_v48  ;;  %1485 = vmatprep.mubr.msk.bf16.mxu0 %vm1629_vm0, %v1627_v35 }
  0x2c   : > { %1091 = vmatprep.mubr.bf16.mxu1 %v827_v8 }
  0x2d   : > { %1480 = vmatpush3.bf16.msra.mxu0 %v1566_v49 }
  0x2e   : > { %1431 = vmatpush3.bf16.msra.mxu1 %v1567_v50  ;;  %1481 = vmatprep.subr.bf16.mxu0 %v1627_v35 }
  0x2f   : > { %1432 = vmatprep.subr.bf16.mxu1 %v1568_v51 }
  0x31   : > { %1482 = vmatpush3.bf16.msra.mxu0 %v1569_v52 }
  0x32   : > { %1433 = vmatpush3.bf16.msra.mxu1 %v1570_v53  ;;  %1483 = vmatprep.subr.bf16.mxu0 %v1627_v35 }
  0x33   : > { %1434 = vmatprep.subr.bf16.mxu1 %v1571_v54 }
  0x35   : > { %1484 = vmatpush3.bf16.msra.mxu0 %v1572_v55 }
  0x36   : > { %1435 = vmatpush3.bf16.msra.mxu1 %v1573_v56  ;;  %1450 = vmatprep.subr.bf16.mxu0 %v1575_v58 }
  0x37   : > { %1436 = vmatprep.subr.bf16.mxu1 %v1574_v57 }
  0x38   : > { %1486 = vmatmul.mubr.msk.bf16.vlgmr.msra.gmra.mrb[4].mxu0 %vm686_vm1, %v1300_v59 }
  0x39   : > { %1451 = vmatpush3.bf16.msra.mxu0 %v1577_v61  ;;  %1131 = vmatprep.mubr.bf16.mxu0 %v828_v12  ;;  %v1376_v61 = vld [vmem:[%s1953_s4] ss:$0 sm:$0xff] }
  0x3a   : > { %1437 = vmatpush3.bf16.msra.mxu1 %v1576_v60  ;;  %1452 = vmatprep.subr.bf16.mxu0 %v1579_v63 }
  0x3b   : > { %1438 = vmatprep.subr.bf16.mxu1 %v1578_v62 }
  0x3d   : > { %1453 = vmatpush3.bf16.msra.mxu0 %v1581_v1 }
  0x3e   : > { %1439 = vmatpush3.bf16.msra.mxu1 %v1580_v0  ;;  %1454 = vmatprep.subr.bf16.mxu0 %v1583_v6 }
  0x3f   : > { %1440 = vmatprep.subr.bf16.mxu1 %v1582_v3 }
  0x41   : > { %1455 = vmatpush3.bf16.msra.mxu0 %v1585_v10 }
  0x42   : > { %1441 = vmatpush3.bf16.msra.mxu1 %v1584_v7  ;;  %1456 = vmatprep.subr.bf16.mxu0 %v1587_v13 }
  0x43   : > { %1442 = vmatprep.subr.bf16.mxu1 %v1586_v11 }
  0x45   : > { %1457 = vmatpush3.bf16.msra.mxu0 %v1589_v15 }
  0x46   : > { %1443 = vmatpush3.bf16.msra.mxu1 %v1588_v14  ;;  %1458 = vmatprep.subr.bf16.mxu0 %v1590_v16 }
  0x47   : > { %1489 = vmatprep.subr.bf16.mxu1 %v1627_v35 }
  0x49   : > { %1092 = vmatmul.mubr.bf16.vlgmr.msra.gmra.mrb[4].mxu1 %v819_v4  ;;  %1459 = vmatpush3.bf16.msra.mxu0 %v1591_v17 }
  0x4a   : > { %1490 = vmatpush3.bf16.msra.mxu1 %v1592_v18  ;;  %1460 = vmatprep.subr.bf16.mxu0 %v1593_v19 }
  0x4b   : > { %1491 = vmatprep.subr.bf16.mxu1 %v1627_v35  ;;  %1497 = vmatprep.mubr.msk.bf16.mxu1 %vm1629_vm0, %v1627_v35 }
  0x4d   : > { %1461 = vmatpush3.bf16.msra.mxu0 %v1594_v20 }
  0x4e   : > { %1492 = vmatpush3.bf16.msra.mxu1 %v1595_v21  ;;  %1462 = vmatprep.subr.bf16.mxu0 %v1596_v22 }
  0x4f   : > { %1493 = vmatprep.subr.bf16.mxu1 %v1627_v35 }
  0x51   : > { %1463 = vmatpush3.bf16.msra.mxu0 %v1597_v23 }
  0x52   : > { %1494 = vmatpush3.bf16.msra.mxu1 %v1598_v24  ;;  %1464 = vmatprep.subr.bf16.mxu0 %v1599_v25 }
  0x53   : > { %1495 = vmatprep.subr.bf16.mxu1 %v1627_v35 }
  0x55   : > { %1465 = vmatpush3.bf16.msra.mxu0 %v1600_v26 }
  0x56   : > { %1496 = vmatpush3.bf16.msra.mxu1 %v1602_v27 }
  0x58   : > { %1132 = vmatmul.mubr.bf16.vlgmr.msra.gmra.mrb[8].mxu0 %v826_v9 }
  0x59   : > { %1498 = vmatmul.mubr.msk.bf16.vlgmr.msra.gmra.mrb[8].mxu1 %vm686_vm1, %v1338_v28 }
  0xfb   : > { %v1395_v29 = vpop.f32.mrb[0].mxu0 }
  0xfc   : > { %v1417_v30 = vpop.f32.mrb[0].mxu1  ;;  %v1396_v31 = vpop.f32.mrb[1].mxu0 }
  0xfd   : > { %v1418_v32 = vpop.f32.mrb[1].mxu1  ;;  %v1397_v33 = vadd.f32 %v1396_v31, %v1395_v29  ;;  %v1398_v36 = vpop.f32.mrb[2].mxu0 }
  0xfe   : > { %v1419_v34 = vadd.f32 %v1418_v32, %v1417_v30  ;;  %v1420_v37 = vpop.f32.mrb[2].mxu1  ;;  %v1399_v38 = vpop.f32.mrb[3].mxu0 }
  0xff   : > { %v1421_v39 = vpop.f32.mrb[3].mxu1 }
 0x100   : > { %v765_v40 = vadd.f32 %v1419_v34, %v1397_v33 }
 0x10b   : > { %v804_v41 = vpop.f32.mrb[4].mxu0 }
 0x10c   : > { %v805_v42 = vadd.f32 %v804_v41, %v765_v40  ;;  %v1487_v35 = vpop.f32.mrb[5].mxu0 }
 0x10d   : > { %v807_v43 = vpop.f32.mrb[6].mxu0 }
 0x10e   : > { %v1488_v44 = vpop.f32.mrb[7].mxu0 }
 0x11c   : > { %v1444_v45 = vpop.f32.mrb[4].mxu1 }
 0x11d   : > { %v1445_v46 = vpop.f32.mrb[5].mxu1 }
 0x11e   : > { %v1446_v47 = vadd.f32 %v1445_v46, %v1444_v45  ;;  %v1447_v48 = vpop.f32.mrb[6].mxu1 }
 0x11f   : > { %v1448_v49 = vpop.f32.mrb[7].mxu1 }
 0x120   : > { %v1094_v50 = vadd.f32 %v1446_v47, %v805_v42 }
 0x12b   : > { %v1466_v51 = vpop.f32.mrb[8].mxu0 }
 0x12c   : > { %v1173_v52 = vpop.f32.mrb[8].mxu1  ;;  %v1467_v53 = vpop.f32.mrb[9].mxu0 }
 0x12d   : > { %v1499_v54 = vpop.f32.mrb[9].mxu1  ;;  %v1468_v55 = vadd.f32 %v1467_v53, %v1466_v51  ;;  %v1469_v56 = vpop.f32.mrb[10].mxu0 }
 0x12e   : > { %v1176_v57 = vpop.f32.mrb[10].mxu1  ;;  %v1470_v58 = vpop.f32.mrb[11].mxu0 }
 0x12f   : > { %v1500_v59 = vpop.f32.mrb[11].mxu1  ;;  %v1134_v60 = vadd.f32 %v1468_v55, %v1094_v50 }
 0x131   : > { %v1174_v62 = vadd.f32 %v1173_v52, %v1134_v60 }
 0x133   : > { %v1186_v63 = vadd.f32 %v1376_v61, %v1174_v62 }
 0x135   : > { %vm1187_vm2 = vcmp.ge.f32.partialorder %v1186_v63, 0.0  ;;  %v1188_v0 = vmul.f32 0.2, %v1186_v63 }
 0x137   : > { %v1189_v1 = vsel %vm1187_vm2, %v1186_v63, %v1188_v0 }
 0x138   : > { %1190 = vst [vmem:[%s290_s10] sm:$0xf] %v1189_v1 }
 0x139 PF: > { %s15_s20 = sadd.s32 1, %s1625_s20   ;;  %s1955_s18 = smov %s1621_s19 }
 0x13a   : > { %p12_p5 = scmp.ge.s32.totalorder %s15_s20, 4   ;;  %s1956_s19 = smov %s1958_s21 }
 0x13c   :  { %14 = sbr.rel (!%p12_p5) target bundleno = 2 (0x2), region = 73 }

// kernel: generator_forward.58
= control target key start
LH: loop header
LB: loop body
LE: loop exit
PB: predicated region body
PF: predicated region fallthrough
CT: control target
= control target key end

     0   :  { %s1477_s12 = smov 0   ;;  %s1479_s13 = smov 0   ;;  %s1748_s0 = inlined_call_operand.vmem [shape: bf16[2,4,1152], index: 0, kind: input, shape index: {}]   ;;  %s1749_s1 = inlined_call_operand.vmem [shape: bf16[1152,32], index: 1, kind: input, shape index: {}]   ;;  %s1750_s2 = inlined_call_operand.vmem [shape: f32[1,32], index: 2, kind: input, shape index: {}]   ;;  %s1751_s3 = inlined_call_operand.vmem [shape: f32[2,4,32], index: 3, kind: output, shape index: {}]  }
   0x1   :  { %s1481_s14 = smov 0  }
   0x2 LB: > { %s25_s15 = sadd.s32 1, %s1448_s13  ;;  %p1132_p0 = scmp.ge.s32.totalorder %s1452_s14, 1  ;;  %s1452_s14 = sphi %s1481_s14, %s13_s14   ;;  %s1448_s13 = sphi %s1479_s13, %s1753_s13   ;;  %s1444_s12 = sphi %s1477_s12, %s1752_s12  }
   0x3   : > { %p27_p1 = scmp.ge.s32.totalorder %s25_s15, 2  ;;  %p157_p2 = scmp.lt.s32.totalorder %s1452_s14, 3 }
   0x5   : > { %s1755_s15 = smov (%p27_p1, %s25_s15), 0  ;;  %p158_p3 = pnand %p1132_p0, %p157_p2 }
   0x6   : > { %v1356_v0 = vld [vmem:[%s1749_s1 + $0x40] sm:$0xff] (!%p158_p3)   ;;  %v1360_v4 = vld [vmem:[%s1749_s1 + $0x48] sm:$0xff] (!%p158_p3)   ;;  %v1364_v8 = vld [vmem:[%s1749_s1 + $0x50] sm:$0xff] (!%p158_p3)   ;;  %p187_p4 = scmp.lt.s32.totalorder (!%p158_p3), %s1444_s12, 1  ;;  %v365_v27 = vlaneseq (!%p158_p3)  ;;  %v1454_v35 = vmov (!%p158_p3), 1983009808  }
   0x7   : > { %161 = sbr.rel (%p158_p3) target bundleno = 321 (0x141), region = 32  ;;  %v1357_v1 = vld [vmem:[%s1749_s1] sm:$0xff] (!%p158_p3)   ;;  %1211 = vmatprep.subr.bf16.mxu0 (!%p158_p3), %v1356_v0  ;;  %v1361_v5 = vld [vmem:[%s1749_s1 + $0x8] sm:$0xff] (!%p158_p3)   ;;  %v1365_v9 = vld [vmem:[%s1749_s1 + $0x10] sm:$0xff] (!%p158_p3)   ;;  %v363_v36 = vunpack.c.l.s4 (!%p158_p3), %v1454_v35  ;;  %vm1456_vm0 = vmmov (!%p158_p3), 0   ;;  %vm1046_vm2 = vcmask (!%p158_p3), 257024  }
   0x8   : > { %v1358_v2 = vld [vmem:[%s1749_s1 + $0xc0] sm:$0xff] (!%p158_p3)   ;;  %1212 = vmatpush3.bf16.msra.mxu0 (!%p158_p3), %v1357_v1  ;;  %v1362_v6 = vld [vmem:[%s1749_s1 + $0xc8] sm:$0xff] (!%p158_p3)   ;;  %v1366_v10 = vld [vmem:[%s1749_s1 + $0xd0] sm:$0xff] (!%p158_p3)   ;;  %v366_v32 = vshrl.u32 (!%p158_p3), %v365_v27, 7 }
   0x9   : > { %v1359_v3 = vld [vmem:[%s1749_s1 + $0x80] sm:$0xff] (!%p158_p3)   ;;  %1233 = vmatprep.subr.bf16.mxu1 (!%p158_p3), %v1358_v2  ;;  %1213 = vmatprep.subr.bf16.mxu0 (!%p158_p3), %v1360_v4  ;;  %v1363_v7 = vld [vmem:[%s1749_s1 + $0x88] sm:$0xff] (!%p158_p3)   ;;  %v1367_v11 = vld [vmem:[%s1749_s1 + $0x90] sm:$0xff] (!%p158_p3)   ;;  %v364_v38 = vunpack.c.0.s8 (!%p158_p3), %v363_v36 }
   0xa   : > { %1234 = vmatpush3.bf16.msra.mxu1 (!%p158_p3), %v1359_v3  ;;  %v1368_v12 = vld [vmem:[%s1749_s1 + $0x58] sm:$0xff] (!%p158_p3)   ;;  %v1372_v16 = vld [vmem:[%s1749_s1 + $0x60] sm:$0xff] (!%p158_p3)   ;;  %v1376_v20 = vld [vmem:[%s1749_s1 + $0x68] sm:$0xff] (!%p158_p3)  }
   0xb   : > { %1235 = vmatprep.subr.bf16.mxu1 (!%p158_p3), %v1362_v6  ;;  %v1369_v13 = vld [vmem:[%s1749_s1 + $0x18] sm:$0xff] (!%p158_p3)   ;;  %v1373_v17 = vld [vmem:[%s1749_s1 + $0x20] sm:$0xff] (!%p158_p3)   ;;  %v1377_v21 = vld [vmem:[%s1749_s1 + $0x28] sm:$0xff] (!%p158_p3)   ;;  %v1610_v41 = vsub.s32 (!%p158_p3), %v364_v38, %v366_v32 }
   0xc   : > { %1214 = vmatpush3.bf16.msra.mxu0 (!%p158_p3), %v1361_v5  ;;  %v1370_v14 = vld [vmem:[%s1749_s1 + $0xd8] sm:$0xff] (!%p158_p3)   ;;  %v1374_v18 = vld [vmem:[%s1749_s1 + $0xe0] sm:$0xff] (!%p158_p3)   ;;  %v1378_v22 = vld [vmem:[%s1749_s1 + $0xe8] sm:$0xff] (!%p158_p3)  }
   0xd   : > { %1215 = vmatprep.subr.bf16.mxu0 (!%p158_p3), %v1364_v8  ;;  %v1371_v15 = vld [vmem:[%s1749_s1 + $0x98] sm:$0xff] (!%p158_p3)   ;;  %v1375_v19 = vld [vmem:[%s1749_s1 + $0xa0] sm:$0xff] (!%p158_p3)   ;;  %v1379_v23 = vld [vmem:[%s1749_s1 + $0xa8] sm:$0xff] (!%p158_p3)  }
   0xe   : > { %1236 = vmatpush3.bf16.msra.mxu1 %v1363_v7  ;;  %s1757_s12 = smov (!%p187_p4, %s1444_s12), 1  ;;  %v1380_v24 = vld [vmem:[%s1749_s1 + $0x70] sm:$0xff]   ;;  %v1384_v29 = vld [vmem:[%s1749_s1 + $0x78] sm:$0xff]   ;;  %v1388_v37 = vld [vmem:[%s1749_s1 + $0x140] sm:$0xff]  }
   0xf   : > { %1237 = vmatprep.subr.bf16.mxu1 %v1366_v10  ;;  %s1328_s20 = smul.u32 18, %s1757_s12  ;;  %v1381_v25 = vld [vmem:[%s1749_s1 + $0x30] sm:$0xff]   ;;  %v1385_v30 = vld [vmem:[%s1749_s1 + $0x38] sm:$0xff]   ;;  %v1391_v40 = vld [vmem:[%s1749_s1 + $0x1c0] sm:$0xff]  }
  0x10   : > { %1216 = vmatpush3.bf16.msra.mxu0 %v1365_v9  ;;  %v1382_v26 = vld [vmem:[%s1749_s1 + $0xf0] sm:$0xff]   ;;  %v1386_v31 = vld [vmem:[%s1749_s1 + $0xf8] sm:$0xff]   ;;  %v1390_v44 = vld [vmem:[%s1749_s1 + $0x100] sm:$0xff]  }
  0x11   : > { %1217 = vmatprep.subr.bf16.mxu0 %v1368_v12  ;;  %v1383_v28 = vld [vmem:[%s1749_s1 + $0xb0] sm:$0xff]   ;;  %s1592_s4 = scalar_lea.vmem %s1748_s0, %s1328_s20  ;;  %v1387_v34 = vld [vmem:[%s1749_s1 + $0xb8] sm:$0xff]   ;;  %v1392_v45 = vld [vmem:[%s1749_s1 + $0x180] sm:$0xff]  }
  0x12   : > { %1238 = vmatpush3.bf16.msra.mxu1 %v1367_v11  ;;  %v204_v33 = vld [vmem:[%s1592_s4] sm:$0xff]  ;;  %v1393_v48 = vld [vmem:[%s1749_s1 + $0x148] sm:$0xff]   ;;  %v1397_v52 = vld [vmem:[%s1749_s1 + $0x150] sm:$0xff]  }
  0x13   : > { %1239 = vmatprep.subr.bf16.mxu1 %v1370_v14  ;;  %v361_v39 = vcombine.high %v204_v33, %v204_v33  ;;  %v368_v42 = vrot.slane %v204_v33, %v1610_v41  ;;  %v1395_v49 = vld [vmem:[%s1749_s1 + $0x1c8] sm:$0xff]   ;;  %v1399_v53 = vld [vmem:[%s1749_s1 + $0x1d0] sm:$0xff]   ;;  %v1401_v56 = vld [vmem:[%s1749_s1 + $0x158] sm:$0xff]  }
  0x14   : > { %1218 = vmatpush3.bf16.msra.mxu0 %v1369_v13  ;;  %v1394_v50 = vld [vmem:[%s1749_s1 + $0x108] sm:$0xff]   ;;  %v1398_v54 = vld [vmem:[%s1749_s1 + $0x110] sm:$0xff]   ;;  %v1403_v57 = vld [vmem:[%s1749_s1 + $0x1d8] sm:$0xff]  }
  0x15   : > { %1219 = vmatprep.subr.bf16.mxu0 %v1372_v16  ;;  %v375_v43 = vrot.slane %v361_v39, %v1610_v41  ;;  %v376_v46 = vcombine.high %v368_v42, %v368_v42  ;;  %v1396_v51 = vld [vmem:[%s1749_s1 + $0x188] sm:$0xff]   ;;  %v1400_v55 = vld [vmem:[%s1749_s1 + $0x190] sm:$0xff]   ;;  %v1402_v58 = vld [vmem:[%s1749_s1 + $0x118] sm:$0xff]  }
  0x16   : > { %1240 = vmatpush3.bf16.msra.mxu1 %v1371_v15  ;;  %v1404_v59 = vld [vmem:[%s1749_s1 + $0x198] sm:$0xff]   ;;  %v1405_v60 = vld [vmem:[%s1749_s1 + $0x160] sm:$0xff]   ;;  %v1409_v0 = vld [vmem:[%s1749_s1 + $0x168] sm:$0xff]  }
  0x17   : > { %1241 = vmatprep.subr.bf16.mxu1 %v1374_v18  ;;  %v377_v47 = vcombine.high %v375_v43, %v375_v43  ;;  %875 = vmatprep.mubr.bf16.mxu0 %v376_v46  ;;  %v1407_v61 = vld [vmem:[%s1749_s1 + $0x1e0] sm:$0xff]   ;;  %v1411_v1 = vld [vmem:[%s1749_s1 + $0x1e8] sm:$0xff]   ;;  %v1413_v4 = vld [vmem:[%s1749_s1 + $0x170] sm:$0xff]  }
  0x18   : > { %1220 = vmatpush3.bf16.msra.mxu0 %v1373_v17  ;;  %v1406_v62 = vld [vmem:[%s1749_s1 + $0x120] sm:$0xff]   ;;  %v1410_v2 = vld [vmem:[%s1749_s1 + $0x128] sm:$0xff]   ;;  %v1415_v5 = vld [vmem:[%s1749_s1 + $0x1f0] sm:$0xff]  }
  0x19   : > { %1221 = vmatprep.subr.bf16.mxu0 %v1376_v20  ;;  %915 = vmatprep.mubr.bf16.mxu1 %v377_v47  ;;  %v1408_v63 = vld [vmem:[%s1749_s1 + $0x1a0] sm:$0xff]   ;;  %v1412_v3 = vld [vmem:[%s1749_s1 + $0x1a8] sm:$0xff]   ;;  %v1414_v6 = vld [vmem:[%s1749_s1 + $0x130] sm:$0xff]  }
  0x1a   : > { %1242 = vmatpush3.bf16.msra.mxu1 %v1375_v19  ;;  %v1416_v7 = vld [vmem:[%s1749_s1 + $0x1b0] sm:$0xff]   ;;  %v205_v8 = vld [vmem:[%s1592_s4 + $0x8] sm:$0xff]  ;;  %v1417_v9 = vld [vmem:[%s1749_s1 + $0x178] sm:$0xff]   ;;  %v1455_v19 = vmov 0.0  }
  0x1b   : > { %1243 = vmatprep.subr.bf16.mxu1 %v1378_v22  ;;  %v385_v10 = vrot.slane %v205_v8, %v1610_v41  ;;  %v378_v11 = vcombine.high %v205_v8, %v205_v8  ;;  %v1419_v12 = vld [vmem:[%s1749_s1 + $0x1f8] sm:$0xff]   ;;  %v1422_v18 = vld [vmem:[%s1749_s1 + $0x200] sm:$0xff]   ;;  %v1423_v20 = vld [vmem:[%s1749_s1 + $0x208] sm:$0xff]  }
  0x1c   : > { %1222 = vmatpush3.bf16.msra.mxu0 %v1377_v21  ;;  %v1418_v15 = vld [vmem:[%s1749_s1 + $0x138] sm:$0xff]   ;;  %v1424_v21 = vld [vmem:[%s1749_s1 + $0x210] sm:$0xff]  }
  0x1d   : > { %1223 = vmatprep.subr.bf16.mxu0 %v1380_v24  ;;  %v393_v13 = vcombine.high %v385_v10, %v385_v10  ;;  %v392_v14 = vrot.slane %v378_v11, %v1610_v41  ;;  %v1420_v16 = vld [vmem:[%s1749_s1 + $0x1b8] sm:$0xff]   ;;  %v1427_v24 = vld [vmem:[%s1749_s1 + $0x228] sm:$0xff]   ;;  %v1136_v27 = vld.sshfl [vmem:[%s1592_s4 + $0x10] sm:$0x3 pattern:$0x76325410] }
  0x1e   : > { %1244 = vmatpush3.bf16.msra.mxu1 %v1379_v23  ;;  %v1425_v22 = vld [vmem:[%s1749_s1 + $0x218] sm:$0xff]   ;;  %v1426_v23 = vld [vmem:[%s1749_s1 + $0x220] sm:$0xff]   ;;  %s1134_s4 = sshll.u32 %s1757_s12, 2 }
  0x1f   : > { %1245 = vmatprep.subr.bf16.mxu1 %v1382_v26  ;;  %v394_v17 = vcombine.high %v392_v14, %v392_v14  ;;  %v1429_v26 = vld [vmem:[%s1749_s1 + $0x238] sm:$0xff]   ;;  %s202_s7 = scalar_lea.vmem %s1751_s3, %s1134_s4 }
  0x20   : > { %1224 = vmatpush3.bf16.msra.mxu0 %v1381_v25  ;;  %v1428_v25 = vld [vmem:[%s1749_s1 + $0x230] sm:$0xff]  }
  0x21   : > { %1225 = vmatprep.subr.bf16.mxu0 %v1384_v29 }
  0x22   : > { %1246 = vmatpush3.bf16.msra.mxu1 %v1383_v28 }
  0x23   : > { %1247 = vmatprep.subr.bf16.mxu1 %v1386_v31 }
  0x24   : > { %1226 = vmatpush3.bf16.msra.mxu0 %v1385_v30  ;;  %v1135_v30 = vld [vmem:[%s1750_s2] ss:$0 sm:$0xff] }
  0x25   : > { %1255 = vmatprep.subr.bf16.mxu0 %v1388_v37 }
  0x26   : > { %1248 = vmatpush3.bf16.msra.mxu1 %v1387_v34 }
  0x27   : > { %1277 = vmatprep.subr.bf16.mxu1 %v1391_v40  ;;  %876 = vmatmul.mubr.bf16.vlgmr.msra.gmra.mrb[0].mxu0 %v368_v42 }
  0x28   : > { %1256 = vmatpush3.bf16.msra.mxu0 %v1390_v44  ;;  %955 = vmatprep.mubr.bf16.mxu0 %v393_v13 }
  0x29   : > { %916 = vmatmul.mubr.bf16.vlgmr.msra.gmra.mrb[0].mxu1 %v375_v43  ;;  %1257 = vmatprep.subr.bf16.mxu0 %v1393_v48 }
  0x2a   : > { %1278 = vmatpush3.bf16.msra.mxu1 %v1392_v45  ;;  %995 = vmatprep.mubr.bf16.mxu1 %v394_v17 }
  0x2b   : > { %1279 = vmatprep.subr.bf16.mxu1 %v1395_v49 }
  0x2c   : > { %1258 = vmatpush3.bf16.msra.mxu0 %v1394_v50 }
  0x2d   : > { %1259 = vmatprep.subr.bf16.mxu0 %v1397_v52 }
  0x2e   : > { %1280 = vmatpush3.bf16.msra.mxu1 %v1396_v51 }
  0x2f   : > { %1281 = vmatprep.subr.bf16.mxu1 %v1399_v53 }
  0x30   : > { %1260 = vmatpush3.bf16.msra.mxu0 %v1398_v54 }
  0x31   : > { %1261 = vmatprep.subr.bf16.mxu0 %v1401_v56 }
  0x32   : > { %1282 = vmatpush3.bf16.msra.mxu1 %v1400_v55 }
  0x33   : > { %1283 = vmatprep.subr.bf16.mxu1 %v1403_v57 }
  0x34   : > { %1262 = vmatpush3.bf16.msra.mxu0 %v1402_v58 }
  0x35   : > { %1263 = vmatprep.subr.bf16.mxu0 %v1405_v60 }
  0x36   : > { %1284 = vmatpush3.bf16.msra.mxu1 %v1404_v59 }
  0x37   : > { %1285 = vmatprep.subr.bf16.mxu1 %v1407_v61 }
  0x38   : > { %1264 = vmatpush3.bf16.msra.mxu0 %v1406_v62 }
  0x39   : > { %1265 = vmatprep.subr.bf16.mxu0 %v1409_v0 }
  0x3a   : > { %1286 = vmatpush3.bf16.msra.mxu1 %v1408_v63 }
  0x3b   : > { %1287 = vmatprep.subr.bf16.mxu1 %v1411_v1 }
  0x3c   : > { %1266 = vmatpush3.bf16.msra.mxu0 %v1410_v2 }
  0x3d   : > { %1267 = vmatprep.subr.bf16.mxu0 %v1413_v4 }
  0x3e   : > { %1288 = vmatpush3.bf16.msra.mxu1 %v1412_v3 }
  0x3f   : > { %1289 = vmatprep.subr.bf16.mxu1 %v1415_v5 }
  0x40   : > { %1268 = vmatpush3.bf16.msra.mxu0 %v1414_v6 }
  0x41   : > { %1269 = vmatprep.subr.bf16.mxu0 %v1417_v9 }
  0x42   : > { %1290 = vmatpush3.bf16.msra.mxu1 %v1416_v7 }
  0x43   : > { %1291 = vmatprep.subr.bf16.mxu1 %v1419_v12 }
  0x44   : > { %1270 = vmatpush3.bf16.msra.mxu0 %v1418_v15 }
  0x45   : > { %1308 = vmatprep.subr.bf16.mxu0 %v1455_v19 }
  0x46   : > { %1292 = vmatpush3.bf16.msra.mxu1 %v1420_v16 }
  0x47   : > { %956 = vmatmul.mubr.bf16.vlgmr.msra.gmra.mrb[4].mxu0 %v385_v10 }
  0x48   : > { %1309 = vmatpush3.bf16.msra.mxu0 %v1422_v18  ;;  %1324 = vmatprep.mubr.msk.bf16.mxu0 %vm1456_vm0, %v1455_v19 }
  0x49   : > { %996 = vmatmul.mubr.bf16.vlgmr.msra.gmra.mrb[4].mxu1 %v392_v14  ;;  %1310 = vmatprep.subr.bf16.mxu0 %v1455_v19 }
  0x4c   : > { %1311 = vmatpush3.bf16.msra.mxu0 %v1423_v20 }
  0x4d   : > { %1312 = vmatprep.subr.bf16.mxu0 %v1455_v19 }
  0x50   : > { %1313 = vmatpush3.bf16.msra.mxu0 %v1424_v21 }
  0x51   : > { %1314 = vmatprep.subr.bf16.mxu0 %v1455_v19 }
  0x54   : > { %1315 = vmatpush3.bf16.msra.mxu0 %v1425_v22 }
  0x55   : > { %1316 = vmatprep.subr.bf16.mxu0 %v1455_v19 }
  0x58   : > { %1317 = vmatpush3.bf16.msra.mxu0 %v1426_v23 }
  0x59   : > { %1318 = vmatprep.subr.bf16.mxu0 %v1455_v19 }
  0x5c   : > { %1319 = vmatpush3.bf16.msra.mxu0 %v1427_v24 }
  0x5d   : > { %1320 = vmatprep.subr.bf16.mxu0 %v1455_v19 }
  0x60   : > { %1321 = vmatpush3.bf16.msra.mxu0 %v1428_v25 }
  0x61   : > { %1322 = vmatprep.subr.bf16.mxu0 %v1455_v19 }
  0x64   : > { %1323 = vmatpush3.bf16.msra.mxu0 %v1429_v26 }
  0x67   : > { %1325 = vmatmul.mubr.bf16.vlgmr.msra.gmra.mrb[8].mxu0 %v1136_v27 }
  0xfa   : > { %v1227_v28 = vpop.f32.mrb[0].mxu0 }
  0xfb   : > { %v1228_v31 = vpop.f32.mrb[1].mxu0 }
  0xfc   : > { %v1249_v29 = vpop.f32.mrb[0].mxu1  ;;  %v1229_v33 = vadd.f32 %v1228_v31, %v1227_v28  ;;  %v1230_v34 = vpop.f32.mrb[2].mxu0 }
  0xfd   : > { %v1250_v32 = vpop.f32.mrb[1].mxu1  ;;  %v1231_v37 = vpop.f32.mrb[3].mxu0 }
  0xfe   : > { %v1251_v35 = vadd.f32 %v1250_v32, %v1249_v29  ;;  %v1252_v36 = vpop.f32.mrb[2].mxu1  ;;  %v878_v39 = vadd.f32 %v1229_v33, %v1135_v30 }
  0xff   : > { %v1253_v38 = vpop.f32.mrb[3].mxu1 }
 0x100   : > { %v918_v40 = vadd.f32 %v1251_v35, %v878_v39 }
 0x11a   : > { %v1271_v41 = vpop.f32.mrb[4].mxu0 }
 0x11b   : > { %v1272_v43 = vpop.f32.mrb[5].mxu0 }
 0x11c   : > { %v1293_v42 = vpop.f32.mrb[4].mxu1  ;;  %v1273_v45 = vadd.f32 %v1272_v43, %v1271_v41  ;;  %v1274_v46 = vpop.f32.mrb[6].mxu0 }
 0x11d   : > { %v1294_v44 = vpop.f32.mrb[5].mxu1  ;;  %v1275_v49 = vpop.f32.mrb[7].mxu0 }
 0x11e   : > { %v1295_v47 = vadd.f32 %v1294_v44, %v1293_v42  ;;  %v1296_v48 = vpop.f32.mrb[6].mxu1  ;;  %v958_v51 = vadd.f32 %v1273_v45, %v918_v40 }
 0x11f   : > { %v1297_v50 = vpop.f32.mrb[7].mxu1 }
 0x120   : > { %v998_v52 = vadd.f32 %v1295_v47, %v958_v51 }
 0x13a   : > { %v1037_v53 = vpop.f32.mrb[8].mxu0 }
 0x13b   : > { %v1038_v54 = vadd.f32 %v1037_v53, %v998_v52  ;;  %v1326_v55 = vpop.f32.mrb[9].mxu0 }
 0x13c   : > { %v1040_v56 = vpop.f32.mrb[10].mxu0 }
 0x13d   : > { %vm1043_vm1 = vcmp.ge.f32.partialorder %v1038_v54, 0.0  ;;  %v1044_v57 = vmul.f32 0.2, %v1038_v54  ;;  %v1327_v58 = vpop.f32.mrb[11].mxu0 }
 0x13f   : > { %v1045_v59 = vsel %vm1043_vm1, %v1038_v54, %v1044_v57 }
 0x140   : > { %1047 = vst.msk [vmem:[%s202_s7] sm:$0xf] %vm1046_vm2, %v1045_v59 }
 0x141 PF: > { %s13_s14 = sadd.s32 1, %s1452_s14   ;;  %s1752_s12 = smov %s1448_s13 }
 0x142   : > { %p10_p5 = scmp.ge.s32.totalorder %s13_s14, 4   ;;  %s1753_s13 = smov %s1755_s15 }
 0x144   :  { %12 = sbr.rel (!%p10_p5) target bundleno = 2 (0x2), region = 62 }

// kernel: generator_forward.60
= control target key start
LH: loop header
LB: loop body
LE: loop exit
PB: predicated region body
PF: predicated region fallthrough
CT: control target
= control target key end

     0   :  { %s1183_s18 = smov 0   ;;  %s1185_s19 = smov 0   ;;  %s1353_s0 = inlined_call_operand.vmem [shape: bf16[2,16,288], index: 0, kind: input, shape index: {}]   ;;  %s1354_s1 = inlined_call_operand.vmem [shape: bf16[2,16,288], index: 1, kind: input, shape index: {}]   ;;  %s1355_s2 = inlined_call_operand.vmem [shape: bf16[288,64], index: 2, kind: input, shape index: {}]   ;;  %s1356_s3 = inlined_call_operand.vmem [shape: bf16[288,64], index: 3, kind: input, shape index: {}]   ;;  %s1357_s4 = inlined_call_operand.vmem [shape: f32[1,64], index: 4, kind: input, shape index: {}]   ;;  %s1358_s5 = inlined_call_operand.vmem [shape: f32[2,16,64], index: 5, kind: output, shape index: {}]  }
   0x1   :  { %s1187_s20 = smov 0  }
   0x2 LB: > { %s27_s21 = sadd.s32 1, %s1145_s19  ;;  %p937_p0 = scmp.ge.s32.totalorder %s1149_s20, 1  ;;  %s1149_s20 = sphi %s1187_s20, %s15_s20   ;;  %s1145_s19 = sphi %s1185_s19, %s1360_s19   ;;  %s1141_s18 = sphi %s1183_s18, %s1359_s18  }
   0x3   : > { %p29_p1 = scmp.ge.s32.totalorder %s27_s21, 2  ;;  %p227_p2 = scmp.lt.s32.totalorder %s1149_s20, 3 }
   0x5   : > { %s1362_s21 = smov (%p29_p1, %s27_s21), 0  ;;  %p228_p3 = pnand %p937_p0, %p227_p2 }
   0x6   : > { %v1083_v0 = vld [vmem:[%s1356_s3 + $0x40] sm:$0xff] (!%p228_p3)   ;;  %v1151_v1 = vmov (!%p228_p3), 0.0   ;;  %vm1152_vm0 = vmmov (!%p228_p3), 0   ;;  %p275_p4 = scmp.lt.s32.totalorder (!%p228_p3), %s1141_s18, 1  ;;  %v1086_v4 = vld [vmem:[%s1356_s3 + $0x48] sm:$0xff] (!%p228_p3)   ;;  %v1091_v8 = vld [vmem:[%s1356_s3 + $0x50] sm:$0xff] (!%p228_p3)  }
   0x7   : > { %231 = sbr.rel (%p228_p3) target bundleno = 278 (0x116), region = 40  ;;  %1040 = vmatprep.subr.bf16.mxu1 (!%p228_p3), %v1151_v1  ;;  %v1084_v2 = vld [vmem:[%s1356_s3 + $0x80] sm:$0xff] (!%p228_p3)   ;;  %990 = vmatprep.subr.bf16.mxu0 (!%p228_p3), %v1083_v0  ;;  %v1087_v5 = vld [vmem:[%s1356_s3 + $0x88] sm:$0xff] (!%p228_p3)   ;;  %vm510_vm1 = vcmask (!%p228_p3), 261120   ;;  %v1093_v11 = vld [vmem:[%s1356_s3 + $0x10] sm:$0xff] (!%p228_p3)   ;;  %vm819_vm3 = vcmask (!%p228_p3), 523264  }
   0x8   : > { %v1085_v3 = vld [vmem:[%s1356_s3] sm:$0xff] (!%p228_p3)   ;;  %1044 = vmatprep.mubr.msk.bf16.mxu1 (!%p228_p3), %vm1152_vm0, %v1151_v1  ;;  %1041 = vmatpush3.bf16.msra.mxu1 (!%p228_p3), %v1084_v2  ;;  %v1088_v6 = vld [vmem:[%s1356_s3 + $0x8] sm:$0xff] (!%p228_p3)   ;;  %v1095_v13 = vld [vmem:[%s1356_s3 + $0x58] sm:$0xff] (!%p228_p3)  }
   0x9   : > { %991 = vmatpush3.bf16.msra.mxu0 (!%p228_p3), %v1085_v3  ;;  %1042 = vmatprep.subr.bf16.mxu1 (!%p228_p3), %v1151_v1  ;;  %v1090_v7 = vld [vmem:[%s1355_s2 + $0x40] sm:$0xff] (!%p228_p3)   ;;  %v1094_v12 = vld [vmem:[%s1355_s2 + $0x48] sm:$0xff] (!%p228_p3)   ;;  %v1097_v15 = vld [vmem:[%s1356_s3 + $0x18] sm:$0xff] (!%p228_p3)  }
   0xa   : > { %992 = vmatprep.subr.bf16.mxu0 (!%p228_p3), %v1086_v4  ;;  %v1092_v9 = vld [vmem:[%s1355_s2] sm:$0xff] (!%p228_p3)   ;;  %v1096_v14 = vld [vmem:[%s1355_s2 + $0x8] sm:$0xff] (!%p228_p3)   ;;  %v1098_v16 = vld [vmem:[%s1355_s2 + $0x50] sm:$0xff] (!%p228_p3)  }
   0xb   : > { %v1099_v17 = vld [vmem:[%s1356_s3 + $0x60] sm:$0xff] (!%p228_p3)   ;;  %v1100_v18 = vld [vmem:[%s1355_s2 + $0x10] sm:$0xff] (!%p228_p3)   ;;  %v1102_v20 = vld [vmem:[%s1355_s2 + $0x58] sm:$0xff] (!%p228_p3)  }
   0xc   : > { %1043 = vmatpush3.bf16.msra.mxu1 (!%p228_p3), %v1087_v5  ;;  %v1101_v19 = vld [vmem:[%s1356_s3 + $0x20] sm:$0xff] (!%p228_p3)   ;;  %v1103_v21 = vld [vmem:[%s1356_s3 + $0x68] sm:$0xff] (!%p228_p3)   ;;  %v1104_v22 = vld [vmem:[%s1355_s2 + $0x18] sm:$0xff] (!%p228_p3)  }
   0xd   : > { %993 = vmatpush3.bf16.msra.mxu0 (!%p228_p3), %v1088_v6  ;;  %1015 = vmatprep.subr.bf16.mxu1 (!%p228_p3), %v1090_v7  ;;  %v1105_v23 = vld [vmem:[%s1356_s3 + $0x28] sm:$0xff] (!%p228_p3)   ;;  %v1106_v24 = vld [vmem:[%s1355_s2 + $0x60] sm:$0xff] (!%p228_p3)   ;;  %v1107_v25 = vld [vmem:[%s1356_s3 + $0x70] sm:$0xff] (!%p228_p3)  }
   0xe   : > { %s1364_s18 = smov (!%p275_p4, %s1141_s18), 1  ;;  %994 = vmatprep.subr.bf16.mxu0 %v1091_v8  ;;  %v1108_v26 = vld [vmem:[%s1355_s2 + $0x20] sm:$0xff]   ;;  %v1109_v27 = vld [vmem:[%s1356_s3 + $0x30] sm:$0xff]   ;;  %v1110_v28 = vld [vmem:[%s1355_s2 + $0x68] sm:$0xff]  }
   0xf   : > { %s1056_s9 = smul.u32 24, %s1364_s18  ;;  %v1111_v29 = vld [vmem:[%s1356_s3 + $0x78] sm:$0xff]   ;;  %v1112_v30 = vld [vmem:[%s1355_s2 + $0x28] sm:$0xff]   ;;  %v1117_v34 = vld [vmem:[%s1355_s2 + $0x70] sm:$0xff]   ;;  %s989_s23 = sshll.u32 %s1364_s18, 4 }
  0x10   : > { %v1113_v31 = vld [vmem:[%s1356_s3 + $0x38] sm:$0xff]   ;;  %v1118_v35 = vld [vmem:[%s1355_s2 + $0x30] sm:$0xff]   ;;  %v1119_v36 = vld [vmem:[%s1355_s2 + $0x80] sm:$0xff]   ;;  %s304_s26 = scalar_lea.vmem %s1358_s5, %s989_s23 }
  0x11   : > { %s1237_s16 = scalar_lea.vmem %s1354_s1, %s1056_s9  ;;  %995 = vmatpush3.bf16.msra.mxu0 %v1093_v11  ;;  %s283_s10 = scalar_lea.vmem %s1353_s0, %s1056_s9  ;;  %v1120_v37 = vld [vmem:[%s1355_s2 + $0x78] sm:$0xff]   ;;  %v1125_v41 = vld [vmem:[%s1355_s2 + $0x88] sm:$0xff]   ;;  %v986_v2 = vld [vmem:[%s1357_s4] ss:$0 sm:$0xff] }
  0x12   : > { %v1089_v10 = vld [vmem:[%s1237_s16 + $0x8] ss:$12 sps:$4 sm:$0xff]   ;;  %996 = vmatprep.subr.bf16.mxu0 %v1095_v13  ;;  %v1114_v32 = vld [vmem:[%s1237_s16] ss:$12 sps:$4 sm:$0xff]   ;;  %v1116_v33 = vld [vmem:[%s1237_s16 + $0x4] ss:$12 sps:$4 sm:$0xff]  }
  0x13   : > { %1045 = vmatmul.mubr.msk.bf16.vlgmr.msra.gmra.mrb[0].mxu1 %vm510_vm1, %v1089_v10  ;;  %546 = vmatprep.mubr.bf16.mxu0 %v1116_v33  ;;  %v1121_v38 = vld [vmem:[%s1355_s2 + $0x38] sm:$0xff]   ;;  %v1122_v39 = vld [vmem:[%s283_s10] ss:$12 sps:$4 sm:$0xff]   ;;  %v1124_v40 = vld [vmem:[%s283_s10 + $0x4] ss:$12 sps:$4 sm:$0xff]  }
  0x14   : > { %1016 = vmatpush3.bf16.msra.mxu1 %v1092_v9  ;;  %754 = vmatprep.mubr.bf16.mxu1 %v1124_v40  ;;  %v1126_v42 = vld [vmem:[%s283_s10 + $0x8] ss:$12 sps:$4 sm:$0xff]  }
  0x15   : > { %1017 = vmatprep.subr.bf16.mxu1 %v1094_v12  ;;  %997 = vmatpush3.bf16.msra.mxu0 %v1097_v15 }
  0x16   : > { %998 = vmatprep.subr.bf16.mxu0 %v1099_v17 }
  0x18   : > { %1018 = vmatpush3.bf16.msra.mxu1 %v1096_v14 }
  0x19   : > { %1019 = vmatprep.subr.bf16.mxu1 %v1098_v16  ;;  %999 = vmatpush3.bf16.msra.mxu0 %v1101_v19 }
  0x1a   : > { %1000 = vmatprep.subr.bf16.mxu0 %v1103_v21 }
  0x1c   : > { %1020 = vmatpush3.bf16.msra.mxu1 %v1100_v18 }
  0x1d   : > { %1021 = vmatprep.subr.bf16.mxu1 %v1102_v20  ;;  %1001 = vmatpush3.bf16.msra.mxu0 %v1105_v23 }
  0x1e   : > { %1002 = vmatprep.subr.bf16.mxu0 %v1107_v25 }
  0x20   : > { %1022 = vmatpush3.bf16.msra.mxu1 %v1104_v22 }
  0x21   : > { %1023 = vmatprep.subr.bf16.mxu1 %v1106_v24  ;;  %1003 = vmatpush3.bf16.msra.mxu0 %v1109_v27 }
  0x22   : > { %1004 = vmatprep.subr.bf16.mxu0 %v1111_v29 }
  0x24   : > { %1024 = vmatpush3.bf16.msra.mxu1 %v1108_v26 }
  0x25   : > { %1025 = vmatprep.subr.bf16.mxu1 %v1110_v28  ;;  %1005 = vmatpush3.bf16.msra.mxu0 %v1113_v31 }
  0x26   : > { %1048 = vmatprep.subr.bf16.mxu0 %v1151_v1 }
  0x28   : > { %1026 = vmatpush3.bf16.msra.mxu1 %v1112_v30  ;;  %547 = vmatmul.mubr.bf16.vlgmr.msra.gmra.mrb[0].mxu0 %v1114_v32 }
  0x29   : > { %1027 = vmatprep.subr.bf16.mxu1 %v1117_v34  ;;  %1052 = vmatprep.mubr.msk.bf16.mxu0 %vm1152_vm0, %v1151_v1 }
  0x2a   : > { %1049 = vmatpush3.bf16.msra.mxu0 %v1119_v36 }
  0x2b   : > { %1050 = vmatprep.subr.bf16.mxu0 %v1151_v1 }
  0x2c   : > { %1028 = vmatpush3.bf16.msra.mxu1 %v1118_v35 }
  0x2d   : > { %1029 = vmatprep.subr.bf16.mxu1 %v1120_v37 }
  0x2e   : > { %1051 = vmatpush3.bf16.msra.mxu0 %v1125_v41 }
  0x30   : > { %1030 = vmatpush3.bf16.msra.mxu1 %v1121_v38 }
  0x31   : > { %1053 = vmatmul.mubr.msk.bf16.vlgmr.msra.gmra.mrb[4].mxu0 %vm510_vm1, %v1126_v42 }
  0x33   : > { %755 = vmatmul.mubr.bf16.vlgmr.msra.gmra.mrb[4].mxu1 %v1122_v39 }
  0xe6   : > { %v589_v43 = vpop.f32.mrb[0].mxu1 }
  0xe7   : > { %v1046_v44 = vpop.f32.mrb[1].mxu1 }
  0xe8   : > { %v592_v45 = vpop.f32.mrb[2].mxu1 }
  0xe9   : > { %v1047_v46 = vpop.f32.mrb[3].mxu1 }
  0xfb   : > { %v1006_v47 = vpop.f32.mrb[0].mxu0 }
  0xfc   : > { %v1007_v48 = vpop.f32.mrb[1].mxu0 }
  0xfd   : > { %v1008_v49 = vadd.f32 %v1007_v48, %v1006_v47  ;;  %v1009_v50 = vpop.f32.mrb[2].mxu0 }
  0xfe   : > { %v1010_v51 = vpop.f32.mrb[3].mxu0 }
  0xff   : > { %v590_v52 = vadd.f32 %v1008_v49, %v589_v43  ;;  %v1011_v53 = vadd.f32 %v1010_v51, %v1009_v50 }
 0x101   : > { %v593_v54 = vadd.f32 %v1011_v53, %v592_v45 }
 0x104   : > { %v797_v57 = vpop.f32.mrb[4].mxu0 }
 0x105   : > { %v1054_v60 = vpop.f32.mrb[5].mxu0 }
 0x106   : > { %v1031_v55 = vpop.f32.mrb[4].mxu1  ;;  %v800_v62 = vpop.f32.mrb[6].mxu0 }
 0x107   : > { %v1032_v56 = vpop.f32.mrb[5].mxu1  ;;  %v1055_v1 = vpop.f32.mrb[7].mxu0 }
 0x108   : > { %v1033_v58 = vadd.f32 %v1032_v56, %v1031_v55  ;;  %v1034_v59 = vpop.f32.mrb[6].mxu1 }
 0x109   : > { %v1035_v61 = vpop.f32.mrb[7].mxu1 }
 0x10a   : > { %v757_v63 = vadd.f32 %v1033_v58, %v590_v52  ;;  %v1036_v0 = vadd.f32 %v1035_v61, %v1034_v59 }
 0x10c   : > { %v798_v3 = vadd.f32 %v797_v57, %v757_v63  ;;  %v760_v4 = vadd.f32 %v1036_v0, %v593_v54 }
 0x10e   : > { %v811_v5 = vadd.f32 %v986_v2, %v798_v3  ;;  %v801_v6 = vadd.f32 %v800_v62, %v760_v4 }
 0x110   : > { %vm813_vm2 = vcmp.ge.f32.partialorder %v811_v5, 0.0  ;;  %v815_v7 = vmul.f32 0.2, %v811_v5  ;;  %v812_v8 = vadd.f32 %v986_v2, %v801_v6 }
 0x112   : > { %v817_v9 = vsel %vm813_vm2, %v811_v5, %v815_v7  ;;  %vm814_vm4 = vcmp.ge.f32.partialorder %v812_v8, 0.0  ;;  %v816_v10 = vmul.f32 0.2, %v812_v8 }
 0x113   : > { %820 = vst.msk [vmem:[%s304_s26] sm:$0xff] %vm819_vm3, %v817_v9 }
 0x114   : > { %v818_v11 = vsel %vm814_vm4, %v812_v8, %v816_v10 }
 0x115   : > { %821 = vst.msk [vmem:[%s304_s26 + $0x8] sm:$0xff] %vm819_vm3, %v818_v11 }
 0x116 PF: > { %s15_s20 = sadd.s32 1, %s1149_s20   ;;  %s1359_s18 = smov %s1145_s19 }
 0x117   : > { %p12_p5 = scmp.ge.s32.totalorder %s15_s20, 4   ;;  %s1360_s19 = smov %s1362_s21 }
 0x119   :  { %14 = sbr.rel (!%p12_p5) target bundleno = 2 (0x2), region = 73 }

// kernel: generator_forward.62
= control target key start
LH: loop header
LB: loop body
LE: loop exit
PB: predicated region body
PF: predicated region fallthrough
CT: control target
= control target key end

     0   :  { %s997_s12 = smov 0   ;;  %s999_s13 = smov 0   ;;  %s1156_s0 = inlined_call_operand.vmem [shape: bf16[2,16,576], index: 0, kind: input, shape index: {}]   ;;  %s1157_s1 = inlined_call_operand.vmem [shape: bf16[576,16], index: 1, kind: input, shape index: {}]   ;;  %s1158_s2 = inlined_call_operand.vmem [shape: f32[1,16], index: 2, kind: input, shape index: {}]   ;;  %s1159_s3 = inlined_call_operand.vmem [shape: f32[2,16,16], index: 3, kind: output, shape index: {}]  }
   0x1   :  { %s1001_s14 = smov 0  }
   0x2 LB: > { %s25_s15 = sadd.s32 1, %s969_s13  ;;  %p770_p0 = scmp.ge.s32.totalorder %s973_s14, 1  ;;  %s973_s14 = sphi %s1001_s14, %s13_s14   ;;  %s969_s13 = sphi %s999_s13, %s1161_s13   ;;  %s965_s12 = sphi %s997_s12, %s1160_s12  }
   0x3   : > { %p27_p1 = scmp.ge.s32.totalorder %s25_s15, 2  ;;  %p159_p2 = scmp.lt.s32.totalorder %s973_s14, 3 }
   0x5   : > { %s1163_s15 = smov (%p27_p1, %s25_s15), 0  ;;  %p160_p3 = pnand %p770_p0, %p159_p2 }
   0x6   : > { %v908_v0 = vld [vmem:[%s1157_s1 + $0x40] sm:$0xff] (!%p160_p3)   ;;  %v912_v4 = vld [vmem:[%s1157_s1 + $0x48] sm:$0xff] (!%p160_p3)   ;;  %v916_v8 = vld [vmem:[%s1157_s1 + $0x50] sm:$0xff] (!%p160_p3)   ;;  %p193_p4 = scmp.lt.s32.totalorder (!%p160_p3), %s965_s12, 1  ;;  %v975_v33 = vmov (!%p160_p3), 0.0   ;;  %vm976_vm0 = vmmov (!%p160_p3), 0  }
   0x7   : > { %163 = sbr.rel (%p160_p3) target bundleno = 275 (0x113), region = 32  ;;  %v909_v1 = vld [vmem:[%s1157_s1] sm:$0xff] (!%p160_p3)   ;;  %820 = vmatprep.subr.bf16.mxu0 (!%p160_p3), %v908_v0  ;;  %v913_v5 = vld [vmem:[%s1157_s1 + $0x8] sm:$0xff] (!%p160_p3)   ;;  %v917_v9 = vld [vmem:[%s1157_s1 + $0x10] sm:$0xff] (!%p160_p3)   ;;  %vm540_vm1 = vcmask (!%p160_p3), 523264   ;;  %vm673_vm3 = vcmask (!%p160_p3), 130048  }
   0x8   : > { %v910_v2 = vld [vmem:[%s1157_s1 + $0xc0] sm:$0xff] (!%p160_p3)   ;;  %821 = vmatpush3.bf16.msra.mxu0 (!%p160_p3), %v909_v1  ;;  %v914_v6 = vld [vmem:[%s1157_s1 + $0xc8] sm:$0xff] (!%p160_p3)   ;;  %v918_v10 = vld [vmem:[%s1157_s1 + $0xd0] sm:$0xff] (!%p160_p3)  }
   0x9   : > { %v911_v3 = vld [vmem:[%s1157_s1 + $0x80] sm:$0xff] (!%p160_p3)   ;;  %842 = vmatprep.subr.bf16.mxu1 (!%p160_p3), %v910_v2  ;;  %822 = vmatprep.subr.bf16.mxu0 (!%p160_p3), %v912_v4  ;;  %v915_v7 = vld [vmem:[%s1157_s1 + $0x88] sm:$0xff] (!%p160_p3)   ;;  %v919_v11 = vld [vmem:[%s1157_s1 + $0x90] sm:$0xff] (!%p160_p3)  }
   0xa   : > { %843 = vmatpush3.bf16.msra.mxu1 (!%p160_p3), %v911_v3  ;;  %v920_v12 = vld [vmem:[%s1157_s1 + $0x58] sm:$0xff] (!%p160_p3)   ;;  %v924_v16 = vld [vmem:[%s1157_s1 + $0x60] sm:$0xff] (!%p160_p3)   ;;  %v928_v20 = vld [vmem:[%s1157_s1 + $0x68] sm:$0xff] (!%p160_p3)  }
   0xb   : > { %844 = vmatprep.subr.bf16.mxu1 (!%p160_p3), %v914_v6  ;;  %v921_v13 = vld [vmem:[%s1157_s1 + $0x18] sm:$0xff] (!%p160_p3)   ;;  %v925_v17 = vld [vmem:[%s1157_s1 + $0x20] sm:$0xff] (!%p160_p3)   ;;  %v929_v21 = vld [vmem:[%s1157_s1 + $0x28] sm:$0xff] (!%p160_p3)  }
   0xc   : > { %823 = vmatpush3.bf16.msra.mxu0 (!%p160_p3), %v913_v5  ;;  %v922_v14 = vld [vmem:[%s1157_s1 + $0xd8] sm:$0xff] (!%p160_p3)   ;;  %v926_v18 = vld [vmem:[%s1157_s1 + $0xe0] sm:$0xff] (!%p160_p3)   ;;  %v930_v22 = vld [vmem:[%s1157_s1 + $0xe8] sm:$0xff] (!%p160_p3)  }
   0xd   : > { %824 = vmatprep.subr.bf16.mxu0 (!%p160_p3), %v916_v8  ;;  %v923_v15 = vld [vmem:[%s1157_s1 + $0x98] sm:$0xff] (!%p160_p3)   ;;  %v927_v19 = vld [vmem:[%s1157_s1 + $0xa0] sm:$0xff] (!%p160_p3)   ;;  %v931_v23 = vld [vmem:[%s1157_s1 + $0xa8] sm:$0xff] (!%p160_p3)  }
   0xe   : > { %845 = vmatpush3.bf16.msra.mxu1 %v915_v7  ;;  %s1165_s12 = smov (!%p193_p4, %s965_s12), 1  ;;  %v932_v24 = vld [vmem:[%s1157_s1 + $0x70] sm:$0xff]   ;;  %v936_v28 = vld [vmem:[%s1157_s1 + $0x78] sm:$0xff]   ;;  %v946_v37 = vld [vmem:[%s1157_s1 + $0x100] sm:$0xff]  }
   0xf   : > { %846 = vmatprep.subr.bf16.mxu1 %v918_v10  ;;  %s881_s20 = smul.u32 40, %s1165_s12  ;;  %v933_v25 = vld [vmem:[%s1157_s1 + $0x30] sm:$0xff]   ;;  %v937_v29 = vld [vmem:[%s1157_s1 + $0x38] sm:$0xff]   ;;  %v947_v38 = vld [vmem:[%s1157_s1 + $0x108] sm:$0xff]   ;;  %s819_s25 = sshll.u32 %s1165_s12, 4 }
  0x10   : > { %825 = vmatpush3.bf16.msra.mxu0 %v917_v9  ;;  %v934_v26 = vld [vmem:[%s1157_s1 + $0xf0] sm:$0xff]   ;;  %v938_v30 = vld [vmem:[%s1157_s1 + $0xf8] sm:$0xff]   ;;  %v774_v43 = vld [vmem:[%s1158_s2] ss:$0 sm:$0xff]  ;;  %s211_s28 = scalar_lea.vmem %s1159_s3, %s819_s25 }
  0x11   : > { %826 = vmatprep.subr.bf16.mxu0 %v920_v12  ;;  %v935_v27 = vld [vmem:[%s1157_s1 + $0xb0] sm:$0xff]   ;;  %s1112_s4 = scalar_lea.vmem %s1156_s0, %s881_s20  ;;  %v942_v34 = vld [vmem:[%s1157_s1 + $0xb8] sm:$0xff]  }
  0x12   : > { %847 = vmatpush3.bf16.msra.mxu1 %v919_v11  ;;  %v939_v31 = vld [vmem:[%s1112_s4] ss:$20 sps:$4 sm:$0xff]   ;;  %v941_v32 = vld [vmem:[%s1112_s4 + $0x4] ss:$20 sps:$4 sm:$0xff]   ;;  %v943_v35 = vld [vmem:[%s1112_s4 + $0x8] ss:$20 sps:$4 sm:$0xff]  }
  0x13   : > { %848 = vmatprep.subr.bf16.mxu1 %v922_v14  ;;  %576 = vmatprep.mubr.bf16.mxu0 %v941_v32  ;;  %v945_v36 = vld [vmem:[%s1112_s4 + $0xc] ss:$20 sps:$4 sm:$0xff]   ;;  %v948_v39 = vld [vmem:[%s1157_s1 + $0x110] sm:$0xff]   ;;  %v949_v40 = vld [vmem:[%s1157_s1 + $0x118] sm:$0xff]  }
  0x14   : > { %827 = vmatpush3.bf16.msra.mxu0 %v921_v13  ;;  %617 = vmatprep.mubr.bf16.mxu1 %v945_v36  ;;  %v950_v41 = vld [vmem:[%s1112_s4 + $0x10] ss:$20 sps:$4 sm:$0xff]  }
  0x15   : > { %828 = vmatprep.subr.bf16.mxu0 %v924_v16 }
  0x16   : > { %849 = vmatpush3.bf16.msra.mxu1 %v923_v15 }
  0x17   : > { %850 = vmatprep.subr.bf16.mxu1 %v926_v18 }
  0x18   : > { %829 = vmatpush3.bf16.msra.mxu0 %v925_v17 }
  0x19   : > { %830 = vmatprep.subr.bf16.mxu0 %v928_v20 }
  0x1a   : > { %851 = vmatpush3.bf16.msra.mxu1 %v927_v19 }
  0x1b   : > { %852 = vmatprep.subr.bf16.mxu1 %v930_v22 }
  0x1c   : > { %831 = vmatpush3.bf16.msra.mxu0 %v929_v21 }
  0x1d   : > { %832 = vmatprep.subr.bf16.mxu0 %v932_v24 }
  0x1e   : > { %853 = vmatpush3.bf16.msra.mxu1 %v931_v23 }
  0x1f   : > { %854 = vmatprep.subr.bf16.mxu1 %v934_v26 }
  0x20   : > { %833 = vmatpush3.bf16.msra.mxu0 %v933_v25 }
  0x21   : > { %834 = vmatprep.subr.bf16.mxu0 %v936_v28 }
  0x22   : > { %855 = vmatpush3.bf16.msra.mxu1 %v935_v27 }
  0x23   : > { %856 = vmatprep.subr.bf16.mxu1 %v938_v30 }
  0x24   : > { %835 = vmatpush3.bf16.msra.mxu0 %v937_v29 }
  0x25   : > { %869 = vmatprep.subr.bf16.mxu0 %v975_v33 }
  0x26   : > { %857 = vmatpush3.bf16.msra.mxu1 %v942_v34 }
  0x27   : > { %577 = vmatmul.mubr.bf16.vlgmr.msra.gmra.mrb[0].mxu0 %v939_v31 }
  0x28   : > { %877 = vmatprep.mubr.msk.bf16.mxu0 %vm976_vm0, %v975_v33  ;;  %870 = vmatpush3.bf16.msra.mxu0 %v946_v37 }
  0x29   : > { %618 = vmatmul.mubr.bf16.vlgmr.msra.gmra.mrb[0].mxu1 %v943_v35  ;;  %871 = vmatprep.subr.bf16.mxu0 %v975_v33 }
  0x2c   : > { %872 = vmatpush3.bf16.msra.mxu0 %v947_v38 }
  0x2d   : > { %873 = vmatprep.subr.bf16.mxu0 %v975_v33 }
  0x30   : > { %874 = vmatpush3.bf16.msra.mxu0 %v948_v39 }
  0x31   : > { %875 = vmatprep.subr.bf16.mxu0 %v975_v33 }
  0x34   : > { %876 = vmatpush3.bf16.msra.mxu0 %v949_v40 }
  0x37   : > { %878 = vmatmul.mubr.msk.bf16.vlgmr.msra.gmra.mrb[4].mxu0 %vm540_vm1, %v950_v41 }
  0xfa   : > { %v836_v42 = vpop.f32.mrb[0].mxu0 }
  0xfb   : > { %v837_v44 = vpop.f32.mrb[1].mxu0 }
  0xfc   : > { %v838_v45 = vadd.f32 %v837_v44, %v836_v42  ;;  %v839_v46 = vpop.f32.mrb[2].mxu0  ;;  %v858_v47 = vpop.f32.mrb[0].mxu1 }
  0xfd   : > { %v840_v48 = vpop.f32.mrb[3].mxu0  ;;  %v859_v51 = vpop.f32.mrb[1].mxu1 }
  0xfe   : > { %v579_v49 = vadd.f32 %v838_v45, %v774_v43  ;;  %v841_v50 = vadd.f32 %v840_v48, %v839_v46  ;;  %v860_v52 = vadd.f32 %v859_v51, %v858_v47  ;;  %v861_v53 = vpop.f32.mrb[2].mxu1 }
  0xff   : > { %v862_v55 = vpop.f32.mrb[3].mxu1 }
 0x100   : > { %v582_v54 = vadd.f32 %v841_v50, %v774_v43  ;;  %v863_v56 = vadd.f32 %v862_v55, %v861_v53  ;;  %v620_v57 = vadd.f32 %v860_v52, %v579_v49 }
 0x102   : > { %v623_v58 = vadd.f32 %v863_v56, %v582_v54 }
 0x10a   : > { %v660_v59 = vpop.f32.mrb[4].mxu0 }
 0x10b   : > { %v661_v60 = vadd.f32 %v660_v59, %v620_v57  ;;  %v879_v61 = vpop.f32.mrb[5].mxu0 }
 0x10c   : > { %v663_v62 = vpop.f32.mrb[6].mxu0 }
 0x10d   : > { %vm667_vm2 = vcmp.ge.f32.partialorder %v661_v60, 0.0  ;;  %v669_v63 = vmul.f32 0.2, %v661_v60  ;;  %v664_v0 = vadd.f32 %v663_v62, %v623_v58  ;;  %v880_v1 = vpop.f32.mrb[7].mxu0 }
 0x10f   : > { %v671_v2 = vsel %vm667_vm2, %v661_v60, %v669_v63  ;;  %vm668_vm4 = vcmp.ge.f32.partialorder %v664_v0, 0.0  ;;  %v670_v3 = vmul.f32 0.2, %v664_v0 }
 0x110   : > { %674 = vst.msk [vmem:[%s211_s28] sm:$0xff] %vm673_vm3, %v671_v2 }
 0x111   : > { %v672_v4 = vsel %vm668_vm4, %v664_v0, %v670_v3 }
 0x112   : > { %675 = vst.msk [vmem:[%s211_s28 + $0x8] sm:$0xff] %vm673_vm3, %v672_v4 }
 0x113 PF: > { %s13_s14 = sadd.s32 1, %s973_s14   ;;  %s1160_s12 = smov %s969_s13 }
 0x114   : > { %p10_p5 = scmp.ge.s32.totalorder %s13_s14, 4   ;;  %s1161_s13 = smov %s1163_s15 }
 0x116   :  { %12 = sbr.rel (!%p10_p5) target bundleno = 2 (0x2), region = 62 }

// kernel: generator_forward.63
= control target key start
LH: loop header
LB: loop body
LE: loop exit
PB: predicated region body
PF: predicated region fallthrough
CT: control target
= control target key end

     0   :  { %s550_s12 = smov 0   ;;  %s552_s13 = smov 0   ;;  %s620_s0 = inlined_call_operand.vmem [shape: bf16[2,16,144], index: 0, kind: input, shape index: {}]   ;;  %s621_s1 = inlined_call_operand.vmem [shape: bf16[144,64], index: 1, kind: input, shape index: {}]   ;;  %s622_s2 = inlined_call_operand.vmem [shape: f32[1,64], index: 2, kind: input, shape index: {}]   ;;  %s623_s3 = inlined_call_operand.vmem [shape: f32[2,16,64], index: 3, kind: output, shape index: {}]  }
   0x1   :  { %s554_s14 = smov 0  }
   0x2 LB: > { %s25_s15 = sadd.s32 1, %s523_s13  ;;  %p446_p0 = scmp.ge.s32.totalorder %s527_s14, 1  ;;  %s527_s14 = sphi %s554_s14, %s13_s14   ;;  %s523_s13 = sphi %s552_s13, %s625_s13   ;;  %s519_s12 = sphi %s550_s12, %s624_s12  }
   0x3   : > { %p27_p1 = scmp.ge.s32.totalorder %s25_s15, 2  ;;  %p159_p2 = scmp.lt.s32.totalorder %s527_s14, 3 }
   0x5   : > { %s627_s15 = smov (%p27_p1, %s25_s15), 0  ;;  %p160_p3 = pnand %p446_p0, %p159_p2 }
   0x6   : > { %v493_v0 = vld [vmem:[%s621_s1] sm:$0xff] (!%p160_p3)   ;;  %v529_v1 = vmov (!%p160_p3), 0   ;;  %p193_p4 = scmp.lt.s32.totalorder (!%p160_p3), %s519_s12, 1  ;;  %v494_v2 = vld [vmem:[%s621_s1 + $0x8] sm:$0xff] (!%p160_p3)   ;;  %v495_v3 = vld [vmem:[%s621_s1 + $0x10] sm:$0xff] (!%p160_p3)   ;;  %vm304_vm0 = vcmask (!%p160_p3), 130048  }
   0x7   : > { %163 = sbr.rel (%p160_p3) target bundleno = 260 (0x104), region = 32  ;;  %308 = vmatprep.subr.bf16.mxu0 (!%p160_p3), %v529_v1  ;;  %v496_v4 = vld [vmem:[%s621_s1 + $0x18] sm:$0xff] (!%p160_p3)   ;;  %v497_v6 = vld [vmem:[%s621_s1 + $0x20] sm:$0xff] (!%p160_p3)   ;;  %v498_v7 = vld [vmem:[%s621_s1 + $0x28] sm:$0xff] (!%p160_p3)   ;;  %vm349_vm1 = vcmask (!%p160_p3), 523264  }
   0x8   : > { %309 = vmatpush1.bf16.msra.mxu0 (!%p160_p3), %v493_v0  ;;  %v499_v8 = vld [vmem:[%s621_s1 + $0x30] sm:$0xff] (!%p160_p3)   ;;  %v500_v9 = vld [vmem:[%s621_s1 + $0x38] sm:$0xff] (!%p160_p3)   ;;  %v501_v10 = vld [vmem:[%s621_s1 + $0x40] sm:$0xff] (!%p160_p3)  }
   0x9   : > { %310 = vmatprep.subr.bf16.mxu0 (!%p160_p3), %v529_v1  ;;  %v451_v12 = vld [vmem:[%s622_s2] ss:$0 sm:$0xff] (!%p160_p3) }
   0xc   : > { %311 = vmatpush1.bf16.msra.mxu0 (!%p160_p3), %v494_v2 }
   0xd   : > { %312 = vmatprep.subr.bf16.mxu0 (!%p160_p3), %v529_v1 }
   0xe   : > { %s629_s12 = smov (!%p193_p4, %s519_s12), 1 }
   0xf   : > { %s466_s20 = sshll.u32 %s629_s12, 4 }
  0x10   : > { %s201_s25 = scalar_lea.vmem %s620_s0, %s466_s20  ;;  %313 = vmatpush1.bf16.msra.mxu0 %v495_v3  ;;  %s211_s19 = scalar_lea.vmem %s623_s3, %s466_s20 }
  0x11   : > { %v504_v5 = vld [vmem:[%s201_s25 + $0x4] ss:$8 sps:$4 sm:$0xff]   ;;  %314 = vmatprep.subr.bf16.mxu0 %v529_v1  ;;  %v502_v11 = vld [vmem:[%s201_s25] ss:$8 sps:$4 sm:$0xff]  }
  0x12   : > { %463 = vmatprep.mubr.msk.bf16.mxu0 %vm304_vm0, %v504_v5 }
  0x14   : > { %315 = vmatpush1.bf16.msra.mxu0 %v496_v4 }
  0x15   : > { %316 = vmatprep.subr.bf16.mxu0 %v529_v1 }
  0x18   : > { %317 = vmatpush1.bf16.msra.mxu0 %v497_v6 }
  0x19   : > { %318 = vmatprep.subr.bf16.mxu0 %v529_v1 }
  0x1c   : > { %319 = vmatpush1.bf16.msra.mxu0 %v498_v7 }
  0x1d   : > { %320 = vmatprep.subr.bf16.mxu0 %v529_v1 }
  0x20   : > { %321 = vmatpush1.bf16.msra.mxu0 %v499_v8 }
  0x21   : > { %322 = vmatprep.subr.bf16.mxu0 %v529_v1 }
  0x24   : > { %323 = vmatpush1.bf16.msra.mxu0 %v500_v9 }
  0x25   : > { %324 = vmatprep.subr.bf16.mxu0 %v529_v1 }
  0x28   : > { %325 = vmatpush1.bf16.msra.mxu0 %v501_v10 }
  0x2b   : > { %341 = vmatmul.mubr.bf16.vlgmr.msra.gmra.mrb[0].mxu0 %v502_v11 }
  0xfe   : > { %v342_v13 = vpop.f32.mrb[0].mxu0 }
  0xff   : > { %v343_v14 = vadd.f32 %v451_v12, %v342_v13  ;;  %v344_v15 = vpop.f32.mrb[1].mxu0 }
 0x100   : > { %v345_v16 = vpop.f32.mrb[2].mxu0 }
 0x101   : > { %350 = vst.msk [vmem:[%s211_s19] sm:$0xff] %vm349_vm1, %v343_v14  ;;  %v346_v17 = vadd.f32 %v451_v12, %v345_v16  ;;  %v347_v18 = vpop.f32.mrb[3].mxu0 }
 0x103   : > { %351 = vst.msk [vmem:[%s211_s19 + $0x8] sm:$0xff] %vm349_vm1, %v346_v17 }
 0x104 PF: > { %s13_s14 = sadd.s32 1, %s527_s14   ;;  %s624_s12 = smov %s523_s13 }
 0x105   : > { %p10_p5 = scmp.ge.s32.totalorder %s13_s14, 4   ;;  %s625_s13 = smov %s627_s15 }
 0x107   :  { %12 = sbr.rel (!%p10_p5) target bundleno = 2 (0x2), region = 62 }

// kernel: generator_forward.61
= control target key start
LH: loop header
LB: loop body
LE: loop exit
PB: predicated region body
PF: predicated region fallthrough
CT: control target
= control target key end

     0   :  { %s996_s12 = smov 0   ;;  %s998_s13 = smov 0   ;;  %s1158_s0 = inlined_call_operand.vmem [shape: bf16[2,16,576], index: 0, kind: input, shape index: {}]   ;;  %s1159_s1 = inlined_call_operand.vmem [shape: bf16[576,64], index: 1, kind: input, shape index: {}]   ;;  %s1160_s2 = inlined_call_operand.vmem [shape: f32[1,64], index: 2, kind: input, shape index: {}]   ;;  %s1161_s3 = inlined_call_operand.vmem [shape: f32[2,16,64], index: 3, kind: output, shape index: {}]  }
   0x1   :  { %s1000_s14 = smov 0  }
   0x2 LB: > { %s25_s15 = sadd.s32 1, %s968_s13  ;;  %p769_p0 = scmp.ge.s32.totalorder %s972_s14, 1  ;;  %s972_s14 = sphi %s1000_s14, %s13_s14   ;;  %s968_s13 = sphi %s998_s13, %s1163_s13   ;;  %s964_s12 = sphi %s996_s12, %s1162_s12  }
   0x3   : > { %p27_p1 = scmp.ge.s32.totalorder %s25_s15, 2  ;;  %p159_p2 = scmp.lt.s32.totalorder %s972_s14, 3 }
   0x5   : > { %s1165_s15 = smov (%p27_p1, %s25_s15), 0  ;;  %p160_p3 = pnand %p769_p0, %p159_p2 }
   0x6   : > { %v907_v0 = vld [vmem:[%s1159_s1 + $0x40] sm:$0xff] (!%p160_p3)   ;;  %v911_v4 = vld [vmem:[%s1159_s1 + $0x48] sm:$0xff] (!%p160_p3)   ;;  %v915_v8 = vld [vmem:[%s1159_s1 + $0x50] sm:$0xff] (!%p160_p3)   ;;  %p193_p4 = scmp.lt.s32.totalorder (!%p160_p3), %s964_s12, 1  ;;  %v974_v33 = vmov (!%p160_p3), 0.0   ;;  %vm975_vm0 = vmmov (!%p160_p3), 0  }
   0x7   : > { %163 = sbr.rel (%p160_p3) target bundleno = 275 (0x113), region = 32  ;;  %v908_v1 = vld [vmem:[%s1159_s1] sm:$0xff] (!%p160_p3)   ;;  %819 = vmatprep.subr.bf16.mxu0 (!%p160_p3), %v907_v0  ;;  %v912_v5 = vld [vmem:[%s1159_s1 + $0x8] sm:$0xff] (!%p160_p3)   ;;  %v916_v9 = vld [vmem:[%s1159_s1 + $0x10] sm:$0xff] (!%p160_p3)   ;;  %vm540_vm1 = vcmask (!%p160_p3), 523264  }
   0x8   : > { %v909_v2 = vld [vmem:[%s1159_s1 + $0xc0] sm:$0xff] (!%p160_p3)   ;;  %820 = vmatpush3.bf16.msra.mxu0 (!%p160_p3), %v908_v1  ;;  %v913_v6 = vld [vmem:[%s1159_s1 + $0xc8] sm:$0xff] (!%p160_p3)   ;;  %v917_v10 = vld [vmem:[%s1159_s1 + $0xd0] sm:$0xff] (!%p160_p3)  }
   0x9   : > { %v910_v3 = vld [vmem:[%s1159_s1 + $0x80] sm:$0xff] (!%p160_p3)   ;;  %841 = vmatprep.subr.bf16.mxu1 (!%p160_p3), %v909_v2  ;;  %821 = vmatprep.subr.bf16.mxu0 (!%p160_p3), %v911_v4  ;;  %v914_v7 = vld [vmem:[%s1159_s1 + $0x88] sm:$0xff] (!%p160_p3)   ;;  %v918_v11 = vld [vmem:[%s1159_s1 + $0x90] sm:$0xff] (!%p160_p3)  }
   0xa   : > { %842 = vmatpush3.bf16.msra.mxu1 (!%p160_p3), %v910_v3  ;;  %v919_v12 = vld [vmem:[%s1159_s1 + $0x58] sm:$0xff] (!%p160_p3)   ;;  %v923_v16 = vld [vmem:[%s1159_s1 + $0x60] sm:$0xff] (!%p160_p3)   ;;  %v927_v20 = vld [vmem:[%s1159_s1 + $0x68] sm:$0xff] (!%p160_p3)  }
   0xb   : > { %843 = vmatprep.subr.bf16.mxu1 (!%p160_p3), %v913_v6  ;;  %v920_v13 = vld [vmem:[%s1159_s1 + $0x18] sm:$0xff] (!%p160_p3)   ;;  %v924_v17 = vld [vmem:[%s1159_s1 + $0x20] sm:$0xff] (!%p160_p3)   ;;  %v928_v21 = vld [vmem:[%s1159_s1 + $0x28] sm:$0xff] (!%p160_p3)  }
   0xc   : > { %822 = vmatpush3.bf16.msra.mxu0 (!%p160_p3), %v912_v5  ;;  %v921_v14 = vld [vmem:[%s1159_s1 + $0xd8] sm:$0xff] (!%p160_p3)   ;;  %v925_v18 = vld [vmem:[%s1159_s1 + $0xe0] sm:$0xff] (!%p160_p3)   ;;  %v929_v22 = vld [vmem:[%s1159_s1 + $0xe8] sm:$0xff] (!%p160_p3)  }
   0xd   : > { %823 = vmatprep.subr.bf16.mxu0 (!%p160_p3), %v915_v8  ;;  %v922_v15 = vld [vmem:[%s1159_s1 + $0x98] sm:$0xff] (!%p160_p3)   ;;  %v926_v19 = vld [vmem:[%s1159_s1 + $0xa0] sm:$0xff] (!%p160_p3)   ;;  %v930_v23 = vld [vmem:[%s1159_s1 + $0xa8] sm:$0xff] (!%p160_p3)  }
   0xe   : > { %844 = vmatpush3.bf16.msra.mxu1 %v914_v7  ;;  %s1167_s12 = smov (!%p193_p4, %s964_s12), 1  ;;  %v931_v24 = vld [vmem:[%s1159_s1 + $0x70] sm:$0xff]   ;;  %v935_v28 = vld [vmem:[%s1159_s1 + $0x78] sm:$0xff]   ;;  %v945_v37 = vld [vmem:[%s1159_s1 + $0x100] sm:$0xff]  }
   0xf   : > { %845 = vmatprep.subr.bf16.mxu1 %v917_v10  ;;  %s880_s20 = smul.u32 40, %s1167_s12  ;;  %v932_v25 = vld [vmem:[%s1159_s1 + $0x30] sm:$0xff]   ;;  %v936_v29 = vld [vmem:[%s1159_s1 + $0x38] sm:$0xff]   ;;  %v946_v38 = vld [vmem:[%s1159_s1 + $0x108] sm:$0xff]   ;;  %s818_s25 = sshll.u32 %s1167_s12, 4 }
  0x10   : > { %824 = vmatpush3.bf16.msra.mxu0 %v916_v9  ;;  %v933_v26 = vld [vmem:[%s1159_s1 + $0xf0] sm:$0xff]   ;;  %v937_v30 = vld [vmem:[%s1159_s1 + $0xf8] sm:$0xff]   ;;  %v773_v43 = vld [vmem:[%s1160_s2] ss:$0 sm:$0xff]  ;;  %s211_s28 = scalar_lea.vmem %s1161_s3, %s818_s25 }
  0x11   : > { %825 = vmatprep.subr.bf16.mxu0 %v919_v12  ;;  %v934_v27 = vld [vmem:[%s1159_s1 + $0xb0] sm:$0xff]   ;;  %s1111_s4 = scalar_lea.vmem %s1158_s0, %s880_s20  ;;  %v941_v34 = vld [vmem:[%s1159_s1 + $0xb8] sm:$0xff]  }
  0x12   : > { %846 = vmatpush3.bf16.msra.mxu1 %v918_v11  ;;  %v938_v31 = vld [vmem:[%s1111_s4] ss:$20 sps:$4 sm:$0xff]   ;;  %v940_v32 = vld [vmem:[%s1111_s4 + $0x4] ss:$20 sps:$4 sm:$0xff]   ;;  %v942_v35 = vld [vmem:[%s1111_s4 + $0x8] ss:$20 sps:$4 sm:$0xff]  }
  0x13   : > { %847 = vmatprep.subr.bf16.mxu1 %v921_v14  ;;  %576 = vmatprep.mubr.bf16.mxu0 %v940_v32  ;;  %v944_v36 = vld [vmem:[%s1111_s4 + $0xc] ss:$20 sps:$4 sm:$0xff]   ;;  %v947_v39 = vld [vmem:[%s1159_s1 + $0x110] sm:$0xff]   ;;  %v948_v40 = vld [vmem:[%s1159_s1 + $0x118] sm:$0xff]  }
  0x14   : > { %826 = vmatpush3.bf16.msra.mxu0 %v920_v13  ;;  %617 = vmatprep.mubr.bf16.mxu1 %v944_v36  ;;  %v949_v41 = vld [vmem:[%s1111_s4 + $0x10] ss:$20 sps:$4 sm:$0xff]  }
  0x15   : > { %827 = vmatprep.subr.bf16.mxu0 %v923_v16 }
  0x16   : > { %848 = vmatpush3.bf16.msra.mxu1 %v922_v15 }
  0x17   : > { %849 = vmatprep.subr.bf16.mxu1 %v925_v18 }
  0x18   : > { %828 = vmatpush3.bf16.msra.mxu0 %v924_v17 }
  0x19   : > { %829 = vmatprep.subr.bf16.mxu0 %v927_v20 }
  0x1a   : > { %850 = vmatpush3.bf16.msra.mxu1 %v926_v19 }
  0x1b   : > { %851 = vmatprep.subr.bf16.mxu1 %v929_v22 }
  0x1c   : > { %830 = vmatpush3.bf16.msra.mxu0 %v928_v21 }
  0x1d   : > { %831 = vmatprep.subr.bf16.mxu0 %v931_v24 }
  0x1e   : > { %852 = vmatpush3.bf16.msra.mxu1 %v930_v23 }
  0x1f   : > { %853 = vmatprep.subr.bf16.mxu1 %v933_v26 }
  0x20   : > { %832 = vmatpush3.bf16.msra.mxu0 %v932_v25 }
  0x21   : > { %833 = vmatprep.subr.bf16.mxu0 %v935_v28 }
  0x22   : > { %854 = vmatpush3.bf16.msra.mxu1 %v934_v27 }
  0x23   : > { %855 = vmatprep.subr.bf16.mxu1 %v937_v30 }
  0x24   : > { %834 = vmatpush3.bf16.msra.mxu0 %v936_v29 }
  0x25   : > { %868 = vmatprep.subr.bf16.mxu0 %v974_v33 }
  0x26   : > { %856 = vmatpush3.bf16.msra.mxu1 %v941_v34 }
  0x27   : > { %577 = vmatmul.mubr.bf16.vlgmr.msra.gmra.mrb[0].mxu0 %v938_v31 }
  0x28   : > { %876 = vmatprep.mubr.msk.bf16.mxu0 %vm975_vm0, %v974_v33  ;;  %869 = vmatpush3.bf16.msra.mxu0 %v945_v37 }
  0x29   : > { %618 = vmatmul.mubr.bf16.vlgmr.msra.gmra.mrb[0].mxu1 %v942_v35  ;;  %870 = vmatprep.subr.bf16.mxu0 %v974_v33 }
  0x2c   : > { %871 = vmatpush3.bf16.msra.mxu0 %v946_v38 }
  0x2d   : > { %872 = vmatprep.subr.bf16.mxu0 %v974_v33 }
  0x30   : > { %873 = vmatpush3.bf16.msra.mxu0 %v947_v39 }
  0x31   : > { %874 = vmatprep.subr.bf16.mxu0 %v974_v33 }
  0x34   : > { %875 = vmatpush3.bf16.msra.mxu0 %v948_v40 }
  0x37   : > { %877 = vmatmul.mubr.msk.bf16.vlgmr.msra.gmra.mrb[4].mxu0 %vm540_vm1, %v949_v41 }
  0xfa   : > { %v835_v42 = vpop.f32.mrb[0].mxu0 }
  0xfb   : > { %v836_v44 = vpop.f32.mrb[1].mxu0 }
  0xfc   : > { %v837_v45 = vadd.f32 %v836_v44, %v835_v42  ;;  %v838_v46 = vpop.f32.mrb[2].mxu0  ;;  %v857_v47 = vpop.f32.mrb[0].mxu1 }
  0xfd   : > { %v839_v48 = vpop.f32.mrb[3].mxu0  ;;  %v858_v51 = vpop.f32.mrb[1].mxu1 }
  0xfe   : > { %v579_v49 = vadd.f32 %v837_v45, %v773_v43  ;;  %v840_v50 = vadd.f32 %v839_v48, %v838_v46  ;;  %v859_v52 = vadd.f32 %v858_v51, %v857_v47  ;;  %v860_v53 = vpop.f32.mrb[2].mxu1 }
  0xff   : > { %v861_v55 = vpop.f32.mrb[3].mxu1 }
 0x100   : > { %v582_v54 = vadd.f32 %v840_v50, %v773_v43  ;;  %v862_v56 = vadd.f32 %v861_v55, %v860_v53  ;;  %v620_v57 = vadd.f32 %v859_v52, %v579_v49 }
 0x102   : > { %v623_v58 = vadd.f32 %v862_v56, %v582_v54 }
 0x10a   : > { %v660_v59 = vpop.f32.mrb[4].mxu0 }
 0x10b   : > { %v661_v60 = vadd.f32 %v660_v59, %v620_v57  ;;  %v878_v61 = vpop.f32.mrb[5].mxu0 }
 0x10c   : > { %v663_v62 = vpop.f32.mrb[6].mxu0 }
 0x10d   : > { %vm667_vm2 = vcmp.ge.f32.partialorder %v661_v60, 0.0  ;;  %v669_v63 = vmul.f32 0.2, %v661_v60  ;;  %v664_v0 = vadd.f32 %v663_v62, %v623_v58  ;;  %v879_v1 = vpop.f32.mrb[7].mxu0 }
 0x10f   : > { %v671_v2 = vsel %vm667_vm2, %v661_v60, %v669_v63  ;;  %vm668_vm3 = vcmp.ge.f32.partialorder %v664_v0, 0.0  ;;  %v670_v3 = vmul.f32 0.2, %v664_v0 }
 0x110   : > { %673 = vst.msk [vmem:[%s211_s28] sm:$0xff] %vm540_vm1, %v671_v2 }
 0x111   : > { %v672_v4 = vsel %vm668_vm3, %v664_v0, %v670_v3 }
 0x112   : > { %674 = vst.msk [vmem:[%s211_s28 + $0x8] sm:$0xff] %vm540_vm1, %v672_v4 }
 0x113 PF: > { %s13_s14 = sadd.s32 1, %s972_s14   ;;  %s1162_s12 = smov %s968_s13 }
 0x114   : > { %p10_p5 = scmp.ge.s32.totalorder %s13_s14, 4   ;;  %s1163_s13 = smov %s1165_s15 }
 0x116   :  { %12 = sbr.rel (!%p10_p5) target bundleno = 2 (0x2), region = 62 }

// kernel: generator_forward.64
= control target key start
LH: loop header
LB: loop body
LE: loop exit
PB: predicated region body
PF: predicated region fallthrough
CT: control target
= control target key end

     0   :  { %s1034_s18 = smov 0   ;;  %s1036_s19 = smov 0   ;;  %s1188_s0 = inlined_call_operand.vmem [shape: bf16[2,64,144], index: 0, kind: input, shape index: {}]   ;;  %s1189_s1 = inlined_call_operand.vmem [shape: bf16[2,64,144], index: 1, kind: input, shape index: {}]   ;;  %s1190_s2 = inlined_call_operand.vmem [shape: bf16[144,32], index: 2, kind: input, shape index: {}]   ;;  %s1191_s3 = inlined_call_operand.vmem [shape: bf16[144,32], index: 3, kind: input, shape index: {}]   ;;  %s1192_s4 = inlined_call_operand.vmem [shape: f32[1,32], index: 4, kind: input, shape index: {}]   ;;  %s1193_s5 = inlined_call_operand.vmem [shape: f32[2,64,32], index: 5, kind: output, shape index: {}]  }
   0x1   :  { %s1038_s20 = smov 0  }
   0x2 LB: > { %s27_s21 = sadd.s32 1, %s997_s19  ;;  %p857_p0 = scmp.ge.s32.totalorder %s1001_s20, 1  ;;  %s1001_s20 = sphi %s1038_s20, %s15_s20   ;;  %s997_s19 = sphi %s1036_s19, %s1195_s19   ;;  %s993_s18 = sphi %s1034_s18, %s1194_s18  }
   0x3   : > { %p29_p1 = scmp.ge.s32.totalorder %s27_s21, 2  ;;  %p227_p2 = scmp.lt.s32.totalorder %s1001_s20, 3 }
   0x5   : > { %s1197_s21 = smov (%p29_p1, %s27_s21), 0  ;;  %p228_p3 = pnand %p857_p0, %p227_p2 }
   0x6   : > { %v937_v0 = vld [vmem:[%s1191_s3] sm:$0xff] (!%p228_p3)   ;;  %v1003_v1 = vmov (!%p228_p3), 0   ;;  %v939_v3 = vld [vmem:[%s1191_s3 + $0x8] sm:$0xff] (!%p228_p3)   ;;  %p275_p4 = scmp.lt.s32.totalorder (!%p228_p3), %s993_s18, 1  ;;  %v941_v5 = vld [vmem:[%s1191_s3 + $0x10] sm:$0xff] (!%p228_p3)   ;;  %vm449_vm0 = vcmask (!%p228_p3), 130048  }
   0x7   : > { %231 = sbr.rel (%p228_p3) target bundleno = 289 (0x121), region = 40  ;;  %462 = vmatprep.subr.bf16.mxu0 (!%p228_p3), %v1003_v1  ;;  %629 = vmatprep.subr.bf16.mxu1 (!%p228_p3), %v1003_v1  ;;  %v938_v2 = vld [vmem:[%s1190_s2] sm:$0xff] (!%p228_p3)   ;;  %v940_v4 = vld [vmem:[%s1190_s2 + $0x8] sm:$0xff] (!%p228_p3)   ;;  %v942_v6 = vld [vmem:[%s1190_s2 + $0x10] sm:$0xff] (!%p228_p3)   ;;  %vm733_vm2 = vcmask (!%p228_p3), 261120  }
   0x8   : > { %463 = vmatpush1.bf16.msra.mxu0 (!%p228_p3), %v937_v0  ;;  %630 = vmatpush1.bf16.msra.mxu1 (!%p228_p3), %v938_v2  ;;  %v943_v7 = vld [vmem:[%s1191_s3 + $0x18] sm:$0xff] (!%p228_p3)   ;;  %v945_v9 = vld [vmem:[%s1191_s3 + $0x20] sm:$0xff] (!%p228_p3)   ;;  %v947_v11 = vld [vmem:[%s1191_s3 + $0x28] sm:$0xff] (!%p228_p3)  }
   0x9   : > { %464 = vmatprep.subr.bf16.mxu0 (!%p228_p3), %v1003_v1  ;;  %631 = vmatprep.subr.bf16.mxu1 (!%p228_p3), %v1003_v1  ;;  %v944_v8 = vld [vmem:[%s1190_s2 + $0x18] sm:$0xff] (!%p228_p3)   ;;  %v946_v10 = vld [vmem:[%s1190_s2 + $0x20] sm:$0xff] (!%p228_p3)   ;;  %v948_v12 = vld [vmem:[%s1190_s2 + $0x28] sm:$0xff] (!%p228_p3)  }
   0xa   : > { %v949_v15 = vld [vmem:[%s1191_s3 + $0x30] sm:$0xff] (!%p228_p3)   ;;  %v951_v17 = vld [vmem:[%s1191_s3 + $0x38] sm:$0xff] (!%p228_p3)   ;;  %v953_v19 = vld [vmem:[%s1191_s3 + $0x40] sm:$0xff] (!%p228_p3)  }
   0xb   : > { %v950_v16 = vld [vmem:[%s1190_s2 + $0x30] sm:$0xff] (!%p228_p3)   ;;  %v952_v18 = vld [vmem:[%s1190_s2 + $0x38] sm:$0xff] (!%p228_p3)   ;;  %v954_v20 = vld [vmem:[%s1190_s2 + $0x40] sm:$0xff] (!%p228_p3)  }
   0xc   : > { %465 = vmatpush1.bf16.msra.mxu0 (!%p228_p3), %v939_v3  ;;  %632 = vmatpush1.bf16.msra.mxu1 (!%p228_p3), %v940_v4  ;;  %v1147_v37 = vld [vmem:[%s1192_s4] ss:$0 sm:$0xff] (!%p228_p3) }
   0xd   : > { %466 = vmatprep.subr.bf16.mxu0 (!%p228_p3), %v1003_v1  ;;  %633 = vmatprep.subr.bf16.mxu1 (!%p228_p3), %v1003_v1 }
   0xe   : > { %s1199_s18 = smov (!%p275_p4, %s993_s18), 1 }
   0xf   : > { %s1076_s13 = sshll.u32 %s1199_s18, 6 }
  0x10   : > { %467 = vmatpush1.bf16.msra.mxu0 %v941_v5  ;;  %634 = vmatpush1.bf16.msra.mxu1 %v942_v6  ;;  %s1088_s24 = scalar_lea.vmem %s1189_s1, %s1076_s13  ;;  %s1097_s28 = scalar_lea.vmem %s1188_s0, %s1076_s13 }
  0x11   : > { %468 = vmatprep.subr.bf16.mxu0 %v1003_v1  ;;  %635 = vmatprep.subr.bf16.mxu1 %v1003_v1  ;;  %v957_v13 = vld [vmem:[%s1088_s24 + $0x4] ss:$8 sps:$4 sm:$0xff]   ;;  %v955_v21 = vld [vmem:[%s1088_s24] ss:$8 sps:$4 sm:$0xff]   ;;  %v961_v23 = vld [vmem:[%s1088_s24 + $0x14] ss:$8 sps:$4 sm:$0xff]   ;;  %s1154_s26 = scalar_lea.vmem %s1193_s5, %s1076_s13 }
  0x12   : > { %v960_v14 = vld [vmem:[%s1097_s28 + $0x4] ss:$8 sps:$4 sm:$0xff]   ;;  %881 = vmatprep.mubr.msk.bf16.mxu0 %vm449_vm0, %v957_v13  ;;  %v958_v22 = vld [vmem:[%s1097_s28] ss:$8 sps:$4 sm:$0xff]   ;;  %v963_v24 = vld [vmem:[%s1097_s28 + $0x14] ss:$8 sps:$4 sm:$0xff]  }
  0x13   : > { %902 = vmatprep.mubr.msk.bf16.mxu1 %vm449_vm0, %v960_v14  ;;  %v965_v25 = vld [vmem:[%s1088_s24 + $0x10] ss:$8 sps:$4 sm:$0xff]   ;;  %v967_v27 = vld [vmem:[%s1088_s24 + $0x24] ss:$8 sps:$4 sm:$0xff]   ;;  %v971_v29 = vld [vmem:[%s1088_s24 + $0x20] ss:$8 sps:$4 sm:$0xff]  }
  0x14   : > { %469 = vmatpush1.bf16.msra.mxu0 %v943_v7  ;;  %636 = vmatpush1.bf16.msra.mxu1 %v944_v8  ;;  %v966_v26 = vld [vmem:[%s1097_s28 + $0x10] ss:$8 sps:$4 sm:$0xff]   ;;  %v969_v28 = vld [vmem:[%s1097_s28 + $0x24] ss:$8 sps:$4 sm:$0xff]   ;;  %v972_v30 = vld [vmem:[%s1097_s28 + $0x20] ss:$8 sps:$4 sm:$0xff]  }
  0x15   : > { %470 = vmatprep.subr.bf16.mxu0 %v1003_v1  ;;  %637 = vmatprep.subr.bf16.mxu1 %v1003_v1  ;;  %v973_v31 = vld [vmem:[%s1088_s24 + $0x34] ss:$8 sps:$4 sm:$0xff]   ;;  %v977_v33 = vld [vmem:[%s1088_s24 + $0x30] ss:$8 sps:$4 sm:$0xff]  }
  0x16   : > { %v975_v32 = vld [vmem:[%s1097_s28 + $0x34] ss:$8 sps:$4 sm:$0xff]   ;;  %v978_v34 = vld [vmem:[%s1097_s28 + $0x30] ss:$8 sps:$4 sm:$0xff]  }
  0x18   : > { %471 = vmatpush1.bf16.msra.mxu0 %v945_v9  ;;  %638 = vmatpush1.bf16.msra.mxu1 %v946_v10 }
  0x19   : > { %472 = vmatprep.subr.bf16.mxu0 %v1003_v1  ;;  %639 = vmatprep.subr.bf16.mxu1 %v1003_v1 }
  0x1c   : > { %473 = vmatpush1.bf16.msra.mxu0 %v947_v11  ;;  %640 = vmatpush1.bf16.msra.mxu1 %v948_v12 }
  0x1d   : > { %474 = vmatprep.subr.bf16.mxu0 %v1003_v1  ;;  %641 = vmatprep.subr.bf16.mxu1 %v1003_v1 }
  0x20   : > { %475 = vmatpush1.bf16.msra.mxu0 %v949_v15  ;;  %642 = vmatpush1.bf16.msra.mxu1 %v950_v16 }
  0x21   : > { %476 = vmatprep.subr.bf16.mxu0 %v1003_v1  ;;  %643 = vmatprep.subr.bf16.mxu1 %v1003_v1 }
  0x24   : > { %477 = vmatpush1.bf16.msra.mxu0 %v951_v17  ;;  %644 = vmatpush1.bf16.msra.mxu1 %v952_v18 }
  0x25   : > { %478 = vmatprep.subr.bf16.mxu0 %v1003_v1  ;;  %645 = vmatprep.subr.bf16.mxu1 %v1003_v1 }
  0x28   : > { %479 = vmatpush1.bf16.msra.mxu0 %v953_v19  ;;  %646 = vmatpush1.bf16.msra.mxu1 %v954_v20 }
  0x2b   : > { %495 = vmatmul.mubr.bf16.vlgmr.msra.gmra.mrb[0].mxu0 %v955_v21  ;;  %662 = vmatmul.mubr.bf16.vlgmr.msra.gmra.mrb[0].mxu1 %v958_v22 }
  0x2c   : > { %882 = vmatprep.mubr.msk.bf16.mxu0 %vm449_vm0, %v961_v23  ;;  %903 = vmatprep.mubr.msk.bf16.mxu1 %vm449_vm0, %v963_v24 }
  0x33   : > { %503 = vmatmul.mubr.bf16.gmra.mrb[4].mxu0 %v965_v25  ;;  %670 = vmatmul.mubr.bf16.gmra.mrb[4].mxu1 %v966_v26 }
  0x34   : > { %883 = vmatprep.mubr.msk.bf16.mxu0 %vm449_vm0, %v967_v27  ;;  %904 = vmatprep.mubr.msk.bf16.mxu1 %vm449_vm0, %v969_v28 }
  0x3b   : > { %511 = vmatmul.mubr.bf16.gmra.mrb[8].mxu0 %v971_v29  ;;  %678 = vmatmul.mubr.bf16.gmra.mrb[8].mxu1 %v972_v30 }
  0x3c   : > { %884 = vmatprep.mubr.msk.bf16.mxu0 %vm449_vm0, %v973_v31  ;;  %905 = vmatprep.mubr.msk.bf16.mxu1 %vm449_vm0, %v975_v32 }
  0x43   : > { %519 = vmatmul.mubr.bf16.gmra.mrb[12].mxu0 %v977_v33  ;;  %686 = vmatmul.mubr.bf16.gmra.mrb[12].mxu1 %v978_v34 }
  0xfe   : > { %v496_v35 = vpop.f32.mrb[0].mxu0  ;;  %v663_v36 = vpop.f32.mrb[0].mxu1 }
  0xff   : > { %v498_v38 = vpop.f32.mrb[1].mxu0  ;;  %v664_v39 = vadd.f32 %v663_v36, %v496_v35  ;;  %v665_v40 = vpop.f32.mrb[1].mxu1 }
 0x100   : > { %v499_v41 = vpop.f32.mrb[2].mxu0  ;;  %v666_v42 = vpop.f32.mrb[2].mxu1 }
 0x101   : > { %v501_v43 = vpop.f32.mrb[3].mxu0  ;;  %v701_v44 = vadd.f32 %v1147_v37, %v664_v39  ;;  %v667_v45 = vadd.f32 %v666_v42, %v499_v41  ;;  %v668_v46 = vpop.f32.mrb[3].mxu1 }
 0x103   : > { %vm709_vm1 = vcmp.ge.f32.partialorder %v701_v44, 0.0  ;;  %v717_v47 = vmul.f32 0.2, %v701_v44  ;;  %v702_v48 = vadd.f32 %v1147_v37, %v667_v45 }
 0x105   : > { %v725_v49 = vsel %vm709_vm1, %v701_v44, %v717_v47  ;;  %vm710_vm3 = vcmp.ge.f32.partialorder %v702_v48, 0.0  ;;  %v718_v50 = vmul.f32 0.2, %v702_v48 }
 0x106   : > { %v504_v51 = vpop.f32.mrb[4].mxu0  ;;  %734 = vst.msk [vmem:[%s1154_s26] sm:$0xff] %vm733_vm2, %v725_v49  ;;  %v671_v52 = vpop.f32.mrb[4].mxu1 }
 0x107   : > { %v506_v53 = vpop.f32.mrb[5].mxu0  ;;  %v726_v54 = vsel %vm710_vm3, %v702_v48, %v718_v50  ;;  %v672_v55 = vadd.f32 %v671_v52, %v504_v51  ;;  %v673_v56 = vpop.f32.mrb[5].mxu1 }
 0x108   : > { %v507_v57 = vpop.f32.mrb[6].mxu0  ;;  %735 = vst.msk [vmem:[%s1154_s26 + $0x8] sm:$0xff] %vm733_vm2, %v726_v54  ;;  %v674_v58 = vpop.f32.mrb[6].mxu1 }
 0x109   : > { %v509_v59 = vpop.f32.mrb[7].mxu0  ;;  %v703_v60 = vadd.f32 %v1147_v37, %v672_v55  ;;  %v675_v61 = vadd.f32 %v674_v58, %v507_v57  ;;  %v676_v62 = vpop.f32.mrb[7].mxu1 }
 0x10b   : > { %vm711_vm4 = vcmp.ge.f32.partialorder %v703_v60, 0.0  ;;  %v719_v63 = vmul.f32 0.2, %v703_v60  ;;  %v704_v0 = vadd.f32 %v1147_v37, %v675_v61 }
 0x10d   : > { %v727_v1 = vsel %vm711_vm4, %v703_v60, %v719_v63  ;;  %vm712_vm5 = vcmp.ge.f32.partialorder %v704_v0, 0.0  ;;  %v720_v2 = vmul.f32 0.2, %v704_v0 }
 0x10e   : > { %v512_v3 = vpop.f32.mrb[8].mxu0  ;;  %736 = vst.msk [vmem:[%s1154_s26 + $0x10] sm:$0xff] %vm733_vm2, %v727_v1  ;;  %v679_v4 = vpop.f32.mrb[8].mxu1 }
 0x10f   : > { %v514_v5 = vpop.f32.mrb[9].mxu0  ;;  %v728_v6 = vsel %vm712_vm5, %v704_v0, %v720_v2  ;;  %v680_v7 = vadd.f32 %v679_v4, %v512_v3  ;;  %v681_v8 = vpop.f32.mrb[9].mxu1 }
 0x110   : > { %v515_v9 = vpop.f32.mrb[10].mxu0  ;;  %737 = vst.msk [vmem:[%s1154_s26 + $0x18] sm:$0xff] %vm733_vm2, %v728_v6  ;;  %v682_v10 = vpop.f32.mrb[10].mxu1 }
 0x111   : > { %v517_v11 = vpop.f32.mrb[11].mxu0  ;;  %v705_v12 = vadd.f32 %v1147_v37, %v680_v7  ;;  %v683_v13 = vadd.f32 %v682_v10, %v515_v9  ;;  %v684_v14 = vpop.f32.mrb[11].mxu1 }
 0x113   : > { %vm713_vm6 = vcmp.ge.f32.partialorder %v705_v12, 0.0  ;;  %v721_v15 = vmul.f32 0.2, %v705_v12  ;;  %v706_v16 = vadd.f32 %v1147_v37, %v683_v13 }
 0x115   : > { %v729_v17 = vsel %vm713_vm6, %v705_v12, %v721_v15  ;;  %vm714_vm7 = vcmp.ge.f32.partialorder %v706_v16, 0.0  ;;  %v722_v18 = vmul.f32 0.2, %v706_v16 }
 0x116   : > { %v520_v19 = vpop.f32.mrb[12].mxu0  ;;  %738 = vst.msk [vmem:[%s1154_s26 + $0x20] sm:$0xff] %vm733_vm2, %v729_v17  ;;  %v687_v20 = vpop.f32.mrb[12].mxu1 }
 0x117   : > { %v522_v21 = vpop.f32.mrb[13].mxu0  ;;  %v730_v22 = vsel %vm714_vm7, %v706_v16, %v722_v18  ;;  %v688_v23 = vadd.f32 %v687_v20, %v520_v19  ;;  %v689_v24 = vpop.f32.mrb[13].mxu1 }
 0x118   : > { %v523_v25 = vpop.f32.mrb[14].mxu0  ;;  %739 = vst.msk [vmem:[%s1154_s26 + $0x28] sm:$0xff] %vm733_vm2, %v730_v22  ;;  %v690_v26 = vpop.f32.mrb[14].mxu1 }
 0x119   : > { %v525_v27 = vpop.f32.mrb[15].mxu0  ;;  %v707_v28 = vadd.f32 %v1147_v37, %v688_v23  ;;  %v691_v29 = vadd.f32 %v690_v26, %v523_v25  ;;  %v692_v30 = vpop.f32.mrb[15].mxu1 }
 0x11b   : > { %vm715_vm8 = vcmp.ge.f32.partialorder %v707_v28, 0.0  ;;  %v723_v31 = vmul.f32 0.2, %v707_v28  ;;  %v708_v32 = vadd.f32 %v1147_v37, %v691_v29 }
 0x11d   : > { %v731_v33 = vsel %vm715_vm8, %v707_v28, %v723_v31  ;;  %vm716_vm9 = vcmp.ge.f32.partialorder %v708_v32, 0.0  ;;  %v724_v34 = vmul.f32 0.2, %v708_v32 }
 0x11e   : > { %740 = vst.msk [vmem:[%s1154_s26 + $0x30] sm:$0xff] %vm733_vm2, %v731_v33 }
 0x11f   : > { %v732_v35 = vsel %vm716_vm9, %v708_v32, %v724_v34 }
 0x120   : > { %741 = vst.msk [vmem:[%s1154_s26 + $0x38] sm:$0xff] %vm733_vm2, %v732_v35 }
 0x121 PF: > { %s15_s20 = sadd.s32 1, %s1001_s20   ;;  %s1194_s18 = smov %s997_s19 }
 0x122   : > { %p12_p5 = scmp.ge.s32.totalorder %s15_s20, 4   ;;  %s1195_s19 = smov %s1197_s21 }
 0x124   :  { %14 = sbr.rel (!%p12_p5) target bundleno = 2 (0x2), region = 73 }

// kernel: generator_forward.65
= control target key start
LH: loop header
LB: loop body
LE: loop exit
PB: predicated region body
PF: predicated region fallthrough
CT: control target
= control target key end

     0   :  { %s930_s12 = smov 0   ;;  %s932_s13 = smov 0   ;;  %s1060_s0 = inlined_call_operand.vmem [shape: bf16[2,64,288], index: 0, kind: input, shape index: {}]   ;;  %s1061_s1 = inlined_call_operand.vmem [shape: bf16[288,8], index: 1, kind: input, shape index: {}]   ;;  %s1062_s2 = inlined_call_operand.vmem [shape: f32[1,8], index: 2, kind: input, shape index: {}]   ;;  %s1063_s3 = inlined_call_operand.vmem [shape: f32[2,64,8], index: 3, kind: output, shape index: {}]  }
   0x1   :  { %s934_s14 = smov 0  }
   0x2 LB: > { %s25_s15 = sadd.s32 1, %s904_s13  ;;  %p711_p0 = scmp.ge.s32.totalorder %s908_s14, 1  ;;  %s908_s14 = sphi %s934_s14, %s13_s14   ;;  %s904_s13 = sphi %s932_s13, %s1065_s13   ;;  %s900_s12 = sphi %s930_s12, %s1064_s12  }
   0x3   : > { %p27_p1 = scmp.ge.s32.totalorder %s25_s15, 2  ;;  %p159_p2 = scmp.lt.s32.totalorder %s908_s14, 3 }
   0x5   : > { %s1067_s15 = smov (%p27_p1, %s25_s15), 0  ;;  %p160_p3 = pnand %p711_p0, %p159_p2 }
   0x6   : > { %v852_v0 = vld [vmem:[%s1061_s1 + $0x40] sm:$0xff] (!%p160_p3)   ;;  %v854_v2 = vld [vmem:[%s1061_s1 + $0x48] sm:$0xff] (!%p160_p3)   ;;  %p193_p4 = scmp.lt.s32.totalorder (!%p160_p3), %s900_s12, 1  ;;  %v856_v4 = vld [vmem:[%s1061_s1 + $0x50] sm:$0xff] (!%p160_p3)   ;;  %vm441_vm0 = vcmask (!%p160_p3), 261120   ;;  %vm608_vm1 = vcmask (!%p160_p3), 64512  }
   0x7   : > { %163 = sbr.rel (%p160_p3) target bundleno = 280 (0x118), region = 32  ;;  %v853_v1 = vld [vmem:[%s1061_s1] sm:$0xff] (!%p160_p3)   ;;  %753 = vmatprep.subr.bf16.mxu0 (!%p160_p3), %v852_v0  ;;  %811 = vmatprep.subr.bf16.mxu1 (!%p160_p3), %v852_v0  ;;  %v855_v3 = vld [vmem:[%s1061_s1 + $0x8] sm:$0xff] (!%p160_p3)   ;;  %v857_v5 = vld [vmem:[%s1061_s1 + $0x10] sm:$0xff] (!%p160_p3)  }
   0x8   : > { %754 = vmatpush3.bf16.msra.mxu0 (!%p160_p3), %v853_v1  ;;  %819 = vmatpush3.bf16.msra.mxu1 (!%p160_p3), %v853_v1  ;;  %v858_v6 = vld [vmem:[%s1061_s1 + $0x58] sm:$0xff] (!%p160_p3)   ;;  %v860_v8 = vld [vmem:[%s1061_s1 + $0x60] sm:$0xff] (!%p160_p3)   ;;  %v862_v10 = vld [vmem:[%s1061_s1 + $0x68] sm:$0xff] (!%p160_p3)  }
   0x9   : > { %755 = vmatprep.subr.bf16.mxu0 (!%p160_p3), %v854_v2  ;;  %812 = vmatprep.subr.bf16.mxu1 (!%p160_p3), %v854_v2  ;;  %v859_v7 = vld [vmem:[%s1061_s1 + $0x18] sm:$0xff] (!%p160_p3)   ;;  %v861_v9 = vld [vmem:[%s1061_s1 + $0x20] sm:$0xff] (!%p160_p3)   ;;  %v863_v13 = vld [vmem:[%s1061_s1 + $0x28] sm:$0xff] (!%p160_p3)  }
   0xa   : > { %v864_v14 = vld [vmem:[%s1061_s1 + $0x70] sm:$0xff] (!%p160_p3)   ;;  %v866_v16 = vld [vmem:[%s1061_s1 + $0x78] sm:$0xff] (!%p160_p3)   ;;  %v874_v18 = vld [vmem:[%s1061_s1 + $0x80] sm:$0xff] (!%p160_p3)  }
   0xb   : > { %v865_v15 = vld [vmem:[%s1061_s1 + $0x30] sm:$0xff] (!%p160_p3)   ;;  %v867_v17 = vld [vmem:[%s1061_s1 + $0x38] sm:$0xff] (!%p160_p3)   ;;  %v875_v22 = vld [vmem:[%s1061_s1 + $0x88] sm:$0xff] (!%p160_p3)  }
   0xc   : > { %756 = vmatpush3.bf16.msra.mxu0 (!%p160_p3), %v855_v3  ;;  %820 = vmatpush3.bf16.msra.mxu1 (!%p160_p3), %v855_v3  ;;  %v715_v42 = vld [vmem:[%s1062_s2] ss:$0 sm:$0xff] (!%p160_p3) }
   0xd   : > { %757 = vmatprep.subr.bf16.mxu0 (!%p160_p3), %v856_v4  ;;  %813 = vmatprep.subr.bf16.mxu1 (!%p160_p3), %v856_v4 }
   0xe   : > { %s1069_s12 = smov (!%p193_p4, %s900_s12), 1 }
   0xf   : > { %s827_s30 = smul.u32 96, %s1069_s12  ;;  %s752_s8 = sshll.u32 %s1069_s12, 6 }
  0x10   : > { %758 = vmatpush3.bf16.msra.mxu0 %v857_v5  ;;  %821 = vmatpush3.bf16.msra.mxu1 %v857_v5  ;;  %s1033_s11 = scalar_lea.vmem %s1063_s3, %s752_s8 }
  0x11   : > { %759 = vmatprep.subr.bf16.mxu0 %v858_v6  ;;  %814 = vmatprep.subr.bf16.mxu1 %v858_v6  ;;  %s981_s10 = scalar_lea.vmem %s1060_s0, %s827_s30 }
  0x12   : > { %v870_v11 = vld [vmem:[%s981_s10 + $0x4] ss:$12 sps:$4 sm:$0xff]   ;;  %v873_v12 = vld [vmem:[%s981_s10 + $0x4c] ss:$12 sps:$4 sm:$0xff]   ;;  %v871_v20 = vld [vmem:[%s981_s10 + $0x48] ss:$12 sps:$4 sm:$0xff]  }
  0x13   : > { %486 = vmatprep.mubr.bf16.mxu0 %v870_v11  ;;  %510 = vmatprep.mubr.bf16.mxu1 %v873_v12  ;;  %v868_v19 = vld [vmem:[%s981_s10] ss:$12 sps:$4 sm:$0xff]   ;;  %v876_v21 = vld [vmem:[%s981_s10 + $0x1c] ss:$12 sps:$4 sm:$0xff]   ;;  %v879_v24 = vld [vmem:[%s981_s10 + $0x18] ss:$12 sps:$4 sm:$0xff]  }
  0x14   : > { %760 = vmatpush3.bf16.msra.mxu0 %v859_v7  ;;  %822 = vmatpush3.bf16.msra.mxu1 %v859_v7  ;;  %v878_v23 = vld [vmem:[%s981_s10 + $0x8] ss:$12 sps:$4 sm:$0xff]   ;;  %v880_v25 = vld [vmem:[%s981_s10 + $0x20] ss:$12 sps:$4 sm:$0xff]   ;;  %v883_v27 = vld [vmem:[%s981_s10 + $0x38] ss:$12 sps:$4 sm:$0xff]  }
  0x15   : > { %761 = vmatprep.subr.bf16.mxu0 %v860_v8  ;;  %815 = vmatprep.subr.bf16.mxu1 %v860_v8  ;;  %v881_v26 = vld [vmem:[%s981_s10 + $0x34] ss:$12 sps:$4 sm:$0xff]   ;;  %v884_v28 = vld [vmem:[%s981_s10 + $0x30] ss:$12 sps:$4 sm:$0xff]  }
  0x16   : > { %v885_v29 = vld [vmem:[%s981_s10 + $0x50] ss:$12 sps:$4 sm:$0xff]  }
  0x18   : > { %762 = vmatpush3.bf16.msra.mxu0 %v861_v9  ;;  %823 = vmatpush3.bf16.msra.mxu1 %v861_v9 }
  0x19   : > { %763 = vmatprep.subr.bf16.mxu0 %v862_v10  ;;  %816 = vmatprep.subr.bf16.mxu1 %v862_v10 }
  0x1c   : > { %764 = vmatpush3.bf16.msra.mxu0 %v863_v13  ;;  %824 = vmatpush3.bf16.msra.mxu1 %v863_v13 }
  0x1d   : > { %765 = vmatprep.subr.bf16.mxu0 %v864_v14  ;;  %817 = vmatprep.subr.bf16.mxu1 %v864_v14 }
  0x20   : > { %766 = vmatpush3.bf16.msra.mxu0 %v865_v15  ;;  %825 = vmatpush3.bf16.msra.mxu1 %v865_v15 }
  0x21   : > { %767 = vmatprep.subr.bf16.mxu0 %v866_v16  ;;  %818 = vmatprep.subr.bf16.mxu1 %v866_v16 }
  0x24   : > { %768 = vmatpush3.bf16.msra.mxu0 %v867_v17  ;;  %826 = vmatpush3.bf16.msra.mxu1 %v867_v17 }
  0x25   : > { %799 = vmatprep.subr.bf16.mxu1 %v874_v18 }
  0x27   : > { %487 = vmatmul.mubr.bf16.vlgmr.msra.gmra.mrb[0].mxu0 %v868_v19  ;;  %511 = vmatmul.mubr.bf16.vlgmr.msra.gmra.mrb[0].mxu1 %v871_v20 }
  0x28   : > { %800 = vmatpush3.bf16.msra.mxu1 %v874_v18  ;;  %494 = vmatprep.mubr.bf16.mxu0 %v876_v21 }
  0x29   : > { %801 = vmatprep.subr.bf16.mxu1 %v875_v22  ;;  %803 = vmatprep.mubr.msk.bf16.mxu1 %vm441_vm0, %v878_v23 }
  0x2c   : > { %802 = vmatpush3.bf16.msra.mxu1 %v875_v22 }
  0x2f   : > { %495 = vmatmul.mubr.bf16.gmra.mrb[4].mxu0 %v879_v24  ;;  %804 = vmatmul.mubr.msk.bf16.vlgmr.msra.gmra.mrb[4].mxu1 %vm441_vm0, %v880_v25 }
  0x30   : > { %502 = vmatprep.mubr.bf16.mxu0 %v881_v26  ;;  %807 = vmatprep.mubr.msk.bf16.mxu1 %vm441_vm0, %v883_v27 }
  0x37   : > { %503 = vmatmul.mubr.bf16.gmra.mrb[8].mxu0 %v884_v28  ;;  %808 = vmatmul.mubr.msk.bf16.gmra.mrb[8].mxu1 %vm441_vm0, %v885_v29 }
  0xfa   : > { %v769_v30 = vpop.f32.mrb[0].mxu0  ;;  %v787_v31 = vpop.f32.mrb[0].mxu1 }
  0xfb   : > { %v770_v32 = vpop.f32.mrb[1].mxu0  ;;  %v788_v33 = vpop.f32.mrb[1].mxu1 }
  0xfc   : > { %v771_v34 = vadd.f32 %v770_v32, %v769_v30  ;;  %v772_v35 = vpop.f32.mrb[2].mxu0  ;;  %v789_v36 = vadd.f32 %v788_v33, %v787_v31  ;;  %v790_v37 = vpop.f32.mrb[2].mxu1 }
  0xfd   : > { %v773_v38 = vpop.f32.mrb[3].mxu0  ;;  %v791_v39 = vpop.f32.mrb[3].mxu1 }
  0xfe   : > { %v774_v40 = vadd.f32 %v773_v38, %v772_v35  ;;  %v792_v41 = vadd.f32 %v791_v39, %v790_v37  ;;  %v489_v45 = vadd.f32 %v771_v34, %v715_v42  ;;  %v513_v63 = vadd.f32 %v789_v36, %v715_v42 }
 0x100   : > { %v492_v53 = vadd.f32 %v774_v40, %v715_v42  ;;  %v516_v8 = vadd.f32 %v792_v41, %v715_v42 }
 0x102   : > { %v775_v43 = vpop.f32.mrb[4].mxu0  ;;  %v805_v44 = vpop.f32.mrb[4].mxu1 }
 0x103   : > { %v776_v46 = vpop.f32.mrb[5].mxu0  ;;  %v553_v47 = vpop.f32.mrb[5].mxu1 }
 0x104   : > { %v777_v48 = vadd.f32 %v776_v46, %v775_v43  ;;  %v554_v49 = vadd.f32 %v553_v47, %v489_v45  ;;  %v778_v50 = vpop.f32.mrb[6].mxu0  ;;  %v806_v51 = vpop.f32.mrb[6].mxu1 }
 0x105   : > { %v779_v52 = vpop.f32.mrb[7].mxu0  ;;  %v556_v54 = vpop.f32.mrb[7].mxu1 }
 0x106   : > { %v497_v55 = vadd.f32 %v777_v48, %v715_v42  ;;  %vm584_vm2 = vcmp.ge.f32.partialorder %v554_v49, 0.0  ;;  %v592_v56 = vmul.f32 0.2, %v554_v49  ;;  %v780_v57 = vadd.f32 %v779_v52, %v778_v50 }
 0x107   : > { %v557_v58 = vadd.f32 %v556_v54, %v492_v53 }
 0x108   : > { %v562_v59 = vadd.f32 %v805_v44, %v497_v55  ;;  %v600_v60 = vsel %vm584_vm2, %v554_v49, %v592_v56  ;;  %v500_v61 = vadd.f32 %v780_v57, %v715_v42 }
 0x109   : > { %609 = vst.msk [vmem:[%s1033_s11] sm:$0xff] %vm608_vm1, %v600_v60  ;;  %vm585_vm3 = vcmp.ge.f32.partialorder %v557_v58, 0.0  ;;  %v593_v62 = vmul.f32 0.2, %v557_v58 }
 0x10a   : > { %vm586_vm4 = vcmp.ge.f32.partialorder %v562_v59, 0.0  ;;  %v594_v0 = vmul.f32 0.2, %v562_v59  ;;  %v565_v1 = vadd.f32 %v806_v51, %v500_v61  ;;  %v781_v2 = vpop.f32.mrb[8].mxu0  ;;  %v809_v3 = vpop.f32.mrb[8].mxu1 }
 0x10b   : > { %v601_v4 = vsel %vm585_vm3, %v557_v58, %v593_v62  ;;  %v578_v5 = vadd.f32 %v809_v3, %v513_v63  ;;  %v782_v6 = vpop.f32.mrb[9].mxu0  ;;  %v569_v7 = vpop.f32.mrb[9].mxu1 }
 0x10c   : > { %v602_v9 = vsel %vm586_vm4, %v562_v59, %v594_v0  ;;  %vm587_vm5 = vcmp.ge.f32.partialorder %v565_v1, 0.0  ;;  %v595_v10 = vmul.f32 0.2, %v565_v1  ;;  %610 = vst.msk [vmem:[%s1033_s11 + $0x8] sm:$0xff] %vm608_vm1, %v601_v4  ;;  %v783_v11 = vadd.f32 %v782_v6, %v781_v2  ;;  %v784_v12 = vpop.f32.mrb[10].mxu0  ;;  %v810_v13 = vpop.f32.mrb[10].mxu1 }
 0x10d   : > { %611 = vst.msk [vmem:[%s1033_s11 + $0x10] sm:$0xff] %vm608_vm1, %v602_v9  ;;  %vm590_vm6 = vcmp.ge.f32.partialorder %v578_v5, 0.0  ;;  %v598_v14 = vmul.f32 0.2, %v578_v5  ;;  %v581_v15 = vadd.f32 %v810_v13, %v516_v8  ;;  %v785_v16 = vpop.f32.mrb[11].mxu0  ;;  %v572_v17 = vpop.f32.mrb[11].mxu1 }
 0x10e   : > { %v603_v18 = vsel %vm587_vm5, %v565_v1, %v595_v10  ;;  %v505_v19 = vadd.f32 %v783_v11, %v715_v42  ;;  %v786_v20 = vadd.f32 %v785_v16, %v784_v12 }
 0x10f   : > { %612 = vst.msk [vmem:[%s1033_s11 + $0x18] sm:$0xff] %vm608_vm1, %v603_v18  ;;  %v606_v21 = vsel %vm590_vm6, %v578_v5, %v598_v14  ;;  %vm591_vm7 = vcmp.ge.f32.partialorder %v581_v15, 0.0  ;;  %v599_v22 = vmul.f32 0.2, %v581_v15 }
 0x110   : > { %615 = vst.msk [vmem:[%s1033_s11 + $0x30] sm:$0xff] %vm608_vm1, %v606_v21  ;;  %v570_v23 = vadd.f32 %v569_v7, %v505_v19  ;;  %v508_v24 = vadd.f32 %v786_v20, %v715_v42 }
 0x111   : > { %v607_v25 = vsel %vm591_vm7, %v581_v15, %v599_v22 }
 0x112   : > { %vm588_vm8 = vcmp.ge.f32.partialorder %v570_v23, 0.0  ;;  %v596_v26 = vmul.f32 0.2, %v570_v23  ;;  %616 = vst.msk [vmem:[%s1033_s11 + $0x38] sm:$0xff] %vm608_vm1, %v607_v25  ;;  %v573_v27 = vadd.f32 %v572_v17, %v508_v24 }
 0x114   : > { %v604_v28 = vsel %vm588_vm8, %v570_v23, %v596_v26  ;;  %vm589_vm9 = vcmp.ge.f32.partialorder %v573_v27, 0.0  ;;  %v597_v29 = vmul.f32 0.2, %v573_v27 }
 0x115   : > { %613 = vst.msk [vmem:[%s1033_s11 + $0x20] sm:$0xff] %vm608_vm1, %v604_v28 }
 0x116   : > { %v605_v30 = vsel %vm589_vm9, %v573_v27, %v597_v29 }
 0x117   : > { %614 = vst.msk [vmem:[%s1033_s11 + $0x28] sm:$0xff] %vm608_vm1, %v605_v30 }
 0x118 PF: > { %s13_s14 = sadd.s32 1, %s908_s14   ;;  %s1064_s12 = smov %s904_s13 }
 0x119   : > { %p10_p5 = scmp.ge.s32.totalorder %s13_s14, 4   ;;  %s1065_s13 = smov %s1067_s15 }
 0x11b   :  { %12 = sbr.rel (!%p10_p5) target bundleno = 2 (0x2), region = 62 }

// kernel: generator_forward.66
= control target key start
LH: loop header
LB: loop body
LE: loop exit
PB: predicated region body
PF: predicated region fallthrough
CT: control target
= control target key end

     0   :  { %s603_s12 = smov 0   ;;  %s605_s13 = smov 0   ;;  %s670_s0 = inlined_call_operand.vmem [shape: bf16[2,64,72], index: 0, kind: input, shape index: {}]   ;;  %s671_s1 = inlined_call_operand.vmem [shape: bf16[72,32], index: 1, kind: input, shape index: {}]   ;;  %s672_s2 = inlined_call_operand.vmem [shape: f32[1,32], index: 2, kind: input, shape index: {}]   ;;  %s673_s3 = inlined_call_operand.vmem [shape: f32[2,64,32], index: 3, kind: output, shape index: {}]  }
   0x1   :  { %s607_s14 = smov 0  }
   0x2 LB: > { %s25_s15 = sadd.s32 1, %s577_s13  ;;  %p464_p0 = scmp.ge.s32.totalorder %s581_s14, 1  ;;  %s581_s14 = sphi %s607_s14, %s13_s14   ;;  %s577_s13 = sphi %s605_s13, %s675_s13   ;;  %s573_s12 = sphi %s603_s12, %s674_s12  }
   0x3   : > { %p27_p1 = scmp.ge.s32.totalorder %s25_s15, 2  ;;  %p158_p2 = scmp.lt.s32.totalorder %s581_s14, 3 }
   0x5   : > { %s677_s15 = smov (%p27_p1, %s25_s15), 0  ;;  %p159_p3 = pnand %p464_p0, %p158_p2 }
   0x6   : > { %v550_v0 = vld [vmem:[%s671_s1] sm:$0xff] (!%p159_p3)   ;;  %v551_v1 = vld [vmem:[%s671_s1 + $0x8] sm:$0xff] (!%p159_p3)   ;;  %p191_p4 = scmp.lt.s32.totalorder (!%p159_p3), %s573_s12, 1  ;;  %v552_v2 = vld [vmem:[%s671_s1 + $0x10] sm:$0xff] (!%p159_p3)   ;;  %vm282_vm0 = vcmask (!%p159_p3), 588800   ;;  %vm295_vm1 = vcmask (!%p159_p3), 1043456  }
   0x7   : > { %162 = sbr.rel (%p159_p3) target bundleno = 245 (0xf5), region = 32  ;;  %496 = vmatprep.subr.bf16.mxu0 (!%p159_p3), %v550_v0  ;;  %514 = vmatprep.subr.bf16.mxu1 (!%p159_p3), %v550_v0  ;;  %v553_v3 = vld [vmem:[%s671_s1 + $0x18] sm:$0xff] (!%p159_p3)   ;;  %v554_v6 = vld [vmem:[%s671_s1 + $0x20] ss:$0 sps:$4 sm:$0xff] (!%p159_p3)   ;;  %vm364_vm2 = vcmask (!%p159_p3), 261120  }
   0x8   : > { %497 = vmatpush3.bf16.msra.mxu0 (!%p159_p3), %v550_v0  ;;  %519 = vmatpush3.bf16.msra.mxu1 (!%p159_p3), %v550_v0  ;;  %v297_v7 = vsel (!%p159_p3), %vm295_vm1, %v554_v6, 0  ;;  %v469_v10 = vld [vmem:[%s672_s2] ss:$0 sm:$0xff] (!%p159_p3) }
   0x9   : > { %498 = vmatprep.subr.bf16.mxu0 (!%p159_p3), %v551_v1  ;;  %515 = vmatprep.subr.bf16.mxu1 (!%p159_p3), %v551_v1 }
   0xc   : > { %499 = vmatpush3.bf16.msra.mxu0 (!%p159_p3), %v551_v1  ;;  %520 = vmatpush3.bf16.msra.mxu1 (!%p159_p3), %v551_v1 }
   0xd   : > { %500 = vmatprep.subr.bf16.mxu0 (!%p159_p3), %v552_v2  ;;  %516 = vmatprep.subr.bf16.mxu1 (!%p159_p3), %v552_v2 }
   0xe   : > { %s679_s12 = smov (!%p191_p4, %s573_s12), 1 }
   0xf   : > { %s485_s22 = sshll.u32 %s679_s12, 5  ;;  %s486_s30 = sshll.u32 %s679_s12, 6 }
  0x10   : > { %s198_s27 = scalar_lea.vmem %s670_s0, %s485_s22  ;;  %501 = vmatpush3.bf16.msra.mxu0 %v552_v2  ;;  %521 = vmatpush3.bf16.msra.mxu1 %v552_v2  ;;  %s208_s8 = scalar_lea.vmem %s673_s3, %s486_s30 }
  0x11   : > { %v555_v4 = vld [vmem:[%s198_s27] sm:$0xff]   ;;  %v556_v5 = vld [vmem:[%s198_s27 + $0x10] sm:$0xff]   ;;  %502 = vmatprep.subr.bf16.mxu0 %v553_v3  ;;  %517 = vmatprep.subr.bf16.mxu1 %v553_v3  ;;  %v557_v8 = vld [vmem:[%s198_s27 + $0x8] sm:$0xff]  }
  0x12   : > { %506 = vmatprep.mubr.msk.bf16.mxu0 %vm282_vm0, %v555_v4  ;;  %510 = vmatprep.mubr.msk.bf16.mxu1 %vm282_vm0, %v556_v5  ;;  %v558_v9 = vld [vmem:[%s198_s27 + $0x18] sm:$0xff]  }
  0x14   : > { %503 = vmatpush3.bf16.msra.mxu0 %v553_v3  ;;  %522 = vmatpush3.bf16.msra.mxu1 %v553_v3 }
  0x15   : > { %524 = vmatprep.subr.msk.bf16.mxu0 %vm295_vm1, %v554_v6  ;;  %525 = vmatprep.subr.msk.bf16.mxu1 %vm295_vm1, %v554_v6 }
  0x18   : > { %505 = vmatpush3.bf16.msra.mxu0 %v297_v7  ;;  %523 = vmatpush3.bf16.msra.mxu1 %v297_v7 }
  0x1b   : > { %507 = vmatmul.mubr.msk.bf16.vlgmr.msra.gmra.mrb[0].mxu0 %vm282_vm0, %v557_v8  ;;  %511 = vmatmul.mubr.msk.bf16.vlgmr.msra.gmra.mrb[0].mxu1 %vm282_vm0, %v558_v9 }
  0xee   : > { %v508_v11 = vpop.f32.mrb[0].mxu0  ;;  %v512_v12 = vpop.f32.mrb[0].mxu1 }
  0xef   : > { %v342_v13 = vadd.f32 %v508_v11, %v469_v10  ;;  %v358_v14 = vadd.f32 %v512_v12, %v469_v10  ;;  %v333_v15 = vpop.f32.mrb[1].mxu0  ;;  %v349_v16 = vpop.f32.mrb[1].mxu1 }
  0xf0   : > { %v334_v17 = vadd.f32 %v469_v10, %v333_v15  ;;  %v350_v18 = vadd.f32 %v469_v10, %v349_v16  ;;  %v509_v19 = vpop.f32.mrb[2].mxu0  ;;  %v513_v20 = vpop.f32.mrb[2].mxu1 }
  0xf1   : > { %367 = vst.msk [vmem:[%s208_s8 + $0x10] sm:$0xff] %vm364_vm2, %v342_v13  ;;  %371 = vst.msk [vmem:[%s208_s8 + $0x30] sm:$0xff] %vm364_vm2, %v358_v14  ;;  %v345_v21 = vadd.f32 %v509_v19, %v469_v10  ;;  %v361_v22 = vadd.f32 %v513_v20, %v469_v10  ;;  %v336_v23 = vpop.f32.mrb[3].mxu0  ;;  %v352_v24 = vpop.f32.mrb[3].mxu1 }
  0xf2   : > { %365 = vst.msk [vmem:[%s208_s8] sm:$0xff] %vm364_vm2, %v334_v17  ;;  %369 = vst.msk [vmem:[%s208_s8 + $0x20] sm:$0xff] %vm364_vm2, %v350_v18  ;;  %v337_v25 = vadd.f32 %v469_v10, %v336_v23  ;;  %v353_v26 = vadd.f32 %v469_v10, %v352_v24 }
  0xf3   : > { %368 = vst.msk [vmem:[%s208_s8 + $0x18] sm:$0xff] %vm364_vm2, %v345_v21  ;;  %372 = vst.msk [vmem:[%s208_s8 + $0x38] sm:$0xff] %vm364_vm2, %v361_v22 }
  0xf4   : > { %366 = vst.msk [vmem:[%s208_s8 + $0x8] sm:$0xff] %vm364_vm2, %v337_v25  ;;  %370 = vst.msk [vmem:[%s208_s8 + $0x28] sm:$0xff] %vm364_vm2, %v353_v26 }
  0xf5 PF: > { %s13_s14 = sadd.s32 1, %s581_s14   ;;  %s674_s12 = smov %s577_s13 }
  0xf6   : > { %p10_p5 = scmp.ge.s32.totalorder %s13_s14, 4   ;;  %s675_s13 = smov %s677_s15 }
  0xf8   :  { %12 = sbr.rel (!%p10_p5) target bundleno = 2 (0x2), region = 62 }

// kernel: generator_forward.67
= control target key start
LH: loop header
LB: loop body
LE: loop exit
PB: predicated region body
PF: predicated region fallthrough
CT: control target
= control target key end

     0   :  { %s1667_s18 = smov 0   ;;  %s1669_s19 = smov 0   ;;  %s1908_s0 = inlined_call_operand.vmem [shape: bf16[2,256,72], index: 0, kind: input, shape index: {}]   ;;  %s1909_s1 = inlined_call_operand.vmem [shape: bf16[2,256,72], index: 1, kind: input, shape index: {}]   ;;  %s1910_s2 = inlined_call_operand.vmem [shape: bf16[72,16], index: 2, kind: input, shape index: {}]   ;;  %s1911_s3 = inlined_call_operand.vmem [shape: bf16[72,16], index: 3, kind: input, shape index: {}]   ;;  %s1912_s4 = inlined_call_operand.vmem [shape: f32[1,16], index: 4, kind: input, shape index: {}]   ;;  %s1913_s5 = inlined_call_operand.vmem [shape: f32[2,256,16], index: 5, kind: output, shape index: {}]  }
   0x1   :  { %s1671_s20 = smov 0  }
   0x2 LB: > { %s27_s21 = sadd.s32 1, %s1631_s19  ;;  %p1300_p0 = scmp.ge.s32.totalorder %s1635_s20, 1  ;;  %s1635_s20 = sphi %s1671_s20, %s15_s20   ;;  %s1631_s19 = sphi %s1669_s19, %s1915_s19   ;;  %s1627_s18 = sphi %s1667_s18, %s1914_s18  }
   0x3   : > { %p29_p1 = scmp.ge.s32.totalorder %s27_s21, 2  ;;  %p225_p2 = scmp.lt.s32.totalorder %s1635_s20, 3 }
   0x5   : > { %s1917_s21 = smov (%p29_p1, %s27_s21), 0  ;;  %p226_p3 = pnand %p1300_p0, %p225_p2 }
   0x6   : > { %v1571_v0 = vld [vmem:[%s1911_s3] sm:$0xff] (!%p226_p3)   ;;  %p271_p4 = scmp.lt.s32.totalorder (!%p226_p3), %s1627_s18, 1  ;;  %v1573_v2 = vld [vmem:[%s1911_s3 + $0x8] sm:$0xff] (!%p226_p3)   ;;  %v1575_v4 = vld [vmem:[%s1911_s3 + $0x10] sm:$0xff] (!%p226_p3)   ;;  %vm490_vm0 = vcmask (!%p226_p3), 588800   ;;  %vm539_vm1 = vcmask (!%p226_p3), 1043456  }
   0x7   : > { %229 = sbr.rel (%p226_p3) target bundleno = 307 (0x133), region = 40  ;;  %v1572_v1 = vld [vmem:[%s1910_s2] sm:$0xff] (!%p226_p3)   ;;  %1429 = vmatprep.subr.bf16.mxu1 (!%p226_p3), %v1571_v0  ;;  %v1574_v3 = vld [vmem:[%s1910_s2 + $0x8] sm:$0xff] (!%p226_p3)   ;;  %v1576_v5 = vld [vmem:[%s1910_s2 + $0x10] sm:$0xff] (!%p226_p3)   ;;  %vm1158_vm3 = vcmask (!%p226_p3), 130048  }
   0x8   : > { %1471 = vmatprep.subr.bf16.mxu0 (!%p226_p3), %v1572_v1  ;;  %1430 = vmatpush3.bf16.msra.mxu1 (!%p226_p3), %v1571_v0  ;;  %v1577_v6 = vld [vmem:[%s1911_s3 + $0x18] sm:$0xff] (!%p226_p3)   ;;  %v1579_v10 = vld [vmem:[%s1911_s3 + $0x20] ss:$0 sps:$4 sm:$0xff] (!%p226_p3)  }
   0x9   : > { %1472 = vmatpush3.bf16.msra.mxu0 (!%p226_p3), %v1572_v1  ;;  %1431 = vmatprep.subr.bf16.mxu1 (!%p226_p3), %v1573_v2  ;;  %v1578_v7 = vld [vmem:[%s1910_s2 + $0x18] sm:$0xff] (!%p226_p3)   ;;  %v1580_v11 = vld [vmem:[%s1910_s2 + $0x20] ss:$0 sps:$4 sm:$0xff] (!%p226_p3)   ;;  %v541_v12 = vsel (!%p226_p3), %vm539_vm1, %v1579_v10, 0 }
   0xa   : > { %1473 = vmatprep.subr.bf16.mxu0 (!%p226_p3), %v1574_v3  ;;  %v860_v13 = vsel (!%p226_p3), %vm539_vm1, %v1580_v11, 0  ;;  %v1795_v46 = vld [vmem:[%s1912_s4] ss:$0 sm:$0xff] (!%p226_p3) }
   0xc   : > { %1432 = vmatpush3.bf16.msra.mxu1 (!%p226_p3), %v1573_v2 }
   0xd   : > { %1474 = vmatpush3.bf16.msra.mxu0 (!%p226_p3), %v1574_v3  ;;  %1433 = vmatprep.subr.bf16.mxu1 (!%p226_p3), %v1575_v4 }
   0xe   : > { %s1919_s18 = smov (!%p271_p4, %s1627_s18), 1  ;;  %1475 = vmatprep.subr.bf16.mxu0 %v1576_v5 }
   0xf   : > { %s1384_s9 = sshll.u32 %s1919_s18, 7  ;;  %s1386_s30 = sshll.u32 %s1919_s18, 8 }
  0x10   : > { %s1709_s12 = scalar_lea.vmem %s1909_s1, %s1384_s9  ;;  %s1717_s17 = scalar_lea.vmem %s1908_s0, %s1384_s9  ;;  %1434 = vmatpush3.bf16.msra.mxu1 %v1575_v4 }
  0x11   : > { %v1581_v8 = vld [vmem:[%s1709_s12] sm:$0xff]   ;;  %1476 = vmatpush3.bf16.msra.mxu0 %v1576_v5  ;;  %1435 = vmatprep.subr.bf16.mxu1 %v1577_v6  ;;  %v1583_v14 = vld [vmem:[%s1709_s12 + $0x8] sm:$0xff]   ;;  %v1585_v16 = vld [vmem:[%s1709_s12 + $0x10] sm:$0xff]   ;;  %s1803_s8 = scalar_lea.vmem %s1913_s5, %s1386_s30 }
  0x12   : > { %v1582_v9 = vld [vmem:[%s1717_s17] sm:$0xff]   ;;  %1477 = vmatprep.subr.bf16.mxu0 %v1578_v7  ;;  %1439 = vmatprep.mubr.msk.bf16.mxu1 %vm490_vm0, %v1581_v8  ;;  %v1584_v15 = vld [vmem:[%s1717_s17 + $0x8] sm:$0xff]   ;;  %v1586_v17 = vld [vmem:[%s1717_s17 + $0x10] sm:$0xff]  }
  0x13   : > { %1481 = vmatprep.mubr.msk.bf16.mxu0 %vm490_vm0, %v1582_v9  ;;  %v1587_v18 = vld [vmem:[%s1709_s12 + $0x18] sm:$0xff]   ;;  %v1589_v20 = vld [vmem:[%s1709_s12 + $0x20] sm:$0xff]   ;;  %v1591_v22 = vld [vmem:[%s1709_s12 + $0x28] sm:$0xff]  }
  0x14   : > { %1436 = vmatpush3.bf16.msra.mxu1 %v1577_v6  ;;  %v1588_v19 = vld [vmem:[%s1717_s17 + $0x18] sm:$0xff]   ;;  %v1590_v21 = vld [vmem:[%s1717_s17 + $0x20] sm:$0xff]   ;;  %v1592_v23 = vld [vmem:[%s1717_s17 + $0x28] sm:$0xff]  }
  0x15   : > { %1478 = vmatpush3.bf16.msra.mxu0 %v1578_v7  ;;  %1545 = vmatprep.subr.msk.bf16.mxu1 %vm539_vm1, %v1579_v10  ;;  %v1593_v24 = vld [vmem:[%s1709_s12 + $0x30] sm:$0xff]   ;;  %v1595_v26 = vld [vmem:[%s1709_s12 + $0x38] sm:$0xff]   ;;  %v1597_v28 = vld [vmem:[%s1709_s12 + $0x40] sm:$0xff]  }
  0x16   : > { %1546 = vmatprep.subr.msk.bf16.mxu0 %vm539_vm1, %v1580_v11  ;;  %v1594_v25 = vld [vmem:[%s1717_s17 + $0x30] sm:$0xff]   ;;  %v1596_v27 = vld [vmem:[%s1717_s17 + $0x38] sm:$0xff]   ;;  %v1598_v29 = vld [vmem:[%s1717_s17 + $0x40] sm:$0xff]  }
  0x17   : > { %v1599_v30 = vld [vmem:[%s1709_s12 + $0x48] sm:$0xff]   ;;  %v1601_v32 = vld [vmem:[%s1709_s12 + $0x50] sm:$0xff]   ;;  %v1603_v34 = vld [vmem:[%s1709_s12 + $0x58] sm:$0xff]  }
  0x18   : > { %1438 = vmatpush3.bf16.msra.mxu1 %v541_v12  ;;  %v1600_v31 = vld [vmem:[%s1717_s17 + $0x48] sm:$0xff]   ;;  %v1602_v33 = vld [vmem:[%s1717_s17 + $0x50] sm:$0xff]   ;;  %v1604_v35 = vld [vmem:[%s1717_s17 + $0x58] sm:$0xff]  }
  0x19   : > { %1480 = vmatpush3.bf16.msra.mxu0 %v860_v13  ;;  %v1605_v36 = vld [vmem:[%s1709_s12 + $0x60] sm:$0xff]   ;;  %v1607_v38 = vld [vmem:[%s1709_s12 + $0x68] sm:$0xff]   ;;  %v1609_v40 = vld [vmem:[%s1709_s12 + $0x70] sm:$0xff]  }
  0x1a   : > { %v1606_v37 = vld [vmem:[%s1717_s17 + $0x60] sm:$0xff]   ;;  %v1608_v39 = vld [vmem:[%s1717_s17 + $0x68] sm:$0xff]   ;;  %v1610_v41 = vld [vmem:[%s1717_s17 + $0x70] sm:$0xff]  }
  0x1b   : > { %1440 = vmatmul.mubr.msk.bf16.vlgmr.msra.gmra.mrb[0].mxu1 %vm490_vm0, %v1583_v14  ;;  %v1611_v42 = vld [vmem:[%s1709_s12 + $0x78] sm:$0xff]  }
  0x1c   : > { %1482 = vmatmul.mubr.msk.bf16.vlgmr.msra.gmra.mrb[0].mxu0 %vm490_vm0, %v1584_v15  ;;  %1443 = vmatprep.mubr.msk.bf16.mxu1 %vm490_vm0, %v1585_v16  ;;  %v1612_v43 = vld [vmem:[%s1717_s17 + $0x78] sm:$0xff]  }
  0x1d   : > { %1485 = vmatprep.mubr.msk.bf16.mxu0 %vm490_vm0, %v1586_v17 }
  0x23   : > { %1444 = vmatmul.mubr.msk.bf16.gmra.mrb[4].mxu1 %vm490_vm0, %v1587_v18 }
  0x24   : > { %1486 = vmatmul.mubr.msk.bf16.gmra.mrb[4].mxu0 %vm490_vm0, %v1588_v19  ;;  %1447 = vmatprep.mubr.msk.bf16.mxu1 %vm490_vm0, %v1589_v20 }
  0x25   : > { %1489 = vmatprep.mubr.msk.bf16.mxu0 %vm490_vm0, %v1590_v21 }
  0x2b   : > { %1448 = vmatmul.mubr.msk.bf16.gmra.mrb[8].mxu1 %vm490_vm0, %v1591_v22 }
  0x2c   : > { %1490 = vmatmul.mubr.msk.bf16.gmra.mrb[8].mxu0 %vm490_vm0, %v1592_v23  ;;  %1451 = vmatprep.mubr.msk.bf16.mxu1 %vm490_vm0, %v1593_v24 }
  0x2d   : > { %1493 = vmatprep.mubr.msk.bf16.mxu0 %vm490_vm0, %v1594_v25 }
  0x33   : > { %1452 = vmatmul.mubr.msk.bf16.gmra.mrb[12].mxu1 %vm490_vm0, %v1595_v26 }
  0x34   : > { %1494 = vmatmul.mubr.msk.bf16.gmra.mrb[12].mxu0 %vm490_vm0, %v1596_v27  ;;  %1455 = vmatprep.mubr.msk.bf16.mxu1 %vm490_vm0, %v1597_v28 }
  0x35   : > { %1497 = vmatprep.mubr.msk.bf16.mxu0 %vm490_vm0, %v1598_v29 }
  0x3b   : > { %1456 = vmatmul.mubr.msk.bf16.gmra.mrb[16].mxu1 %vm490_vm0, %v1599_v30 }
  0x3c   : > { %1498 = vmatmul.mubr.msk.bf16.gmra.mrb[16].mxu0 %vm490_vm0, %v1600_v31  ;;  %1459 = vmatprep.mubr.msk.bf16.mxu1 %vm490_vm0, %v1601_v32 }
  0x3d   : > { %1501 = vmatprep.mubr.msk.bf16.mxu0 %vm490_vm0, %v1602_v33 }
  0x43   : > { %1460 = vmatmul.mubr.msk.bf16.gmra.mrb[20].mxu1 %vm490_vm0, %v1603_v34 }
  0x44   : > { %1502 = vmatmul.mubr.msk.bf16.gmra.mrb[20].mxu0 %vm490_vm0, %v1604_v35  ;;  %1463 = vmatprep.mubr.msk.bf16.mxu1 %vm490_vm0, %v1605_v36 }
  0x45   : > { %1505 = vmatprep.mubr.msk.bf16.mxu0 %vm490_vm0, %v1606_v37 }
  0x4b   : > { %1464 = vmatmul.mubr.msk.bf16.gmra.mrb[24].mxu1 %vm490_vm0, %v1607_v38 }
  0x4c   : > { %1506 = vmatmul.mubr.msk.bf16.gmra.mrb[24].mxu0 %vm490_vm0, %v1608_v39  ;;  %1467 = vmatprep.mubr.msk.bf16.mxu1 %vm490_vm0, %v1609_v40 }
  0x4d   : > { %1509 = vmatprep.mubr.msk.bf16.mxu0 %vm490_vm0, %v1610_v41 }
  0x53   : > { %1468 = vmatmul.mubr.msk.bf16.gmra.mrb[28].mxu1 %vm490_vm0, %v1611_v42 }
  0x54   : > { %1510 = vmatmul.mubr.msk.bf16.gmra.mrb[28].mxu0 %vm490_vm0, %v1612_v43 }
  0xee   : > { %v1441_v44 = vpop.f32.mrb[0].mxu1 }
  0xef   : > { %v1483_v45 = vpop.f32.mrb[0].mxu0  ;;  %v577_v47 = vpop.f32.mrb[1].mxu1 }
  0xf0   : > { %v905_v48 = vadd.f32 %v1483_v45, %v1441_v44  ;;  %v896_v49 = vpop.f32.mrb[1].mxu0  ;;  %v1442_v50 = vpop.f32.mrb[2].mxu1 }
  0xf1   : > { %v897_v51 = vadd.f32 %v896_v49, %v577_v47  ;;  %v1484_v52 = vpop.f32.mrb[2].mxu0  ;;  %v580_v53 = vpop.f32.mrb[3].mxu1 }
  0xf2   : > { %v1032_v54 = vadd.f32 %v1795_v46, %v905_v48  ;;  %v908_v55 = vadd.f32 %v1484_v52, %v1442_v50  ;;  %v899_v56 = vpop.f32.mrb[3].mxu0 }
  0xf3   : > { %v1030_v57 = vadd.f32 %v1795_v46, %v897_v51  ;;  %v900_v58 = vadd.f32 %v899_v56, %v580_v53 }
  0xf4   : > { %vm1064_vm2 = vcmp.ge.f32.partialorder %v1032_v54, 0.0  ;;  %v1096_v59 = vmul.f32 0.2, %v1032_v54  ;;  %v1033_v60 = vadd.f32 %v1795_v46, %v908_v55 }
  0xf5   : > { %vm1062_vm4 = vcmp.ge.f32.partialorder %v1030_v57, 0.0  ;;  %v1094_v61 = vmul.f32 0.2, %v1030_v57  ;;  %v1031_v62 = vadd.f32 %v1795_v46, %v900_v58 }
  0xf6   : > { %v1128_v63 = vsel %vm1064_vm2, %v1032_v54, %v1096_v59  ;;  %vm1065_vm5 = vcmp.ge.f32.partialorder %v1033_v60, 0.0  ;;  %v1097_v0 = vmul.f32 0.2, %v1033_v60  ;;  %v1445_v1 = vpop.f32.mrb[4].mxu1 }
  0xf7   : > { %1161 = vst.msk [vmem:[%s1803_s8 + $0x10] sm:$0xff] %vm1158_vm3, %v1128_v63  ;;  %v1126_v2 = vsel %vm1062_vm4, %v1030_v57, %v1094_v61  ;;  %vm1063_vm6 = vcmp.ge.f32.partialorder %v1031_v62, 0.0  ;;  %v1095_v3 = vmul.f32 0.2, %v1031_v62  ;;  %v1487_v4 = vpop.f32.mrb[4].mxu0  ;;  %v593_v5 = vpop.f32.mrb[5].mxu1 }
  0xf8   : > { %1159 = vst.msk [vmem:[%s1803_s8] sm:$0xff] %vm1158_vm3, %v1126_v2  ;;  %v1129_v6 = vsel %vm1065_vm5, %v1033_v60, %v1097_v0  ;;  %v921_v7 = vadd.f32 %v1487_v4, %v1445_v1  ;;  %v912_v8 = vpop.f32.mrb[5].mxu0  ;;  %v1446_v9 = vpop.f32.mrb[6].mxu1 }
  0xf9   : > { %1162 = vst.msk [vmem:[%s1803_s8 + $0x18] sm:$0xff] %vm1158_vm3, %v1129_v6  ;;  %v1127_v10 = vsel %vm1063_vm6, %v1031_v62, %v1095_v3  ;;  %v913_v11 = vadd.f32 %v912_v8, %v593_v5  ;;  %v1488_v12 = vpop.f32.mrb[6].mxu0  ;;  %v596_v13 = vpop.f32.mrb[7].mxu1 }
  0xfa   : > { %1160 = vst.msk [vmem:[%s1803_s8 + $0x8] sm:$0xff] %vm1158_vm3, %v1127_v10  ;;  %v1036_v14 = vadd.f32 %v1795_v46, %v921_v7  ;;  %v924_v15 = vadd.f32 %v1488_v12, %v1446_v9  ;;  %v915_v16 = vpop.f32.mrb[7].mxu0 }
  0xfb   : > { %v1034_v17 = vadd.f32 %v1795_v46, %v913_v11  ;;  %v916_v18 = vadd.f32 %v915_v16, %v596_v13 }
  0xfc   : > { %vm1068_vm7 = vcmp.ge.f32.partialorder %v1036_v14, 0.0  ;;  %v1100_v19 = vmul.f32 0.2, %v1036_v14  ;;  %v1037_v20 = vadd.f32 %v1795_v46, %v924_v15 }
  0xfd   : > { %vm1066_vm8 = vcmp.ge.f32.partialorder %v1034_v17, 0.0  ;;  %v1098_v21 = vmul.f32 0.2, %v1034_v17  ;;  %v1035_v22 = vadd.f32 %v1795_v46, %v916_v18 }
  0xfe   : > { %v1132_v23 = vsel %vm1068_vm7, %v1036_v14, %v1100_v19  ;;  %vm1069_vm9 = vcmp.ge.f32.partialorder %v1037_v20, 0.0  ;;  %v1101_v24 = vmul.f32 0.2, %v1037_v20  ;;  %v1449_v25 = vpop.f32.mrb[8].mxu1 }
  0xff   : > { %1165 = vst.msk [vmem:[%s1803_s8 + $0x30] sm:$0xff] %vm1158_vm3, %v1132_v23  ;;  %v1130_v26 = vsel %vm1066_vm8, %v1034_v17, %v1098_v21  ;;  %vm1067_vm10 = vcmp.ge.f32.partialorder %v1035_v22, 0.0  ;;  %v1099_v27 = vmul.f32 0.2, %v1035_v22  ;;  %v1491_v28 = vpop.f32.mrb[8].mxu0  ;;  %v609_v29 = vpop.f32.mrb[9].mxu1 }
 0x100   : > { %1163 = vst.msk [vmem:[%s1803_s8 + $0x20] sm:$0xff] %vm1158_vm3, %v1130_v26  ;;  %v1133_v30 = vsel %vm1069_vm9, %v1037_v20, %v1101_v24  ;;  %v937_v31 = vadd.f32 %v1491_v28, %v1449_v25  ;;  %v928_v32 = vpop.f32.mrb[9].mxu0  ;;  %v1450_v33 = vpop.f32.mrb[10].mxu1 }
 0x101   : > { %1166 = vst.msk [vmem:[%s1803_s8 + $0x38] sm:$0xff] %vm1158_vm3, %v1133_v30  ;;  %v1131_v34 = vsel %vm1067_vm10, %v1035_v22, %v1099_v27  ;;  %v929_v35 = vadd.f32 %v928_v32, %v609_v29  ;;  %v1492_v36 = vpop.f32.mrb[10].mxu0  ;;  %v612_v37 = vpop.f32.mrb[11].mxu1 }
 0x102   : > { %1164 = vst.msk [vmem:[%s1803_s8 + $0x28] sm:$0xff] %vm1158_vm3, %v1131_v34  ;;  %v1040_v38 = vadd.f32 %v1795_v46, %v937_v31  ;;  %v940_v39 = vadd.f32 %v1492_v36, %v1450_v33  ;;  %v931_v40 = vpop.f32.mrb[11].mxu0 }
 0x103   : > { %v1038_v41 = vadd.f32 %v1795_v46, %v929_v35  ;;  %v932_v42 = vadd.f32 %v931_v40, %v612_v37 }
 0x104   : > { %vm1072_vm11 = vcmp.ge.f32.partialorder %v1040_v38, 0.0  ;;  %v1104_v43 = vmul.f32 0.2, %v1040_v38  ;;  %v1041_v44 = vadd.f32 %v1795_v46, %v940_v39 }
 0x105   : > { %vm1070_vm12 = vcmp.ge.f32.partialorder %v1038_v41, 0.0  ;;  %v1102_v45 = vmul.f32 0.2, %v1038_v41  ;;  %v1039_v47 = vadd.f32 %v1795_v46, %v932_v42 }
 0x106   : > { %v1136_v48 = vsel %vm1072_vm11, %v1040_v38, %v1104_v43  ;;  %vm1073_vm13 = vcmp.ge.f32.partialorder %v1041_v44, 0.0  ;;  %v1105_v49 = vmul.f32 0.2, %v1041_v44  ;;  %v1453_v50 = vpop.f32.mrb[12].mxu1 }
 0x107   : > { %1169 = vst.msk [vmem:[%s1803_s8 + $0x50] sm:$0xff] %vm1158_vm3, %v1136_v48  ;;  %v1134_v51 = vsel %vm1070_vm12, %v1038_v41, %v1102_v45  ;;  %vm1071_vm14 = vcmp.ge.f32.partialorder %v1039_v47, 0.0  ;;  %v1103_v52 = vmul.f32 0.2, %v1039_v47  ;;  %v1495_v53 = vpop.f32.mrb[12].mxu0  ;;  %v625_v54 = vpop.f32.mrb[13].mxu1 }
 0x108   : > { %1167 = vst.msk [vmem:[%s1803_s8 + $0x40] sm:$0xff] %vm1158_vm3, %v1134_v51  ;;  %v1137_v55 = vsel %vm1073_vm13, %v1041_v44, %v1105_v49  ;;  %v953_v56 = vadd.f32 %v1495_v53, %v1453_v50  ;;  %v944_v57 = vpop.f32.mrb[13].mxu0  ;;  %v1454_v58 = vpop.f32.mrb[14].mxu1 }
 0x109   : > { %1170 = vst.msk [vmem:[%s1803_s8 + $0x58] sm:$0xff] %vm1158_vm3, %v1137_v55  ;;  %v1135_v59 = vsel %vm1071_vm14, %v1039_v47, %v1103_v52  ;;  %v945_v60 = vadd.f32 %v944_v57, %v625_v54  ;;  %v1496_v61 = vpop.f32.mrb[14].mxu0  ;;  %v628_v62 = vpop.f32.mrb[15].mxu1 }
 0x10a   : > { %1168 = vst.msk [vmem:[%s1803_s8 + $0x48] sm:$0xff] %vm1158_vm3, %v1135_v59  ;;  %v1044_v63 = vadd.f32 %v1795_v46, %v953_v56  ;;  %v956_v0 = vadd.f32 %v1496_v61, %v1454_v58  ;;  %v947_v1 = vpop.f32.mrb[15].mxu0 }
 0x10b   : > { %v1042_v2 = vadd.f32 %v1795_v46, %v945_v60  ;;  %v948_v3 = vadd.f32 %v947_v1, %v628_v62 }
 0x10c   : > { %vm1076_vm15 = vcmp.ge.f32.partialorder %v1044_v63, 0.0  ;;  %v1108_v4 = vmul.f32 0.2, %v1044_v63  ;;  %v1045_v5 = vadd.f32 %v1795_v46, %v956_v0 }
 0x10d   : > { %vm1074_vm0 = vcmp.ge.f32.partialorder %v1042_v2, 0.0  ;;  %v1106_v6 = vmul.f32 0.2, %v1042_v2  ;;  %v1043_v7 = vadd.f32 %v1795_v46, %v948_v3 }
 0x10e   : > { %v1140_v8 = vsel %vm1076_vm15, %v1044_v63, %v1108_v4  ;;  %vm1077_vm1 = vcmp.ge.f32.partialorder %v1045_v5, 0.0  ;;  %v1109_v9 = vmul.f32 0.2, %v1045_v5  ;;  %v1457_v10 = vpop.f32.mrb[16].mxu1 }
 0x10f   : > { %1173 = vst.msk [vmem:[%s1803_s8 + $0x70] sm:$0xff] %vm1158_vm3, %v1140_v8  ;;  %v1138_v11 = vsel %vm1074_vm0, %v1042_v2, %v1106_v6  ;;  %vm1075_vm2 = vcmp.ge.f32.partialorder %v1043_v7, 0.0  ;;  %v1107_v12 = vmul.f32 0.2, %v1043_v7  ;;  %v1499_v13 = vpop.f32.mrb[16].mxu0  ;;  %v641_v14 = vpop.f32.mrb[17].mxu1 }
 0x110   : > { %1171 = vst.msk [vmem:[%s1803_s8 + $0x60] sm:$0xff] %vm1158_vm3, %v1138_v11  ;;  %v1141_v15 = vsel %vm1077_vm1, %v1045_v5, %v1109_v9  ;;  %v969_v16 = vadd.f32 %v1499_v13, %v1457_v10  ;;  %v960_v17 = vpop.f32.mrb[17].mxu0  ;;  %v1458_v18 = vpop.f32.mrb[18].mxu1 }
 0x111   : > { %1174 = vst.msk [vmem:[%s1803_s8 + $0x78] sm:$0xff] %vm1158_vm3, %v1141_v15  ;;  %v1139_v19 = vsel %vm1075_vm2, %v1043_v7, %v1107_v12  ;;  %v961_v20 = vadd.f32 %v960_v17, %v641_v14  ;;  %v1500_v21 = vpop.f32.mrb[18].mxu0  ;;  %v644_v22 = vpop.f32.mrb[19].mxu1 }
 0x112   : > { %1172 = vst.msk [vmem:[%s1803_s8 + $0x68] sm:$0xff] %vm1158_vm3, %v1139_v19  ;;  %v1048_v23 = vadd.f32 %v1795_v46, %v969_v16  ;;  %v972_v24 = vadd.f32 %v1500_v21, %v1458_v18  ;;  %v963_v25 = vpop.f32.mrb[19].mxu0 }
 0x113   : > { %v1046_v26 = vadd.f32 %v1795_v46, %v961_v20  ;;  %v964_v27 = vadd.f32 %v963_v25, %v644_v22 }
 0x114   : > { %vm1080_vm4 = vcmp.ge.f32.partialorder %v1048_v23, 0.0  ;;  %v1112_v28 = vmul.f32 0.2, %v1048_v23  ;;  %v1049_v29 = vadd.f32 %v1795_v46, %v972_v24 }
 0x115   : > { %vm1078_vm5 = vcmp.ge.f32.partialorder %v1046_v26, 0.0  ;;  %v1110_v30 = vmul.f32 0.2, %v1046_v26  ;;  %v1047_v31 = vadd.f32 %v1795_v46, %v964_v27 }
 0x116   : > { %v1144_v32 = vsel %vm1080_vm4, %v1048_v23, %v1112_v28  ;;  %vm1081_vm6 = vcmp.ge.f32.partialorder %v1049_v29, 0.0  ;;  %v1113_v33 = vmul.f32 0.2, %v1049_v29  ;;  %v1461_v34 = vpop.f32.mrb[20].mxu1 }
 0x117   : > { %1177 = vst.msk [vmem:[%s1803_s8 + $0x90] sm:$0xff] %vm1158_vm3, %v1144_v32  ;;  %v1142_v35 = vsel %vm1078_vm5, %v1046_v26, %v1110_v30  ;;  %vm1079_vm7 = vcmp.ge.f32.partialorder %v1047_v31, 0.0  ;;  %v1111_v36 = vmul.f32 0.2, %v1047_v31  ;;  %v1503_v37 = vpop.f32.mrb[20].mxu0  ;;  %v657_v38 = vpop.f32.mrb[21].mxu1 }
 0x118   : > { %1175 = vst.msk [vmem:[%s1803_s8 + $0x80] sm:$0xff] %vm1158_vm3, %v1142_v35  ;;  %v1145_v39 = vsel %vm1081_vm6, %v1049_v29, %v1113_v33  ;;  %v985_v40 = vadd.f32 %v1503_v37, %v1461_v34  ;;  %v976_v41 = vpop.f32.mrb[21].mxu0  ;;  %v1462_v42 = vpop.f32.mrb[22].mxu1 }
 0x119   : > { %1178 = vst.msk [vmem:[%s1803_s8 + $0x98] sm:$0xff] %vm1158_vm3, %v1145_v39  ;;  %v1143_v43 = vsel %vm1079_vm7, %v1047_v31, %v1111_v36  ;;  %v977_v44 = vadd.f32 %v976_v41, %v657_v38  ;;  %v1504_v45 = vpop.f32.mrb[22].mxu0  ;;  %v660_v47 = vpop.f32.mrb[23].mxu1 }
 0x11a   : > { %1176 = vst.msk [vmem:[%s1803_s8 + $0x88] sm:$0xff] %vm1158_vm3, %v1143_v43  ;;  %v1052_v48 = vadd.f32 %v1795_v46, %v985_v40  ;;  %v988_v49 = vadd.f32 %v1504_v45, %v1462_v42  ;;  %v979_v50 = vpop.f32.mrb[23].mxu0 }
 0x11b   : > { %v1050_v51 = vadd.f32 %v1795_v46, %v977_v44  ;;  %v980_v52 = vadd.f32 %v979_v50, %v660_v47 }
 0x11c   : > { %vm1084_vm8 = vcmp.ge.f32.partialorder %v1052_v48, 0.0  ;;  %v1116_v53 = vmul.f32 0.2, %v1052_v48  ;;  %v1053_v54 = vadd.f32 %v1795_v46, %v988_v49 }
 0x11d   : > { %vm1082_vm9 = vcmp.ge.f32.partialorder %v1050_v51, 0.0  ;;  %v1114_v55 = vmul.f32 0.2, %v1050_v51  ;;  %v1051_v56 = vadd.f32 %v1795_v46, %v980_v52 }
 0x11e   : > { %v1148_v57 = vsel %vm1084_vm8, %v1052_v48, %v1116_v53  ;;  %vm1085_vm10 = vcmp.ge.f32.partialorder %v1053_v54, 0.0  ;;  %v1117_v58 = vmul.f32 0.2, %v1053_v54  ;;  %v1465_v59 = vpop.f32.mrb[24].mxu1 }
 0x11f   : > { %1181 = vst.msk [vmem:[%s1803_s8 + $0xb0] sm:$0xff] %vm1158_vm3, %v1148_v57  ;;  %v1146_v60 = vsel %vm1082_vm9, %v1050_v51, %v1114_v55  ;;  %vm1083_vm11 = vcmp.ge.f32.partialorder %v1051_v56, 0.0  ;;  %v1115_v61 = vmul.f32 0.2, %v1051_v56  ;;  %v1507_v62 = vpop.f32.mrb[24].mxu0  ;;  %v673_v63 = vpop.f32.mrb[25].mxu1 }
 0x120   : > { %1179 = vst.msk [vmem:[%s1803_s8 + $0xa0] sm:$0xff] %vm1158_vm3, %v1146_v60  ;;  %v1149_v0 = vsel %vm1085_vm10, %v1053_v54, %v1117_v58  ;;  %v1001_v1 = vadd.f32 %v1507_v62, %v1465_v59  ;;  %v992_v2 = vpop.f32.mrb[25].mxu0  ;;  %v1466_v3 = vpop.f32.mrb[26].mxu1 }
 0x121   : > { %1182 = vst.msk [vmem:[%s1803_s8 + $0xb8] sm:$0xff] %vm1158_vm3, %v1149_v0  ;;  %v1147_v4 = vsel %vm1083_vm11, %v1051_v56, %v1115_v61  ;;  %v993_v5 = vadd.f32 %v992_v2, %v673_v63  ;;  %v1508_v6 = vpop.f32.mrb[26].mxu0  ;;  %v676_v7 = vpop.f32.mrb[27].mxu1 }
 0x122   : > { %1180 = vst.msk [vmem:[%s1803_s8 + $0xa8] sm:$0xff] %vm1158_vm3, %v1147_v4  ;;  %v1056_v8 = vadd.f32 %v1795_v46, %v1001_v1  ;;  %v1004_v9 = vadd.f32 %v1508_v6, %v1466_v3  ;;  %v995_v10 = vpop.f32.mrb[27].mxu0 }
 0x123   : > { %v1054_v11 = vadd.f32 %v1795_v46, %v993_v5  ;;  %v996_v12 = vadd.f32 %v995_v10, %v676_v7 }
 0x124   : > { %vm1088_vm12 = vcmp.ge.f32.partialorder %v1056_v8, 0.0  ;;  %v1120_v13 = vmul.f32 0.2, %v1056_v8  ;;  %v1057_v14 = vadd.f32 %v1795_v46, %v1004_v9 }
 0x125   : > { %vm1086_vm13 = vcmp.ge.f32.partialorder %v1054_v11, 0.0  ;;  %v1118_v15 = vmul.f32 0.2, %v1054_v11  ;;  %v1055_v16 = vadd.f32 %v1795_v46, %v996_v12 }
 0x126   : > { %v1152_v17 = vsel %vm1088_vm12, %v1056_v8, %v1120_v13  ;;  %vm1089_vm14 = vcmp.ge.f32.partialorder %v1057_v14, 0.0  ;;  %v1121_v18 = vmul.f32 0.2, %v1057_v14  ;;  %v1469_v19 = vpop.f32.mrb[28].mxu1 }
 0x127   : > { %1185 = vst.msk [vmem:[%s1803_s8 + $0xd0] sm:$0xff] %vm1158_vm3, %v1152_v17  ;;  %v1150_v20 = vsel %vm1086_vm13, %v1054_v11, %v1118_v15  ;;  %vm1087_vm15 = vcmp.ge.f32.partialorder %v1055_v16, 0.0  ;;  %v1119_v21 = vmul.f32 0.2, %v1055_v16  ;;  %v1511_v22 = vpop.f32.mrb[28].mxu0  ;;  %v689_v23 = vpop.f32.mrb[29].mxu1 }
 0x128   : > { %1183 = vst.msk [vmem:[%s1803_s8 + $0xc0] sm:$0xff] %vm1158_vm3, %v1150_v20  ;;  %v1153_v24 = vsel %vm1089_vm14, %v1057_v14, %v1121_v18  ;;  %v1017_v25 = vadd.f32 %v1511_v22, %v1469_v19  ;;  %v1008_v26 = vpop.f32.mrb[29].mxu0  ;;  %v1470_v27 = vpop.f32.mrb[30].mxu1 }
 0x129   : > { %1186 = vst.msk [vmem:[%s1803_s8 + $0xd8] sm:$0xff] %vm1158_vm3, %v1153_v24  ;;  %v1151_v28 = vsel %vm1087_vm15, %v1055_v16, %v1119_v21  ;;  %v1009_v29 = vadd.f32 %v1008_v26, %v689_v23  ;;  %v1512_v30 = vpop.f32.mrb[30].mxu0  ;;  %v692_v31 = vpop.f32.mrb[31].mxu1 }
 0x12a   : > { %1184 = vst.msk [vmem:[%s1803_s8 + $0xc8] sm:$0xff] %vm1158_vm3, %v1151_v28  ;;  %v1060_v32 = vadd.f32 %v1795_v46, %v1017_v25  ;;  %v1020_v33 = vadd.f32 %v1512_v30, %v1470_v27  ;;  %v1011_v34 = vpop.f32.mrb[31].mxu0 }
 0x12b   : > { %v1058_v35 = vadd.f32 %v1795_v46, %v1009_v29  ;;  %v1012_v36 = vadd.f32 %v1011_v34, %v692_v31 }
 0x12c   : > { %vm1092_vm0 = vcmp.ge.f32.partialorder %v1060_v32, 0.0  ;;  %v1124_v37 = vmul.f32 0.2, %v1060_v32  ;;  %v1061_v38 = vadd.f32 %v1795_v46, %v1020_v33 }
 0x12d   : > { %vm1090_vm1 = vcmp.ge.f32.partialorder %v1058_v35, 0.0  ;;  %v1122_v39 = vmul.f32 0.2, %v1058_v35  ;;  %v1059_v40 = vadd.f32 %v1795_v46, %v1012_v36 }
 0x12e   : > { %v1156_v41 = vsel %vm1092_vm0, %v1060_v32, %v1124_v37  ;;  %vm1093_vm2 = vcmp.ge.f32.partialorder %v1061_v38, 0.0  ;;  %v1125_v42 = vmul.f32 0.2, %v1061_v38 }
 0x12f   : > { %1189 = vst.msk [vmem:[%s1803_s8 + $0xf0] sm:$0xff] %vm1158_vm3, %v1156_v41  ;;  %v1154_v43 = vsel %vm1090_vm1, %v1058_v35, %v1122_v39  ;;  %vm1091_vm4 = vcmp.ge.f32.partialorder %v1059_v40, 0.0  ;;  %v1123_v44 = vmul.f32 0.2, %v1059_v40 }
 0x130   : > { %1187 = vst.msk [vmem:[%s1803_s8 + $0xe0] sm:$0xff] %vm1158_vm3, %v1154_v43  ;;  %v1157_v45 = vsel %vm1093_vm2, %v1061_v38, %v1125_v42 }
 0x131   : > { %1190 = vst.msk [vmem:[%s1803_s8 + $0xf8] sm:$0xff] %vm1158_vm3, %v1157_v45  ;;  %v1155_v47 = vsel %vm1091_vm4, %v1059_v40, %v1123_v44 }
 0x132   : > { %1188 = vst.msk [vmem:[%s1803_s8 + $0xe8] sm:$0xff] %vm1158_vm3, %v1155_v47 }
 0x133 PF: > { %s15_s20 = sadd.s32 1, %s1635_s20   ;;  %s1914_s18 = smov %s1631_s19 }
 0x134   : > { %p12_p5 = scmp.ge.s32.totalorder %s15_s20, 4   ;;  %s1915_s19 = smov %s1917_s21 }
 0x136   :  { %14 = sbr.rel (!%p12_p5) target bundleno = 2 (0x2), region = 73 }

// kernel: generator_forward.69
= control target key start
LH: loop header
LB: loop body
LE: loop exit
PB: predicated region body
PF: predicated region fallthrough
CT: control target
= control target key end

     0   :  { %s855_s14 = smov 0   ;;  %s857_s15 = smov 0   ;;  %s1029_s0 = inlined_call_operand.vmem [shape: bf16[2,256,8], index: 0, kind: input, shape index: {}]   ;;  %s1030_s1 = inlined_call_operand.vmem [shape: bf16[8,1], index: 1, kind: input, shape index: {}]   ;;  %s1031_s2 = inlined_call_operand.<no memory space> [shape: f32[1,1], index: 2, kind: input, shape index: {}]   ;;  %s1032_s3 = inlined_call_operand.vmem [shape: f32[2,256,1], index: 3, kind: output, shape index: {}]  }
   0x1   :  { %v8_v0 = vstv %s1031_s2  ;;  %s859_s16 = smov 0  }
   0x2   :  { %9 = vst [vmem:[#allocation2] sm:$0x1] %v8_v0 }
   0x3 LB: > { %s27_s2 = sadd.s32 1, %s826_s15  ;;  %p671_p0 = scmp.ge.s32.totalorder %s830_s16, 1  ;;  %s830_s16 = sphi %s859_s16, %s15_s16   ;;  %s826_s15 = sphi %s857_s15, %s1034_s15   ;;  %s822_s14 = sphi %s855_s14, %s1033_s14  }
   0x4   : > { %p29_p1 = scmp.ge.s32.totalorder %s27_s2, 2  ;;  %p160_p2 = scmp.lt.s32.totalorder %s830_s16, 3 }
   0x6   : > { %s1036_s2 = smov (%p29_p1, %s27_s2), 0  ;;  %p161_p3 = pnand %p671_p0, %p160_p2 }
   0x7   : > { %v245_v1 = vld [vmem:[%s1030_s1] sm:$0xf] (!%p161_p3)  ;;  %vm382_vm0 = vcmask (!%p161_p3), 1043456   ;;  %p193_p4 = scmp.lt.s32.totalorder (!%p161_p3), %s822_s14, 1  ;;  %vm333_vm1 = vcmask (!%p161_p3), 64512   ;;  %vm547_vm2 = vcmask (!%p161_p3), 7168  }
   0x8   : > { %164 = sbr.rel (%p161_p3) target bundleno = 263 (0x107), region = 32  ;;  %766 = vmatprep.subr.msk.bf16.mxu0 (!%p161_p3), %vm382_vm0, %v245_v1  ;;  %767 = vmatprep.subr.msk.bf16.mxu1 (!%p161_p3), %vm382_vm0, %v245_v1  ;;  %v384_v2 = vsel (!%p161_p3), %vm382_vm0, %v245_v1, 0 }
   0x9   : > { %731 = vmatpush3.bf16.msra.mxu0 (!%p161_p3), %v384_v2  ;;  %765 = vmatpush3.bf16.msra.mxu1 (!%p161_p3), %v384_v2  ;;  %v917_v19 = vld [vmem:[#allocation2] ss:$0 sm:$0xff] (!%p161_p3) }
   0xf   : > { %s1038_s14 = smov (!%p193_p4, %s822_s14), 1 }
  0x10   : > { %s711_s19 = sshll.u32 %s1038_s14, 7  ;;  %s712_s23 = sshll.u32 %s1038_s14, 8 }
  0x11   : > { %s882_s22 = scalar_lea.vmem %s1029_s0, %s711_s19  ;;  %s922_s26 = scalar_lea.vmem %s1032_s3, %s712_s23 }
  0x12   : > { %v792_v3 = vld [vmem:[%s882_s22] sm:$0xff]   ;;  %v794_v5 = vld [vmem:[%s882_s22 + $0x8] sm:$0xff]   ;;  %v796_v7 = vld [vmem:[%s882_s22 + $0x10] sm:$0xff]  }
  0x13   : > { %v793_v4 = vld [vmem:[%s882_s22 + $0x40] sm:$0xff]   ;;  %732 = vmatprep.mubr.msk.bf16.mxu0 %vm333_vm1, %v792_v3  ;;  %v795_v6 = vld [vmem:[%s882_s22 + $0x48] sm:$0xff]   ;;  %v797_v8 = vld [vmem:[%s882_s22 + $0x50] sm:$0xff]  }
  0x14   : > { %748 = vmatprep.mubr.msk.bf16.mxu1 %vm333_vm1, %v793_v4  ;;  %733 = vmatmul.mubr.msk.bf16.vlgmr.msra.gmra.mrb[0].mxu0 %vm333_vm1, %v794_v5  ;;  %v798_v9 = vld [vmem:[%s882_s22 + $0x18] sm:$0xff]   ;;  %v800_v11 = vld [vmem:[%s882_s22 + $0x20] sm:$0xff]   ;;  %v802_v13 = vld [vmem:[%s882_s22 + $0x28] sm:$0xff]  }
  0x15   : > { %749 = vmatmul.mubr.msk.bf16.vlgmr.msra.gmra.mrb[0].mxu1 %vm333_vm1, %v795_v6  ;;  %736 = vmatprep.mubr.msk.bf16.mxu0 %vm333_vm1, %v796_v7  ;;  %v799_v10 = vld [vmem:[%s882_s22 + $0x58] sm:$0xff]   ;;  %v801_v12 = vld [vmem:[%s882_s22 + $0x60] sm:$0xff]   ;;  %v803_v14 = vld [vmem:[%s882_s22 + $0x68] sm:$0xff]  }
  0x16   : > { %752 = vmatprep.mubr.msk.bf16.mxu1 %vm333_vm1, %v797_v8  ;;  %v804_v15 = vld [vmem:[%s882_s22 + $0x30] sm:$0xff]   ;;  %v806_v17 = vld [vmem:[%s882_s22 + $0x38] sm:$0xff]  }
  0x17   : > { %v805_v16 = vld [vmem:[%s882_s22 + $0x70] sm:$0xff]   ;;  %v807_v18 = vld [vmem:[%s882_s22 + $0x78] sm:$0xff]  }
  0x1c   : > { %737 = vmatmul.mubr.msk.bf16.gmra.mrb[4].mxu0 %vm333_vm1, %v798_v9 }
  0x1d   : > { %753 = vmatmul.mubr.msk.bf16.gmra.mrb[4].mxu1 %vm333_vm1, %v799_v10  ;;  %740 = vmatprep.mubr.msk.bf16.mxu0 %vm333_vm1, %v800_v11 }
  0x1e   : > { %756 = vmatprep.mubr.msk.bf16.mxu1 %vm333_vm1, %v801_v12 }
  0x24   : > { %741 = vmatmul.mubr.msk.bf16.gmra.mrb[8].mxu0 %vm333_vm1, %v802_v13 }
  0x25   : > { %757 = vmatmul.mubr.msk.bf16.gmra.mrb[8].mxu1 %vm333_vm1, %v803_v14  ;;  %744 = vmatprep.mubr.msk.bf16.mxu0 %vm333_vm1, %v804_v15 }
  0x26   : > { %760 = vmatprep.mubr.msk.bf16.mxu1 %vm333_vm1, %v805_v16 }
  0x2c   : > { %745 = vmatmul.mubr.msk.bf16.gmra.mrb[12].mxu0 %vm333_vm1, %v806_v17 }
  0x2d   : > { %761 = vmatmul.mubr.msk.bf16.gmra.mrb[12].mxu1 %vm333_vm1, %v807_v18 }
  0xe7   : > { %v734_v20 = vpop.f32.mrb[0].mxu0 }
  0xe8   : > { %v429_v21 = vadd.f32 %v734_v20, %v917_v19  ;;  %v750_v22 = vpop.f32.mrb[0].mxu1  ;;  %v420_v23 = vpop.f32.mrb[1].mxu0 }
  0xe9   : > { %v493_v24 = vadd.f32 %v750_v22, %v917_v19  ;;  %v421_v25 = vadd.f32 %v917_v19, %v420_v23  ;;  %v484_v26 = vpop.f32.mrb[1].mxu1  ;;  %v735_v27 = vpop.f32.mrb[2].mxu0 }
  0xea   : > { %550 = vst.msk [vmem:[%s922_s26 + $0x10] sm:$0xff] %vm547_vm2, %v429_v21  ;;  %v485_v28 = vadd.f32 %v917_v19, %v484_v26  ;;  %v432_v29 = vadd.f32 %v735_v27, %v917_v19  ;;  %v751_v30 = vpop.f32.mrb[2].mxu1  ;;  %v423_v31 = vpop.f32.mrb[3].mxu0 }
  0xeb   : > { %566 = vst.msk [vmem:[%s922_s26 + $0x90] sm:$0xff] %vm547_vm2, %v493_v24  ;;  %548 = vst.msk [vmem:[%s922_s26] sm:$0xff] %vm547_vm2, %v421_v25  ;;  %v496_v32 = vadd.f32 %v751_v30, %v917_v19  ;;  %v424_v33 = vadd.f32 %v917_v19, %v423_v31  ;;  %v487_v34 = vpop.f32.mrb[3].mxu1 }
  0xec   : > { %564 = vst.msk [vmem:[%s922_s26 + $0x80] sm:$0xff] %vm547_vm2, %v485_v28  ;;  %551 = vst.msk [vmem:[%s922_s26 + $0x18] sm:$0xff] %vm547_vm2, %v432_v29  ;;  %v488_v35 = vadd.f32 %v917_v19, %v487_v34 }
  0xed   : > { %567 = vst.msk [vmem:[%s922_s26 + $0x98] sm:$0xff] %vm547_vm2, %v496_v32  ;;  %549 = vst.msk [vmem:[%s922_s26 + $0x8] sm:$0xff] %vm547_vm2, %v424_v33 }
  0xee   : > { %565 = vst.msk [vmem:[%s922_s26 + $0x88] sm:$0xff] %vm547_vm2, %v488_v35 }
  0xef   : > { %v738_v36 = vpop.f32.mrb[4].mxu0 }
  0xf0   : > { %v445_v37 = vadd.f32 %v738_v36, %v917_v19  ;;  %v754_v38 = vpop.f32.mrb[4].mxu1  ;;  %v436_v39 = vpop.f32.mrb[5].mxu0 }
  0xf1   : > { %v509_v40 = vadd.f32 %v754_v38, %v917_v19  ;;  %v437_v41 = vadd.f32 %v917_v19, %v436_v39  ;;  %v500_v42 = vpop.f32.mrb[5].mxu1  ;;  %v739_v43 = vpop.f32.mrb[6].mxu0 }
  0xf2   : > { %554 = vst.msk [vmem:[%s922_s26 + $0x30] sm:$0xff] %vm547_vm2, %v445_v37  ;;  %v501_v44 = vadd.f32 %v917_v19, %v500_v42  ;;  %v448_v45 = vadd.f32 %v739_v43, %v917_v19  ;;  %v755_v46 = vpop.f32.mrb[6].mxu1  ;;  %v439_v47 = vpop.f32.mrb[7].mxu0 }
  0xf3   : > { %570 = vst.msk [vmem:[%s922_s26 + $0xb0] sm:$0xff] %vm547_vm2, %v509_v40  ;;  %552 = vst.msk [vmem:[%s922_s26 + $0x20] sm:$0xff] %vm547_vm2, %v437_v41  ;;  %v512_v48 = vadd.f32 %v755_v46, %v917_v19  ;;  %v440_v49 = vadd.f32 %v917_v19, %v439_v47  ;;  %v503_v50 = vpop.f32.mrb[7].mxu1 }
  0xf4   : > { %568 = vst.msk [vmem:[%s922_s26 + $0xa0] sm:$0xff] %vm547_vm2, %v501_v44  ;;  %555 = vst.msk [vmem:[%s922_s26 + $0x38] sm:$0xff] %vm547_vm2, %v448_v45  ;;  %v504_v51 = vadd.f32 %v917_v19, %v503_v50 }
  0xf5   : > { %571 = vst.msk [vmem:[%s922_s26 + $0xb8] sm:$0xff] %vm547_vm2, %v512_v48  ;;  %553 = vst.msk [vmem:[%s922_s26 + $0x28] sm:$0xff] %vm547_vm2, %v440_v49 }
  0xf6   : > { %569 = vst.msk [vmem:[%s922_s26 + $0xa8] sm:$0xff] %vm547_vm2, %v504_v51 }
  0xf7   : > { %v742_v52 = vpop.f32.mrb[8].mxu0 }
  0xf8   : > { %v461_v53 = vadd.f32 %v742_v52, %v917_v19  ;;  %v758_v54 = vpop.f32.mrb[8].mxu1  ;;  %v452_v55 = vpop.f32.mrb[9].mxu0 }
  0xf9   : > { %v525_v56 = vadd.f32 %v758_v54, %v917_v19  ;;  %v453_v57 = vadd.f32 %v917_v19, %v452_v55  ;;  %v516_v58 = vpop.f32.mrb[9].mxu1  ;;  %v743_v59 = vpop.f32.mrb[10].mxu0 }
  0xfa   : > { %558 = vst.msk [vmem:[%s922_s26 + $0x50] sm:$0xff] %vm547_vm2, %v461_v53  ;;  %v517_v60 = vadd.f32 %v917_v19, %v516_v58  ;;  %v464_v61 = vadd.f32 %v743_v59, %v917_v19  ;;  %v759_v62 = vpop.f32.mrb[10].mxu1  ;;  %v455_v63 = vpop.f32.mrb[11].mxu0 }
  0xfb   : > { %574 = vst.msk [vmem:[%s922_s26 + $0xd0] sm:$0xff] %vm547_vm2, %v525_v56  ;;  %556 = vst.msk [vmem:[%s922_s26 + $0x40] sm:$0xff] %vm547_vm2, %v453_v57  ;;  %v528_v0 = vadd.f32 %v759_v62, %v917_v19  ;;  %v456_v1 = vadd.f32 %v917_v19, %v455_v63  ;;  %v519_v2 = vpop.f32.mrb[11].mxu1 }
  0xfc   : > { %572 = vst.msk [vmem:[%s922_s26 + $0xc0] sm:$0xff] %vm547_vm2, %v517_v60  ;;  %559 = vst.msk [vmem:[%s922_s26 + $0x58] sm:$0xff] %vm547_vm2, %v464_v61  ;;  %v520_v3 = vadd.f32 %v917_v19, %v519_v2 }
  0xfd   : > { %575 = vst.msk [vmem:[%s922_s26 + $0xd8] sm:$0xff] %vm547_vm2, %v528_v0  ;;  %557 = vst.msk [vmem:[%s922_s26 + $0x48] sm:$0xff] %vm547_vm2, %v456_v1 }
  0xfe   : > { %573 = vst.msk [vmem:[%s922_s26 + $0xc8] sm:$0xff] %vm547_vm2, %v520_v3 }
  0xff   : > { %v746_v4 = vpop.f32.mrb[12].mxu0 }
 0x100   : > { %v477_v5 = vadd.f32 %v746_v4, %v917_v19  ;;  %v762_v6 = vpop.f32.mrb[12].mxu1  ;;  %v468_v7 = vpop.f32.mrb[13].mxu0 }
 0x101   : > { %v541_v8 = vadd.f32 %v762_v6, %v917_v19  ;;  %v469_v9 = vadd.f32 %v917_v19, %v468_v7  ;;  %v532_v10 = vpop.f32.mrb[13].mxu1  ;;  %v747_v11 = vpop.f32.mrb[14].mxu0 }
 0x102   : > { %562 = vst.msk [vmem:[%s922_s26 + $0x70] sm:$0xff] %vm547_vm2, %v477_v5  ;;  %v533_v12 = vadd.f32 %v917_v19, %v532_v10  ;;  %v480_v13 = vadd.f32 %v747_v11, %v917_v19  ;;  %v763_v14 = vpop.f32.mrb[14].mxu1  ;;  %v471_v15 = vpop.f32.mrb[15].mxu0 }
 0x103   : > { %578 = vst.msk [vmem:[%s922_s26 + $0xf0] sm:$0xff] %vm547_vm2, %v541_v8  ;;  %560 = vst.msk [vmem:[%s922_s26 + $0x60] sm:$0xff] %vm547_vm2, %v469_v9  ;;  %v544_v16 = vadd.f32 %v763_v14, %v917_v19  ;;  %v472_v17 = vadd.f32 %v917_v19, %v471_v15  ;;  %v535_v18 = vpop.f32.mrb[15].mxu1 }
 0x104   : > { %576 = vst.msk [vmem:[%s922_s26 + $0xe0] sm:$0xff] %vm547_vm2, %v533_v12  ;;  %563 = vst.msk [vmem:[%s922_s26 + $0x78] sm:$0xff] %vm547_vm2, %v480_v13  ;;  %v536_v20 = vadd.f32 %v917_v19, %v535_v18 }
 0x105   : > { %579 = vst.msk [vmem:[%s922_s26 + $0xf8] sm:$0xff] %vm547_vm2, %v544_v16  ;;  %561 = vst.msk [vmem:[%s922_s26 + $0x68] sm:$0xff] %vm547_vm2, %v472_v17 }
 0x106   : > { %577 = vst.msk [vmem:[%s922_s26 + $0xe8] sm:$0xff] %vm547_vm2, %v536_v20 }
 0x107 PF: > { %s15_s16 = sadd.s32 1, %s830_s16   ;;  %s1033_s14 = smov %s826_s15 }
 0x108   : > { %p12_p5 = scmp.ge.s32.totalorder %s15_s16, 4   ;;  %s1034_s15 = smov %s1036_s2 }
 0x10a   :  { %14 = sbr.rel (!%p12_p5) target bundleno = 3 (0x3), region = 62 }

// kernel: generator_forward.68
= control target key start
LH: loop header
LB: loop body
LE: loop exit
PB: predicated region body
PF: predicated region fallthrough
CT: control target
= control target key end

     0   :  { %s1114_s12 = smov 0   ;;  %s1116_s13 = smov 0   ;;  %s1334_s0 = inlined_call_operand.vmem [shape: bf16[2,256,144], index: 0, kind: input, shape index: {}]   ;;  %s1335_s1 = inlined_call_operand.vmem [shape: bf16[144,8], index: 1, kind: input, shape index: {}]   ;;  %s1336_s2 = inlined_call_operand.vmem [shape: f32[1,8], index: 2, kind: input, shape index: {}]   ;;  %s1337_s3 = inlined_call_operand.vmem [shape: f32[2,256,8], index: 3, kind: output, shape index: {}]  }
   0x1   :  { %s1118_s14 = smov 0  }
   0x2 LB: > { %s25_s15 = sadd.s32 1, %s1087_s13  ;;  %p902_p0 = scmp.ge.s32.totalorder %s1091_s14, 1  ;;  %s1091_s14 = sphi %s1118_s14, %s13_s14   ;;  %s1087_s13 = sphi %s1116_s13, %s1339_s13   ;;  %s1083_s12 = sphi %s1114_s12, %s1338_s12  }
   0x3   : > { %p27_p1 = scmp.ge.s32.totalorder %s25_s15, 2  ;;  %p159_p2 = scmp.lt.s32.totalorder %s1091_s14, 3 }
   0x5   : > { %s1341_s15 = smov (%p27_p1, %s25_s15), 0  ;;  %p160_p3 = pnand %p902_p0, %p159_p2 }
   0x6   : > { %v1012_v0 = vld [vmem:[%s1335_s1] sm:$0xff] (!%p160_p3)   ;;  %v1093_v1 = vmov (!%p160_p3), 0   ;;  %p193_p4 = scmp.lt.s32.totalorder (!%p160_p3), %s1083_s12, 1  ;;  %v1013_v2 = vld [vmem:[%s1335_s1 + $0x8] sm:$0xff] (!%p160_p3)   ;;  %v1014_v3 = vld [vmem:[%s1335_s1 + $0x10] sm:$0xff] (!%p160_p3)   ;;  %vm469_vm0 = vcmask (!%p160_p3), 130048  }
   0x7   : > { %163 = sbr.rel (%p160_p3) target bundleno = 321 (0x141), region = 32  ;;  %518 = vmatprep.subr.bf16.mxu0 (!%p160_p3), %v1093_v1  ;;  %969 = vmatprep.subr.bf16.mxu1 (!%p160_p3), %v1093_v1  ;;  %v1015_v4 = vld [vmem:[%s1335_s1 + $0x18] sm:$0xff] (!%p160_p3)   ;;  %v1016_v7 = vld [vmem:[%s1335_s1 + $0x20] sm:$0xff] (!%p160_p3)   ;;  %v1017_v8 = vld [vmem:[%s1335_s1 + $0x28] sm:$0xff] (!%p160_p3)   ;;  %vm775_vm1 = vcmask (!%p160_p3), 64512  }
   0x8   : > { %519 = vmatpush1.bf16.msra.mxu0 (!%p160_p3), %v1012_v0  ;;  %978 = vmatpush1.bf16.msra.mxu1 (!%p160_p3), %v1012_v0  ;;  %v1018_v9 = vld [vmem:[%s1335_s1 + $0x30] sm:$0xff] (!%p160_p3)   ;;  %v1019_v10 = vld [vmem:[%s1335_s1 + $0x38] sm:$0xff] (!%p160_p3)   ;;  %v1020_v11 = vld [vmem:[%s1335_s1 + $0x40] sm:$0xff] (!%p160_p3)  }
   0x9   : > { %520 = vmatprep.subr.bf16.mxu0 (!%p160_p3), %v1093_v1  ;;  %970 = vmatprep.subr.bf16.mxu1 (!%p160_p3), %v1093_v1  ;;  %v1220_v42 = vld [vmem:[%s1336_s2] ss:$0 sm:$0xff] (!%p160_p3) }
   0xc   : > { %521 = vmatpush1.bf16.msra.mxu0 (!%p160_p3), %v1013_v2  ;;  %979 = vmatpush1.bf16.msra.mxu1 (!%p160_p3), %v1013_v2 }
   0xd   : > { %522 = vmatprep.subr.bf16.mxu0 (!%p160_p3), %v1093_v1  ;;  %971 = vmatprep.subr.bf16.mxu1 (!%p160_p3), %v1093_v1 }
   0xe   : > { %s1343_s12 = smov (!%p193_p4, %s1083_s12), 1 }
   0xf   : > { %s967_s20 = sshll.u32 %s1343_s12, 8 }
  0x10   : > { %s1149_s25 = scalar_lea.vmem %s1334_s0, %s967_s20  ;;  %523 = vmatpush1.bf16.msra.mxu0 %v1014_v3  ;;  %980 = vmatpush1.bf16.msra.mxu1 %v1014_v3  ;;  %s1229_s19 = scalar_lea.vmem %s1337_s3, %s967_s20 }
  0x11   : > { %v1023_v5 = vld [vmem:[%s1149_s25 + $0x4] ss:$8 sps:$4 sm:$0xff]   ;;  %524 = vmatprep.subr.bf16.mxu0 %v1093_v1  ;;  %972 = vmatprep.subr.bf16.mxu1 %v1093_v1  ;;  %v1021_v12 = vld [vmem:[%s1149_s25] ss:$8 sps:$4 sm:$0xff]   ;;  %v1027_v14 = vld [vmem:[%s1149_s25 + $0x14] ss:$8 sps:$4 sm:$0xff]  }
  0x12   : > { %v1026_v6 = vld [vmem:[%s1149_s25 + $0x84] ss:$8 sps:$4 sm:$0xff]   ;;  %949 = vmatprep.mubr.msk.bf16.mxu0 %vm469_vm0, %v1023_v5  ;;  %v1024_v13 = vld [vmem:[%s1149_s25 + $0x80] ss:$8 sps:$4 sm:$0xff]   ;;  %v1029_v15 = vld [vmem:[%s1149_s25 + $0x94] ss:$8 sps:$4 sm:$0xff]  }
  0x13   : > { %957 = vmatprep.mubr.msk.bf16.mxu1 %vm469_vm0, %v1026_v6  ;;  %v1031_v16 = vld [vmem:[%s1149_s25 + $0x10] ss:$8 sps:$4 sm:$0xff]   ;;  %v1033_v18 = vld [vmem:[%s1149_s25 + $0x24] ss:$8 sps:$4 sm:$0xff]   ;;  %v1037_v20 = vld [vmem:[%s1149_s25 + $0x20] ss:$8 sps:$4 sm:$0xff]  }
  0x14   : > { %525 = vmatpush1.bf16.msra.mxu0 %v1015_v4  ;;  %981 = vmatpush1.bf16.msra.mxu1 %v1015_v4  ;;  %v1032_v17 = vld [vmem:[%s1149_s25 + $0x90] ss:$8 sps:$4 sm:$0xff]   ;;  %v1035_v19 = vld [vmem:[%s1149_s25 + $0xa4] ss:$8 sps:$4 sm:$0xff]   ;;  %v1038_v21 = vld [vmem:[%s1149_s25 + $0xa0] ss:$8 sps:$4 sm:$0xff]  }
  0x15   : > { %526 = vmatprep.subr.bf16.mxu0 %v1093_v1  ;;  %973 = vmatprep.subr.bf16.mxu1 %v1093_v1  ;;  %v1039_v22 = vld [vmem:[%s1149_s25 + $0x34] ss:$8 sps:$4 sm:$0xff]   ;;  %v1043_v24 = vld [vmem:[%s1149_s25 + $0x30] ss:$8 sps:$4 sm:$0xff]   ;;  %v1045_v26 = vld [vmem:[%s1149_s25 + $0x44] ss:$8 sps:$4 sm:$0xff]  }
  0x16   : > { %v1041_v23 = vld [vmem:[%s1149_s25 + $0xb4] ss:$8 sps:$4 sm:$0xff]   ;;  %v1044_v25 = vld [vmem:[%s1149_s25 + $0xb0] ss:$8 sps:$4 sm:$0xff]   ;;  %v1047_v27 = vld [vmem:[%s1149_s25 + $0xc4] ss:$8 sps:$4 sm:$0xff]  }
  0x17   : > { %v1049_v28 = vld [vmem:[%s1149_s25 + $0x40] ss:$8 sps:$4 sm:$0xff]   ;;  %v1051_v30 = vld [vmem:[%s1149_s25 + $0x54] ss:$8 sps:$4 sm:$0xff]   ;;  %v1055_v32 = vld [vmem:[%s1149_s25 + $0x50] ss:$8 sps:$4 sm:$0xff]  }
  0x18   : > { %527 = vmatpush1.bf16.msra.mxu0 %v1016_v7  ;;  %982 = vmatpush1.bf16.msra.mxu1 %v1016_v7  ;;  %v1050_v29 = vld [vmem:[%s1149_s25 + $0xc0] ss:$8 sps:$4 sm:$0xff]   ;;  %v1053_v31 = vld [vmem:[%s1149_s25 + $0xd4] ss:$8 sps:$4 sm:$0xff]   ;;  %v1056_v33 = vld [vmem:[%s1149_s25 + $0xd0] ss:$8 sps:$4 sm:$0xff]  }
  0x19   : > { %528 = vmatprep.subr.bf16.mxu0 %v1093_v1  ;;  %974 = vmatprep.subr.bf16.mxu1 %v1093_v1  ;;  %v1057_v34 = vld [vmem:[%s1149_s25 + $0x64] ss:$8 sps:$4 sm:$0xff]   ;;  %v1061_v36 = vld [vmem:[%s1149_s25 + $0x60] ss:$8 sps:$4 sm:$0xff]   ;;  %v1063_v38 = vld [vmem:[%s1149_s25 + $0x74] ss:$8 sps:$4 sm:$0xff]  }
  0x1a   : > { %v1059_v35 = vld [vmem:[%s1149_s25 + $0xe4] ss:$8 sps:$4 sm:$0xff]   ;;  %v1062_v37 = vld [vmem:[%s1149_s25 + $0xe0] ss:$8 sps:$4 sm:$0xff]   ;;  %v1065_v39 = vld [vmem:[%s1149_s25 + $0xf4] ss:$8 sps:$4 sm:$0xff]  }
  0x1b   : > { %v1067_v40 = vld [vmem:[%s1149_s25 + $0x70] ss:$8 sps:$4 sm:$0xff]  }
  0x1c   : > { %529 = vmatpush1.bf16.msra.mxu0 %v1017_v8  ;;  %983 = vmatpush1.bf16.msra.mxu1 %v1017_v8  ;;  %v1068_v41 = vld [vmem:[%s1149_s25 + $0xf0] ss:$8 sps:$4 sm:$0xff]  }
  0x1d   : > { %530 = vmatprep.subr.bf16.mxu0 %v1093_v1  ;;  %975 = vmatprep.subr.bf16.mxu1 %v1093_v1 }
  0x20   : > { %531 = vmatpush1.bf16.msra.mxu0 %v1018_v9  ;;  %984 = vmatpush1.bf16.msra.mxu1 %v1018_v9 }
  0x21   : > { %532 = vmatprep.subr.bf16.mxu0 %v1093_v1  ;;  %976 = vmatprep.subr.bf16.mxu1 %v1093_v1 }
  0x24   : > { %533 = vmatpush1.bf16.msra.mxu0 %v1019_v10  ;;  %985 = vmatpush1.bf16.msra.mxu1 %v1019_v10 }
  0x25   : > { %534 = vmatprep.subr.bf16.mxu0 %v1093_v1  ;;  %977 = vmatprep.subr.bf16.mxu1 %v1093_v1 }
  0x28   : > { %535 = vmatpush1.bf16.msra.mxu0 %v1020_v11  ;;  %986 = vmatpush1.bf16.msra.mxu1 %v1020_v11 }
  0x2b   : > { %551 = vmatmul.mubr.bf16.vlgmr.msra.gmra.mrb[0].mxu0 %v1021_v12  ;;  %615 = vmatmul.mubr.bf16.vlgmr.msra.gmra.mrb[0].mxu1 %v1024_v13 }
  0x2c   : > { %950 = vmatprep.mubr.msk.bf16.mxu0 %vm469_vm0, %v1027_v14  ;;  %958 = vmatprep.mubr.msk.bf16.mxu1 %vm469_vm0, %v1029_v15 }
  0x33   : > { %559 = vmatmul.mubr.bf16.gmra.mrb[4].mxu0 %v1031_v16  ;;  %623 = vmatmul.mubr.bf16.gmra.mrb[4].mxu1 %v1032_v17 }
  0x34   : > { %951 = vmatprep.mubr.msk.bf16.mxu0 %vm469_vm0, %v1033_v18  ;;  %959 = vmatprep.mubr.msk.bf16.mxu1 %vm469_vm0, %v1035_v19 }
  0x3b   : > { %567 = vmatmul.mubr.bf16.gmra.mrb[8].mxu0 %v1037_v20  ;;  %631 = vmatmul.mubr.bf16.gmra.mrb[8].mxu1 %v1038_v21 }
  0x3c   : > { %952 = vmatprep.mubr.msk.bf16.mxu0 %vm469_vm0, %v1039_v22  ;;  %960 = vmatprep.mubr.msk.bf16.mxu1 %vm469_vm0, %v1041_v23 }
  0x43   : > { %575 = vmatmul.mubr.bf16.gmra.mrb[12].mxu0 %v1043_v24  ;;  %639 = vmatmul.mubr.bf16.gmra.mrb[12].mxu1 %v1044_v25 }
  0x44   : > { %953 = vmatprep.mubr.msk.bf16.mxu0 %vm469_vm0, %v1045_v26  ;;  %961 = vmatprep.mubr.msk.bf16.mxu1 %vm469_vm0, %v1047_v27 }
  0x4b   : > { %583 = vmatmul.mubr.bf16.gmra.mrb[16].mxu0 %v1049_v28  ;;  %647 = vmatmul.mubr.bf16.gmra.mrb[16].mxu1 %v1050_v29 }
  0x4c   : > { %954 = vmatprep.mubr.msk.bf16.mxu0 %vm469_vm0, %v1051_v30  ;;  %962 = vmatprep.mubr.msk.bf16.mxu1 %vm469_vm0, %v1053_v31 }
  0x53   : > { %591 = vmatmul.mubr.bf16.gmra.mrb[20].mxu0 %v1055_v32  ;;  %655 = vmatmul.mubr.bf16.gmra.mrb[20].mxu1 %v1056_v33 }
  0x54   : > { %955 = vmatprep.mubr.msk.bf16.mxu0 %vm469_vm0, %v1057_v34  ;;  %963 = vmatprep.mubr.msk.bf16.mxu1 %vm469_vm0, %v1059_v35 }
  0x5b   : > { %599 = vmatmul.mubr.bf16.gmra.mrb[24].mxu0 %v1061_v36  ;;  %663 = vmatmul.mubr.bf16.gmra.mrb[24].mxu1 %v1062_v37 }
  0x5c   : > { %956 = vmatprep.mubr.msk.bf16.mxu0 %vm469_vm0, %v1063_v38  ;;  %964 = vmatprep.mubr.msk.bf16.mxu1 %vm469_vm0, %v1065_v39 }
  0x63   : > { %607 = vmatmul.mubr.bf16.gmra.mrb[28].mxu0 %v1067_v40  ;;  %671 = vmatmul.mubr.bf16.gmra.mrb[28].mxu1 %v1068_v41 }
  0xfe   : > { %v552_v43 = vpop.f32.mrb[0].mxu0  ;;  %v616_v44 = vpop.f32.mrb[0].mxu1 }
  0xff   : > { %v553_v45 = vadd.f32 %v1220_v42, %v552_v43  ;;  %v617_v46 = vadd.f32 %v1220_v42, %v616_v44  ;;  %v554_v47 = vpop.f32.mrb[1].mxu0  ;;  %v618_v48 = vpop.f32.mrb[1].mxu1 }
 0x100   : > { %v555_v49 = vpop.f32.mrb[2].mxu0  ;;  %v619_v50 = vpop.f32.mrb[2].mxu1 }
 0x101   : > { %vm679_vm2 = vcmp.ge.f32.partialorder %v553_v45, 0.0  ;;  %v711_v51 = vmul.f32 0.2, %v553_v45  ;;  %vm695_vm3 = vcmp.ge.f32.partialorder %v617_v46, 0.0  ;;  %v727_v52 = vmul.f32 0.2, %v617_v46 }
 0x102   : > { %v556_v53 = vadd.f32 %v1220_v42, %v555_v49  ;;  %v620_v54 = vadd.f32 %v1220_v42, %v619_v50  ;;  %v557_v55 = vpop.f32.mrb[3].mxu0  ;;  %v621_v56 = vpop.f32.mrb[3].mxu1 }
 0x103   : > { %v743_v57 = vsel %vm679_vm2, %v553_v45, %v711_v51  ;;  %v759_v58 = vsel %vm695_vm3, %v617_v46, %v727_v52 }
 0x104   : > { %776 = vst.msk [vmem:[%s1229_s19] sm:$0xff] %vm775_vm1, %v743_v57  ;;  %792 = vst.msk [vmem:[%s1229_s19 + $0x80] sm:$0xff] %vm775_vm1, %v759_v58  ;;  %vm680_vm4 = vcmp.ge.f32.partialorder %v556_v53, 0.0  ;;  %v712_v59 = vmul.f32 0.2, %v556_v53  ;;  %vm696_vm5 = vcmp.ge.f32.partialorder %v620_v54, 0.0 }
 0x105   : > { %v728_v60 = vmul.f32 0.2, %v620_v54 }
 0x106   : > { %v744_v61 = vsel %vm680_vm4, %v556_v53, %v712_v59  ;;  %v560_v63 = vpop.f32.mrb[4].mxu0  ;;  %v624_v0 = vpop.f32.mrb[4].mxu1 }
 0x107   : > { %v760_v62 = vsel %vm696_vm5, %v620_v54, %v728_v60  ;;  %777 = vst.msk [vmem:[%s1229_s19 + $0x8] sm:$0xff] %vm775_vm1, %v744_v61  ;;  %v561_v1 = vadd.f32 %v1220_v42, %v560_v63  ;;  %v625_v2 = vadd.f32 %v1220_v42, %v624_v0  ;;  %v562_v3 = vpop.f32.mrb[5].mxu0  ;;  %v626_v4 = vpop.f32.mrb[5].mxu1 }
 0x108   : > { %793 = vst.msk [vmem:[%s1229_s19 + $0x88] sm:$0xff] %vm775_vm1, %v760_v62  ;;  %v563_v5 = vpop.f32.mrb[6].mxu0  ;;  %v627_v6 = vpop.f32.mrb[6].mxu1 }
 0x109   : > { %vm681_vm6 = vcmp.ge.f32.partialorder %v561_v1, 0.0  ;;  %v713_v7 = vmul.f32 0.2, %v561_v1  ;;  %vm697_vm7 = vcmp.ge.f32.partialorder %v625_v2, 0.0  ;;  %v729_v8 = vmul.f32 0.2, %v625_v2 }
 0x10a   : > { %v564_v9 = vadd.f32 %v1220_v42, %v563_v5  ;;  %v628_v10 = vadd.f32 %v1220_v42, %v627_v6  ;;  %v565_v11 = vpop.f32.mrb[7].mxu0  ;;  %v629_v12 = vpop.f32.mrb[7].mxu1 }
 0x10b   : > { %v745_v13 = vsel %vm681_vm6, %v561_v1, %v713_v7  ;;  %v761_v14 = vsel %vm697_vm7, %v625_v2, %v729_v8 }
 0x10c   : > { %778 = vst.msk [vmem:[%s1229_s19 + $0x10] sm:$0xff] %vm775_vm1, %v745_v13  ;;  %794 = vst.msk [vmem:[%s1229_s19 + $0x90] sm:$0xff] %vm775_vm1, %v761_v14  ;;  %vm682_vm8 = vcmp.ge.f32.partialorder %v564_v9, 0.0  ;;  %v714_v15 = vmul.f32 0.2, %v564_v9  ;;  %vm698_vm9 = vcmp.ge.f32.partialorder %v628_v10, 0.0 }
 0x10d   : > { %v730_v16 = vmul.f32 0.2, %v628_v10 }
 0x10e   : > { %v746_v17 = vsel %vm682_vm8, %v564_v9, %v714_v15  ;;  %v568_v19 = vpop.f32.mrb[8].mxu0  ;;  %v632_v20 = vpop.f32.mrb[8].mxu1 }
 0x10f   : > { %v762_v18 = vsel %vm698_vm9, %v628_v10, %v730_v16  ;;  %779 = vst.msk [vmem:[%s1229_s19 + $0x18] sm:$0xff] %vm775_vm1, %v746_v17  ;;  %v569_v21 = vadd.f32 %v1220_v42, %v568_v19  ;;  %v633_v22 = vadd.f32 %v1220_v42, %v632_v20  ;;  %v570_v23 = vpop.f32.mrb[9].mxu0  ;;  %v634_v24 = vpop.f32.mrb[9].mxu1 }
 0x110   : > { %795 = vst.msk [vmem:[%s1229_s19 + $0x98] sm:$0xff] %vm775_vm1, %v762_v18  ;;  %v571_v25 = vpop.f32.mrb[10].mxu0  ;;  %v635_v26 = vpop.f32.mrb[10].mxu1 }
 0x111   : > { %vm683_vm10 = vcmp.ge.f32.partialorder %v569_v21, 0.0  ;;  %v715_v27 = vmul.f32 0.2, %v569_v21  ;;  %vm699_vm11 = vcmp.ge.f32.partialorder %v633_v22, 0.0  ;;  %v731_v28 = vmul.f32 0.2, %v633_v22 }
 0x112   : > { %v572_v29 = vadd.f32 %v1220_v42, %v571_v25  ;;  %v636_v30 = vadd.f32 %v1220_v42, %v635_v26  ;;  %v573_v31 = vpop.f32.mrb[11].mxu0  ;;  %v637_v32 = vpop.f32.mrb[11].mxu1 }
 0x113   : > { %v747_v33 = vsel %vm683_vm10, %v569_v21, %v715_v27  ;;  %v763_v34 = vsel %vm699_vm11, %v633_v22, %v731_v28 }
 0x114   : > { %780 = vst.msk [vmem:[%s1229_s19 + $0x20] sm:$0xff] %vm775_vm1, %v747_v33  ;;  %796 = vst.msk [vmem:[%s1229_s19 + $0xa0] sm:$0xff] %vm775_vm1, %v763_v34  ;;  %vm684_vm12 = vcmp.ge.f32.partialorder %v572_v29, 0.0  ;;  %v716_v35 = vmul.f32 0.2, %v572_v29  ;;  %vm700_vm13 = vcmp.ge.f32.partialorder %v636_v30, 0.0 }
 0x115   : > { %v732_v36 = vmul.f32 0.2, %v636_v30 }
 0x116   : > { %v748_v37 = vsel %vm684_vm12, %v572_v29, %v716_v35  ;;  %v576_v39 = vpop.f32.mrb[12].mxu0  ;;  %v640_v40 = vpop.f32.mrb[12].mxu1 }
 0x117   : > { %v764_v38 = vsel %vm700_vm13, %v636_v30, %v732_v36  ;;  %781 = vst.msk [vmem:[%s1229_s19 + $0x28] sm:$0xff] %vm775_vm1, %v748_v37  ;;  %v577_v41 = vadd.f32 %v1220_v42, %v576_v39  ;;  %v641_v43 = vadd.f32 %v1220_v42, %v640_v40  ;;  %v578_v44 = vpop.f32.mrb[13].mxu0  ;;  %v642_v45 = vpop.f32.mrb[13].mxu1 }
 0x118   : > { %797 = vst.msk [vmem:[%s1229_s19 + $0xa8] sm:$0xff] %vm775_vm1, %v764_v38  ;;  %v579_v46 = vpop.f32.mrb[14].mxu0  ;;  %v643_v47 = vpop.f32.mrb[14].mxu1 }
 0x119   : > { %vm685_vm14 = vcmp.ge.f32.partialorder %v577_v41, 0.0  ;;  %v717_v48 = vmul.f32 0.2, %v577_v41  ;;  %vm701_vm15 = vcmp.ge.f32.partialorder %v641_v43, 0.0  ;;  %v733_v49 = vmul.f32 0.2, %v641_v43 }
 0x11a   : > { %v580_v50 = vadd.f32 %v1220_v42, %v579_v46  ;;  %v644_v51 = vadd.f32 %v1220_v42, %v643_v47  ;;  %v581_v52 = vpop.f32.mrb[15].mxu0  ;;  %v645_v53 = vpop.f32.mrb[15].mxu1 }
 0x11b   : > { %v749_v54 = vsel %vm685_vm14, %v577_v41, %v717_v48  ;;  %v765_v55 = vsel %vm701_vm15, %v641_v43, %v733_v49 }
 0x11c   : > { %782 = vst.msk [vmem:[%s1229_s19 + $0x30] sm:$0xff] %vm775_vm1, %v749_v54  ;;  %798 = vst.msk [vmem:[%s1229_s19 + $0xb0] sm:$0xff] %vm775_vm1, %v765_v55  ;;  %vm686_vm0 = vcmp.ge.f32.partialorder %v580_v50, 0.0  ;;  %v718_v56 = vmul.f32 0.2, %v580_v50  ;;  %vm702_vm2 = vcmp.ge.f32.partialorder %v644_v51, 0.0 }
 0x11d   : > { %v734_v57 = vmul.f32 0.2, %v644_v51 }
 0x11e   : > { %v750_v58 = vsel %vm686_vm0, %v580_v50, %v718_v56  ;;  %v584_v60 = vpop.f32.mrb[16].mxu0  ;;  %v648_v61 = vpop.f32.mrb[16].mxu1 }
 0x11f   : > { %v766_v59 = vsel %vm702_vm2, %v644_v51, %v734_v57  ;;  %783 = vst.msk [vmem:[%s1229_s19 + $0x38] sm:$0xff] %vm775_vm1, %v750_v58  ;;  %v585_v62 = vadd.f32 %v1220_v42, %v584_v60  ;;  %v649_v63 = vadd.f32 %v1220_v42, %v648_v61  ;;  %v586_v0 = vpop.f32.mrb[17].mxu0  ;;  %v650_v1 = vpop.f32.mrb[17].mxu1 }
 0x120   : > { %799 = vst.msk [vmem:[%s1229_s19 + $0xb8] sm:$0xff] %vm775_vm1, %v766_v59  ;;  %v587_v2 = vpop.f32.mrb[18].mxu0  ;;  %v651_v3 = vpop.f32.mrb[18].mxu1 }
 0x121   : > { %vm687_vm3 = vcmp.ge.f32.partialorder %v585_v62, 0.0  ;;  %v719_v4 = vmul.f32 0.2, %v585_v62  ;;  %vm703_vm4 = vcmp.ge.f32.partialorder %v649_v63, 0.0  ;;  %v735_v5 = vmul.f32 0.2, %v649_v63 }
 0x122   : > { %v588_v6 = vadd.f32 %v1220_v42, %v587_v2  ;;  %v652_v7 = vadd.f32 %v1220_v42, %v651_v3  ;;  %v589_v8 = vpop.f32.mrb[19].mxu0  ;;  %v653_v9 = vpop.f32.mrb[19].mxu1 }
 0x123   : > { %v751_v10 = vsel %vm687_vm3, %v585_v62, %v719_v4  ;;  %v767_v11 = vsel %vm703_vm4, %v649_v63, %v735_v5 }
 0x124   : > { %784 = vst.msk [vmem:[%s1229_s19 + $0x40] sm:$0xff] %vm775_vm1, %v751_v10  ;;  %800 = vst.msk [vmem:[%s1229_s19 + $0xc0] sm:$0xff] %vm775_vm1, %v767_v11  ;;  %vm688_vm5 = vcmp.ge.f32.partialorder %v588_v6, 0.0  ;;  %v720_v12 = vmul.f32 0.2, %v588_v6  ;;  %vm704_vm6 = vcmp.ge.f32.partialorder %v652_v7, 0.0 }
 0x125   : > { %v736_v13 = vmul.f32 0.2, %v652_v7 }
 0x126   : > { %v752_v14 = vsel %vm688_vm5, %v588_v6, %v720_v12  ;;  %v592_v16 = vpop.f32.mrb[20].mxu0  ;;  %v656_v17 = vpop.f32.mrb[20].mxu1 }
 0x127   : > { %v768_v15 = vsel %vm704_vm6, %v652_v7, %v736_v13  ;;  %785 = vst.msk [vmem:[%s1229_s19 + $0x48] sm:$0xff] %vm775_vm1, %v752_v14  ;;  %v593_v18 = vadd.f32 %v1220_v42, %v592_v16  ;;  %v657_v19 = vadd.f32 %v1220_v42, %v656_v17  ;;  %v594_v20 = vpop.f32.mrb[21].mxu0  ;;  %v658_v21 = vpop.f32.mrb[21].mxu1 }
 0x128   : > { %801 = vst.msk [vmem:[%s1229_s19 + $0xc8] sm:$0xff] %vm775_vm1, %v768_v15  ;;  %v595_v22 = vpop.f32.mrb[22].mxu0  ;;  %v659_v23 = vpop.f32.mrb[22].mxu1 }
 0x129   : > { %vm689_vm7 = vcmp.ge.f32.partialorder %v593_v18, 0.0  ;;  %v721_v24 = vmul.f32 0.2, %v593_v18  ;;  %vm705_vm8 = vcmp.ge.f32.partialorder %v657_v19, 0.0  ;;  %v737_v25 = vmul.f32 0.2, %v657_v19 }
 0x12a   : > { %v596_v26 = vadd.f32 %v1220_v42, %v595_v22  ;;  %v660_v27 = vadd.f32 %v1220_v42, %v659_v23  ;;  %v597_v28 = vpop.f32.mrb[23].mxu0  ;;  %v661_v29 = vpop.f32.mrb[23].mxu1 }
 0x12b   : > { %v753_v30 = vsel %vm689_vm7, %v593_v18, %v721_v24  ;;  %v769_v31 = vsel %vm705_vm8, %v657_v19, %v737_v25 }
 0x12c   : > { %786 = vst.msk [vmem:[%s1229_s19 + $0x50] sm:$0xff] %vm775_vm1, %v753_v30  ;;  %802 = vst.msk [vmem:[%s1229_s19 + $0xd0] sm:$0xff] %vm775_vm1, %v769_v31  ;;  %vm690_vm9 = vcmp.ge.f32.partialorder %v596_v26, 0.0  ;;  %v722_v32 = vmul.f32 0.2, %v596_v26  ;;  %vm706_vm10 = vcmp.ge.f32.partialorder %v660_v27, 0.0 }
 0x12d   : > { %v738_v33 = vmul.f32 0.2, %v660_v27 }
 0x12e   : > { %v754_v34 = vsel %vm690_vm9, %v596_v26, %v722_v32  ;;  %v600_v36 = vpop.f32.mrb[24].mxu0  ;;  %v664_v37 = vpop.f32.mrb[24].mxu1 }
 0x12f   : > { %v770_v35 = vsel %vm706_vm10, %v660_v27, %v738_v33  ;;  %787 = vst.msk [vmem:[%s1229_s19 + $0x58] sm:$0xff] %vm775_vm1, %v754_v34  ;;  %v601_v38 = vadd.f32 %v1220_v42, %v600_v36  ;;  %v665_v39 = vadd.f32 %v1220_v42, %v664_v37  ;;  %v602_v40 = vpop.f32.mrb[25].mxu0  ;;  %v666_v41 = vpop.f32.mrb[25].mxu1 }
 0x130   : > { %803 = vst.msk [vmem:[%s1229_s19 + $0xd8] sm:$0xff] %vm775_vm1, %v770_v35  ;;  %v603_v43 = vpop.f32.mrb[26].mxu0  ;;  %v667_v44 = vpop.f32.mrb[26].mxu1 }
 0x131   : > { %vm691_vm11 = vcmp.ge.f32.partialorder %v601_v38, 0.0  ;;  %v723_v45 = vmul.f32 0.2, %v601_v38  ;;  %vm707_vm12 = vcmp.ge.f32.partialorder %v665_v39, 0.0  ;;  %v739_v46 = vmul.f32 0.2, %v665_v39 }
 0x132   : > { %v604_v47 = vadd.f32 %v1220_v42, %v603_v43  ;;  %v668_v48 = vadd.f32 %v1220_v42, %v667_v44  ;;  %v605_v49 = vpop.f32.mrb[27].mxu0  ;;  %v669_v50 = vpop.f32.mrb[27].mxu1 }
 0x133   : > { %v755_v51 = vsel %vm691_vm11, %v601_v38, %v723_v45  ;;  %v771_v52 = vsel %vm707_vm12, %v665_v39, %v739_v46 }
 0x134   : > { %788 = vst.msk [vmem:[%s1229_s19 + $0x60] sm:$0xff] %vm775_vm1, %v755_v51  ;;  %804 = vst.msk [vmem:[%s1229_s19 + $0xe0] sm:$0xff] %vm775_vm1, %v771_v52  ;;  %vm692_vm13 = vcmp.ge.f32.partialorder %v604_v47, 0.0  ;;  %v724_v53 = vmul.f32 0.2, %v604_v47  ;;  %vm708_vm14 = vcmp.ge.f32.partialorder %v668_v48, 0.0 }
 0x135   : > { %v740_v54 = vmul.f32 0.2, %v668_v48 }
 0x136   : > { %v756_v55 = vsel %vm692_vm13, %v604_v47, %v724_v53  ;;  %v608_v57 = vpop.f32.mrb[28].mxu0  ;;  %v672_v58 = vpop.f32.mrb[28].mxu1 }
 0x137   : > { %v772_v56 = vsel %vm708_vm14, %v668_v48, %v740_v54  ;;  %789 = vst.msk [vmem:[%s1229_s19 + $0x68] sm:$0xff] %vm775_vm1, %v756_v55  ;;  %v609_v59 = vadd.f32 %v1220_v42, %v608_v57  ;;  %v673_v60 = vadd.f32 %v1220_v42, %v672_v58  ;;  %v610_v61 = vpop.f32.mrb[29].mxu0  ;;  %v674_v62 = vpop.f32.mrb[29].mxu1 }
 0x138   : > { %805 = vst.msk [vmem:[%s1229_s19 + $0xe8] sm:$0xff] %vm775_vm1, %v772_v56  ;;  %v611_v63 = vpop.f32.mrb[30].mxu0  ;;  %v675_v0 = vpop.f32.mrb[30].mxu1 }
 0x139   : > { %vm693_vm15 = vcmp.ge.f32.partialorder %v609_v59, 0.0  ;;  %v725_v1 = vmul.f32 0.2, %v609_v59  ;;  %vm709_vm0 = vcmp.ge.f32.partialorder %v673_v60, 0.0  ;;  %v741_v2 = vmul.f32 0.2, %v673_v60 }
 0x13a   : > { %v612_v3 = vadd.f32 %v1220_v42, %v611_v63  ;;  %v676_v4 = vadd.f32 %v1220_v42, %v675_v0  ;;  %v613_v5 = vpop.f32.mrb[31].mxu0  ;;  %v677_v6 = vpop.f32.mrb[31].mxu1 }
 0x13b   : > { %v757_v7 = vsel %vm693_vm15, %v609_v59, %v725_v1  ;;  %v773_v8 = vsel %vm709_vm0, %v673_v60, %v741_v2 }
 0x13c   : > { %790 = vst.msk [vmem:[%s1229_s19 + $0x70] sm:$0xff] %vm775_vm1, %v757_v7  ;;  %806 = vst.msk [vmem:[%s1229_s19 + $0xf0] sm:$0xff] %vm775_vm1, %v773_v8  ;;  %vm694_vm2 = vcmp.ge.f32.partialorder %v612_v3, 0.0  ;;  %v726_v9 = vmul.f32 0.2, %v612_v3  ;;  %vm710_vm3 = vcmp.ge.f32.partialorder %v676_v4, 0.0 }
 0x13d   : > { %v742_v10 = vmul.f32 0.2, %v676_v4 }
 0x13e   : > { %v758_v11 = vsel %vm694_vm2, %v612_v3, %v726_v9 }
 0x13f   : > { %v774_v12 = vsel %vm710_vm3, %v676_v4, %v742_v10  ;;  %791 = vst.msk [vmem:[%s1229_s19 + $0x78] sm:$0xff] %vm775_vm1, %v758_v11 }
 0x140   : > { %807 = vst.msk [vmem:[%s1229_s19 + $0xf8] sm:$0xff] %vm775_vm1, %v774_v12 }
 0x141 PF: > { %s13_s14 = sadd.s32 1, %s1091_s14   ;;  %s1338_s12 = smov %s1087_s13 }
 0x142   : > { %p10_p5 = scmp.ge.s32.totalorder %s13_s14, 4   ;;  %s1339_s13 = smov %s1341_s15 }
 0x144   :  { %12 = sbr.rel (!%p10_p5) target bundleno = 2 (0x2), region = 62 }

</bundles_post_ra>
